<compile_context>
chip_gen: v7x
topology: tpu7x:2x2x1
jax: 0.10.0
libtpu: 0.0.40
codegen_flags: <defaults>
</compile_context>

<pallas_src>
import jax
import jax.numpy as jnp
from jax import lax
from jax.experimental import pallas as pl
from jax.experimental.pallas import tpu as pltpu
import numpy as np

EPS = 1e-5  # nn.GroupNorm default eps


def _tpu_generation():
    """Best-effort TPU generation from device_kind (7 for v7x, 6 for v6e, 5 for v5e, ...)."""
    try:
        kind = jax.devices()[0].device_kind.lower()
    except Exception:
        return 6
    for g in ("7", "6", "5", "4", "3", "2"):
        if g in kind:
            return int(g)
    return 6


def _pick_hc(H, W, m_target):
    """Largest divisor hc of H with hc*W <= m_target (M rows per MXU chunk)."""
    best = 1
    for hc in range(1, H + 1):
        if H % hc == 0 and hc * W <= m_target:
            best = hc
    return best


def _padded_nbytes(shape, dtype):
    """VMEM footprint of an array, padding the trailing dims to (8, 128) tiles."""
    shape = tuple(int(d) for d in shape)
    if len(shape) >= 2:
        lead = 1
        for d in shape[:-2]:
            lead *= d
        n = lead * (-(-shape[-2] // 8) * 8) * (-(-shape[-1] // 128) * 128)
    else:
        n = -(-max(shape[0], 1) // 128) * 128
    return n * jnp.dtype(dtype).itemsize


def _make_kernel(BB, H, W, CX, F, K, LIN, HC):
    PAD = (K - 1) // 2
    C4 = 4 * F
    CCH = CX + F                 # channels of concat(h, x) per dx group
    ONES = K * CCH               # constant-1 lane (carries the conv bias)
    NHC = H // HC
    assert NHC * HC == H
    assert ONES < LIN

    def _sigmoid(x):
        # Exact rewrite sigmoid(x) = 0.5*(1 + tanh(x/2)); keeps gate transcendentals on the
        # EUP tanh path instead of a potential exp + full-precision divide lowering.
        return 0.5 * (1.0 + jnp.tanh(0.5 * x))

    def kernel(x_ref, w_ref, gamma_ref, beta_ref, grp_ref, grpt_ref,
               y_ref, cy_ref, p_ref, gates_ref):
        t = pl.program_id(1)

        @pl.when(t == 0)
        def _init():
            # hidden_state is None in the reference forward -> zero initial (h, c).  Zeroing
            # the packed buffer also keeps the conv row halo, the unwritten boundary columns
            # of the shifted groups and the spare lanes at zero forever.  The cell state is
            # carried in the cy output block (index_map constant in t -> VMEM resident), so
            # it is initialised here too.
            p_ref[...] = jnp.zeros_like(p_ref)
            # Constant-1 lane on the rows read by the centre (dy == PAD) tap: the conv bias
            # lives in that row of the dy == PAD merged weight, so it folds into the MXU
            # accumulation for free.
            p_ref[:, PAD:PAD + H, :, ONES:ONES + 1] = jnp.ones((BB, H, W, 1), jnp.float32)
            cy_ref[...] = jnp.zeros_like(cy_ref)

        gamma = gamma_ref[...].astype(jnp.float32)    # (1, C4)
        beta = beta_ref[...].astype(jnp.float32)      # (1, C4)

        # Scatter x_t into the x lanes of all K dx groups (write-time im2col along W):
        # lane group g at column w holds concat(h, x) at column w + g - PAD; boundary
        # columns of the shifted groups are never written and stay zero from init.
        xv = x_ref[...].astype(jnp.float32)           # (BB, H, W, CX)
        for g in range(K):
            s = g - PAD
            lo_x = g * CCH + F
            if s <= 0:
                p_ref[:, PAD:PAD + H, -s:W, lo_x:lo_x + CX] = xv[:, :, 0:W + s, :]
            else:
                p_ref[:, PAD:PAD + H, 0:W - s, lo_x:lo_x + CX] = xv[:, :, s:W, :]

        for b in range(BB):
            # ---- phase 1: conv(concat(x, h)) + bias as K dy-shifted full-depth bf16 MXU
            #      matmuls per M-row chunk (dx taps + bias are packed into the 128
            #      contraction lanes); GroupNorm channel sums accumulated on the fly from
            #      the register-resident f32 accumulator.
            ch_sum = jnp.zeros((1, C4), jnp.float32)
            ch_sq = jnp.zeros((1, C4), jnp.float32)
            for hc in range(NHC):
                h0 = hc * HC
                acc = None
                for dy in range(K):
                    lhs = p_ref[b, dy + h0:dy + h0 + HC, :, :]        # tile-aligned slice
                    lhs = lhs.astype(jnp.bfloat16).reshape(HC * W, LIN)
                    d = jnp.dot(lhs, w_ref[dy], preferred_element_type=jnp.float32)
                    acc = d if acc is None else acc + d
                gates_ref[b, h0:h0 + HC] = acc.reshape(HC, W, C4)
                ch_sum = ch_sum + jnp.sum(acc, axis=0, keepdims=True)
                ch_sq = ch_sq + jnp.sum(acc * acc, axis=0, keepdims=True)

            # ---- GroupNorm stats per (sample, group); grp already folds in 1/N.
            g_mean = jnp.dot(ch_sum, grp_ref[...], preferred_element_type=jnp.float32)
            g_sqm = jnp.dot(ch_sq, grp_ref[...], preferred_element_type=jnp.float32)
            # TODO(synk): single-pass E[x^2]-E[x]^2 variance (clamped >= 0); switch to a
            # centered second pass if tighter-than-1e-2 agreement is ever required.
            g_var = jnp.maximum(g_sqm - g_mean * g_mean, 0.0)
            g_rstd = lax.rsqrt(g_var + EPS)
            mean_c = jnp.dot(g_mean, grpt_ref[...], preferred_element_type=jnp.float32)
            rstd_c = jnp.dot(g_rstd, grpt_ref[...], preferred_element_type=jnp.float32)
            scale = rstd_c * gamma                    # folded GN affine: one FMA per element
            shift = beta - mean_c * scale
            scale_c = scale.reshape(1, 1, C4)
            shift_c = shift.reshape(1, 1, C4)

            # ---- phase 2: GN affine + gate nonlinearities + LSTM state update (f32).
            for hc in range(NHC):
                h0 = hc * HC
                gn = gates_ref[b, h0:h0 + HC] * scale_c + shift_c     # (HC, W, C4)
                i_g = _sigmoid(gn[:, :, 0 * F:1 * F])
                f_g = _sigmoid(gn[:, :, 1 * F:2 * F])
                c_g = jnp.tanh(gn[:, :, 2 * F:3 * F])
                o_g = _sigmoid(gn[:, :, 3 * F:4 * F])
                cx = cy_ref[b, h0:h0 + HC]            # c_{t-1}: carried in the output block
                cy = f_g * cx + i_g * c_g
                hy = o_g * jnp.tanh(cy)
                cy_ref[b, h0:h0 + HC] = cy
                y_ref[b, h0:h0 + HC] = hy
                # Recurrent feed: scatter h_t into the h lanes of all K dx groups so the
                # next step's conv reads it with tile-aligned dy row offsets only.
                for g in range(K):
                    s = g - PAD
                    lo_h = g * CCH
                    if s <= 0:
                        p_ref[b, PAD + h0:PAD + h0 + HC, -s:W, lo_h:lo_h + F] = \
                            hy[:, 0:W + s, :]
                    else:
                        p_ref[b, PAD + h0:PAD + h0 + HC, 0:W - s, lo_h:lo_h + F] = \
                            hy[:, s:W, :]

    return kernel


def clstm_cell_forward(inputs_nhwc, conv_w, conv_b, gn_gamma, gn_beta, *,
                       shape, input_channels, filter_size, num_features, seq_len,
                       batch_blocks=None):
    """Pallas ConvLSTM forward (channels-last).

    inputs_nhwc: (seq_len, B, H, W, input_channels)
    conv_w:      (4F, input_channels + F, k, k)  (PyTorch OIHW; in-channels = concat(x, h))
    conv_b / gn_gamma / gn_beta: (4F,)
    Returns (outputs (seq_len, B, H, W, F), (hy, cy)) in channels-last layout.
    """
    H, W = shape
    CX, F, K = input_channels, num_features, filter_size
    C4 = 4 * F
    assert C4 % 32 == 0
    G = C4 // 32
    S, B = inputs_nhwc.shape[0], inputs_nhwc.shape[1]
    assert S == seq_len
    assert W % 8 == 0, "packed layout assumes W is a multiple of 8 (sublane tile)"
    PAD = (K - 1) // 2
    HP = H + 2 * PAD                               # only the rows carry a conv halo
    CCH = CX + F
    ONES = K * CCH                                 # constant-1 (bias) lane index
    LIN = ((ONES + 1 + 127) // 128) * 128          # packed contraction dim, lane-padded
    assert conv_w.shape == (C4, CCH, K, K)

    gen = _tpu_generation()
    if batch_blocks is None:
        # v7x has 2 TensorCores per chip; v5e/v6e have 1 -> extra grid steps buy nothing.
        batch_blocks = 2 if (gen >= 7 and B >= 2 and B % 2 == 0) else 1
    assert B % batch_blocks == 0
    BB = B // batch_blocks

    # M-row chunk for the MXU: ~256 rows on v6e/v7x (2x256^2 MXUs), ~128 on v5e (4x128^2).
    m_target = 256 if gen >= 6 else 128
    HC = _pick_hc(H, W, m_target)

    x = inputs_nhwc.astype(jnp.float32)

    # Packed conv weight: (K, LIN, 4F) bf16.  For dy fixed, lane group g holds the (dy, dx=g)
    # tap with rows ordered [h (F rows), x (CX rows)]; the bias sits in the constant-1 lane
    # row of the dy == PAD tap.  Remaining rows are zero.
    w_kkio = jnp.transpose(conv_w, (2, 3, 1, 0)).astype(jnp.float32)   # (K, K, CX+F, C4)
    w_pack = jnp.zeros((K, LIN, C4), jnp.float32)
    for g in range(K):
        lo = g * CCH
        w_pack = w_pack.at[:, lo:lo + F, :].set(w_kkio[:, g, CX:CX + F, :])       # h rows
        w_pack = w_pack.at[:, lo + F:lo + F + CX, :].set(w_kkio[:, g, 0:CX, :])   # x rows
    w_pack = w_pack.at[PAD, ONES, :].set(conv_b)
    w_pack = w_pack.astype(jnp.bfloat16)

    gamma = gn_gamma.reshape(1, C4).astype(jnp.float32)
    beta = gn_beta.reshape(1, C4).astype(jnp.float32)

    # One-hot channel -> group projection (1/N folded in) and its transpose for GN stats.
    n_grp = H * W * 32
    grp = (jnp.arange(C4)[:, None] // 32 ==
           jnp.arange(G)[None, :]).astype(jnp.float32) / n_grp
    grpt = (jnp.arange(G)[:, None] ==
            jnp.arange(C4)[None, :] // 32).astype(jnp.float32)

    kernel = _make_kernel(BB, H, W, CX, F, K, LIN, HC)

    # VMEM budget derived from the actual footprint (scratch + double-buffered blocks +
    # resident cy block) with generous headroom, instead of a fixed 32 MiB.
    scratch_bytes = (_padded_nbytes((BB, HP, W, LIN), jnp.float32)
                     + _padded_nbytes((BB, H, W, C4), jnp.float32))
    blk_bytes = (_padded_nbytes((BB, H, W, CX), jnp.float32)       # x block
                 + _padded_nbytes((K, LIN, C4), jnp.bfloat16)      # packed weights
                 + 2 * _padded_nbytes((1, C4), jnp.float32)        # gamma, beta
                 + _padded_nbytes((C4, G), jnp.float32)
                 + _padded_nbytes((G, C4), jnp.float32)
                 + _padded_nbytes((BB, H, W, F), jnp.float32))     # y block
    resident_bytes = 2 * _padded_nbytes((BB, H, W, F), jnp.float32)  # cy (double-buffered)
    vmem_need = scratch_bytes + 2 * blk_bytes + resident_bytes + (6 << 20)
    vmem_limit = int(min(max(vmem_need, 12 << 20), 64 << 20))

    grid_spec = pltpu.PrefetchScalarGridSpec(
        num_scalar_prefetch=0,
        grid=(batch_blocks, seq_len),
        in_specs=[
            pl.BlockSpec((None, BB, H, W, CX), lambda b, t: (t, b, 0, 0, 0)),
            pl.BlockSpec((K, LIN, C4), lambda b, t: (0, 0, 0)),
            pl.BlockSpec((1, C4), lambda b, t: (0, 0)),
            pl.BlockSpec((1, C4), lambda b, t: (0, 0)),
            pl.BlockSpec((C4, G), lambda b, t: (0, 0)),
            pl.BlockSpec((G, C4), lambda b, t: (0, 0)),
        ],
        out_specs=[
            pl.BlockSpec((None, BB, H, W, F), lambda b, t: (t, b, 0, 0, 0)),
            # constant index along t -> VMEM-resident across the recurrence; doubles as the
            # carried cell state (replaces the old cx scratch + duplicate store).
            pl.BlockSpec((BB, H, W, F), lambda b, t: (b, 0, 0, 0)),
        ],
        scratch_shapes=[
            pltpu.VMEM((BB, HP, W, LIN), jnp.float32),   # packed concat(h, x) state buffer
            pltpu.VMEM((BB, H, W, C4), jnp.float32),     # conv gates (pre-GroupNorm)
        ],
    )

    y, cy = pl.pallas_call(
        kernel,
        out_shape=(
            jax.ShapeDtypeStruct((seq_len, B, H, W, F), jnp.float32),
            jax.ShapeDtypeStruct((B, H, W, F), jnp.float32),
        ),
        grid_spec=grid_spec,
        compiler_params=pltpu.CompilerParams(
            dimension_semantics=("parallel", "arbitrary"),   # batch parallel, time recurrent
            vmem_limit_bytes=vmem_limit,
        ),
    )(x, w_pack, gamma, beta, grp, grpt)

    hy = y[-1]
    return y, (hy, cy)


def clstm_cell_reference(inputs_nchw, conv_w, conv_b, gn_gamma, gn_beta,
                         *, shape, input_channels, filter_size, num_features,
                         seq_len):
    """Pure-JAX reference mirroring the PyTorch module (NCHW)."""
    H, W = shape
    F = num_features
    C4 = 4 * F
    P = (filter_size - 1) // 2
    B = inputs_nchw.shape[1]
    G = C4 // 32

    hx = jnp.zeros((B, F, H, W), jnp.float32)
    cx = jnp.zeros((B, F, H, W), jnp.float32)
    outs = []
    for t in range(seq_len):
        x_t = inputs_nchw[t]
        combined = jnp.concatenate([x_t, hx], axis=1)
        gates = lax.conv_general_dilated(
            combined, conv_w, window_strides=(1, 1),
            padding=[(P, P), (P, P)],
            dimension_numbers=("NCHW", "OIHW", "NCHW"),
            precision=lax.Precision.HIGHEST)
        gates = gates + conv_b[None, :, None, None]
        g5 = gates.reshape(B, G, C4 // G, H, W)
        mu = g5.mean(axis=(2, 3, 4), keepdims=True)
        var = ((g5 - mu) ** 2).mean(axis=(2, 3, 4), keepdims=True)
        gn = ((g5 - mu) / jnp.sqrt(var + EPS)).reshape(B, C4, H, W)
        gn = gn * gn_gamma[None, :, None, None] + gn_beta[None, :, None, None]
        i, f, c, o = jnp.split(gn, 4, axis=1)
        i = jax.nn.sigmoid(i)
        f = jax.nn.sigmoid(f)
        c = jnp.tanh(c)
        o = jax.nn.sigmoid(o)
        cx = f * cx + i * c
        hx = o * jnp.tanh(cx)
        outs.append(hx)
    return jnp.stack(outs), (hx, cx)


if __name__ == "__main__":
    # Small shapes consistent with the module (4*num_features must be divisible by 32).
    shape = (16, 16)
    input_channels = 4
    filter_size = 3
    num_features = 32
    seq_len = 8
    batch = 2
    H, W = shape
    C4 = 4 * num_features
    Cin = input_channels + num_features

    key = jax.random.PRNGKey(0)
    k_x, k_w, k_b, k_g, k_be = jax.random.split(key, 5)
    # Channels-last inputs (the kernel's native layout; avoids hot-path transposes).
    x_nhwc = jax.random.normal(
        k_x, (seq_len, batch, H, W, input_channels), jnp.float32)
    conv_w = 0.1 * jax.random.normal(
        k_w, (C4, Cin, filter_size, filter_size), jnp.float32)
    conv_b = 0.1 * jax.random.normal(k_b, (C4,), jnp.float32)
    gn_gamma = 1.0 + 0.1 * jax.random.normal(k_g, (C4,), jnp.float32)
    gn_beta = 0.1 * jax.random.normal(k_be, (C4,), jnp.float32)

    kwargs = dict(shape=shape, input_channels=input_channels,
                  filter_size=filter_size, num_features=num_features,
                  seq_len=seq_len)

    y, (hy, cy) = clstm_cell_forward(x_nhwc, conv_w, conv_b, gn_gamma, gn_beta, **kwargs)
    jax.block_until_ready((y, hy, cy))

    # Reference in PyTorch's NCHW layout (test-only transposes, not in the kernel path).
    x_nchw = jnp.transpose(x_nhwc, (0, 1, 4, 2, 3))
    y_ref, (hy_ref, cy_ref) = clstm_cell_reference(
        x_nchw, conv_w, conv_b, gn_gamma, gn_beta, **kwargs)
    y_ref = jnp.transpose(y_ref, (0, 1, 3, 4, 2))
    hy_ref = jnp.transpose(hy_ref, (0, 2, 3, 1))
    cy_ref = jnp.transpose(cy_ref, (0, 2, 3, 1))

    assert y.shape == (seq_len, batch, H, W, num_features)
    # bf16 MXU operands vs the f32 HIGHEST-precision reference -> slightly looser tolerance.
    np.testing.assert_allclose(np.asarray(y), np.asarray(y_ref), atol=3e-2, rtol=3e-2)
    np.testing.assert_allclose(np.asarray(hy), np.asarray(hy_ref), atol=3e-2, rtol=3e-2)
    np.testing.assert_allclose(np.asarray(cy), np.asarray(cy_ref), atol=3e-2, rtol=3e-2)
    print("KERNEL_OK")
</pallas_src>

<mosaic_0001>
module attributes {stable_mosaic.version = 11 : i64} {
  func.func @kernel(%arg0: i32, %arg1: i32, %arg2: memref<1x2x16x16x4xf32, #tpu.memory_space<vmem>>, %arg3: memref<3x128x128xbf16, #tpu.memory_space<vmem>>, %arg4: memref<1x128xf32, #tpu.memory_space<vmem>>, %arg5: memref<1x128xf32, #tpu.memory_space<vmem>>, %arg6: memref<128x4xf32, #tpu.memory_space<vmem>>, %arg7: memref<4x128xf32, #tpu.memory_space<vmem>>, %arg8: memref<1x2x16x16x32xf32, #tpu.memory_space<vmem>>, %arg9: memref<2x16x16x32xf32, #tpu.memory_space<vmem>>, %arg10: memref<2x18x16x128xf32, #tpu.memory_space<vmem>>, %arg11: memref<2x16x16x128xf32, #tpu.memory_space<vmem>>) attributes {dimension_semantics = [#tpu.dimension_semantics<parallel>, #tpu.dimension_semantics<arbitrary>], iteration_bounds = array<i64: 1, 8>, scalar_prefetch = 0 : i64, scratch_operands = 2 : i64, tpu.core_type = #tpu.core_type<tc>, window_params = [{transform_indices = @transform_0, window_bounds = array<i64: 1, 2, 16, 16, 4>}, {pipeline_mode = #tpu.pipeline_mode<synchronous>, transform_indices = @transform_1, window_bounds = array<i64: 3, 128, 128>}, {pipeline_mode = #tpu.pipeline_mode<synchronous>, transform_indices = @transform_2, window_bounds = array<i64: 1, 128>}, {pipeline_mode = #tpu.pipeline_mode<synchronous>, transform_indices = @transform_3, window_bounds = array<i64: 1, 128>}, {pipeline_mode = #tpu.pipeline_mode<synchronous>, transform_indices = @transform_4, window_bounds = array<i64: 128, 4>}, {pipeline_mode = #tpu.pipeline_mode<synchronous>, transform_indices = @transform_5, window_bounds = array<i64: 4, 128>}, {transform_indices = @transform_6, window_bounds = array<i64: 1, 2, 16, 16, 32>}, {transform_indices = @transform_7, window_bounds = array<i64: 2, 16, 16, 32>}]} {
    %c0_i32 = arith.constant 0 : i32
    %0 = arith.cmpi eq, %arg1, %c0_i32 : i32
    %1 = arith.extui %0 : i1 to i32
    %c0_i32_0 = arith.constant 0 : i32
    %2 = arith.cmpi ne, %1, %c0_i32_0 : i32
    scf.if %2 {
      %cst_181 = arith.constant 0.000000e+00 : f32
      %236 = vector.broadcast %cst_181 : f32 to vector<2x18x16x128xf32>
      %c0_182 = arith.constant 0 : index
      %c0_183 = arith.constant 0 : index
      %c0_184 = arith.constant 0 : index
      %c0_185 = arith.constant 0 : index
      %237 = vector.load %arg10[%c0_182, %c0_183, %c0_184, %c0_185] : memref<2x18x16x128xf32, #tpu.memory_space<vmem>>, vector<2x18x16x128xf32>
      tpu.vector_store %arg10[%c0_182, %c0_183, %c0_184, %c0_185], %236 {strides = array<i32>} : memref<2x18x16x128xf32, #tpu.memory_space<vmem>>, vector<2x18x16x128xf32>,
      %cst_186 = arith.constant 1.000000e+00 : f32
      %238 = vector.broadcast %cst_186 : f32 to vector<2x16x16x1xf32>
      %c0_187 = arith.constant 0 : index
      %c1_188 = arith.constant 1 : index
      %c0_189 = arith.constant 0 : index
      %c108 = arith.constant 108 : index
      %239 = vector.load %arg10[%c0_187, %c1_188, %c0_189, %c108] : memref<2x18x16x128xf32, #tpu.memory_space<vmem>>, vector<2x16x16x1xf32>
      tpu.vector_store %arg10[%c0_187, %c1_188, %c0_189, %c108], %238 {strides = array<i32>} : memref<2x18x16x128xf32, #tpu.memory_space<vmem>>, vector<2x16x16x1xf32>,
      %cst_190 = arith.constant 0.000000e+00 : f32
      %240 = vector.broadcast %cst_190 : f32 to vector<2x16x16x32xf32>
      %c0_191 = arith.constant 0 : index
      %c0_192 = arith.constant 0 : index
      %c0_193 = arith.constant 0 : index
      %c0_194 = arith.constant 0 : index
      %241 = vector.load %arg9[%c0_191, %c0_192, %c0_193, %c0_194] : memref<2x16x16x32xf32, #tpu.memory_space<vmem>>, vector<2x16x16x32xf32>
      tpu.vector_store %arg9[%c0_191, %c0_192, %c0_193, %c0_194], %240 {strides = array<i32>} : memref<2x16x16x32xf32, #tpu.memory_space<vmem>>, vector<2x16x16x32xf32>,
    } else {
    }
    %c0 = arith.constant 0 : index
    %c0_1 = arith.constant 0 : index
    %3 = vector.load %arg4[%c0, %c0_1] : memref<1x128xf32, #tpu.memory_space<vmem>>, vector<1x128xf32>
    %c0_2 = arith.constant 0 : index
    %c0_3 = arith.constant 0 : index
    %4 = vector.load %arg5[%c0_2, %c0_3] : memref<1x128xf32, #tpu.memory_space<vmem>>, vector<1x128xf32>
    %c0_4 = arith.constant 0 : index
    %c0_5 = arith.constant 0 : index
    %c0_6 = arith.constant 0 : index
    %c0_7 = arith.constant 0 : index
    %c0_8 = arith.constant 0 : index
    %5 = vector.load %arg2[%c0_4, %c0_5, %c0_6, %c0_7, %c0_8] : memref<1x2x16x16x4xf32, #tpu.memory_space<vmem>>, vector<1x2x16x16x4xf32>
    %6 = vector.shape_cast %5 : vector<1x2x16x16x4xf32> to vector<2x16x16x4xf32>
    %7 = vector.extract_strided_slice %6 {offsets = [0, 0, 0, 0], sizes = [2, 16, 15, 4], strides = [1, 1, 1, 1]} : vector<2x16x16x4xf32> to vector<2x16x15x4xf32>
    %c0_9 = arith.constant 0 : index
    %c1 = arith.constant 1 : index
    %c1_10 = arith.constant 1 : index
    %c32 = arith.constant 32 : index
    %8 = vector.load %arg10[%c0_9, %c1, %c1_10, %c32] : memref<2x18x16x128xf32, #tpu.memory_space<vmem>>, vector<2x16x15x4xf32>
    tpu.vector_store %arg10[%c0_9, %c1, %c1_10, %c32], %7 {strides = array<i32>} : memref<2x18x16x128xf32, #tpu.memory_space<vmem>>, vector<2x16x15x4xf32>,
    %c0_11 = arith.constant 0 : index
    %c1_12 = arith.constant 1 : index
    %c0_13 = arith.constant 0 : index
    %c68 = arith.constant 68 : index
    %9 = vector.load %arg10[%c0_11, %c1_12, %c0_13, %c68] : memref<2x18x16x128xf32, #tpu.memory_space<vmem>>, vector<2x16x16x4xf32>
    tpu.vector_store %arg10[%c0_11, %c1_12, %c0_13, %c68], %6 {strides = array<i32>} : memref<2x18x16x128xf32, #tpu.memory_space<vmem>>, vector<2x16x16x4xf32>,
    %10 = vector.extract_strided_slice %6 {offsets = [0, 0, 1, 0], sizes = [2, 16, 15, 4], strides = [1, 1, 1, 1]} : vector<2x16x16x4xf32> to vector<2x16x15x4xf32>
    %c0_14 = arith.constant 0 : index
    %c1_15 = arith.constant 1 : index
    %c0_16 = arith.constant 0 : index
    %c104 = arith.constant 104 : index
    %11 = vector.load %arg10[%c0_14, %c1_15, %c0_16, %c104] : memref<2x18x16x128xf32, #tpu.memory_space<vmem>>, vector<2x16x15x4xf32>
    tpu.vector_store %arg10[%c0_14, %c1_15, %c0_16, %c104], %10 {strides = array<i32>} : memref<2x18x16x128xf32, #tpu.memory_space<vmem>>, vector<2x16x15x4xf32>,
    %cst = arith.constant 0.000000e+00 : f32
    %12 = vector.broadcast %cst : f32 to vector<1x128xf32>
    %cst_17 = arith.constant 0.000000e+00 : f32
    %13 = vector.broadcast %cst_17 : f32 to vector<1x128xf32>
    %c0_18 = arith.constant 0 : index
    %c0_19 = arith.constant 0 : index
    %c0_20 = arith.constant 0 : index
    %c0_21 = arith.constant 0 : index
    %14 = vector.load %arg10[%c0_18, %c0_19, %c0_20, %c0_21] : memref<2x18x16x128xf32, #tpu.memory_space<vmem>>, vector<1x16x16x128xf32>
    %15 = vector.shape_cast %14 : vector<1x16x16x128xf32> to vector<16x16x128xf32>
    %16 = arith.truncf %15 : vector<16x16x128xf32> to vector<16x16x128xbf16>
    %17 = vector.shape_cast %16 : vector<16x16x128xbf16> to vector<256x128xbf16>
    %c0_22 = arith.constant 0 : index
    %c0_23 = arith.constant 0 : index
    %c0_24 = arith.constant 0 : index
    %18 = vector.load %arg3[%c0_22, %c0_23, %c0_24] : memref<3x128x128xbf16, #tpu.memory_space<vmem>>, vector<1x128x128xbf16>
    %19 = vector.shape_cast %18 : vector<1x128x128xbf16> to vector<128x128xbf16>
    %cst_25 = arith.constant dense<0.000000e+00> : vector<256x128xf32>
    %20 = tpu.matmul %17, %19, %cst_25 {dimension_numbers = #tpu.dot_dimension_numbers<[1], [0], [0], [1], [0, 0, 1, 1], [], []>} : vector<256x128xbf16>, vector<128x128xbf16>, vector<256x128xf32> -> vector<256x128xf32>
    %c0_26 = arith.constant 0 : index
    %c1_27 = arith.constant 1 : index
    %c0_28 = arith.constant 0 : index
    %c0_29 = arith.constant 0 : index
    %21 = vector.load %arg10[%c0_26, %c1_27, %c0_28, %c0_29] : memref<2x18x16x128xf32, #tpu.memory_space<vmem>>, vector<1x16x16x128xf32>
    %22 = vector.shape_cast %21 : vector<1x16x16x128xf32> to vector<16x16x128xf32>
    %23 = arith.truncf %22 : vector<16x16x128xf32> to vector<16x16x128xbf16>
    %24 = vector.shape_cast %23 : vector<16x16x128xbf16> to vector<256x128xbf16>
    %c1_30 = arith.constant 1 : index
    %c0_31 = arith.constant 0 : index
    %c0_32 = arith.constant 0 : index
    %25 = vector.load %arg3[%c1_30, %c0_31, %c0_32] : memref<3x128x128xbf16, #tpu.memory_space<vmem>>, vector<1x128x128xbf16>
    %26 = vector.shape_cast %25 : vector<1x128x128xbf16> to vector<128x128xbf16>
    %cst_33 = arith.constant dense<0.000000e+00> : vector<256x128xf32>
    %27 = tpu.matmul %24, %26, %cst_33 {dimension_numbers = #tpu.dot_dimension_numbers<[1], [0], [0], [1], [0, 0, 1, 1], [], []>} : vector<256x128xbf16>, vector<128x128xbf16>, vector<256x128xf32> -> vector<256x128xf32>
    %28 = arith.addf %20, %27 : vector<256x128xf32>
    %c0_34 = arith.constant 0 : index
    %c2 = arith.constant 2 : index
    %c0_35 = arith.constant 0 : index
    %c0_36 = arith.constant 0 : index
    %29 = vector.load %arg10[%c0_34, %c2, %c0_35, %c0_36] : memref<2x18x16x128xf32, #tpu.memory_space<vmem>>, vector<1x16x16x128xf32>
    %30 = vector.shape_cast %29 : vector<1x16x16x128xf32> to vector<16x16x128xf32>
    %31 = arith.truncf %30 : vector<16x16x128xf32> to vector<16x16x128xbf16>
    %32 = vector.shape_cast %31 : vector<16x16x128xbf16> to vector<256x128xbf16>
    %c2_37 = arith.constant 2 : index
    %c0_38 = arith.constant 0 : index
    %c0_39 = arith.constant 0 : index
    %33 = vector.load %arg3[%c2_37, %c0_38, %c0_39] : memref<3x128x128xbf16, #tpu.memory_space<vmem>>, vector<1x128x128xbf16>
    %34 = vector.shape_cast %33 : vector<1x128x128xbf16> to vector<128x128xbf16>
    %cst_40 = arith.constant dense<0.000000e+00> : vector<256x128xf32>
    %35 = tpu.matmul %32, %34, %cst_40 {dimension_numbers = #tpu.dot_dimension_numbers<[1], [0], [0], [1], [0, 0, 1, 1], [], []>} : vector<256x128xbf16>, vector<128x128xbf16>, vector<256x128xf32> -> vector<256x128xf32>
    %36 = arith.addf %28, %35 : vector<256x128xf32>
    %37 = vector.shape_cast %36 : vector<256x128xf32> to vector<16x16x128xf32>
    %c0_41 = arith.constant 0 : index
    %c0_42 = arith.constant 0 : index
    %c0_43 = arith.constant 0 : index
    %c0_44 = arith.constant 0 : index
    %38 = vector.load %arg11[%c0_41, %c0_42, %c0_43, %c0_44] : memref<2x16x16x128xf32, #tpu.memory_space<vmem>>, vector<1x16x16x128xf32>
    %39 = vector.shape_cast %38 : vector<1x16x16x128xf32> to vector<16x16x128xf32>
    %40 = vector.shape_cast %37 : vector<16x16x128xf32> to vector<1x16x16x128xf32>
    tpu.vector_store %arg11[%c0_41, %c0_42, %c0_43, %c0_44], %40 {strides = array<i32>} : memref<2x16x16x128xf32, #tpu.memory_space<vmem>>, vector<1x16x16x128xf32>,
    %cst_45 = arith.constant dense<0.000000e+00> : vector<128xf32>
    %41 = vector.multi_reduction <add>, %36, %cst_45 [0] : vector<256x128xf32> to vector<128xf32>
    %42 = vector.shape_cast %41 : vector<128xf32> to vector<1x128xf32>
    %43 = arith.addf %12, %42 : vector<1x128xf32>
    %44 = arith.mulf %36, %36 : vector<256x128xf32>
    %cst_46 = arith.constant dense<0.000000e+00> : vector<128xf32>
    %45 = vector.multi_reduction <add>, %44, %cst_46 [0] : vector<256x128xf32> to vector<128xf32>
    %46 = vector.shape_cast %45 : vector<128xf32> to vector<1x128xf32>
    %47 = arith.addf %13, %46 : vector<1x128xf32>
    %c0_47 = arith.constant 0 : index
    %c0_48 = arith.constant 0 : index
    %48 = vector.load %arg6[%c0_47, %c0_48] : memref<128x4xf32, #tpu.memory_space<vmem>>, vector<128x4xf32>
    %cst_49 = arith.constant dense<0.000000e+00> : vector<1x4xf32>
    %49 = tpu.matmul %43, %48, %cst_49 {dimension_numbers = #tpu.dot_dimension_numbers<[1], [0], [0], [1], [0, 0, 1, 1], [], []>} : vector<1x128xf32>, vector<128x4xf32>, vector<1x4xf32> -> vector<1x4xf32>
    %c0_50 = arith.constant 0 : index
    %c0_51 = arith.constant 0 : index
    %50 = vector.load %arg6[%c0_50, %c0_51] : memref<128x4xf32, #tpu.memory_space<vmem>>, vector<128x4xf32>
    %cst_52 = arith.constant dense<0.000000e+00> : vector<1x4xf32>
    %51 = tpu.matmul %47, %50, %cst_52 {dimension_numbers = #tpu.dot_dimension_numbers<[1], [0], [0], [1], [0, 0, 1, 1], [], []>} : vector<1x128xf32>, vector<128x4xf32>, vector<1x4xf32> -> vector<1x4xf32>
    %52 = arith.mulf %49, %49 : vector<1x4xf32>
    %53 = arith.subf %51, %52 : vector<1x4xf32>
    %cst_53 = arith.constant 0.000000e+00 : f32
    %54 = vector.broadcast %cst_53 : f32 to vector<1x4xf32>
    %55 = arith.maximumf %53, %54 : vector<1x4xf32>
    %cst_54 = arith.constant 9.99999974E-6 : f32
    %56 = vector.broadcast %cst_54 : f32 to vector<1x4xf32>
    %57 = arith.addf %55, %56 : vector<1x4xf32>
    %58 = math.rsqrt %57 : vector<1x4xf32>
    %c0_55 = arith.constant 0 : index
    %c0_56 = arith.constant 0 : index
    %59 = vector.load %arg7[%c0_55, %c0_56] : memref<4x128xf32, #tpu.memory_space<vmem>>, vector<4x128xf32>
    %cst_57 = arith.constant dense<0.000000e+00> : vector<1x128xf32>
    %60 = tpu.matmul %49, %59, %cst_57 {dimension_numbers = #tpu.dot_dimension_numbers<[1], [0], [0], [1], [0, 0, 1, 1], [], []>} : vector<1x4xf32>, vector<4x128xf32>, vector<1x128xf32> -> vector<1x128xf32>
    %c0_58 = arith.constant 0 : index
    %c0_59 = arith.constant 0 : index
    %61 = vector.load %arg7[%c0_58, %c0_59] : memref<4x128xf32, #tpu.memory_space<vmem>>, vector<4x128xf32>
    %cst_60 = arith.constant dense<0.000000e+00> : vector<1x128xf32>
    %62 = tpu.matmul %58, %61, %cst_60 {dimension_numbers = #tpu.dot_dimension_numbers<[1], [0], [0], [1], [0, 0, 1, 1], [], []>} : vector<1x4xf32>, vector<4x128xf32>, vector<1x128xf32> -> vector<1x128xf32>
    %63 = arith.mulf %62, %3 : vector<1x128xf32>
    %64 = arith.mulf %60, %63 : vector<1x128xf32>
    %65 = arith.subf %4, %64 : vector<1x128xf32>
    %66 = vector.shape_cast %63 : vector<1x128xf32> to vector<1x1x128xf32>
    %67 = vector.shape_cast %65 : vector<1x128xf32> to vector<1x1x128xf32>
    %c0_61 = arith.constant 0 : index
    %c0_62 = arith.constant 0 : index
    %c0_63 = arith.constant 0 : index
    %c0_64 = arith.constant 0 : index
    %68 = vector.load %arg11[%c0_61, %c0_62, %c0_63, %c0_64] : memref<2x16x16x128xf32, #tpu.memory_space<vmem>>, vector<1x16x16x128xf32>
    %69 = vector.shape_cast %68 : vector<1x16x16x128xf32> to vector<16x16x128xf32>
    %70 = vector.broadcast %66 : vector<1x1x128xf32> to vector<16x16x128xf32>
    %71 = arith.mulf %69, %70 : vector<16x16x128xf32>
    %72 = vector.broadcast %67 : vector<1x1x128xf32> to vector<16x16x128xf32>
    %73 = arith.addf %71, %72 : vector<16x16x128xf32>
    %74 = vector.extract_strided_slice %73 {offsets = [0, 0, 0], sizes = [16, 16, 32], strides = [1, 1, 1]} : vector<16x16x128xf32> to vector<16x16x32xf32>
    %cst_65 = arith.constant 5.000000e-01 : f32
    %75 = vector.broadcast %cst_65 : f32 to vector<16x16x32xf32>
    %76 = arith.mulf %75, %74 : vector<16x16x32xf32>
    %77 = math.tanh %76 : vector<16x16x32xf32>
    %cst_66 = arith.constant 1.000000e+00 : f32
    %78 = vector.broadcast %cst_66 : f32 to vector<16x16x32xf32>
    %79 = arith.addf %78, %77 : vector<16x16x32xf32>
    %cst_67 = arith.constant 5.000000e-01 : f32
    %80 = vector.broadcast %cst_67 : f32 to vector<16x16x32xf32>
    %81 = arith.mulf %80, %79 : vector<16x16x32xf32>
    %82 = vector.extract_strided_slice %73 {offsets = [0, 0, 32], sizes = [16, 16, 32], strides = [1, 1, 1]} : vector<16x16x128xf32> to vector<16x16x32xf32>
    %cst_68 = arith.constant 5.000000e-01 : f32
    %83 = vector.broadcast %cst_68 : f32 to vector<16x16x32xf32>
    %84 = arith.mulf %83, %82 : vector<16x16x32xf32>
    %85 = math.tanh %84 : vector<16x16x32xf32>
    %cst_69 = arith.constant 1.000000e+00 : f32
    %86 = vector.broadcast %cst_69 : f32 to vector<16x16x32xf32>
    %87 = arith.addf %86, %85 : vector<16x16x32xf32>
    %cst_70 = arith.constant 5.000000e-01 : f32
    %88 = vector.broadcast %cst_70 : f32 to vector<16x16x32xf32>
    %89 = arith.mulf %88, %87 : vector<16x16x32xf32>
    %90 = vector.extract_strided_slice %73 {offsets = [0, 0, 64], sizes = [16, 16, 32], strides = [1, 1, 1]} : vector<16x16x128xf32> to vector<16x16x32xf32>
    %91 = math.tanh %90 : vector<16x16x32xf32>
    %92 = vector.extract_strided_slice %73 {offsets = [0, 0, 96], sizes = [16, 16, 32], strides = [1, 1, 1]} : vector<16x16x128xf32> to vector<16x16x32xf32>
    %cst_71 = arith.constant 5.000000e-01 : f32
    %93 = vector.broadcast %cst_71 : f32 to vector<16x16x32xf32>
    %94 = arith.mulf %93, %92 : vector<16x16x32xf32>
    %95 = math.tanh %94 : vector<16x16x32xf32>
    %cst_72 = arith.constant 1.000000e+00 : f32
    %96 = vector.broadcast %cst_72 : f32 to vector<16x16x32xf32>
    %97 = arith.addf %96, %95 : vector<16x16x32xf32>
    %cst_73 = arith.constant 5.000000e-01 : f32
    %98 = vector.broadcast %cst_73 : f32 to vector<16x16x32xf32>
    %99 = arith.mulf %98, %97 : vector<16x16x32xf32>
    %c0_74 = arith.constant 0 : index
    %c0_75 = arith.constant 0 : index
    %c0_76 = arith.constant 0 : index
    %c0_77 = arith.constant 0 : index
    %100 = vector.load %arg9[%c0_74, %c0_75, %c0_76, %c0_77] : memref<2x16x16x32xf32, #tpu.memory_space<vmem>>, vector<1x16x16x32xf32>
    %101 = vector.shape_cast %100 : vector<1x16x16x32xf32> to vector<16x16x32xf32>
    %102 = arith.mulf %89, %101 : vector<16x16x32xf32>
    %103 = arith.mulf %81, %91 : vector<16x16x32xf32>
    %104 = arith.addf %102, %103 : vector<16x16x32xf32>
    %105 = math.tanh %104 : vector<16x16x32xf32>
    %106 = arith.mulf %99, %105 : vector<16x16x32xf32>
    %c0_78 = arith.constant 0 : index
    %c0_79 = arith.constant 0 : index
    %c0_80 = arith.constant 0 : index
    %c0_81 = arith.constant 0 : index
    %107 = vector.load %arg9[%c0_78, %c0_79, %c0_80, %c0_81] : memref<2x16x16x32xf32, #tpu.memory_space<vmem>>, vector<1x16x16x32xf32>
    %108 = vector.shape_cast %107 : vector<1x16x16x32xf32> to vector<16x16x32xf32>
    %109 = vector.shape_cast %104 : vector<16x16x32xf32> to vector<1x16x16x32xf32>
    tpu.vector_store %arg9[%c0_78, %c0_79, %c0_80, %c0_81], %109 {strides = array<i32>} : memref<2x16x16x32xf32, #tpu.memory_space<vmem>>, vector<1x16x16x32xf32>,
    %c0_82 = arith.constant 0 : index
    %c0_83 = arith.constant 0 : index
    %c0_84 = arith.constant 0 : index
    %c0_85 = arith.constant 0 : index
    %c0_86 = arith.constant 0 : index
    %110 = vector.load %arg8[%c0_82, %c0_83, %c0_84, %c0_85, %c0_86] : memref<1x2x16x16x32xf32, #tpu.memory_space<vmem>>, vector<1x1x16x16x32xf32>
    %111 = vector.shape_cast %110 : vector<1x1x16x16x32xf32> to vector<16x16x32xf32>
    %112 = vector.shape_cast %106 : vector<16x16x32xf32> to vector<1x1x16x16x32xf32>
    tpu.vector_store %arg8[%c0_82, %c0_83, %c0_84, %c0_85, %c0_86], %112 {strides = array<i32>} : memref<1x2x16x16x32xf32, #tpu.memory_space<vmem>>, vector<1x1x16x16x32xf32>,
    %113 = vector.extract_strided_slice %106 {offsets = [0, 0, 0], sizes = [16, 15, 32], strides = [1, 1, 1]} : vector<16x16x32xf32> to vector<16x15x32xf32>
    %c0_87 = arith.constant 0 : index
    %c1_88 = arith.constant 1 : index
    %c1_89 = arith.constant 1 : index
    %c0_90 = arith.constant 0 : index
    %114 = vector.load %arg10[%c0_87, %c1_88, %c1_89, %c0_90] : memref<2x18x16x128xf32, #tpu.memory_space<vmem>>, vector<1x16x15x32xf32>
    %115 = vector.shape_cast %114 : vector<1x16x15x32xf32> to vector<16x15x32xf32>
    %116 = vector.shape_cast %113 : vector<16x15x32xf32> to vector<1x16x15x32xf32>
    tpu.vector_store %arg10[%c0_87, %c1_88, %c1_89, %c0_90], %116 {strides = array<i32>} : memref<2x18x16x128xf32, #tpu.memory_space<vmem>>, vector<1x16x15x32xf32>,
    %c0_91 = arith.constant 0 : index
    %c1_92 = arith.constant 1 : index
    %c0_93 = arith.constant 0 : index
    %c36 = arith.constant 36 : index
    %117 = vector.load %arg10[%c0_91, %c1_92, %c0_93, %c36] : memref<2x18x16x128xf32, #tpu.memory_space<vmem>>, vector<1x16x16x32xf32>
    %118 = vector.shape_cast %117 : vector<1x16x16x32xf32> to vector<16x16x32xf32>
    %119 = vector.shape_cast %106 : vector<16x16x32xf32> to vector<1x16x16x32xf32>
    tpu.vector_store %arg10[%c0_91, %c1_92, %c0_93, %c36], %119 {strides = array<i32>} : memref<2x18x16x128xf32, #tpu.memory_space<vmem>>, vector<1x16x16x32xf32>,
    %120 = vector.extract_strided_slice %106 {offsets = [0, 1, 0], sizes = [16, 15, 32], strides = [1, 1, 1]} : vector<16x16x32xf32> to vector<16x15x32xf32>
    %c0_94 = arith.constant 0 : index
    %c1_95 = arith.constant 1 : index
    %c0_96 = arith.constant 0 : index
    %c72 = arith.constant 72 : index
    %121 = vector.load %arg10[%c0_94, %c1_95, %c0_96, %c72] : memref<2x18x16x128xf32, #tpu.memory_space<vmem>>, vector<1x16x15x32xf32>
    %122 = vector.shape_cast %121 : vector<1x16x15x32xf32> to vector<16x15x32xf32>
    %123 = vector.shape_cast %120 : vector<16x15x32xf32> to vector<1x16x15x32xf32>
    tpu.vector_store %arg10[%c0_94, %c1_95, %c0_96, %c72], %123 {strides = array<i32>} : memref<2x18x16x128xf32, #tpu.memory_space<vmem>>, vector<1x16x15x32xf32>,
    %cst_97 = arith.constant 0.000000e+00 : f32
    %124 = vector.broadcast %cst_97 : f32 to vector<1x128xf32>
    %cst_98 = arith.constant 0.000000e+00 : f32
    %125 = vector.broadcast %cst_98 : f32 to vector<1x128xf32>
    %c1_99 = arith.constant 1 : index
    %c0_100 = arith.constant 0 : index
    %c0_101 = arith.constant 0 : index
    %c0_102 = arith.constant 0 : index
    %126 = vector.load %arg10[%c1_99, %c0_100, %c0_101, %c0_102] : memref<2x18x16x128xf32, #tpu.memory_space<vmem>>, vector<1x16x16x128xf32>
    %127 = vector.shape_cast %126 : vector<1x16x16x128xf32> to vector<16x16x128xf32>
    %128 = arith.truncf %127 : vector<16x16x128xf32> to vector<16x16x128xbf16>
    %129 = vector.shape_cast %128 : vector<16x16x128xbf16> to vector<256x128xbf16>
    %c0_103 = arith.constant 0 : index
    %c0_104 = arith.constant 0 : index
    %c0_105 = arith.constant 0 : index
    %130 = vector.load %arg3[%c0_103, %c0_104, %c0_105] : memref<3x128x128xbf16, #tpu.memory_space<vmem>>, vector<1x128x128xbf16>
    %131 = vector.shape_cast %130 : vector<1x128x128xbf16> to vector<128x128xbf16>
    %cst_106 = arith.constant dense<0.000000e+00> : vector<256x128xf32>
    %132 = tpu.matmul %129, %131, %cst_106 {dimension_numbers = #tpu.dot_dimension_numbers<[1], [0], [0], [1], [0, 0, 1, 1], [], []>} : vector<256x128xbf16>, vector<128x128xbf16>, vector<256x128xf32> -> vector<256x128xf32>
    %c1_107 = arith.constant 1 : index
    %c1_108 = arith.constant 1 : index
    %c0_109 = arith.constant 0 : index
    %c0_110 = arith.constant 0 : index
    %133 = vector.load %arg10[%c1_107, %c1_108, %c0_109, %c0_110] : memref<2x18x16x128xf32, #tpu.memory_space<vmem>>, vector<1x16x16x128xf32>
    %134 = vector.shape_cast %133 : vector<1x16x16x128xf32> to vector<16x16x128xf32>
    %135 = arith.truncf %134 : vector<16x16x128xf32> to vector<16x16x128xbf16>
    %136 = vector.shape_cast %135 : vector<16x16x128xbf16> to vector<256x128xbf16>
    %c1_111 = arith.constant 1 : index
    %c0_112 = arith.constant 0 : index
    %c0_113 = arith.constant 0 : index
    %137 = vector.load %arg3[%c1_111, %c0_112, %c0_113] : memref<3x128x128xbf16, #tpu.memory_space<vmem>>, vector<1x128x128xbf16>
    %138 = vector.shape_cast %137 : vector<1x128x128xbf16> to vector<128x128xbf16>
    %cst_114 = arith.constant dense<0.000000e+00> : vector<256x128xf32>
    %139 = tpu.matmul %136, %138, %cst_114 {dimension_numbers = #tpu.dot_dimension_numbers<[1], [0], [0], [1], [0, 0, 1, 1], [], []>} : vector<256x128xbf16>, vector<128x128xbf16>, vector<256x128xf32> -> vector<256x128xf32>
    %140 = arith.addf %132, %139 : vector<256x128xf32>
    %c1_115 = arith.constant 1 : index
    %c2_116 = arith.constant 2 : index
    %c0_117 = arith.constant 0 : index
    %c0_118 = arith.constant 0 : index
    %141 = vector.load %arg10[%c1_115, %c2_116, %c0_117, %c0_118] : memref<2x18x16x128xf32, #tpu.memory_space<vmem>>, vector<1x16x16x128xf32>
    %142 = vector.shape_cast %141 : vector<1x16x16x128xf32> to vector<16x16x128xf32>
    %143 = arith.truncf %142 : vector<16x16x128xf32> to vector<16x16x128xbf16>
    %144 = vector.shape_cast %143 : vector<16x16x128xbf16> to vector<256x128xbf16>
    %c2_119 = arith.constant 2 : index
    %c0_120 = arith.constant 0 : index
    %c0_121 = arith.constant 0 : index
    %145 = vector.load %arg3[%c2_119, %c0_120, %c0_121] : memref<3x128x128xbf16, #tpu.memory_space<vmem>>, vector<1x128x128xbf16>
    %146 = vector.shape_cast %145 : vector<1x128x128xbf16> to vector<128x128xbf16>
    %cst_122 = arith.constant dense<0.000000e+00> : vector<256x128xf32>
    %147 = tpu.matmul %144, %146, %cst_122 {dimension_numbers = #tpu.dot_dimension_numbers<[1], [0], [0], [1], [0, 0, 1, 1], [], []>} : vector<256x128xbf16>, vector<128x128xbf16>, vector<256x128xf32> -> vector<256x128xf32>
    %148 = arith.addf %140, %147 : vector<256x128xf32>
    %149 = vector.shape_cast %148 : vector<256x128xf32> to vector<16x16x128xf32>
    %c1_123 = arith.constant 1 : index
    %c0_124 = arith.constant 0 : index
    %c0_125 = arith.constant 0 : index
    %c0_126 = arith.constant 0 : index
    %150 = vector.load %arg11[%c1_123, %c0_124, %c0_125, %c0_126] : memref<2x16x16x128xf32, #tpu.memory_space<vmem>>, vector<1x16x16x128xf32>
    %151 = vector.shape_cast %150 : vector<1x16x16x128xf32> to vector<16x16x128xf32>
    %152 = vector.shape_cast %149 : vector<16x16x128xf32> to vector<1x16x16x128xf32>
    tpu.vector_store %arg11[%c1_123, %c0_124, %c0_125, %c0_126], %152 {strides = array<i32>} : memref<2x16x16x128xf32, #tpu.memory_space<vmem>>, vector<1x16x16x128xf32>,
    %cst_127 = arith.constant dense<0.000000e+00> : vector<128xf32>
    %153 = vector.multi_reduction <add>, %148, %cst_127 [0] : vector<256x128xf32> to vector<128xf32>
    %154 = vector.shape_cast %153 : vector<128xf32> to vector<1x128xf32>
    %155 = arith.addf %124, %154 : vector<1x128xf32>
    %156 = arith.mulf %148, %148 : vector<256x128xf32>
    %cst_128 = arith.constant dense<0.000000e+00> : vector<128xf32>
    %157 = vector.multi_reduction <add>, %156, %cst_128 [0] : vector<256x128xf32> to vector<128xf32>
    %158 = vector.shape_cast %157 : vector<128xf32> to vector<1x128xf32>
    %159 = arith.addf %125, %158 : vector<1x128xf32>
    %c0_129 = arith.constant 0 : index
    %c0_130 = arith.constant 0 : index
    %160 = vector.load %arg6[%c0_129, %c0_130] : memref<128x4xf32, #tpu.memory_space<vmem>>, vector<128x4xf32>
    %cst_131 = arith.constant dense<0.000000e+00> : vector<1x4xf32>
    %161 = tpu.matmul %155, %160, %cst_131 {dimension_numbers = #tpu.dot_dimension_numbers<[1], [0], [0], [1], [0, 0, 1, 1], [], []>} : vector<1x128xf32>, vector<128x4xf32>, vector<1x4xf32> -> vector<1x4xf32>
    %c0_132 = arith.constant 0 : index
    %c0_133 = arith.constant 0 : index
    %162 = vector.load %arg6[%c0_132, %c0_133] : memref<128x4xf32, #tpu.memory_space<vmem>>, vector<128x4xf32>
    %cst_134 = arith.constant dense<0.000000e+00> : vector<1x4xf32>
    %163 = tpu.matmul %159, %162, %cst_134 {dimension_numbers = #tpu.dot_dimension_numbers<[1], [0], [0], [1], [0, 0, 1, 1], [], []>} : vector<1x128xf32>, vector<128x4xf32>, vector<1x4xf32> -> vector<1x4xf32>
    %164 = arith.mulf %161, %161 : vector<1x4xf32>
    %165 = arith.subf %163, %164 : vector<1x4xf32>
    %cst_135 = arith.constant 0.000000e+00 : f32
    %166 = vector.broadcast %cst_135 : f32 to vector<1x4xf32>
    %167 = arith.maximumf %165, %166 : vector<1x4xf32>
    %cst_136 = arith.constant 9.99999974E-6 : f32
    %168 = vector.broadcast %cst_136 : f32 to vector<1x4xf32>
    %169 = arith.addf %167, %168 : vector<1x4xf32>
    %170 = math.rsqrt %169 : vector<1x4xf32>
    %c0_137 = arith.constant 0 : index
    %c0_138 = arith.constant 0 : index
    %171 = vector.load %arg7[%c0_137, %c0_138] : memref<4x128xf32, #tpu.memory_space<vmem>>, vector<4x128xf32>
    %cst_139 = arith.constant dense<0.000000e+00> : vector<1x128xf32>
    %172 = tpu.matmul %161, %171, %cst_139 {dimension_numbers = #tpu.dot_dimension_numbers<[1], [0], [0], [1], [0, 0, 1, 1], [], []>} : vector<1x4xf32>, vector<4x128xf32>, vector<1x128xf32> -> vector<1x128xf32>
    %c0_140 = arith.constant 0 : index
    %c0_141 = arith.constant 0 : index
    %173 = vector.load %arg7[%c0_140, %c0_141] : memref<4x128xf32, #tpu.memory_space<vmem>>, vector<4x128xf32>
    %cst_142 = arith.constant dense<0.000000e+00> : vector<1x128xf32>
    %174 = tpu.matmul %170, %173, %cst_142 {dimension_numbers = #tpu.dot_dimension_numbers<[1], [0], [0], [1], [0, 0, 1, 1], [], []>} : vector<1x4xf32>, vector<4x128xf32>, vector<1x128xf32> -> vector<1x128xf32>
    %175 = arith.mulf %174, %3 : vector<1x128xf32>
    %176 = arith.mulf %172, %175 : vector<1x128xf32>
    %177 = arith.subf %4, %176 : vector<1x128xf32>
    %178 = vector.shape_cast %175 : vector<1x128xf32> to vector<1x1x128xf32>
    %179 = vector.shape_cast %177 : vector<1x128xf32> to vector<1x1x128xf32>
    %c1_143 = arith.constant 1 : index
    %c0_144 = arith.constant 0 : index
    %c0_145 = arith.constant 0 : index
    %c0_146 = arith.constant 0 : index
    %180 = vector.load %arg11[%c1_143, %c0_144, %c0_145, %c0_146] : memref<2x16x16x128xf32, #tpu.memory_space<vmem>>, vector<1x16x16x128xf32>
    %181 = vector.shape_cast %180 : vector<1x16x16x128xf32> to vector<16x16x128xf32>
    %182 = vector.broadcast %178 : vector<1x1x128xf32> to vector<16x16x128xf32>
    %183 = arith.mulf %181, %182 : vector<16x16x128xf32>
    %184 = vector.broadcast %179 : vector<1x1x128xf32> to vector<16x16x128xf32>
    %185 = arith.addf %183, %184 : vector<16x16x128xf32>
    %186 = vector.extract_strided_slice %185 {offsets = [0, 0, 0], sizes = [16, 16, 32], strides = [1, 1, 1]} : vector<16x16x128xf32> to vector<16x16x32xf32>
    %cst_147 = arith.constant 5.000000e-01 : f32
    %187 = vector.broadcast %cst_147 : f32 to vector<16x16x32xf32>
    %188 = arith.mulf %187, %186 : vector<16x16x32xf32>
    %189 = math.tanh %188 : vector<16x16x32xf32>
    %cst_148 = arith.constant 1.000000e+00 : f32
    %190 = vector.broadcast %cst_148 : f32 to vector<16x16x32xf32>
    %191 = arith.addf %190, %189 : vector<16x16x32xf32>
    %cst_149 = arith.constant 5.000000e-01 : f32
    %192 = vector.broadcast %cst_149 : f32 to vector<16x16x32xf32>
    %193 = arith.mulf %192, %191 : vector<16x16x32xf32>
    %194 = vector.extract_strided_slice %185 {offsets = [0, 0, 32], sizes = [16, 16, 32], strides = [1, 1, 1]} : vector<16x16x128xf32> to vector<16x16x32xf32>
    %cst_150 = arith.constant 5.000000e-01 : f32
    %195 = vector.broadcast %cst_150 : f32 to vector<16x16x32xf32>
    %196 = arith.mulf %195, %194 : vector<16x16x32xf32>
    %197 = math.tanh %196 : vector<16x16x32xf32>
    %cst_151 = arith.constant 1.000000e+00 : f32
    %198 = vector.broadcast %cst_151 : f32 to vector<16x16x32xf32>
    %199 = arith.addf %198, %197 : vector<16x16x32xf32>
    %cst_152 = arith.constant 5.000000e-01 : f32
    %200 = vector.broadcast %cst_152 : f32 to vector<16x16x32xf32>
    %201 = arith.mulf %200, %199 : vector<16x16x32xf32>
    %202 = vector.extract_strided_slice %185 {offsets = [0, 0, 64], sizes = [16, 16, 32], strides = [1, 1, 1]} : vector<16x16x128xf32> to vector<16x16x32xf32>
    %203 = math.tanh %202 : vector<16x16x32xf32>
    %204 = vector.extract_strided_slice %185 {offsets = [0, 0, 96], sizes = [16, 16, 32], strides = [1, 1, 1]} : vector<16x16x128xf32> to vector<16x16x32xf32>
    %cst_153 = arith.constant 5.000000e-01 : f32
    %205 = vector.broadcast %cst_153 : f32 to vector<16x16x32xf32>
    %206 = arith.mulf %205, %204 : vector<16x16x32xf32>
    %207 = math.tanh %206 : vector<16x16x32xf32>
    %cst_154 = arith.constant 1.000000e+00 : f32
    %208 = vector.broadcast %cst_154 : f32 to vector<16x16x32xf32>
    %209 = arith.addf %208, %207 : vector<16x16x32xf32>
    %cst_155 = arith.constant 5.000000e-01 : f32
    %210 = vector.broadcast %cst_155 : f32 to vector<16x16x32xf32>
    %211 = arith.mulf %210, %209 : vector<16x16x32xf32>
    %c1_156 = arith.constant 1 : index
    %c0_157 = arith.constant 0 : index
    %c0_158 = arith.constant 0 : index
    %c0_159 = arith.constant 0 : index
    %212 = vector.load %arg9[%c1_156, %c0_157, %c0_158, %c0_159] : memref<2x16x16x32xf32, #tpu.memory_space<vmem>>, vector<1x16x16x32xf32>
    %213 = vector.shape_cast %212 : vector<1x16x16x32xf32> to vector<16x16x32xf32>
    %214 = arith.mulf %201, %213 : vector<16x16x32xf32>
    %215 = arith.mulf %193, %203 : vector<16x16x32xf32>
    %216 = arith.addf %214, %215 : vector<16x16x32xf32>
    %217 = math.tanh %216 : vector<16x16x32xf32>
    %218 = arith.mulf %211, %217 : vector<16x16x32xf32>
    %c1_160 = arith.constant 1 : index
    %c0_161 = arith.constant 0 : index
    %c0_162 = arith.constant 0 : index
    %c0_163 = arith.constant 0 : index
    %219 = vector.load %arg9[%c1_160, %c0_161, %c0_162, %c0_163] : memref<2x16x16x32xf32, #tpu.memory_space<vmem>>, vector<1x16x16x32xf32>
    %220 = vector.shape_cast %219 : vector<1x16x16x32xf32> to vector<16x16x32xf32>
    %221 = vector.shape_cast %216 : vector<16x16x32xf32> to vector<1x16x16x32xf32>
    tpu.vector_store %arg9[%c1_160, %c0_161, %c0_162, %c0_163], %221 {strides = array<i32>} : memref<2x16x16x32xf32, #tpu.memory_space<vmem>>, vector<1x16x16x32xf32>,
    %c0_164 = arith.constant 0 : index
    %c1_165 = arith.constant 1 : index
    %c0_166 = arith.constant 0 : index
    %c0_167 = arith.constant 0 : index
    %c0_168 = arith.constant 0 : index
    %222 = vector.load %arg8[%c0_164, %c1_165, %c0_166, %c0_167, %c0_168] : memref<1x2x16x16x32xf32, #tpu.memory_space<vmem>>, vector<1x1x16x16x32xf32>
    %223 = vector.shape_cast %222 : vector<1x1x16x16x32xf32> to vector<16x16x32xf32>
    %224 = vector.shape_cast %218 : vector<16x16x32xf32> to vector<1x1x16x16x32xf32>
    tpu.vector_store %arg8[%c0_164, %c1_165, %c0_166, %c0_167, %c0_168], %224 {strides = array<i32>} : memref<1x2x16x16x32xf32, #tpu.memory_space<vmem>>, vector<1x1x16x16x32xf32>,
    %225 = vector.extract_strided_slice %218 {offsets = [0, 0, 0], sizes = [16, 15, 32], strides = [1, 1, 1]} : vector<16x16x32xf32> to vector<16x15x32xf32>
    %c1_169 = arith.constant 1 : index
    %c1_170 = arith.constant 1 : index
    %c1_171 = arith.constant 1 : index
    %c0_172 = arith.constant 0 : index
    %226 = vector.load %arg10[%c1_169, %c1_170, %c1_171, %c0_172] : memref<2x18x16x128xf32, #tpu.memory_space<vmem>>, vector<1x16x15x32xf32>
    %227 = vector.shape_cast %226 : vector<1x16x15x32xf32> to vector<16x15x32xf32>
    %228 = vector.shape_cast %225 : vector<16x15x32xf32> to vector<1x16x15x32xf32>
    tpu.vector_store %arg10[%c1_169, %c1_170, %c1_171, %c0_172], %228 {strides = array<i32>} : memref<2x18x16x128xf32, #tpu.memory_space<vmem>>, vector<1x16x15x32xf32>,
    %c1_173 = arith.constant 1 : index
    %c1_174 = arith.constant 1 : index
    %c0_175 = arith.constant 0 : index
    %c36_176 = arith.constant 36 : index
    %229 = vector.load %arg10[%c1_173, %c1_174, %c0_175, %c36_176] : memref<2x18x16x128xf32, #tpu.memory_space<vmem>>, vector<1x16x16x32xf32>
    %230 = vector.shape_cast %229 : vector<1x16x16x32xf32> to vector<16x16x32xf32>
    %231 = vector.shape_cast %218 : vector<16x16x32xf32> to vector<1x16x16x32xf32>
    tpu.vector_store %arg10[%c1_173, %c1_174, %c0_175, %c36_176], %231 {strides = array<i32>} : memref<2x18x16x128xf32, #tpu.memory_space<vmem>>, vector<1x16x16x32xf32>,
    %232 = vector.extract_strided_slice %218 {offsets = [0, 1, 0], sizes = [16, 15, 32], strides = [1, 1, 1]} : vector<16x16x32xf32> to vector<16x15x32xf32>
    %c1_177 = arith.constant 1 : index
    %c1_178 = arith.constant 1 : index
    %c0_179 = arith.constant 0 : index
    %c72_180 = arith.constant 72 : index
    %233 = vector.load %arg10[%c1_177, %c1_178, %c0_179, %c72_180] : memref<2x18x16x128xf32, #tpu.memory_space<vmem>>, vector<1x16x15x32xf32>
    %234 = vector.shape_cast %233 : vector<1x16x15x32xf32> to vector<16x15x32xf32>
    %235 = vector.shape_cast %232 : vector<16x15x32xf32> to vector<1x16x15x32xf32>
    tpu.vector_store %arg10[%c1_177, %c1_178, %c0_179, %c72_180], %235 {strides = array<i32>} : memref<2x18x16x128xf32, #tpu.memory_space<vmem>>, vector<1x16x15x32xf32>,
    return
  }
  func.func @transform_0(%arg0: i32, %arg1: i32) -> (i32, i32, i32, i32, i32) {
    %c0_i32 = arith.constant 0 : i32
    %c0_i32_0 = arith.constant 0 : i32
    %c0_i32_1 = arith.constant 0 : i32
    %c0_i32_2 = arith.constant 0 : i32
    return %arg1, %arg0, %c0_i32, %c0_i32_0, %c0_i32_1 : i32, i32, i32, i32, i32
  }
  func.func @transform_1(%arg0: i32, %arg1: i32) -> (i32, i32, i32) {
    %c0_i32 = arith.constant 0 : i32
    %c0_i32_0 = arith.constant 0 : i32
    %c0_i32_1 = arith.constant 0 : i32
    %c0_i32_2 = arith.constant 0 : i32
    return %c0_i32, %c0_i32_0, %c0_i32_1 : i32, i32, i32
  }
  func.func @transform_2(%arg0: i32, %arg1: i32) -> (i32, i32) {
    %c0_i32 = arith.constant 0 : i32
    %c0_i32_0 = arith.constant 0 : i32
    %c0_i32_1 = arith.constant 0 : i32
    return %c0_i32, %c0_i32_0 : i32, i32
  }
  func.func @transform_3(%arg0: i32, %arg1: i32) -> (i32, i32) {
    %c0_i32 = arith.constant 0 : i32
    %c0_i32_0 = arith.constant 0 : i32
    %c0_i32_1 = arith.constant 0 : i32
    return %c0_i32, %c0_i32_0 : i32, i32
  }
  func.func @transform_4(%arg0: i32, %arg1: i32) -> (i32, i32) {
    %c0_i32 = arith.constant 0 : i32
    %c0_i32_0 = arith.constant 0 : i32
    %c0_i32_1 = arith.constant 0 : i32
    return %c0_i32, %c0_i32_0 : i32, i32
  }
  func.func @transform_5(%arg0: i32, %arg1: i32) -> (i32, i32) {
    %c0_i32 = arith.constant 0 : i32
    %c0_i32_0 = arith.constant 0 : i32
    %c0_i32_1 = arith.constant 0 : i32
    return %c0_i32, %c0_i32_0 : i32, i32
  }
  func.func @transform_6(%arg0: i32, %arg1: i32) -> (i32, i32, i32, i32, i32) {
    %c0_i32 = arith.constant 0 : i32
    %c0_i32_0 = arith.constant 0 : i32
    %c0_i32_1 = arith.constant 0 : i32
    %c0_i32_2 = arith.constant 0 : i32
    return %arg1, %arg0, %c0_i32, %c0_i32_0, %c0_i32_1 : i32, i32, i32, i32, i32
  }
  func.func @transform_7(%arg0: i32, %arg1: i32) -> (i32, i32, i32, i32) {
    %c0_i32 = arith.constant 0 : i32
    %c0_i32_0 = arith.constant 0 : i32
    %c0_i32_1 = arith.constant 0 : i32
    %c0_i32_2 = arith.constant 0 : i32
    return %arg0, %c0_i32, %c0_i32_0, %c0_i32_1 : i32, i32, i32, i32
  }
}

</mosaic_0001>

<bundles_post_ra>
// kernel: tpu_custom_call.1
= control target key start
LH: loop header
LB: loop body
LE: loop exit
PB: predicated region body
PF: predicated region fallthrough
CT: control target
= control target key end

     0   :  { %13 = vsyncpa [#allocation5], 0  ;;  %s13226_s0 = inlined_call_operand.vmem [shape: f32[8,2,16,16,4], index: 0, kind: input, shape index: {}]   ;;  %s13227_s1 = inlined_call_operand.vmem [shape: bf16[3,128,128], index: 1, kind: input, shape index: {}]   ;;  %s13228_s2 = inlined_call_operand.vmem [shape: f32[1,128], index: 2, kind: input, shape index: {}]   ;;  %s13229_s3 = inlined_call_operand.vmem [shape: f32[1,128], index: 3, kind: input, shape index: {}]   ;;  %s13230_s4 = inlined_call_operand.vmem [shape: f32[128,4], index: 4, kind: input, shape index: {}]   ;;  %s13231_s5 = inlined_call_operand.vmem [shape: f32[4,128], index: 5, kind: input, shape index: {}]   ;;  %s13232_s6 = inlined_call_operand.hbm [shape: f32[8,2,16,16,32], index: 6, kind: output, shape index: {0}]   ;;  %s13233_s7 = inlined_call_operand.hbm [shape: f32[2,16,16,32], index: 7, kind: output, shape index: {1}]  }
   0x1   :  { %15 = vsyncpa [#allocation5 + $0x1], 0 }
   0x2   :  { %16 = vsyncpa [#allocation7], 0  ;;  %s9077_s24 = smov 0   ;;  %s9079_s25 = smov 0  }
   0x3   :  { %s9081_s26 = smov 0   ;;  %s9083_s27 = smov 0  }
   0x4   :  { %s9085_s28 = smov 0   ;;  %s9087_s29 = smov 0  }
   0x5 LB: > { %s7339_s30 = sadd.s32 4294967295, %s9021_s29   ;;  %s7340_s8 = sadd.s32 4294967294, %s9021_s29   ;;  %s9021_s29 = sphi %s9087_s29, %s22_s29   ;;  %s9017_s28 = sphi %s9085_s28, %s13514_s28   ;;  %s9013_s27 = sphi %s9083_s27, %s13513_s27   ;;  %s9009_s26 = sphi %s9081_s26, %s13512_s26   ;;  %s9005_s25 = sphi %s9079_s25, %s13511_s25   ;;  %s9001_s24 = sphi %s9077_s24, %s13510_s24  }
   0x6   : > { %s31_s9 = sadd.s32 1, %s9017_s28  ;;  %s176_s10 = sadd.s32 1, %s9009_s26 }
   0x7   : > { %p32_p0 = scmp.ge.s32.totalorder %s31_s9, 8  ;;  %p186_p1 = scmp.ne.s32.totalorder %s9009_s26, %s9005_s25 }
   0x8   : > { %p9113_p2 = scmp.eq.s32.totalorder %s7339_s30, 7  ;;  %p192_p3 = scmp.ne.s32.totalorder %s9005_s25, %s9001_s24 }
   0x9   : > { %s13516_s9 = smov (%p32_p0, %s31_s9), 0  ;;  %p193_p5 = scmp.eq.s32.totalorder %s7340_s8, 7 }
   0xa   : > { %p9123_p4 = por %p9113_p2, %p186_p1  ;;  %s171_s13 = ssub.s32 %s9017_s28, %s13516_s9 }
   0xb   : > { %p7343_p6 = scmp.ge.s32.totalorder %s9021_s29, 1  ;;  %p174_p7 = scmp.eq.s32.totalorder %s171_s13, 0 }
   0xc   : > { %p9130_p8 = por %p193_p5, %p192_p3  ;;  %p266_p9 = scmp.lt.s32.totalorder %s9021_s29, 9 }
   0xd   : > { %s9136_s15 = scalar_select %p174_p7, %s9009_s26, %s176_s10  }
   0xe   : > { %p267_p10 = pnand %p7343_p6, %p266_p9 }
  0x10   : > { %270 = sbr.rel (%p267_p10) target bundleno = 2773 (0xad5), region = 44 }
  0x17   : > { %s13234_s16 = sand.u32 1, %s9005_s25   ;;  %p304_p11 = scmp.lt.s32.totalorder %s9013_s27, 7 }
  0x18   : > { %s7344_s17 = sshll.u32 %s13234_s16, 9  ;;  %p7347_p12 = scmp.ne.s32.totalorder %s9013_s27, 0 }
  0x19   : > { %s305_s18 = scalar_select %p304_p11, %s9013_s27, 7 }
  0x1a   : > { %s9148_s23 = scalar_lea.vmem [#allocation4], %s7344_s17  ;;  %320 = sbr.rel (%p7347_p12) target bundleno = 127 (0x7f), region = 48  ;;  %vm394_vm0 = vcmask (!%p7347_p12), 892768   ;;  %vm459_vm1 = vcmask (!%p7347_p12), 261120   ;;  %v9023_v0 = vmov (!%p7347_p12), 0.0   ;;  %v9024_v1 = vmov (!%p7347_p12), 1.0  }
  0x1b   : > { %s7507_s19 = sshll.u32 %s305_s18, 9  ;;  %323 = vst [vmem:[#allocation2 + $0x10] sm:$0xff] (!%p7347_p12), %v9023_v0  ;;  %321 = vst [vmem:[#allocation2] sm:$0xff] (!%p7347_p12), %v9023_v0 }
  0x1c   : > { %s9146_s22 = scalar_lea.vmem %s13226_s0, %s7507_s19  ;;  %322 = vst [vmem:[#allocation2 + $0x8] sm:$0xff] (!%p7347_p12), %v9023_v0  ;;  %324 = vst [vmem:[#allocation2 + $0x18] sm:$0xff] (!%p7347_p12), %v9023_v0 }
  0x1d   : > { %325 = vst [vmem:[#allocation2 + $0x20] sm:$0xff] (!%p7347_p12), %v9023_v0  ;;  %326 = vst [vmem:[#allocation2 + $0x28] sm:$0xff] (!%p7347_p12), %v9023_v0 }
  0x1e   : > { %327 = vst [vmem:[#allocation2 + $0x30] sm:$0xff] (!%p7347_p12), %v9023_v0  ;;  %328 = vst [vmem:[#allocation2 + $0x38] sm:$0xff] (!%p7347_p12), %v9023_v0 }
  0x1f   : > { %329 = vst [vmem:[#allocation2 + $0x40] sm:$0xff] (!%p7347_p12), %v9023_v0  ;;  %330 = vst [vmem:[#allocation2 + $0x48] sm:$0xff] (!%p7347_p12), %v9023_v0 }
  0x20   : > { %331 = vst [vmem:[#allocation2 + $0x50] sm:$0xff] (!%p7347_p12), %v9023_v0  ;;  %332 = vst [vmem:[#allocation2 + $0x58] sm:$0xff] (!%p7347_p12), %v9023_v0 }
  0x21   : > { %333 = vst [vmem:[#allocation2 + $0x60] sm:$0xff] %v9023_v0  ;;  %334 = vst [vmem:[#allocation2 + $0x68] sm:$0xff] %v9023_v0 }
  0x22   : > { %335 = vst [vmem:[#allocation2 + $0x70] sm:$0xff] %v9023_v0  ;;  %336 = vst [vmem:[#allocation2 + $0x78] sm:$0xff] %v9023_v0 }
  0x23   : > { %337 = vst [vmem:[#allocation2 + $0x80] sm:$0xff] %v9023_v0  ;;  %338 = vst [vmem:[#allocation2 + $0x88] sm:$0xff] %v9023_v0 }
  0x24   : > { %339 = vst [vmem:[#allocation2 + $0x90] sm:$0xff] %v9023_v0  ;;  %340 = vst [vmem:[#allocation2 + $0x98] sm:$0xff] %v9023_v0 }
  0x25   : > { %341 = vst [vmem:[#allocation2 + $0xa0] sm:$0xff] %v9023_v0  ;;  %342 = vst [vmem:[#allocation2 + $0xa8] sm:$0xff] %v9023_v0 }
  0x26   : > { %343 = vst [vmem:[#allocation2 + $0xb0] sm:$0xff] %v9023_v0  ;;  %344 = vst [vmem:[#allocation2 + $0xb8] sm:$0xff] %v9023_v0 }
  0x27   : > { %345 = vst [vmem:[#allocation2 + $0xc0] sm:$0xff] %v9023_v0  ;;  %346 = vst [vmem:[#allocation2 + $0xc8] sm:$0xff] %v9023_v0 }
  0x28   : > { %347 = vst [vmem:[#allocation2 + $0xd0] sm:$0xff] %v9023_v0  ;;  %348 = vst [vmem:[#allocation2 + $0xd8] sm:$0xff] %v9023_v0 }
  0x29   : > { %349 = vst [vmem:[#allocation2 + $0xe0] sm:$0xff] %v9023_v0  ;;  %350 = vst [vmem:[#allocation2 + $0xe8] sm:$0xff] %v9023_v0 }
  0x2a   : > { %351 = vst [vmem:[#allocation2 + $0xf0] sm:$0xff] %v9023_v0  ;;  %352 = vst [vmem:[#allocation2 + $0xf8] sm:$0xff] %v9023_v0 }
  0x2b   : > { %353 = vst [vmem:[#allocation2 + $0x100] sm:$0xff] %v9023_v0  ;;  %354 = vst [vmem:[#allocation2 + $0x108] sm:$0xff] %v9023_v0 }
  0x2c   : > { %355 = vst [vmem:[#allocation2 + $0x110] sm:$0xff] %v9023_v0  ;;  %356 = vst [vmem:[#allocation2 + $0x118] sm:$0xff] %v9023_v0 }
  0x2d   : > { %357 = vst [vmem:[#allocation2 + $0x120] sm:$0xff] %v9023_v0  ;;  %358 = vst [vmem:[#allocation2 + $0x128] sm:$0xff] %v9023_v0 }
  0x2e   : > { %359 = vst [vmem:[#allocation2 + $0x130] sm:$0xff] %v9023_v0  ;;  %360 = vst [vmem:[#allocation2 + $0x138] sm:$0xff] %v9023_v0 }
  0x2f   : > { %361 = vst [vmem:[#allocation2 + $0x140] sm:$0xff] %v9023_v0  ;;  %362 = vst [vmem:[#allocation2 + $0x148] sm:$0xff] %v9023_v0 }
  0x30   : > { %363 = vst [vmem:[#allocation2 + $0x150] sm:$0xff] %v9023_v0  ;;  %364 = vst [vmem:[#allocation2 + $0x158] sm:$0xff] %v9023_v0 }
  0x31   : > { %365 = vst [vmem:[#allocation2 + $0x160] sm:$0xff] %v9023_v0  ;;  %366 = vst [vmem:[#allocation2 + $0x168] sm:$0xff] %v9023_v0 }
  0x32   : > { %367 = vst [vmem:[#allocation2 + $0x170] sm:$0xff] %v9023_v0  ;;  %368 = vst [vmem:[#allocation2 + $0x178] sm:$0xff] %v9023_v0 }
  0x33   : > { %369 = vst [vmem:[#allocation2 + $0x180] sm:$0xff] %v9023_v0  ;;  %370 = vst [vmem:[#allocation2 + $0x188] sm:$0xff] %v9023_v0 }
  0x34   : > { %371 = vst [vmem:[#allocation2 + $0x190] sm:$0xff] %v9023_v0  ;;  %372 = vst [vmem:[#allocation2 + $0x198] sm:$0xff] %v9023_v0 }
  0x35   : > { %373 = vst [vmem:[#allocation2 + $0x1a0] sm:$0xff] %v9023_v0  ;;  %374 = vst [vmem:[#allocation2 + $0x1a8] sm:$0xff] %v9023_v0 }
  0x36   : > { %375 = vst [vmem:[#allocation2 + $0x1b0] sm:$0xff] %v9023_v0  ;;  %376 = vst [vmem:[#allocation2 + $0x1b8] sm:$0xff] %v9023_v0 }
  0x37   : > { %377 = vst [vmem:[#allocation2 + $0x1c0] sm:$0xff] %v9023_v0  ;;  %378 = vst [vmem:[#allocation2 + $0x1c8] sm:$0xff] %v9023_v0 }
  0x38   : > { %379 = vst [vmem:[#allocation2 + $0x1d0] sm:$0xff] %v9023_v0  ;;  %380 = vst [vmem:[#allocation2 + $0x1d8] sm:$0xff] %v9023_v0 }
  0x39   : > { %381 = vst [vmem:[#allocation2 + $0x1e0] sm:$0xff] %v9023_v0  ;;  %382 = vst [vmem:[#allocation2 + $0x1e8] sm:$0xff] %v9023_v0 }
  0x3a   : > { %383 = vst [vmem:[#allocation2 + $0x1f0] sm:$0xff] %v9023_v0  ;;  %384 = vst [vmem:[#allocation2 + $0x1f8] sm:$0xff] %v9023_v0 }
  0x3b   : > { %385 = vst [vmem:[#allocation2 + $0x200] sm:$0xff] %v9023_v0  ;;  %386 = vst [vmem:[#allocation2 + $0x208] sm:$0xff] %v9023_v0 }
  0x3c   : > { %387 = vst [vmem:[#allocation2 + $0x210] sm:$0xff] %v9023_v0  ;;  %388 = vst [vmem:[#allocation2 + $0x218] sm:$0xff] %v9023_v0 }
  0x3d   : > { %389 = vst [vmem:[#allocation2 + $0x220] sm:$0xff] %v9023_v0  ;;  %390 = vst [vmem:[#allocation2 + $0x228] sm:$0xff] %v9023_v0 }
  0x3e   : > { %391 = vst [vmem:[#allocation2 + $0x230] sm:$0xff] %v9023_v0  ;;  %392 = vst [vmem:[#allocation2 + $0x238] sm:$0xff] %v9023_v0 }
  0x3f   : > { %460 = vst.msk [vmem:[#allocation6] sm:$0xff] %vm459_vm1, %v9023_v0  ;;  %461 = vst.msk [vmem:[#allocation6 + $0x8] sm:$0xff] %vm459_vm1, %v9023_v0 }
  0x40   : > { %462 = vst.msk [vmem:[#allocation6 + $0x10] sm:$0xff] %vm459_vm1, %v9023_v0  ;;  %463 = vst.msk [vmem:[#allocation6 + $0x18] sm:$0xff] %vm459_vm1, %v9023_v0 }
  0x41   : > { %464 = vst.msk [vmem:[#allocation6 + $0x20] sm:$0xff] %vm459_vm1, %v9023_v0  ;;  %465 = vst.msk [vmem:[#allocation6 + $0x28] sm:$0xff] %vm459_vm1, %v9023_v0 }
  0x42   : > { %466 = vst.msk [vmem:[#allocation6 + $0x30] sm:$0xff] %vm459_vm1, %v9023_v0  ;;  %467 = vst.msk [vmem:[#allocation6 + $0x38] sm:$0xff] %vm459_vm1, %v9023_v0 }
  0x43   : > { %468 = vst.msk [vmem:[#allocation6 + $0x40] sm:$0xff] %vm459_vm1, %v9023_v0  ;;  %469 = vst.msk [vmem:[#allocation6 + $0x48] sm:$0xff] %vm459_vm1, %v9023_v0 }
  0x44   : > { %470 = vst.msk [vmem:[#allocation6 + $0x50] sm:$0xff] %vm459_vm1, %v9023_v0  ;;  %471 = vst.msk [vmem:[#allocation6 + $0x58] sm:$0xff] %vm459_vm1, %v9023_v0 }
  0x45   : > { %472 = vst.msk [vmem:[#allocation6 + $0x60] sm:$0xff] %vm459_vm1, %v9023_v0  ;;  %473 = vst.msk [vmem:[#allocation6 + $0x68] sm:$0xff] %vm459_vm1, %v9023_v0 }
  0x46   : > { %474 = vst.msk [vmem:[#allocation6 + $0x70] sm:$0xff] %vm459_vm1, %v9023_v0  ;;  %475 = vst.msk [vmem:[#allocation6 + $0x78] sm:$0xff] %vm459_vm1, %v9023_v0 }
  0x47   : > { %476 = vst.msk [vmem:[#allocation6 + $0x80] sm:$0xff] %vm459_vm1, %v9023_v0  ;;  %477 = vst.msk [vmem:[#allocation6 + $0x88] sm:$0xff] %vm459_vm1, %v9023_v0 }
  0x48   : > { %478 = vst.msk [vmem:[#allocation6 + $0x90] sm:$0xff] %vm459_vm1, %v9023_v0  ;;  %479 = vst.msk [vmem:[#allocation6 + $0x98] sm:$0xff] %vm459_vm1, %v9023_v0 }
  0x49   : > { %480 = vst.msk [vmem:[#allocation6 + $0xa0] sm:$0xff] %vm459_vm1, %v9023_v0  ;;  %481 = vst.msk [vmem:[#allocation6 + $0xa8] sm:$0xff] %vm459_vm1, %v9023_v0 }
  0x4a   : > { %482 = vst.msk [vmem:[#allocation6 + $0xb0] sm:$0xff] %vm459_vm1, %v9023_v0  ;;  %483 = vst.msk [vmem:[#allocation6 + $0xb8] sm:$0xff] %vm459_vm1, %v9023_v0 }
  0x4b   : > { %484 = vst.msk [vmem:[#allocation6 + $0xc0] sm:$0xff] %vm459_vm1, %v9023_v0  ;;  %485 = vst.msk [vmem:[#allocation6 + $0xc8] sm:$0xff] %vm459_vm1, %v9023_v0 }
  0x4c   : > { %486 = vst.msk [vmem:[#allocation6 + $0xd0] sm:$0xff] %vm459_vm1, %v9023_v0  ;;  %487 = vst.msk [vmem:[#allocation6 + $0xd8] sm:$0xff] %vm459_vm1, %v9023_v0 }
  0x4d   : > { %488 = vst.msk [vmem:[#allocation6 + $0xe0] sm:$0xff] %vm459_vm1, %v9023_v0  ;;  %489 = vst.msk [vmem:[#allocation6 + $0xe8] sm:$0xff] %vm459_vm1, %v9023_v0 }
  0x4e   : > { %490 = vst.msk [vmem:[#allocation6 + $0xf0] sm:$0xff] %vm459_vm1, %v9023_v0  ;;  %491 = vst.msk [vmem:[#allocation6 + $0xf8] sm:$0xff] %vm459_vm1, %v9023_v0 }
  0x4f   : > { %492 = vst.msk [vmem:[#allocation6 + $0x100] sm:$0xff] %vm459_vm1, %v9023_v0  ;;  %493 = vst.msk [vmem:[#allocation6 + $0x108] sm:$0xff] %vm459_vm1, %v9023_v0 }
  0x50   : > { %494 = vst.msk [vmem:[#allocation6 + $0x110] sm:$0xff] %vm459_vm1, %v9023_v0  ;;  %495 = vst.msk [vmem:[#allocation6 + $0x118] sm:$0xff] %vm459_vm1, %v9023_v0 }
  0x51   : > { %496 = vst.msk [vmem:[#allocation6 + $0x120] sm:$0xff] %vm459_vm1, %v9023_v0  ;;  %497 = vst.msk [vmem:[#allocation6 + $0x128] sm:$0xff] %vm459_vm1, %v9023_v0 }
  0x52   : > { %498 = vst.msk [vmem:[#allocation6 + $0x130] sm:$0xff] %vm459_vm1, %v9023_v0  ;;  %499 = vst.msk [vmem:[#allocation6 + $0x138] sm:$0xff] %vm459_vm1, %v9023_v0 }
  0x53   : > { %500 = vst.msk [vmem:[#allocation6 + $0x140] sm:$0xff] %vm459_vm1, %v9023_v0  ;;  %501 = vst.msk [vmem:[#allocation6 + $0x148] sm:$0xff] %vm459_vm1, %v9023_v0 }
  0x54   : > { %502 = vst.msk [vmem:[#allocation6 + $0x150] sm:$0xff] %vm459_vm1, %v9023_v0  ;;  %503 = vst.msk [vmem:[#allocation6 + $0x158] sm:$0xff] %vm459_vm1, %v9023_v0 }
  0x55   : > { %504 = vst.msk [vmem:[#allocation6 + $0x160] sm:$0xff] %vm459_vm1, %v9023_v0  ;;  %505 = vst.msk [vmem:[#allocation6 + $0x168] sm:$0xff] %vm459_vm1, %v9023_v0 }
  0x56   : > { %506 = vst.msk [vmem:[#allocation6 + $0x170] sm:$0xff] %vm459_vm1, %v9023_v0  ;;  %507 = vst.msk [vmem:[#allocation6 + $0x178] sm:$0xff] %vm459_vm1, %v9023_v0 }
  0x57   : > { %508 = vst.msk [vmem:[#allocation6 + $0x180] sm:$0xff] %vm459_vm1, %v9023_v0  ;;  %509 = vst.msk [vmem:[#allocation6 + $0x188] sm:$0xff] %vm459_vm1, %v9023_v0 }
  0x58   : > { %510 = vst.msk [vmem:[#allocation6 + $0x190] sm:$0xff] %vm459_vm1, %v9023_v0  ;;  %511 = vst.msk [vmem:[#allocation6 + $0x198] sm:$0xff] %vm459_vm1, %v9023_v0 }
  0x59   : > { %512 = vst.msk [vmem:[#allocation6 + $0x1a0] sm:$0xff] %vm459_vm1, %v9023_v0  ;;  %513 = vst.msk [vmem:[#allocation6 + $0x1a8] sm:$0xff] %vm459_vm1, %v9023_v0 }
  0x5a   : > { %514 = vst.msk [vmem:[#allocation6 + $0x1b0] sm:$0xff] %vm459_vm1, %v9023_v0  ;;  %515 = vst.msk [vmem:[#allocation6 + $0x1b8] sm:$0xff] %vm459_vm1, %v9023_v0 }
  0x5b   : > { %516 = vst.msk [vmem:[#allocation6 + $0x1c0] sm:$0xff] %vm459_vm1, %v9023_v0  ;;  %517 = vst.msk [vmem:[#allocation6 + $0x1c8] sm:$0xff] %vm459_vm1, %v9023_v0 }
  0x5c   : > { %518 = vst.msk [vmem:[#allocation6 + $0x1d0] sm:$0xff] %vm459_vm1, %v9023_v0  ;;  %519 = vst.msk [vmem:[#allocation6 + $0x1d8] sm:$0xff] %vm459_vm1, %v9023_v0 }
  0x5d   : > { %520 = vst.msk [vmem:[#allocation6 + $0x1e0] sm:$0xff] %vm459_vm1, %v9023_v0  ;;  %521 = vst.msk [vmem:[#allocation6 + $0x1e8] sm:$0xff] %vm459_vm1, %v9023_v0 }
  0x5e   : > { %522 = vst.msk [vmem:[#allocation6 + $0x1f0] sm:$0xff] %vm459_vm1, %v9023_v0  ;;  %523 = vst.msk [vmem:[#allocation6 + $0x1f8] sm:$0xff] %vm459_vm1, %v9023_v0 }
  0x5f   : > { %395 = vst.msk [vmem:[#allocation2 + $0x10] sm:$0xff] %vm394_vm0, %v9024_v1  ;;  %396 = vst.msk [vmem:[#allocation2 + $0x18] sm:$0xff] %vm394_vm0, %v9024_v1 }
  0x60   : > { %397 = vst.msk [vmem:[#allocation2 + $0x20] sm:$0xff] %vm394_vm0, %v9024_v1  ;;  %398 = vst.msk [vmem:[#allocation2 + $0x28] sm:$0xff] %vm394_vm0, %v9024_v1 }
  0x61   : > { %399 = vst.msk [vmem:[#allocation2 + $0x30] sm:$0xff] %vm394_vm0, %v9024_v1  ;;  %400 = vst.msk [vmem:[#allocation2 + $0x38] sm:$0xff] %vm394_vm0, %v9024_v1 }
  0x62   : > { %401 = vst.msk [vmem:[#allocation2 + $0x40] sm:$0xff] %vm394_vm0, %v9024_v1  ;;  %402 = vst.msk [vmem:[#allocation2 + $0x48] sm:$0xff] %vm394_vm0, %v9024_v1 }
  0x63   : > { %403 = vst.msk [vmem:[#allocation2 + $0x50] sm:$0xff] %vm394_vm0, %v9024_v1  ;;  %404 = vst.msk [vmem:[#allocation2 + $0x58] sm:$0xff] %vm394_vm0, %v9024_v1 }
  0x64   : > { %405 = vst.msk [vmem:[#allocation2 + $0x60] sm:$0xff] %vm394_vm0, %v9024_v1  ;;  %406 = vst.msk [vmem:[#allocation2 + $0x68] sm:$0xff] %vm394_vm0, %v9024_v1 }
  0x65   : > { %407 = vst.msk [vmem:[#allocation2 + $0x70] sm:$0xff] %vm394_vm0, %v9024_v1  ;;  %408 = vst.msk [vmem:[#allocation2 + $0x78] sm:$0xff] %vm394_vm0, %v9024_v1 }
  0x66   : > { %409 = vst.msk [vmem:[#allocation2 + $0x80] sm:$0xff] %vm394_vm0, %v9024_v1  ;;  %410 = vst.msk [vmem:[#allocation2 + $0x88] sm:$0xff] %vm394_vm0, %v9024_v1 }
  0x67   : > { %411 = vst.msk [vmem:[#allocation2 + $0x90] sm:$0xff] %vm394_vm0, %v9024_v1  ;;  %412 = vst.msk [vmem:[#allocation2 + $0x98] sm:$0xff] %vm394_vm0, %v9024_v1 }
  0x68   : > { %413 = vst.msk [vmem:[#allocation2 + $0xa0] sm:$0xff] %vm394_vm0, %v9024_v1  ;;  %414 = vst.msk [vmem:[#allocation2 + $0xa8] sm:$0xff] %vm394_vm0, %v9024_v1 }
  0x69   : > { %415 = vst.msk [vmem:[#allocation2 + $0xb0] sm:$0xff] %vm394_vm0, %v9024_v1  ;;  %416 = vst.msk [vmem:[#allocation2 + $0xb8] sm:$0xff] %vm394_vm0, %v9024_v1 }
  0x6a   : > { %417 = vst.msk [vmem:[#allocation2 + $0xc0] sm:$0xff] %vm394_vm0, %v9024_v1  ;;  %418 = vst.msk [vmem:[#allocation2 + $0xc8] sm:$0xff] %vm394_vm0, %v9024_v1 }
  0x6b   : > { %419 = vst.msk [vmem:[#allocation2 + $0xd0] sm:$0xff] %vm394_vm0, %v9024_v1  ;;  %420 = vst.msk [vmem:[#allocation2 + $0xd8] sm:$0xff] %vm394_vm0, %v9024_v1 }
  0x6c   : > { %421 = vst.msk [vmem:[#allocation2 + $0xe0] sm:$0xff] %vm394_vm0, %v9024_v1  ;;  %422 = vst.msk [vmem:[#allocation2 + $0xe8] sm:$0xff] %vm394_vm0, %v9024_v1 }
  0x6d   : > { %423 = vst.msk [vmem:[#allocation2 + $0xf0] sm:$0xff] %vm394_vm0, %v9024_v1  ;;  %424 = vst.msk [vmem:[#allocation2 + $0xf8] sm:$0xff] %vm394_vm0, %v9024_v1 }
  0x6e   : > { %425 = vst.msk [vmem:[#allocation2 + $0x100] sm:$0xff] %vm394_vm0, %v9024_v1  ;;  %426 = vst.msk [vmem:[#allocation2 + $0x108] sm:$0xff] %vm394_vm0, %v9024_v1 }
  0x6f   : > { %427 = vst.msk [vmem:[#allocation2 + $0x130] sm:$0xff] %vm394_vm0, %v9024_v1  ;;  %428 = vst.msk [vmem:[#allocation2 + $0x138] sm:$0xff] %vm394_vm0, %v9024_v1 }
  0x70   : > { %429 = vst.msk [vmem:[#allocation2 + $0x140] sm:$0xff] %vm394_vm0, %v9024_v1  ;;  %430 = vst.msk [vmem:[#allocation2 + $0x148] sm:$0xff] %vm394_vm0, %v9024_v1 }
  0x71   : > { %431 = vst.msk [vmem:[#allocation2 + $0x150] sm:$0xff] %vm394_vm0, %v9024_v1  ;;  %432 = vst.msk [vmem:[#allocation2 + $0x158] sm:$0xff] %vm394_vm0, %v9024_v1 }
  0x72   : > { %433 = vst.msk [vmem:[#allocation2 + $0x160] sm:$0xff] %vm394_vm0, %v9024_v1  ;;  %434 = vst.msk [vmem:[#allocation2 + $0x168] sm:$0xff] %vm394_vm0, %v9024_v1 }
  0x73   : > { %435 = vst.msk [vmem:[#allocation2 + $0x170] sm:$0xff] %vm394_vm0, %v9024_v1  ;;  %436 = vst.msk [vmem:[#allocation2 + $0x178] sm:$0xff] %vm394_vm0, %v9024_v1 }
  0x74   : > { %437 = vst.msk [vmem:[#allocation2 + $0x180] sm:$0xff] %vm394_vm0, %v9024_v1  ;;  %438 = vst.msk [vmem:[#allocation2 + $0x188] sm:$0xff] %vm394_vm0, %v9024_v1 }
  0x75   : > { %439 = vst.msk [vmem:[#allocation2 + $0x190] sm:$0xff] %vm394_vm0, %v9024_v1  ;;  %440 = vst.msk [vmem:[#allocation2 + $0x198] sm:$0xff] %vm394_vm0, %v9024_v1 }
  0x76   : > { %441 = vst.msk [vmem:[#allocation2 + $0x1a0] sm:$0xff] %vm394_vm0, %v9024_v1  ;;  %442 = vst.msk [vmem:[#allocation2 + $0x1a8] sm:$0xff] %vm394_vm0, %v9024_v1 }
  0x77   : > { %443 = vst.msk [vmem:[#allocation2 + $0x1b0] sm:$0xff] %vm394_vm0, %v9024_v1  ;;  %444 = vst.msk [vmem:[#allocation2 + $0x1b8] sm:$0xff] %vm394_vm0, %v9024_v1 }
  0x78   : > { %445 = vst.msk [vmem:[#allocation2 + $0x1c0] sm:$0xff] %vm394_vm0, %v9024_v1  ;;  %446 = vst.msk [vmem:[#allocation2 + $0x1c8] sm:$0xff] %vm394_vm0, %v9024_v1 }
  0x79   : > { %447 = vst.msk [vmem:[#allocation2 + $0x1d0] sm:$0xff] %vm394_vm0, %v9024_v1  ;;  %448 = vst.msk [vmem:[#allocation2 + $0x1d8] sm:$0xff] %vm394_vm0, %v9024_v1 }
  0x7a   : > { %449 = vst.msk [vmem:[#allocation2 + $0x1e0] sm:$0xff] %vm394_vm0, %v9024_v1  ;;  %450 = vst.msk [vmem:[#allocation2 + $0x1e8] sm:$0xff] %vm394_vm0, %v9024_v1 }
  0x7b   : > { %451 = vst.msk [vmem:[#allocation2 + $0x1f0] sm:$0xff] %vm394_vm0, %v9024_v1  ;;  %452 = vst.msk [vmem:[#allocation2 + $0x1f8] sm:$0xff] %vm394_vm0, %v9024_v1 }
  0x7c   : > { %453 = vst.msk [vmem:[#allocation2 + $0x200] sm:$0xff] %vm394_vm0, %v9024_v1  ;;  %454 = vst.msk [vmem:[#allocation2 + $0x208] sm:$0xff] %vm394_vm0, %v9024_v1 }
  0x7d   : > { %455 = vst.msk [vmem:[#allocation2 + $0x210] sm:$0xff] %vm394_vm0, %v9024_v1  ;;  %456 = vst.msk [vmem:[#allocation2 + $0x218] sm:$0xff] %vm394_vm0, %v9024_v1 }
  0x7e   : > { %457 = vst.msk [vmem:[#allocation2 + $0x220] sm:$0xff] %vm394_vm0, %v9024_v1  ;;  %458 = vst.msk [vmem:[#allocation2 + $0x228] sm:$0xff] %vm394_vm0, %v9024_v1 }
  0x7f PF: > { %v528_v2 = vld [vmem:[%s9146_s22 + $0x10] sm:$0xff]  ;;  %v526_v3 = vld [vmem:[%s9146_s22] sm:$0xff]  ;;  %s9025_s30 = smov 32   ;;  %v529_v4 = vld [vmem:[%s9146_s22 + $0x18] sm:$0xff]  ;;  %s13243_s13 = smov 68   ;;  %vm847_vm2 = vcmask 294144  }
  0x80   : > { %658 = vrot.lane.b32.xlu1 %v528_v2, %s9025_s30  ;;  %654 = vrot.lane.b32.xlu0 %v526_v3, %s9025_s30  ;;  %v527_v5 = vld [vmem:[%s9146_s22 + $0x8] sm:$0xff]  ;;  %v8475_v6 = vld [vmem:[%s13227_s1 + $0x40] sm:$0xff]   ;;  %s13235_s10 = smov 104   ;;  %vm849_vm3 = vcmask 293120   ;;  %vm1105_vm4 = vcmask 589344   ;;  %vm1364_vm5 = vcmask 884544  }
  0x81   : > { %v8476_v7 = vld [vmem:[%s13227_s1 + $0x48] sm:$0xff]   ;;  %7729 = vmatprep.subr.bf16.mxu0 %v8475_v6  ;;  %v8477_v8 = vld [vmem:[%s13227_s1 + $0x50] sm:$0xff]   ;;  %v8478_v9 = vld [vmem:[%s13227_s1 + $0x58] sm:$0xff]   ;;  %vm1362_vm6 = vcmask 884545   ;;  %vm9029_vm7 = vmmov 0   ;;  %s13300_s16 = smov 104  }
  0x82   : > { %7730 = vmatpush3.bf16.msra.mxu0 %v8475_v6  ;;  %v531_v10 = vld [vmem:[%s9146_s22 + $0x28] sm:$0xff]  ;;  %v530_v11 = vld [vmem:[%s9146_s22 + $0x20] sm:$0xff]  ;;  %v533_v14 = vld [vmem:[%s9146_s22 + $0x38] sm:$0xff]  ;;  %vm2588_vm8 = vcmask 1043456   ;;  %vm2584_vm9 = vcmask 31744   ;;  %s9031_s21 = smov 64  }
  0x83   : > { %7731 = vmatprep.subr.bf16.mxu0 %v8476_v7  ;;  %v8479_v12 = vld [vmem:[%s13227_s1 + $0x60] sm:$0xff]   ;;  %v8480_v13 = vld [vmem:[%s13227_s1 + $0x68] sm:$0xff]   ;;  %v532_v15 = vld [vmem:[%s9146_s22 + $0x30] sm:$0xff]  ;;  %vm3836_vm10 = vcmask 261120   ;;  %s13433_s17 = smov 68   ;;  %vm4030_vm11 = vcmask 260096  }
  0x84   : > { %660 = vrot.lane.b32.xlu1 %v529_v4, %s9025_s30  ;;  %656 = vrot.lane.b32.xlu0 %v527_v5, %s9025_s30  ;;  %v8481_v16 = vld [vmem:[%s13227_s1 + $0x70] sm:$0xff]   ;;  %v8482_v17 = vld [vmem:[%s13227_s1 + $0x78] sm:$0xff]   ;;  %vm4158_vm12 = vcmask 556320   ;;  %vm4287_vm13 = vcmask 851521   ;;  %vm4289_vm14 = vcmask 851520   ;;  %s9034_s20 = smov [#allocation4]  }
  0x85   : > { %v535_v18 = vld [vmem:[%s9146_s22 + $0x48] sm:$0xff]  ;;  %v534_v19 = vld [vmem:[%s9146_s22 + $0x40] sm:$0xff]  ;;  %v537_v20 = vld [vmem:[%s9146_s22 + $0x58] sm:$0xff]  ;;  %s8917_s8 = sshll.u32 %s9034_s20, 4  ;;  %s8918_s8 = int_to_ptr.vmem [resolvable:$false] %s8917_s8 }
  0x86   : > { %7732 = vmatpush3.bf16.msra.mxu0 %v8476_v7  ;;  %v536_v21 = vld [vmem:[%s9146_s22 + $0x50] sm:$0xff]  ;;  %v539_v22 = vld [vmem:[%s9146_s22 + $0x68] sm:$0xff]  ;;  %v538_v23 = vld [vmem:[%s9146_s22 + $0x60] sm:$0xff] }
  0x87   : > { %7733 = vmatprep.subr.bf16.mxu0 %v8477_v8  ;;  %v541_v24 = vld [vmem:[%s9146_s22 + $0x78] sm:$0xff]  ;;  %v540_v25 = vld [vmem:[%s9146_s22 + $0x70] sm:$0xff]  ;;  %v543_v26 = vld [vmem:[%s9146_s22 + $0x88] sm:$0xff] }
  0x88   : > { %915 = vrot.lane.b32.xlu1 %v527_v5, %s13243_s13  ;;  %913 = vrot.lane.b32.xlu0 %v526_v3, %s13243_s13  ;;  %v542_v27 = vld [vmem:[%s9146_s22 + $0x80] sm:$0xff]  ;;  %v545_v28 = vld [vmem:[%s9146_s22 + $0x98] sm:$0xff] }
  0x89   : > { %v544_v29 = vld [vmem:[%s9146_s22 + $0x90] sm:$0xff]  ;;  %v547_v32 = vld [vmem:[%s9146_s22 + $0xa8] sm:$0xff]  ;;  %v546_v33 = vld [vmem:[%s9146_s22 + $0xa0] sm:$0xff] }
  0x8a   : > { %7734 = vmatpush3.bf16.msra.mxu0 %v8477_v8  ;;  %v549_v36 = vld [vmem:[%s9146_s22 + $0xb8] sm:$0xff]  ;;  %v548_v37 = vld [vmem:[%s9146_s22 + $0xb0] sm:$0xff]  ;;  %v8483_v42 = vld [vmem:[%s13227_s1] sm:$0xff]  }
  0x8b   : > { %7735 = vmatprep.subr.bf16.mxu0 %v8478_v9  ;;  %v551_v52 = vld [vmem:[%s9146_s22 + $0xc8] sm:$0xff]  ;;  %v550_v53 = vld [vmem:[%s9146_s22 + $0xc0] sm:$0xff]  ;;  %v553_v60 = vld [vmem:[%s9146_s22 + $0xd8] sm:$0xff] }
  0x8c   : > { %919 = vrot.lane.b32.xlu1 %v529_v4, %s13243_s13  ;;  %917 = vrot.lane.b32.xlu0 %v528_v2, %s13243_s13  ;;  %v8484_v59 = vld [vmem:[%s13227_s1 + $0x8] sm:$0xff]   ;;  %v552_v61 = vld [vmem:[%s9146_s22 + $0xd0] sm:$0xff] }
  0x8d   : > { %v8485_v0 = vld [vmem:[%s13227_s1 + $0x10] sm:$0xff]   ;;  %v8487_v8 = vld [vmem:[%s13227_s1 + $0x20] sm:$0xff]  }
  0x8e   : > { %7736 = vmatpush3.bf16.msra.mxu0 %v8478_v9 }
  0x8f   : > { %7737 = vmatprep.subr.bf16.mxu0 %v8479_v12 }
  0x90   : > { %1172 = vrot.lane.b32.xlu1 %v527_v5, %s13235_s10  ;;  %1170 = vrot.lane.b32.xlu0 %v526_v3, %s13235_s10  ;;  %v8486_v3 = vld [vmem:[%s13227_s1 + $0x18] sm:$0xff]  }
  0x92   : > { %7738 = vmatpush3.bf16.msra.mxu0 %v8479_v12 }
  0x93   : > { %7739 = vmatprep.subr.bf16.mxu0 %v8480_v13 }
  0x94   : > { %1176 = vrot.lane.b32.xlu1 %v529_v4, %s13235_s10  ;;  %1174 = vrot.lane.b32.xlu0 %v528_v2, %s13235_s10 }
  0x96   : > { %7740 = vmatpush3.bf16.msra.mxu0 %v8480_v13 }
  0x97   : > { %7741 = vmatprep.subr.bf16.mxu0 %v8481_v16 }
  0x98   : > { %664 = vrot.lane.b32.xlu1 %v531_v10, %s9025_s30  ;;  %662 = vrot.lane.b32.xlu0 %v530_v11, %s9025_s30 }
  0x9a   : > { %7742 = vmatpush3.bf16.msra.mxu0 %v8481_v16 }
  0x9b   : > { %7743 = vmatprep.subr.bf16.mxu0 %v8482_v17 }
  0x9c   : > { %668 = vrot.lane.b32.xlu1 %v533_v14, %s9025_s30  ;;  %666 = vrot.lane.b32.xlu0 %v532_v15, %s9025_s30 }
  0x9e   : > { %7744 = vmatpush3.bf16.msra.mxu0 %v8482_v17 }
  0x9f   : > { %7777 = vmatprep.subr.bf16.mxu0 %v8483_v42 }
  0xa0   : > { %923 = vrot.lane.b32.xlu1 %v531_v10, %s13243_s13  ;;  %921 = vrot.lane.b32.xlu0 %v530_v11, %s13243_s13 }
  0xa4   : > { %927 = vrot.lane.b32.xlu1 %v533_v14, %s13243_s13  ;;  %925 = vrot.lane.b32.xlu0 %v532_v15, %s13243_s13 }
  0xa8   : > { %1180 = vrot.lane.b32.xlu1 %v531_v10, %s13235_s10  ;;  %1178 = vrot.lane.b32.xlu0 %v530_v11, %s13235_s10 }
  0xac   : > { %1184 = vrot.lane.b32.xlu1 %v533_v14, %s13235_s10  ;;  %1182 = vrot.lane.b32.xlu0 %v532_v15, %s13235_s10  ;;  %v555_v14 = vld [vmem:[%s9146_s22 + $0xe8] sm:$0xff]  ;;  %v554_v15 = vld [vmem:[%s9146_s22 + $0xe0] sm:$0xff] }
  0xb0   : > { %672 = vrot.lane.b32.xlu1 %v535_v18, %s9025_s30  ;;  %670 = vrot.lane.b32.xlu0 %v534_v19, %s9025_s30 }
  0xb4   : > { %676 = vrot.lane.b32.xlu1 %v537_v20, %s9025_s30  ;;  %674 = vrot.lane.b32.xlu0 %v536_v21, %s9025_s30 }
  0xb8   : > { %931 = vrot.lane.b32.xlu1 %v535_v18, %s13243_s13  ;;  %929 = vrot.lane.b32.xlu0 %v534_v19, %s13243_s13 }
  0xbc   : > { %935 = vrot.lane.b32.xlu1 %v537_v20, %s13243_s13  ;;  %933 = vrot.lane.b32.xlu0 %v536_v21, %s13243_s13 }
  0xc0   : > { %1188 = vrot.lane.b32.xlu1 %v535_v18, %s13235_s10  ;;  %1186 = vrot.lane.b32.xlu0 %v534_v19, %s13235_s10 }
  0xc4   : > { %1192 = vrot.lane.b32.xlu1 %v537_v20, %s13235_s10  ;;  %1190 = vrot.lane.b32.xlu0 %v536_v21, %s13235_s10  ;;  %v8488_v21 = vld [vmem:[%s13227_s1 + $0x28] sm:$0xff]  }
  0xc8   : > { %680 = vrot.lane.b32.xlu1 %v539_v22, %s9025_s30  ;;  %678 = vrot.lane.b32.xlu0 %v538_v23, %s9025_s30 }
  0xcc   : > { %684 = vrot.lane.b32.xlu1 %v541_v24, %s9025_s30  ;;  %682 = vrot.lane.b32.xlu0 %v540_v25, %s9025_s30 }
  0xd0   : > { %939 = vrot.lane.b32.xlu1 %v539_v22, %s13243_s13  ;;  %937 = vrot.lane.b32.xlu0 %v538_v23, %s13243_s13 }
  0xd4   : > { %943 = vrot.lane.b32.xlu1 %v541_v24, %s13243_s13  ;;  %941 = vrot.lane.b32.xlu0 %v540_v25, %s13243_s13 }
  0xd8   : > { %1196 = vrot.lane.b32.xlu1 %v539_v22, %s13235_s10  ;;  %1194 = vrot.lane.b32.xlu0 %v538_v23, %s13235_s10  ;;  %v557_v22 = vld [vmem:[%s9146_s22 + $0xf8] sm:$0xff]  ;;  %v556_v23 = vld [vmem:[%s9146_s22 + $0xf0] sm:$0xff] }
  0xdc   : > { %1200 = vrot.lane.b32.xlu1 %v541_v24, %s13235_s10  ;;  %1198 = vrot.lane.b32.xlu0 %v540_v25, %s13235_s10 }
  0xe0   : > { %688 = vrot.lane.b32.xlu1 %v543_v26, %s9025_s30  ;;  %686 = vrot.lane.b32.xlu0 %v542_v27, %s9025_s30 }
  0xe4   : > { %692 = vrot.lane.b32.xlu1 %v545_v28, %s9025_s30  ;;  %690 = vrot.lane.b32.xlu0 %v544_v29, %s9025_s30 }
  0xe8   : > { %947 = vrot.lane.b32.xlu1 %v543_v26, %s13243_s13  ;;  %945 = vrot.lane.b32.xlu0 %v542_v27, %s13243_s13 }
  0xec   : > { %951 = vrot.lane.b32.xlu1 %v545_v28, %s13243_s13  ;;  %949 = vrot.lane.b32.xlu0 %v544_v29, %s13243_s13 }
  0xf0   : > { %1204 = vrot.lane.b32.xlu1 %v543_v26, %s13235_s10  ;;  %1202 = vrot.lane.b32.xlu0 %v542_v27, %s13235_s10 }
  0xf2   : > { %v659_v30 = vpop.permute.xlu1 %658  ;;  %v655_v31 = vpop.permute.xlu0 %654 }
  0xf3   : > { %851 = vst.msk [vmem:[#allocation2 + $0x21] sm:$0xff] %vm847_vm2, %v659_v30  ;;  %848 = vst.msk [vmem:[#allocation2 + $0x11] sm:$0xff] %vm847_vm2, %v655_v31 }
  0xf4   : > { %1208 = vrot.lane.b32.xlu1 %v545_v28, %s13235_s10  ;;  %1206 = vrot.lane.b32.xlu0 %v544_v29, %s13235_s10  ;;  %v8489_v28 = vld [vmem:[%s13227_s1 + $0x30] sm:$0xff]  }
  0xf6   : > { %v661_v34 = vpop.permute.xlu1 %660  ;;  %v657_v35 = vpop.permute.xlu0 %656 }
  0xf7   : > { %852 = vst.msk [vmem:[#allocation2 + $0x29] sm:$0x7f] %vm849_vm3, %v661_v34  ;;  %850 = vst.msk [vmem:[#allocation2 + $0x19] sm:$0x7f] %vm849_vm3, %v657_v35 }
  0xf8   : > { %696 = vrot.lane.b32.xlu1 %v547_v32, %s9025_s30  ;;  %694 = vrot.lane.b32.xlu0 %v546_v33, %s9025_s30 }
  0xfa   : > { %v916_v38 = vpop.permute.xlu1 %915  ;;  %v914_v39 = vpop.permute.xlu0 %913 }
  0xfb   : > { %1107 = vst.msk [vmem:[#allocation2 + $0x18] sm:$0xff] %vm1105_vm4, %v916_v38  ;;  %1106 = vst.msk [vmem:[#allocation2 + $0x10] sm:$0xff] %vm1105_vm4, %v914_v39 }
  0xfc   : > { %700 = vrot.lane.b32.xlu1 %v549_v36, %s9025_s30  ;;  %698 = vrot.lane.b32.xlu0 %v548_v37, %s9025_s30 }
  0xfe   : > { %v920_v40 = vpop.permute.xlu1 %919  ;;  %v918_v41 = vpop.permute.xlu0 %917 }
  0xff   : > { %1109 = vst.msk [vmem:[#allocation2 + $0x28] sm:$0xff] %vm1105_vm4, %v920_v40  ;;  %1108 = vst.msk [vmem:[#allocation2 + $0x20] sm:$0xff] %vm1105_vm4, %v918_v41 }
 0x100   : > { %955 = vrot.lane.b32.xlu1 %v547_v32, %s13243_s13  ;;  %953 = vrot.lane.b32.xlu0 %v546_v33, %s13243_s13 }
 0x102   : > { %v1173_v43 = vpop.permute.xlu1 %1172  ;;  %v1171_v44 = vpop.permute.xlu0 %1170 }
 0x103   : > { %1365 = vst.msk [vmem:[#allocation2 + $0x17] sm:$0xff] %vm1364_vm5, %v1173_v43 }
 0x104   : > { %1363 = vst.msk [vmem:[#allocation2 + $0xf] sm:$0xfe] %vm1362_vm6, %v1171_v44  ;;  %959 = vrot.lane.b32.xlu1 %v549_v36, %s13243_s13  ;;  %957 = vrot.lane.b32.xlu0 %v548_v37, %s13243_s13  ;;  %v9716_v44 = vld [vmem:[%s13227_s1 + $0x80] sm:$0xff]  }
 0x106   : > { %v1177_v45 = vpop.permute.xlu1 %1176  ;;  %v1175_v46 = vpop.permute.xlu0 %1174 }
 0x107   : > { %1367 = vst.msk [vmem:[#allocation2 + $0x27] sm:$0xff] %vm1364_vm5, %v1177_v45 }
 0x108   : > { %1366 = vst.msk [vmem:[#allocation2 + $0x1f] sm:$0xfe] %vm1362_vm6, %v1175_v46  ;;  %1212 = vrot.lane.b32.xlu1 %v547_v32, %s13235_s10  ;;  %1210 = vrot.lane.b32.xlu0 %v546_v33, %s13235_s10  ;;  %v8490_v33 = vld [vmem:[%s13227_s1 + $0x38] sm:$0xff]  }
 0x10a   : > { %v665_v47 = vpop.permute.xlu1 %664  ;;  %v663_v48 = vpop.permute.xlu0 %662  ;;  %v1493_v50 = vld [vmem:[#allocation2 + $0x18] sm:$0xff] }
 0x10b   : > { %v1492_v49 = vld [vmem:[#allocation2 + $0x10] sm:$0xff]  ;;  %854 = vst.msk [vmem:[#allocation2 + $0x39] sm:$0x7f] %vm849_vm3, %v665_v47 }
 0x10c   : > { %853 = vst.msk [vmem:[#allocation2 + $0x31] sm:$0xff] %vm847_vm2, %v663_v48  ;;  %v9614_v51 = vpack.c.bf16 %v1493_v50, %v1492_v49  ;;  %1216 = vrot.lane.b32.xlu1 %v549_v36, %s13235_s10  ;;  %1214 = vrot.lane.b32.xlu0 %v548_v37, %s13235_s10 }
 0x10e   : > { %7745 = vmatprep.mubr.bf16.mxu0 %v9614_v51  ;;  %v669_v54 = vpop.permute.xlu1 %668  ;;  %v667_v55 = vpop.permute.xlu0 %666  ;;  %v1495_v57 = vld [vmem:[#allocation2 + $0x28] sm:$0xff] }
 0x10f   : > { %v1494_v56 = vld [vmem:[#allocation2 + $0x20] sm:$0xff]  ;;  %856 = vst.msk [vmem:[#allocation2 + $0x49] sm:$0x7f] %vm849_vm3, %v669_v54 }
 0x110   : > { %855 = vst.msk [vmem:[#allocation2 + $0x41] sm:$0xff] %vm847_vm2, %v667_v55  ;;  %v9623_v58 = vpack.c.bf16 %v1495_v57, %v1494_v56  ;;  %704 = vrot.lane.b32.xlu1 %v551_v52, %s9025_s30  ;;  %702 = vrot.lane.b32.xlu0 %v550_v53, %s9025_s30 }
 0x112   : > { %7746 = vmatmul.mubr.bf16.vlgmr.msra.gmra.mrb[0].mxu0 %v9623_v58  ;;  %v924_v62 = vpop.permute.xlu1 %923  ;;  %v922_v63 = vpop.permute.xlu0 %921 }
 0x113   : > { %7778 = vmatpush3.bf16.msra.mxu0 %v8483_v42  ;;  %1111 = vst.msk [vmem:[#allocation2 + $0x38] sm:$0xff] %vm1105_vm4, %v924_v62  ;;  %1110 = vst.msk [vmem:[#allocation2 + $0x30] sm:$0xff] %vm1105_vm4, %v922_v63 }
 0x114   : > { %7779 = vmatprep.subr.bf16.mxu0 %v8484_v59  ;;  %708 = vrot.lane.b32.xlu1 %v553_v60, %s9025_s30 }
 0x115   : > { %706 = vrot.lane.b32.xlu0 %v552_v61, %s9025_s30 }
 0x116   : > { %v928_v1 = vpop.permute.xlu1 %927  ;;  %v926_v2 = vpop.permute.xlu0 %925 }
 0x117   : > { %7780 = vmatpush3.bf16.msra.mxu0 %v8484_v59  ;;  %1113 = vst.msk [vmem:[#allocation2 + $0x48] sm:$0xff] %vm1105_vm4, %v928_v1  ;;  %1112 = vst.msk [vmem:[#allocation2 + $0x40] sm:$0xff] %vm1105_vm4, %v926_v2 }
 0x118   : > { %7781 = vmatprep.subr.bf16.mxu0 %v8485_v0  ;;  %963 = vrot.lane.b32.xlu1 %v551_v52, %s13243_s13 }
 0x119   : > { %961 = vrot.lane.b32.xlu0 %v550_v53, %s13243_s13 }
 0x11a   : > { %v1181_v4 = vpop.permute.xlu1 %1180  ;;  %v1179_v5 = vpop.permute.xlu0 %1178 }
 0x11b   : > { %7782 = vmatpush3.bf16.msra.mxu0 %v8485_v0  ;;  %1369 = vst.msk [vmem:[#allocation2 + $0x37] sm:$0xff] %vm1364_vm5, %v1181_v4 }
 0x11c   : > { %1368 = vst.msk [vmem:[#allocation2 + $0x2f] sm:$0xfe] %vm1362_vm6, %v1179_v5  ;;  %7783 = vmatprep.subr.bf16.mxu0 %v8486_v3  ;;  %967 = vrot.lane.b32.xlu1 %v553_v60, %s13243_s13 }
 0x11d   : > { %965 = vrot.lane.b32.xlu0 %v552_v61, %s13243_s13 }
 0x11e   : > { %v1185_v6 = vpop.permute.xlu1 %1184  ;;  %v1183_v7 = vpop.permute.xlu0 %1182 }
 0x11f   : > { %7784 = vmatpush3.bf16.msra.mxu0 %v8486_v3  ;;  %1371 = vst.msk [vmem:[#allocation2 + $0x47] sm:$0xff] %vm1364_vm5, %v1185_v6 }
 0x120   : > { %1370 = vst.msk [vmem:[#allocation2 + $0x3f] sm:$0xfe] %vm1362_vm6, %v1183_v7  ;;  %1220 = vrot.lane.b32.xlu1 %v551_v52, %s13235_s10  ;;  %7785 = vmatprep.subr.bf16.mxu0 %v8487_v8 }
 0x121   : > { %1218 = vrot.lane.b32.xlu0 %v550_v53, %s13235_s10 }
 0x122   : > { %v673_v9 = vpop.permute.xlu1 %672  ;;  %v671_v10 = vpop.permute.xlu0 %670  ;;  %v1497_v12 = vld [vmem:[#allocation2 + $0x38] sm:$0xff] }
 0x123   : > { %v1496_v11 = vld [vmem:[#allocation2 + $0x30] sm:$0xff]  ;;  %858 = vst.msk [vmem:[#allocation2 + $0x59] sm:$0x7f] %vm849_vm3, %v673_v9  ;;  %7786 = vmatpush3.bf16.msra.mxu0 %v8487_v8 }
 0x124   : > { %857 = vst.msk [vmem:[#allocation2 + $0x51] sm:$0xff] %vm847_vm2, %v671_v10  ;;  %v9660_v13 = vpack.c.bf16 %v1497_v12, %v1496_v11  ;;  %1224 = vrot.lane.b32.xlu1 %v553_v60, %s13235_s10  ;;  %7787 = vmatprep.subr.bf16.mxu0 %v8488_v21 }
 0x125   : > { %1222 = vrot.lane.b32.xlu0 %v552_v61, %s13235_s10 }
 0x126   : > { %7749 = vmatprep.mubr.bf16.mxu0 %v9660_v13  ;;  %v677_v16 = vpop.permute.xlu1 %676  ;;  %v675_v17 = vpop.permute.xlu0 %674  ;;  %v1499_v19 = vld [vmem:[#allocation2 + $0x48] sm:$0xff] }
 0x127   : > { %v1498_v18 = vld [vmem:[#allocation2 + $0x40] sm:$0xff]  ;;  %860 = vst.msk [vmem:[#allocation2 + $0x69] sm:$0x7f] %vm849_vm3, %v677_v16  ;;  %7788 = vmatpush3.bf16.msra.mxu0 %v8488_v21 }
 0x128   : > { %859 = vst.msk [vmem:[#allocation2 + $0x61] sm:$0xff] %vm847_vm2, %v675_v17  ;;  %v9669_v20 = vpack.c.bf16 %v1499_v19, %v1498_v18  ;;  %712 = vrot.lane.b32.xlu1 %v555_v14, %s9025_s30  ;;  %7789 = vmatprep.subr.bf16.mxu0 %v8489_v28 }
 0x129   : > { %710 = vrot.lane.b32.xlu0 %v554_v15, %s9025_s30 }
 0x12a   : > { %7750 = vmatmul.mubr.bf16.gmra.mrb[4].mxu0 %v9669_v20  ;;  %v932_v24 = vpop.permute.xlu1 %931  ;;  %v930_v25 = vpop.permute.xlu0 %929 }
 0x12b   : > { %1115 = vst.msk [vmem:[#allocation2 + $0x58] sm:$0xff] %vm1105_vm4, %v932_v24  ;;  %1114 = vst.msk [vmem:[#allocation2 + $0x50] sm:$0xff] %vm1105_vm4, %v930_v25  ;;  %7790 = vmatpush3.bf16.msra.mxu0 %v8489_v28 }
 0x12c   : > { %716 = vrot.lane.b32.xlu1 %v557_v22, %s9025_s30  ;;  %7791 = vmatprep.subr.bf16.mxu0 %v8490_v33 }
 0x12d   : > { %714 = vrot.lane.b32.xlu0 %v556_v23, %s9025_s30 }
 0x12e   : > { %v936_v26 = vpop.permute.xlu1 %935  ;;  %v934_v27 = vpop.permute.xlu0 %933 }
 0x12f   : > { %1117 = vst.msk [vmem:[#allocation2 + $0x68] sm:$0xff] %vm1105_vm4, %v936_v26  ;;  %1116 = vst.msk [vmem:[#allocation2 + $0x60] sm:$0xff] %vm1105_vm4, %v934_v27  ;;  %7792 = vmatpush3.bf16.msra.mxu0 %v8490_v33 }
 0x130   : > { %971 = vrot.lane.b32.xlu1 %v555_v14, %s13243_s13  ;;  %7825 = vmatprep.subr.bf16.mxu0 %v9716_v44 }
 0x131   : > { %969 = vrot.lane.b32.xlu0 %v554_v15, %s13243_s13 }
 0x132   : > { %v1189_v29 = vpop.permute.xlu1 %1188  ;;  %v1187_v30 = vpop.permute.xlu0 %1186 }
 0x133   : > { %1373 = vst.msk [vmem:[#allocation2 + $0x57] sm:$0xff] %vm1364_vm5, %v1189_v29 }
 0x134   : > { %1372 = vst.msk [vmem:[#allocation2 + $0x4f] sm:$0xfe] %vm1362_vm6, %v1187_v30  ;;  %975 = vrot.lane.b32.xlu1 %v557_v22, %s13243_s13 }
 0x135   : > { %973 = vrot.lane.b32.xlu0 %v556_v23, %s13243_s13 }
 0x136   : > { %v1193_v31 = vpop.permute.xlu1 %1192  ;;  %v1191_v32 = vpop.permute.xlu0 %1190 }
 0x137   : > { %1375 = vst.msk [vmem:[#allocation2 + $0x67] sm:$0xff] %vm1364_vm5, %v1193_v31 }
 0x138   : > { %1374 = vst.msk [vmem:[#allocation2 + $0x5f] sm:$0xfe] %vm1362_vm6, %v1191_v32  ;;  %1228 = vrot.lane.b32.xlu1 %v555_v14, %s13235_s10 }
 0x139   : > { %1226 = vrot.lane.b32.xlu0 %v554_v15, %s13235_s10 }
 0x13a   : > { %v681_v34 = vpop.permute.xlu1 %680  ;;  %v679_v35 = vpop.permute.xlu0 %678  ;;  %v1501_v37 = vld [vmem:[#allocation2 + $0x58] sm:$0xff] }
 0x13b   : > { %v1500_v36 = vld [vmem:[#allocation2 + $0x50] sm:$0xff]  ;;  %862 = vst.msk [vmem:[#allocation2 + $0x79] sm:$0x7f] %vm849_vm3, %v681_v34 }
 0x13c   : > { %861 = vst.msk [vmem:[#allocation2 + $0x71] sm:$0xff] %vm847_vm2, %v679_v35  ;;  %v9703_v38 = vpack.c.bf16 %v1501_v37, %v1500_v36  ;;  %1232 = vrot.lane.b32.xlu1 %v557_v22, %s13235_s10 }
 0x13d   : > { %1230 = vrot.lane.b32.xlu0 %v556_v23, %s13235_s10  ;;  %s7227_s10 = sshll.u32 %s9148_s23, 4  ;;  %s13071_s10 = int_to_ptr.vmem [resolvable:$true] %s7227_s10 }
 0x13e   : > { %7753 = vmatprep.mubr.bf16.mxu0 %v9703_v38  ;;  %v685_v39 = vpop.permute.xlu1 %684  ;;  %v683_v40 = vpop.permute.xlu0 %682  ;;  %v1503_v42 = vld [vmem:[#allocation2 + $0x68] sm:$0xff]  ;;  %s8913_s19 = scalar_lea.vmem %s13071_s10, 8192  ;;  %p8920_p3 = scmp.lt.s32.totalorder %s13071_s10, %s8918_s8 }
 0x13f   : > { %v1502_v41 = vld [vmem:[#allocation2 + $0x60] sm:$0xff]  ;;  %864 = vst.msk [vmem:[#allocation2 + $0x89] sm:$0x7f] %vm849_vm3, %v685_v39  ;;  %p8914_p13 = scmp.ne.s32.totalorder %s13071_s10, %s8913_s19 }
 0x140   : > { %863 = vst.msk [vmem:[#allocation2 + $0x81] sm:$0xff] %vm847_vm2, %v683_v40  ;;  %v9710_v43 = vpack.c.bf16 %v1503_v42, %v1502_v41 }
 0x141   : > { %p8915_p0 = pnand %p8914_p13, %p9123_p4 }
 0x142   : > { %7754 = vmatmul.mubr.bf16.gmra.mrb[8].mxu0 %v9710_v43  ;;  %v940_v45 = vpop.permute.xlu1 %939  ;;  %v938_v46 = vpop.permute.xlu0 %937 }
 0x143   : > { %1119 = vst.msk [vmem:[#allocation2 + $0x78] sm:$0xff] %vm1105_vm4, %v940_v45  ;;  %1118 = vst.msk [vmem:[#allocation2 + $0x70] sm:$0xff] %vm1105_vm4, %v938_v46  ;;  %p8916_p1 = pneg %p8915_p0 }
 0x146   : > { %v944_v47 = vpop.permute.xlu1 %943  ;;  %v942_v48 = vpop.permute.xlu0 %941 }
 0x147   : > { %1121 = vst.msk [vmem:[#allocation2 + $0x88] sm:$0xff] %vm1105_vm4, %v944_v47  ;;  %1120 = vst.msk [vmem:[#allocation2 + $0x80] sm:$0xff] %vm1105_vm4, %v942_v48 }
 0x14a   : > { %v1197_v49 = vpop.permute.xlu1 %1196  ;;  %v1195_v50 = vpop.permute.xlu0 %1194 }
 0x14b   : > { %1377 = vst.msk [vmem:[#allocation2 + $0x77] sm:$0xff] %vm1364_vm5, %v1197_v49 }
 0x14c   : > { %1376 = vst.msk [vmem:[#allocation2 + $0x6f] sm:$0xfe] %vm1362_vm6, %v1195_v50 }
 0x14e   : > { %v1201_v52 = vpop.permute.xlu1 %1200  ;;  %v1199_v53 = vpop.permute.xlu0 %1198 }
 0x14f   : > { %1379 = vst.msk [vmem:[#allocation2 + $0x87] sm:$0xff] %vm1364_vm5, %v1201_v52 }
 0x150   : > { %1378 = vst.msk [vmem:[#allocation2 + $0x7f] sm:$0xfe] %vm1362_vm6, %v1199_v53 }
 0x152   : > { %v689_v54 = vpop.permute.xlu1 %688  ;;  %v687_v55 = vpop.permute.xlu0 %686  ;;  %v1505_v57 = vld [vmem:[#allocation2 + $0x78] sm:$0xff] }
 0x153   : > { %v1504_v56 = vld [vmem:[#allocation2 + $0x70] sm:$0xff]  ;;  %866 = vst.msk [vmem:[#allocation2 + $0x99] sm:$0x7f] %vm849_vm3, %v689_v54 }
 0x154   : > { %865 = vst.msk [vmem:[#allocation2 + $0x91] sm:$0xff] %vm847_vm2, %v687_v55  ;;  %v9729_v59 = vpack.c.bf16 %v1505_v57, %v1504_v56 }
 0x156   : > { %7757 = vmatprep.mubr.bf16.mxu0 %v9729_v59  ;;  %v693_v60 = vpop.permute.xlu1 %692  ;;  %v691_v61 = vpop.permute.xlu0 %690  ;;  %v1507_v63 = vld [vmem:[#allocation2 + $0x88] sm:$0xff] }
 0x157   : > { %v1506_v62 = vld [vmem:[#allocation2 + $0x80] sm:$0xff]  ;;  %868 = vst.msk [vmem:[#allocation2 + $0xa9] sm:$0x7f] %vm849_vm3, %v693_v60 }
 0x158   : > { %867 = vst.msk [vmem:[#allocation2 + $0xa1] sm:$0xff] %vm847_vm2, %v691_v61  ;;  %v9734_v0 = vpack.c.bf16 %v1507_v63, %v1506_v62 }
 0x15a   : > { %7758 = vmatmul.mubr.bf16.gmra.mrb[12].mxu0 %v9734_v0  ;;  %v948_v1 = vpop.permute.xlu1 %947  ;;  %v946_v2 = vpop.permute.xlu0 %945 }
 0x15b   : > { %1123 = vst.msk [vmem:[#allocation2 + $0x98] sm:$0xff] %vm1105_vm4, %v948_v1  ;;  %1122 = vst.msk [vmem:[#allocation2 + $0x90] sm:$0xff] %vm1105_vm4, %v946_v2 }
 0x15e   : > { %v952_v3 = vpop.permute.xlu1 %951  ;;  %v950_v4 = vpop.permute.xlu0 %949 }
 0x15f   : > { %1125 = vst.msk [vmem:[#allocation2 + $0xa8] sm:$0xff] %vm1105_vm4, %v952_v3  ;;  %1124 = vst.msk [vmem:[#allocation2 + $0xa0] sm:$0xff] %vm1105_vm4, %v950_v4 }
 0x162   : > { %v1205_v5 = vpop.permute.xlu1 %1204  ;;  %v1203_v6 = vpop.permute.xlu0 %1202 }
 0x163   : > { %1381 = vst.msk [vmem:[#allocation2 + $0x97] sm:$0xff] %vm1364_vm5, %v1205_v5 }
 0x164   : > { %1380 = vst.msk [vmem:[#allocation2 + $0x8f] sm:$0xfe] %vm1362_vm6, %v1203_v6 }
 0x166   : > { %v1209_v7 = vpop.permute.xlu1 %1208  ;;  %v1207_v8 = vpop.permute.xlu0 %1206 }
 0x167   : > { %1383 = vst.msk [vmem:[#allocation2 + $0xa7] sm:$0xff] %vm1364_vm5, %v1209_v7 }
 0x168   : > { %1382 = vst.msk [vmem:[#allocation2 + $0x9f] sm:$0xfe] %vm1362_vm6, %v1207_v8 }
 0x16a   : > { %v697_v9 = vpop.permute.xlu1 %696  ;;  %v695_v10 = vpop.permute.xlu0 %694  ;;  %v1509_v12 = vld [vmem:[#allocation2 + $0x98] sm:$0xff] }
 0x16b   : > { %v1508_v11 = vld [vmem:[#allocation2 + $0x90] sm:$0xff]  ;;  %870 = vst.msk [vmem:[#allocation2 + $0xb9] sm:$0x7f] %vm849_vm3, %v697_v9 }
 0x16c   : > { %869 = vst.msk [vmem:[#allocation2 + $0xb1] sm:$0xff] %vm847_vm2, %v695_v10  ;;  %v9747_v14 = vpack.c.bf16 %v1509_v12, %v1508_v11  ;;  %v1428_v11 = vld [vmem:[#allocation2] sm:$0xff]  ;;  %v1429_v12 = vld [vmem:[#allocation2 + $0x8] sm:$0xff] }
 0x16e   : > { %7761 = vmatprep.mubr.bf16.mxu0 %v9747_v14  ;;  %v701_v15 = vpop.permute.xlu1 %700  ;;  %v699_v16 = vpop.permute.xlu0 %698  ;;  %v1511_v18 = vld [vmem:[#allocation2 + $0xa8] sm:$0xff] }
 0x16f   : > { %v1510_v17 = vld [vmem:[#allocation2 + $0xa0] sm:$0xff]  ;;  %872 = vst.msk [vmem:[#allocation2 + $0xc9] sm:$0x7f] %vm849_vm3, %v701_v15 }
 0x170   : > { %871 = vst.msk [vmem:[#allocation2 + $0xc1] sm:$0xff] %vm847_vm2, %v699_v16  ;;  %v9752_v19 = vpack.c.bf16 %v1511_v18, %v1510_v17  ;;  %v1460_v17 = vpack.c.bf16 %v1429_v12, %v1428_v11 }
 0x172   : > { %7762 = vmatmul.mubr.bf16.gmra.mrb[16].mxu0 %v9752_v19  ;;  %v956_v21 = vpop.permute.xlu1 %955  ;;  %v954_v22 = vpop.permute.xlu0 %953 }
 0x173   : > { %1127 = vst.msk [vmem:[#allocation2 + $0xb8] sm:$0xff] %vm1105_vm4, %v956_v21  ;;  %1126 = vst.msk [vmem:[#allocation2 + $0xb0] sm:$0xff] %vm1105_vm4, %v954_v22  ;;  %v8492_v21 = vld [vmem:[%s13227_s1 + $0x88] sm:$0xff]   ;;  %v8493_v22 = vld [vmem:[%s13227_s1 + $0x90] sm:$0xff]  }
 0x176   : > { %v960_v23 = vpop.permute.xlu1 %959  ;;  %v958_v24 = vpop.permute.xlu0 %957 }
 0x177   : > { %1129 = vst.msk [vmem:[#allocation2 + $0xc8] sm:$0xff] %vm1105_vm4, %v960_v23  ;;  %1128 = vst.msk [vmem:[#allocation2 + $0xc0] sm:$0xff] %vm1105_vm4, %v958_v24  ;;  %v8494_v23 = vld [vmem:[%s13227_s1 + $0x98] sm:$0xff]   ;;  %v8497_v24 = vld [vmem:[%s13227_s1 + $0xb0] sm:$0xff]  }
 0x17a   : > { %v1213_v25 = vpop.permute.xlu1 %1212  ;;  %v1211_v26 = vpop.permute.xlu0 %1210 }
 0x17b   : > { %1385 = vst.msk [vmem:[#allocation2 + $0xb7] sm:$0xff] %vm1364_vm5, %v1213_v25  ;;  %v8498_v25 = vld [vmem:[%s13227_s1 + $0xb8] sm:$0xff]  }
 0x17c   : > { %1384 = vst.msk [vmem:[#allocation2 + $0xaf] sm:$0xfe] %vm1362_vm6, %v1211_v26 }
 0x17e   : > { %v1217_v27 = vpop.permute.xlu1 %1216  ;;  %v1215_v28 = vpop.permute.xlu0 %1214 }
 0x17f   : > { %1387 = vst.msk [vmem:[#allocation2 + $0xc7] sm:$0xff] %vm1364_vm5, %v1217_v27  ;;  %v2426_v27 = vld [vmem:[%s13230_s4 + $0x20] sm:$0xff] }
 0x180   : > { %1386 = vst.msk [vmem:[#allocation2 + $0xbf] sm:$0xfe] %vm1362_vm6, %v1215_v28  ;;  %v2427_v28 = vld [vmem:[%s13230_s4 + $0x28] sm:$0xff] }
 0x182   : > { %v705_v29 = vpop.permute.xlu1 %704  ;;  %v703_v30 = vpop.permute.xlu0 %702  ;;  %v1513_v32 = vld [vmem:[#allocation2 + $0xb8] sm:$0xff] }
 0x183   : > { %v1512_v31 = vld [vmem:[#allocation2 + $0xb0] sm:$0xff]  ;;  %874 = vst.msk [vmem:[#allocation2 + $0xd9] sm:$0x7f] %vm849_vm3, %v705_v29  ;;  %v9876_v29 = vpack.c.bf16 %v2427_v28, %v2426_v27 }
 0x184   : > { %873 = vst.msk [vmem:[#allocation2 + $0xd1] sm:$0xff] %vm847_vm2, %v703_v30  ;;  %v9765_v33 = vpack.c.bf16 %v1513_v32, %v1512_v31  ;;  %v2428_v30 = vld [vmem:[%s13230_s4 + $0x30] sm:$0xff]  ;;  %v2429_v31 = vld [vmem:[%s13230_s4 + $0x38] sm:$0xff] }
 0x185   : > { %v9886_v32 = vpack.c.bf16 %v2429_v31, %v2428_v30 }
 0x186   : > { %7765 = vmatprep.mubr.bf16.mxu0 %v9765_v33  ;;  %v709_v34 = vpop.permute.xlu1 %708  ;;  %v1515_v37 = vld [vmem:[#allocation2 + $0xc8] sm:$0xff] }
 0x187   : > { %v707_v35 = vpop.permute.xlu0 %706  ;;  %v1514_v36 = vld [vmem:[#allocation2 + $0xc0] sm:$0xff]  ;;  %876 = vst.msk [vmem:[#allocation2 + $0xe9] sm:$0x7f] %vm849_vm3, %v709_v34  ;;  %v2431_v34 = vld [vmem:[%s13230_s4 + $0x48] sm:$0xff] }
 0x188   : > { %875 = vst.msk [vmem:[#allocation2 + $0xe1] sm:$0xff] %vm847_vm2, %v707_v35  ;;  %v9770_v39 = vpack.c.bf16 %v1515_v37, %v1514_v36  ;;  %v2432_v36 = vld [vmem:[%s13230_s4 + $0x50] sm:$0xff]  ;;  %v2433_v37 = vld [vmem:[%s13230_s4 + $0x58] sm:$0xff] }
 0x18a   : > { %7766 = vmatmul.mubr.bf16.gmra.mrb[20].mxu0 %v9770_v39  ;;  %v964_v40 = vpop.permute.xlu1 %963 }
 0x18b   : > { %v962_v41 = vpop.permute.xlu0 %961  ;;  %1131 = vst.msk [vmem:[#allocation2 + $0xd8] sm:$0xff] %vm1105_vm4, %v964_v40  ;;  %v2434_v40 = vld [vmem:[%s13230_s4 + $0x60] sm:$0xff] }
 0x18c   : > { %1130 = vst.msk [vmem:[#allocation2 + $0xd0] sm:$0xff] %vm1105_vm4, %v962_v41  ;;  %v2435_v41 = vld [vmem:[%s13230_s4 + $0x68] sm:$0xff] }
 0x18e   : > { %v968_v42 = vpop.permute.xlu1 %967 }
 0x18f   : > { %v966_v45 = vpop.permute.xlu0 %965  ;;  %1133 = vst.msk [vmem:[#allocation2 + $0xe8] sm:$0xff] %vm1105_vm4, %v968_v42  ;;  %v9916_v42 = vpack.c.bf16 %v2435_v41, %v2434_v40 }
 0x190   : > { %1132 = vst.msk [vmem:[#allocation2 + $0xe0] sm:$0xff] %vm1105_vm4, %v966_v45  ;;  %v2436_v45 = vld [vmem:[%s13230_s4 + $0x70] sm:$0xff] }
 0x192   : > { %v1221_v46 = vpop.permute.xlu1 %1220 }
 0x193   : > { %v1219_v47 = vpop.permute.xlu0 %1218  ;;  %1389 = vst.msk [vmem:[#allocation2 + $0xd7] sm:$0xff] %vm1364_vm5, %v1221_v46  ;;  %v2437_v46 = vld [vmem:[%s13230_s4 + $0x78] sm:$0xff] }
 0x194   : > { %1388 = vst.msk [vmem:[#allocation2 + $0xcf] sm:$0xfe] %vm1362_vm6, %v1219_v47  ;;  %v13237_v47 = vmov 0.0  }
 0x195   : > { %7905 = vmatprep.mubr.msk.f32.mxu1 %vm9029_vm7, %v13237_v47 }
 0x196   : > { %v1225_v48 = vpop.permute.xlu1 %1224 }
 0x197   : > { %v1223_v49 = vpop.permute.xlu0 %1222  ;;  %1391 = vst.msk [vmem:[#allocation2 + $0xe7] sm:$0xff] %vm1364_vm5, %v1225_v48  ;;  %v9929_v48 = vpack.c.bf16 %v2437_v46, %v2436_v45 }
 0x198   : > { %1390 = vst.msk [vmem:[#allocation2 + $0xdf] sm:$0xfe] %vm1362_vm6, %v1223_v49  ;;  %v559_v49 = vld [vmem:[%s9146_s22 + $0x108] sm:$0xff] }
 0x199   : > { %720 = vrot.lane.b32.xlu1 %v559_v49, %s9025_s30 }
 0x19a   : > { %v713_v50 = vpop.permute.xlu1 %712  ;;  %v1517_v54 = vld [vmem:[#allocation2 + $0xd8] sm:$0xff] }
 0x19b   : > { %v711_v52 = vpop.permute.xlu0 %710  ;;  %v1516_v53 = vld [vmem:[#allocation2 + $0xd0] sm:$0xff]  ;;  %878 = vst.msk [vmem:[#allocation2 + $0xf9] sm:$0x7f] %vm849_vm3, %v713_v50  ;;  %v558_v50 = vld [vmem:[%s9146_s22 + $0x100] sm:$0xff] }
 0x19c   : > { %877 = vst.msk [vmem:[#allocation2 + $0xf1] sm:$0xff] %vm847_vm2, %v711_v52  ;;  %v9783_v55 = vpack.c.bf16 %v1517_v54, %v1516_v53  ;;  %718 = vrot.lane.b32.xlu0 %v558_v50, %s9025_s30  ;;  %v561_v52 = vld [vmem:[%s9146_s22 + $0x118] sm:$0xff]  ;;  %v560_v53 = vld [vmem:[%s9146_s22 + $0x110] sm:$0xff]  ;;  %v563_v54 = vld [vmem:[%s9146_s22 + $0x128] sm:$0xff] }
 0x19d   : > { %724 = vrot.lane.b32.xlu1 %v561_v52, %s9025_s30 }
 0x19e   : > { %7769 = vmatprep.mubr.bf16.mxu0 %v9783_v55  ;;  %v717_v56 = vpop.permute.xlu1 %716  ;;  %v1519_v61 = vld [vmem:[#allocation2 + $0xe8] sm:$0xff] }
 0x19f   : > { %v715_v57 = vpop.permute.xlu0 %714  ;;  %v1518_v60 = vld [vmem:[#allocation2 + $0xe0] sm:$0xff]  ;;  %880 = vst.msk [vmem:[#allocation2 + $0x109] sm:$0x7f] %vm849_vm3, %v717_v56 }
 0x1a0   : > { %879 = vst.msk [vmem:[#allocation2 + $0x101] sm:$0xff] %vm847_vm2, %v715_v57  ;;  %v9788_v62 = vpack.c.bf16 %v1519_v61, %v1518_v60  ;;  %722 = vrot.lane.b32.xlu0 %v560_v53, %s9025_s30  ;;  %v565_v60 = vld [vmem:[%s9146_s22 + $0x138] sm:$0xff]  ;;  %v564_v61 = vld [vmem:[%s9146_s22 + $0x130] sm:$0xff] }
 0x1a1   : > { %979 = vrot.lane.b32.xlu1 %v559_v49, %s13243_s13 }
 0x1a2   : > { %7770 = vmatmul.mubr.bf16.gmra.mrb[24].mxu0 %v9788_v62  ;;  %v972_v63 = vpop.permute.xlu1 %971 }
 0x1a3   : > { %v970_v1 = vpop.permute.xlu0 %969  ;;  %1135 = vst.msk [vmem:[#allocation2 + $0xf8] sm:$0xff] %vm1105_vm4, %v972_v63 }
 0x1a4   : > { %1134 = vst.msk [vmem:[#allocation2 + $0xf0] sm:$0xff] %vm1105_vm4, %v970_v1  ;;  %977 = vrot.lane.b32.xlu0 %v558_v50, %s13243_s13 }
 0x1a5   : > { %983 = vrot.lane.b32.xlu1 %v561_v52, %s13243_s13 }
 0x1a6   : > { %v976_v2 = vpop.permute.xlu1 %975 }
 0x1a7   : > { %v974_v3 = vpop.permute.xlu0 %973  ;;  %1137 = vst.msk [vmem:[#allocation2 + $0x108] sm:$0xff] %vm1105_vm4, %v976_v2 }
 0x1a8   : > { %1136 = vst.msk [vmem:[#allocation2 + $0x100] sm:$0xff] %vm1105_vm4, %v974_v3  ;;  %981 = vrot.lane.b32.xlu0 %v560_v53, %s13243_s13 }
 0x1a9   : > { %1236 = vrot.lane.b32.xlu1 %v559_v49, %s13300_s16 }
 0x1aa   : > { %v1229_v4 = vpop.permute.xlu1 %1228 }
 0x1ab   : > { %v1227_v5 = vpop.permute.xlu0 %1226  ;;  %1393 = vst.msk [vmem:[#allocation2 + $0xf7] sm:$0xff] %vm1364_vm5, %v1229_v4 }
 0x1ac   : > { %1392 = vst.msk [vmem:[#allocation2 + $0xef] sm:$0xfe] %vm1362_vm6, %v1227_v5  ;;  %1234 = vrot.lane.b32.xlu0 %v558_v50, %s13300_s16 }
 0x1ad   : > { %1240 = vrot.lane.b32.xlu1 %v561_v52, %s13300_s16 }
 0x1ae   : > { %v1233_v6 = vpop.permute.xlu1 %1232 }
 0x1af   : > { %v1231_v7 = vpop.permute.xlu0 %1230  ;;  %1395 = vst.msk [vmem:[#allocation2 + $0x107] sm:$0xff] %vm1364_vm5, %v1233_v6 }
 0x1b0   : > { %1394 = vst.msk [vmem:[#allocation2 + $0xff] sm:$0xfe] %vm1362_vm6, %v1231_v7  ;;  %1238 = vrot.lane.b32.xlu0 %v560_v53, %s13300_s16  ;;  %v569_v53 = vld [vmem:[%s9146_s22 + $0x158] sm:$0xff] }
 0x1b1   : > { %728 = vrot.lane.b32.xlu1 %v563_v54, %s9025_s30 }
 0x1b2   : > { %v1521_v9 = vld [vmem:[#allocation2 + $0xf8] sm:$0xff] }
 0x1b3   : > { %v1520_v8 = vld [vmem:[#allocation2 + $0xf0] sm:$0xff] }
 0x1b4   : > { %v1538_v10 = vpack.c.bf16 %v1521_v9, %v1520_v8 }
 0x1b5   : > { %732 = vrot.lane.b32.xlu1 %v565_v60, %s9025_s30 }
 0x1b6   : > { %7773 = vmatprep.mubr.bf16.mxu0 %v1538_v10  ;;  %v1523_v16 = vld [vmem:[#allocation2 + $0x108] sm:$0xff] }
 0x1b7   : > { %v1522_v15 = vld [vmem:[#allocation2 + $0x100] sm:$0xff] }
 0x1b8   : > { %v1539_v18 = vpack.c.bf16 %v1523_v16, %v1522_v15 }
 0x1b9   : > { %987 = vrot.lane.b32.xlu1 %v563_v54, %s13243_s13 }
 0x1ba   : > { %7774 = vmatmul.mubr.bf16.gmra.mrb[28].mxu0 %v1539_v18 }
 0x1bb   : > { %7793 = vmatprep.mubr.bf16.mxu0 %v1460_v17 }
 0x1bd   : > { %991 = vrot.lane.b32.xlu1 %v565_v60, %s13243_s13 }
 0x1c1   : > { %1244 = vrot.lane.b32.xlu1 %v563_v54, %s13300_s16  ;;  %v568_v54 = vld [vmem:[%s9146_s22 + $0x150] sm:$0xff] }
 0x1c2   : > { %7794 = vmatmul.mubr.bf16.vlgmr.msra.gmra.mrb[0].mxu0 %v9614_v51  ;;  %v8495_v51 = vld [vmem:[%s13227_s1 + $0xa0] sm:$0xff]  }
 0x1c3   : > { %7797 = vmatprep.mubr.bf16.mxu0 %v9623_v58  ;;  %7826 = vmatpush3.bf16.msra.mxu0 %v9716_v44  ;;  %v8496_v44 = vld [vmem:[%s13227_s1 + $0xa8] sm:$0xff]  }
 0x1c4   : > { %7827 = vmatprep.subr.bf16.mxu0 %v8492_v21 }
 0x1c5   : > { %1248 = vrot.lane.b32.xlu1 %v565_v60, %s13300_s16 }
 0x1c7   : > { %7828 = vmatpush3.bf16.msra.mxu0 %v8492_v21 }
 0x1c8   : > { %7829 = vmatprep.subr.bf16.mxu0 %v8493_v22 }
 0x1ca   : > { %7798 = vmatmul.mubr.bf16.gmra.mrb[4].mxu0 %v9660_v13 }
 0x1cb   : > { %7801 = vmatprep.mubr.bf16.mxu0 %v9669_v20  ;;  %7830 = vmatpush3.bf16.msra.mxu0 %v8493_v22 }
 0x1cc   : > { %7831 = vmatprep.subr.bf16.mxu0 %v8494_v23 }
 0x1cf   : > { %7832 = vmatpush3.bf16.msra.mxu0 %v8494_v23 }
 0x1d0   : > { %7833 = vmatprep.subr.bf16.mxu0 %v8495_v51 }
 0x1d2   : > { %7802 = vmatmul.mubr.bf16.gmra.mrb[8].mxu0 %v9703_v38 }
 0x1d3   : > { %7805 = vmatprep.mubr.bf16.mxu0 %v9710_v43  ;;  %7834 = vmatpush3.bf16.msra.mxu0 %v8495_v51 }
 0x1d4   : > { %7835 = vmatprep.subr.bf16.mxu0 %v8496_v44 }
 0x1d7   : > { %7836 = vmatpush3.bf16.msra.mxu0 %v8496_v44 }
 0x1d8   : > { %7837 = vmatprep.subr.bf16.mxu0 %v8497_v24 }
 0x1da   : > { %7806 = vmatmul.mubr.bf16.gmra.mrb[12].mxu0 %v9729_v59 }
 0x1db   : > { %7809 = vmatprep.mubr.bf16.mxu0 %v9734_v0  ;;  %7838 = vmatpush3.bf16.msra.mxu0 %v8497_v24 }
 0x1dc   : > { %7839 = vmatprep.subr.bf16.mxu0 %v8498_v25 }
 0x1df   : > { %7840 = vmatpush3.bf16.msra.mxu0 %v8498_v25 }
 0x1e2   : > { %7810 = vmatmul.mubr.bf16.gmra.mrb[16].mxu0 %v9747_v14 }
 0x1e3   : > { %7813 = vmatprep.mubr.bf16.mxu0 %v9752_v19 }
 0x1ea   : > { %7814 = vmatmul.mubr.bf16.gmra.mrb[20].mxu0 %v9765_v33 }
 0x1eb   : > { %7817 = vmatprep.mubr.bf16.mxu0 %v9770_v39 }
 0x1f2   : > { %7818 = vmatmul.mubr.bf16.gmra.mrb[24].mxu0 %v9783_v55 }
 0x1f3   : > { %7821 = vmatprep.mubr.bf16.mxu0 %v9788_v62 }
 0x1fa   : > { %7822 = vmatmul.mubr.bf16.gmra.mrb[28].mxu0 %v1538_v10 }
 0x1fb   : > { %7841 = vmatprep.mubr.bf16.mxu0 %v9623_v58  ;;  %v2006_v58 = vld [vmem:[#allocation2 + $0x110] sm:$0xff] }
 0x202   : > { %7842 = vmatmul.mubr.bf16.vlgmr.msra.gmra.mrb[0].mxu0 %v9660_v13  ;;  %v2007_v13 = vld [vmem:[#allocation2 + $0x118] sm:$0xff] }
 0x203   : > { %7845 = vmatprep.mubr.bf16.mxu0 %v9669_v20  ;;  %v2023_v20 = vpack.c.bf16 %v2007_v13, %v2006_v58 }
 0x20a   : > { %7846 = vmatmul.mubr.bf16.gmra.mrb[4].mxu0 %v9703_v38  ;;  %v2422_v38 = vld [vmem:[%s13230_s4] sm:$0xff] }
 0x20b   : > { %7849 = vmatprep.mubr.bf16.mxu0 %v9710_v43  ;;  %v2423_v43 = vld [vmem:[%s13230_s4 + $0x8] sm:$0xff] }
 0x212   : > { %7850 = vmatmul.mubr.bf16.gmra.mrb[8].mxu0 %v9729_v59  ;;  %v9854_v59 = vpack.c.bf16 %v2423_v43, %v2422_v38 }
 0x213   : > { %7853 = vmatprep.mubr.bf16.mxu0 %v9734_v0  ;;  %v13239_v0 = vmov 0.0|0.0  }
 0x214   : > { %8177 = vmatprep.subr.bf16.mxu1 %v13239_v0  ;;  %8225 = vmatprep.subr.bf16.mxu0 %v13239_v0 }
 0x215   : > { %8179 = vmatpush3.bf16.msra.mxu1 %v9854_v59 }
 0x216   : > { %8180 = vmatprep.subr.bf16.mxu1 %v13239_v0 }
 0x21a   : > { %7854 = vmatmul.mubr.bf16.gmra.mrb[12].mxu0 %v9747_v14  ;;  %v2424_v14 = vld [vmem:[%s13230_s4 + $0x10] sm:$0xff] }
 0x21b   : > { %7857 = vmatprep.mubr.bf16.mxu0 %v9752_v19  ;;  %v2425_v19 = vld [vmem:[%s13230_s4 + $0x18] sm:$0xff] }
 0x21c   : > { %v9866_v26 = vpack.c.bf16 %v2425_v19, %v2424_v14 }
 0x21e   : > { %8182 = vmatpush3.bf16.msra.mxu1 %v9866_v26 }
 0x21f   : > { %8183 = vmatprep.subr.bf16.mxu1 %v13239_v0 }
 0x222   : > { %7858 = vmatmul.mubr.bf16.gmra.mrb[16].mxu0 %v9765_v33  ;;  %8185 = vmatpush3.bf16.msra.mxu1 %v9876_v29  ;;  %v2430_v33 = vld [vmem:[%s13230_s4 + $0x40] sm:$0xff] }
 0x223   : > { %7861 = vmatprep.mubr.bf16.mxu0 %v9770_v39  ;;  %8186 = vmatprep.subr.bf16.mxu1 %v13239_v0  ;;  %v9896_v35 = vpack.c.bf16 %v2431_v34, %v2430_v33  ;;  %v9906_v39 = vpack.c.bf16 %v2433_v37, %v2432_v36  ;;  %v567_v34 = vld [vmem:[%s9146_s22 + $0x148] sm:$0xff]  ;;  %v566_v36 = vld [vmem:[%s9146_s22 + $0x140] sm:$0xff] }
 0x224   : > { %736 = vrot.lane.b32.xlu1 %v567_v34, %s9025_s30 }
 0x226   : > { %8188 = vmatpush3.bf16.msra.mxu1 %v9886_v32 }
 0x227   : > { %8189 = vmatprep.subr.bf16.mxu1 %v13239_v0 }
 0x228   : > { %740 = vrot.lane.b32.xlu1 %v569_v53, %s9025_s30 }
 0x22a   : > { %7862 = vmatmul.mubr.bf16.gmra.mrb[20].mxu0 %v9783_v55  ;;  %8191 = vmatpush3.bf16.msra.mxu1 %v9896_v35  ;;  %v562_v55 = vld [vmem:[%s9146_s22 + $0x120] sm:$0xff] }
 0x22b   : > { %7865 = vmatprep.mubr.bf16.mxu0 %v9788_v62  ;;  %8192 = vmatprep.subr.bf16.mxu1 %v13239_v0 }
 0x22c   : > { %726 = vrot.lane.b32.xlu0 %v562_v55, %s9025_s30  ;;  %995 = vrot.lane.b32.xlu1 %v567_v34, %s13243_s13 }
 0x22e   : > { %8194 = vmatpush3.bf16.msra.mxu1 %v9906_v39 }
 0x22f   : > { %8195 = vmatprep.subr.bf16.mxu1 %v13239_v0 }
 0x230   : > { %730 = vrot.lane.b32.xlu0 %v564_v61, %s9025_s30  ;;  %999 = vrot.lane.b32.xlu1 %v569_v53, %s13243_s13 }
 0x232   : > { %7866 = vmatmul.mubr.bf16.gmra.mrb[24].mxu0 %v1538_v10  ;;  %8197 = vmatpush3.bf16.msra.mxu1 %v9916_v42 }
 0x233   : > { %7869 = vmatprep.mubr.bf16.mxu0 %v1539_v18  ;;  %8198 = vmatprep.subr.bf16.mxu1 %v13239_v0 }
 0x234   : > { %985 = vrot.lane.b32.xlu0 %v562_v55, %s13243_s13  ;;  %1252 = vrot.lane.b32.xlu1 %v567_v34, %s13300_s16 }
 0x236   : > { %8200 = vmatpush3.bf16.msra.mxu1 %v9929_v48 }
 0x237   : > { %8201 = vmatprep.subr.bf16.mxu1 %v13239_v0 }
 0x238   : > { %989 = vrot.lane.b32.xlu0 %v564_v61, %s13243_s13  ;;  %1256 = vrot.lane.b32.xlu1 %v569_v53, %s13300_s16 }
 0x23a   : > { %7870 = vmatmul.mubr.bf16.gmra.mrb[28].mxu0 %v2023_v20 }
 0x23b   : > { %8129 = vmatprep.mubr.msk.f32.mxu0 %vm9029_vm7, %v13237_v47 }
 0x23c   : > { %1242 = vrot.lane.b32.xlu0 %v562_v55, %s13300_s16 }
 0x240   : > { %1246 = vrot.lane.b32.xlu0 %v564_v61, %s13300_s16 }
 0x244   : > { %734 = vrot.lane.b32.xlu0 %v566_v36, %s9025_s30 }
 0x248   : > { %738 = vrot.lane.b32.xlu0 %v568_v54, %s9025_s30 }
 0x24c   : > { %993 = vrot.lane.b32.xlu0 %v566_v36, %s13243_s13 }
 0x250   : > { %997 = vrot.lane.b32.xlu0 %v568_v54, %s13243_s13 }
 0x254   : > { %1250 = vrot.lane.b32.xlu0 %v566_v36, %s13300_s16  ;;  %v571_v36 = vld [vmem:[%s9146_s22 + $0x168] sm:$0xff] }
 0x255   : > { %744 = vrot.lane.b32.xlu1 %v571_v36, %s9025_s30 }
 0x258   : > { %1254 = vrot.lane.b32.xlu0 %v568_v54, %s13300_s16  ;;  %v573_v54 = vld [vmem:[%s9146_s22 + $0x178] sm:$0xff] }
 0x259   : > { %748 = vrot.lane.b32.xlu1 %v573_v54, %s9025_s30 }
 0x25d   : > { %1003 = vrot.lane.b32.xlu1 %v571_v36, %s13243_s13 }
 0x261   : > { %1007 = vrot.lane.b32.xlu1 %v573_v54, %s13243_s13 }
 0x265   : > { %1260 = vrot.lane.b32.xlu1 %v571_v36, %s13300_s16 }
 0x269   : > { %1264 = vrot.lane.b32.xlu1 %v573_v54, %s13300_s16  ;;  %v719_v54 = vpop.permute.xlu0 %718 }
 0x26a   : > { %881 = vst.msk [vmem:[#allocation2 + $0x131] sm:$0xff] %vm847_vm2, %v719_v54 }
 0x2d5   : > { %v9952_v56 = vpop.f32.mrb[0].mxu0 }
 0x2d6   : > { %v9956_v57 = vpop.f32.mrb[1].mxu0  ;;  %v2354_v4 = vmul.f32 %v9952_v56, %v9952_v56 }
 0x2d7   : > { %v9960_v62 = vpop.f32.mrb[2].mxu0  ;;  %v2352_v1 = vmul.f32 %v9956_v57, %v9956_v57 }
 0x2d8   : > { %v9962_v63 = vpop.f32.mrb[3].mxu0  ;;  %v2355_v7 = vmul.f32 %v9960_v62, %v9960_v62 }
 0x2d9   : > { %v2314_v2 = vadd.f32 %v9962_v63, %v9956_v57  ;;  %v2353_v3 = vmul.f32 %v9962_v63, %v9962_v63 }
 0x2db   : > { %v2315_v5 = vadd.f32 %v9952_v56, %v2314_v2  ;;  %v2384_v6 = vadd.f32 %v2353_v3, %v2352_v1 }
 0x2dd   : > { %v2385_v8 = vadd.f32 %v2384_v6, %v2354_v4  ;;  %v9977_v9 = vpop.f32.mrb[4].mxu0  ;;  %v2316_v10 = vadd.f32 %v9960_v62, %v2315_v5 }
 0x2de   : > { %v9982_v11 = vpop.f32.mrb[5].mxu0  ;;  %v2358_v51 = vmul.f32 %v9977_v9, %v9977_v9 }
 0x2df   : > { %v2317_v12 = vadd.f32 %v2316_v10, %v9982_v11  ;;  %v2356_v15 = vmul.f32 %v9982_v11, %v9982_v11  ;;  %v2386_v16 = vadd.f32 %v2385_v8, %v2355_v7  ;;  %v9987_v17 = vpop.f32.mrb[6].mxu0 }
 0x2e0   : > { %v9989_v18 = vpop.f32.mrb[7].mxu0  ;;  %v2359_v25 = vmul.f32 %v9987_v17, %v9987_v17 }
 0x2e1   : > { %v2387_v21 = vadd.f32 %v2386_v16, %v2356_v15  ;;  %v2318_v22 = vadd.f32 %v2317_v12, %v9989_v18  ;;  %v2357_v23 = vmul.f32 %v9989_v18, %v9989_v18 }
 0x2e3   : > { %v2319_v44 = vadd.f32 %v9977_v9, %v2318_v22  ;;  %v2388_v24 = vadd.f32 %v2387_v21, %v2357_v23 }
 0x2e5   : > { %v2389_v58 = vadd.f32 %v2388_v24, %v2358_v51  ;;  %v10001_v13 = vpop.f32.mrb[8].mxu0  ;;  %v2320_v20 = vadd.f32 %v9987_v17, %v2319_v44 }
 0x2e6   : > { %v10006_v38 = vpop.f32.mrb[9].mxu0  ;;  %v2362_v37 = vmul.f32 %v10001_v13, %v10001_v13 }
 0x2e7   : > { %v2321_v43 = vadd.f32 %v2320_v20, %v10006_v38  ;;  %v2360_v14 = vmul.f32 %v10006_v38, %v10006_v38  ;;  %v2390_v19 = vadd.f32 %v2389_v58, %v2359_v25  ;;  %v10011_v27 = vpop.f32.mrb[10].mxu0 }
 0x2e8   : > { %v10013_v28 = vpop.f32.mrb[11].mxu0  ;;  %v2363_v45 = vmul.f32 %v10011_v27, %v10011_v27 }
 0x2e9   : > { %v2391_v30 = vadd.f32 %v2390_v19, %v2360_v14  ;;  %v2322_v31 = vadd.f32 %v2321_v43, %v10013_v28  ;;  %v2361_v33 = vmul.f32 %v10013_v28, %v10013_v28 }
 0x2eb   : > { %v2323_v40 = vadd.f32 %v10001_v13, %v2322_v31  ;;  %v2392_v41 = vadd.f32 %v2391_v30, %v2361_v33 }
 0x2ed   : > { %v2393_v46 = vadd.f32 %v2392_v41, %v2362_v37  ;;  %v10027_v49 = vpop.f32.mrb[12].mxu0  ;;  %v2324_v50 = vadd.f32 %v10011_v27, %v2323_v40 }
 0x2ee   : > { %v10032_v52 = vpop.f32.mrb[13].mxu0  ;;  %v2366_v6 = vmul.f32 %v10027_v49, %v10027_v49 }
 0x2ef   : > { %v2325_v55 = vadd.f32 %v2324_v50, %v10032_v52  ;;  %v2364_v60 = vmul.f32 %v10032_v52, %v10032_v52  ;;  %v2394_v61 = vadd.f32 %v2393_v46, %v2363_v45  ;;  %v10039_v1 = vpop.f32.mrb[14].mxu0 }
 0x2f0   : > { %v10041_v2 = vpop.f32.mrb[15].mxu0  ;;  %v2367_v10 = vmul.f32 %v10039_v1, %v10039_v1 }
 0x2f1   : > { %v2395_v3 = vadd.f32 %v2394_v61, %v2364_v60  ;;  %v2326_v4 = vadd.f32 %v2325_v55, %v10041_v2  ;;  %v2365_v5 = vmul.f32 %v10041_v2, %v10041_v2 }
 0x2f3   : > { %v2327_v7 = vadd.f32 %v10027_v49, %v2326_v4  ;;  %v2396_v8 = vadd.f32 %v2395_v3, %v2365_v5  ;;  %v570_v3 = vld [vmem:[%s9146_s22 + $0x160] sm:$0xff] }
 0x2f4   : > { %742 = vrot.lane.b32.xlu0 %v570_v3, %s9025_s30 }
 0x2f5   : > { %v2397_v12 = vadd.f32 %v2396_v8, %v2366_v6  ;;  %v10053_v15 = vpop.f32.mrb[16].mxu0  ;;  %v2328_v16 = vadd.f32 %v10039_v1, %v2327_v7 }
 0x2f6   : > { %v10058_v21 = vpop.f32.mrb[17].mxu0  ;;  %v2370_v43 = vmul.f32 %v10053_v15, %v10053_v15 }
 0x2f7   : > { %v2329_v22 = vadd.f32 %v2328_v16, %v10058_v21  ;;  %v2368_v23 = vmul.f32 %v10058_v21, %v10058_v21  ;;  %v2398_v51 = vadd.f32 %v2397_v12, %v2367_v10  ;;  %v10063_v44 = vpop.f32.mrb[18].mxu0  ;;  %v572_v16 = vld [vmem:[%s9146_s22 + $0x170] sm:$0xff] }
 0x2f8   : > { %v10065_v24 = vpop.f32.mrb[19].mxu0  ;;  %v2371_v30 = vmul.f32 %v10063_v44, %v10063_v44  ;;  %746 = vrot.lane.b32.xlu0 %v572_v16, %s9025_s30 }
 0x2f9   : > { %v2399_v25 = vadd.f32 %v2398_v51, %v2368_v23  ;;  %v2330_v58 = vadd.f32 %v2329_v22, %v10065_v24  ;;  %v2369_v20 = vmul.f32 %v10065_v24, %v10065_v24 }
 0x2fb   : > { %v2331_v14 = vadd.f32 %v10053_v15, %v2330_v58  ;;  %v2400_v19 = vadd.f32 %v2399_v25, %v2369_v20 }
 0x2fc   : > { %1001 = vrot.lane.b32.xlu0 %v570_v3, %s13243_s13 }
 0x2fd   : > { %v2401_v31 = vadd.f32 %v2400_v19, %v2370_v43  ;;  %v10077_v33 = vpop.f32.mrb[20].mxu0  ;;  %v2332_v37 = vadd.f32 %v10063_v44, %v2331_v14 }
 0x2fe   : > { %v10082_v40 = vpop.f32.mrb[21].mxu0  ;;  %v2374_v4 = vmul.f32 %v10077_v33, %v10077_v33 }
 0x2ff   : > { %v2333_v41 = vadd.f32 %v2332_v37, %v10082_v40  ;;  %v2372_v45 = vmul.f32 %v10082_v40, %v10082_v40  ;;  %v2402_v46 = vadd.f32 %v2401_v31, %v2371_v30  ;;  %v10087_v50 = vpop.f32.mrb[22].mxu0 }
 0x300   : > { %v10089_v55 = vpop.f32.mrb[23].mxu0  ;;  %v2375_v7 = vmul.f32 %v10087_v50, %v10087_v50  ;;  %1005 = vrot.lane.b32.xlu0 %v572_v16, %s13243_s13 }
 0x301   : > { %v2403_v60 = vadd.f32 %v2402_v46, %v2372_v45  ;;  %v2334_v61 = vadd.f32 %v2333_v41, %v10089_v55  ;;  %v2373_v34 = vmul.f32 %v10089_v55, %v10089_v55 }
 0x303   : > { %v2335_v5 = vadd.f32 %v10077_v33, %v2334_v61  ;;  %v2404_v6 = vadd.f32 %v2403_v60, %v2373_v34 }
 0x304   : > { %1258 = vrot.lane.b32.xlu0 %v570_v3, %s13300_s16  ;;  %v721_v3 = vpop.permute.xlu1 %720 }
 0x305   : > { %v2405_v8 = vadd.f32 %v2404_v6, %v2374_v4  ;;  %v10103_v10 = vpop.f32.mrb[24].mxu0  ;;  %v2336_v12 = vadd.f32 %v10087_v50, %v2335_v5  ;;  %882 = vst.msk [vmem:[#allocation2 + $0x139] sm:$0x7f] %vm849_vm3, %v721_v3  ;;  %v584_v3 = vld [vmem:[%s9146_s22 + $0x1d0] sm:$0xff] }
 0x306   : > { %v10108_v53 = vpop.f32.mrb[25].mxu0  ;;  %v2378_v19 = vmul.f32 %v10103_v10, %v10103_v10 }
 0x307   : > { %v2337_v22 = vadd.f32 %v2336_v12, %v10108_v53  ;;  %v2376_v23 = vmul.f32 %v10108_v53, %v10108_v53  ;;  %v2406_v51 = vadd.f32 %v2405_v8, %v2375_v7  ;;  %v10115_v25 = vpop.f32.mrb[26].mxu0 }
 0x308   : > { %v10117_v58 = vpop.f32.mrb[27].mxu0  ;;  %v2379_v37 = vmul.f32 %v10115_v25, %v10115_v25  ;;  %1262 = vrot.lane.b32.xlu0 %v572_v16, %s13300_s16  ;;  %v725_v16 = vpop.permute.xlu1 %724 }
 0x309   : > { %v2407_v20 = vadd.f32 %v2406_v51, %v2376_v23  ;;  %v2338_v43 = vadd.f32 %v2337_v22, %v10117_v58  ;;  %v2377_v14 = vmul.f32 %v10117_v58, %v10117_v58  ;;  %884 = vst.msk [vmem:[#allocation2 + $0x149] sm:$0x7f] %vm849_vm3, %v725_v16 }
 0x30b   : > { %v2339_v30 = vadd.f32 %v10103_v10, %v2338_v43  ;;  %v2408_v31 = vadd.f32 %v2407_v20, %v2377_v14 }
 0x30d   : > { %v2409_v41 = vadd.f32 %v2408_v31, %v2378_v19  ;;  %v10129_v45 = vpop.f32.mrb[28].mxu0  ;;  %v2340_v46 = vadd.f32 %v10115_v25, %v2339_v30 }
 0x30e   : > { %v10134_v60 = vpop.f32.mrb[29].mxu0  ;;  %v2382_v22 = vmul.f32 %v10129_v45, %v10129_v45 }
 0x30f   : > { %v2341_v61 = vadd.f32 %v2340_v46, %v10134_v60  ;;  %v2380_v34 = vmul.f32 %v10134_v60, %v10134_v60  ;;  %v2410_v4 = vadd.f32 %v2409_v41, %v2379_v37  ;;  %v10139_v5 = vpop.f32.mrb[30].mxu0  ;;  %v575_v37 = vld [vmem:[%s9146_s22 + $0x188] sm:$0xff]  ;;  %v574_v41 = vld [vmem:[%s9146_s22 + $0x180] sm:$0xff] }
 0x310   : > { %v10141_v6 = vpop.f32.mrb[31].mxu0  ;;  %v2383_v20 = vmul.f32 %v10139_v5, %v10139_v5  ;;  %752 = vrot.lane.b32.xlu1 %v575_v37, %s9025_s30  ;;  %750 = vrot.lane.b32.xlu0 %v574_v41, %s9025_s30 }
 0x311   : > { %v2411_v7 = vadd.f32 %v2410_v4, %v2380_v34  ;;  %v2342_v8 = vadd.f32 %v2341_v61, %v10141_v6  ;;  %v2381_v12 = vmul.f32 %v10141_v6, %v10141_v6  ;;  %v577_v34 = vld [vmem:[%s9146_s22 + $0x198] sm:$0xff]  ;;  %v576_v4 = vld [vmem:[%s9146_s22 + $0x190] sm:$0xff] }
 0x313   : > { %v2343_v23 = vadd.f32 %v10129_v45, %v2342_v8  ;;  %v2412_v51 = vadd.f32 %v2411_v7, %v2381_v12  ;;  %v723_v8 = vpop.permute.xlu0 %722  ;;  %v578_v12 = vld [vmem:[%s9146_s22 + $0x1a0] sm:$0xff] }
 0x314   : > { %756 = vrot.lane.b32.xlu1 %v577_v34, %s9025_s30  ;;  %754 = vrot.lane.b32.xlu0 %v576_v4, %s9025_s30  ;;  %883 = vst.msk [vmem:[#allocation2 + $0x141] sm:$0xff] %vm847_vm2, %v723_v8 }
 0x315   : > { %v2344_v43 = vadd.f32 %v10139_v5, %v2343_v23  ;;  %v2413_v14 = vadd.f32 %v2412_v51, %v2382_v22  ;;  %v581_v22 = vld [vmem:[%s9146_s22 + $0x1b8] sm:$0xff]  ;;  %v980_v23 = vpop.permute.xlu1 %979 }
 0x316   : > { %1139 = vst.msk [vmem:[#allocation2 + $0x138] sm:$0xff] %vm1105_vm4, %v980_v23  ;;  %v587_v23 = vld [vmem:[%s9146_s22 + $0x1e8] sm:$0xff] }
 0x317   : > { %v2345_v19 = vrot.slane %v2344_v43, 4  ;;  %v2414_v30 = vadd.f32 %v2413_v14, %v2383_v20  ;;  %v978_v51 = vpop.permute.xlu0 %977  ;;  %v580_v20 = vld [vmem:[%s9146_s22 + $0x1b0] sm:$0xff] }
 0x318   : > { %1011 = vrot.lane.b32.xlu1 %v575_v37, %s13243_s13  ;;  %1009 = vrot.lane.b32.xlu0 %v574_v41, %s13243_s13  ;;  %1138 = vst.msk [vmem:[#allocation2 + $0x130] sm:$0xff] %vm1105_vm4, %v978_v51 }
 0x319   : > { %v2346_v31 = vadd.f32 %v2345_v19, %v2344_v43  ;;  %v984_v43 = vpop.permute.xlu1 %983 }
 0x31a   : > { %1141 = vst.msk [vmem:[#allocation2 + $0x148] sm:$0xff] %vm1105_vm4, %v984_v43  ;;  %v589_v43 = vld [vmem:[%s9146_s22 + $0x1f8] sm:$0xff] }
 0x31b   : > { %v2347_v46 = vrot.slane %v2346_v31, 2  ;;  %v982_v14 = vpop.permute.xlu0 %981 }
 0x31c   : > { %1015 = vrot.lane.b32.xlu1 %v577_v34, %s13243_s13  ;;  %1013 = vrot.lane.b32.xlu0 %v576_v4, %s13243_s13  ;;  %1140 = vst.msk [vmem:[#allocation2 + $0x140] sm:$0xff] %vm1105_vm4, %v982_v14 }
 0x31d   : > { %v2348_v61 = vadd.f32 %v2347_v46, %v2346_v31  ;;  %v1237_v19 = vpop.permute.xlu1 %1236  ;;  %v583_v46 = vld [vmem:[%s9146_s22 + $0x1c8] sm:$0xff] }
 0x31e   : > { %1397 = vst.msk [vmem:[#allocation2 + $0x137] sm:$0xff] %vm1364_vm5, %v1237_v19  ;;  %v588_v19 = vld [vmem:[%s9146_s22 + $0x1f0] sm:$0xff] }
 0x31f   : > { %v2349_v36 = vrot.slane %v2348_v61, 1 }
 0x320   : > { %1268 = vrot.lane.b32.xlu1 %v575_v37, %s13300_s16  ;;  %1266 = vrot.lane.b32.xlu0 %v574_v41, %s13300_s16 }
 0x321   : > { %v2350_v7 = vadd.f32 %v2349_v36, %v2348_v61  ;;  %v1241_v31 = vpop.permute.xlu1 %1240  ;;  %v585_v36 = vld [vmem:[%s9146_s22 + $0x1d8] sm:$0xff] }
 0x322   : > { %1399 = vst.msk [vmem:[#allocation2 + $0x147] sm:$0xff] %vm1364_vm5, %v1241_v31 }
 0x323   : > { %7906 = vmatmul.mubr.f32.vlgmr.msra.gmra.mrb[0].mxu1 %v2350_v7 }
 0x324   : > { %8203 = vmatpush3.bf16.msra.mxu1 %v9854_v59  ;;  %7940 = vmatprep.mubr.msk.f32.mxu1 %vm9029_vm7, %v13237_v47  ;;  %v2415_v59 = vrot.slane %v2414_v30, 4 }
 0x325   : > { %8204 = vmatprep.subr.bf16.mxu1 %v13239_v0  ;;  %1272 = vrot.lane.b32.xlu1 %v577_v34, %s13300_s16 }
 0x326   : > { %1270 = vrot.lane.b32.xlu0 %v576_v4, %s13300_s16  ;;  %v582_v4 = vld [vmem:[%s9146_s22 + $0x1c0] sm:$0xff] }
 0x328   : > { %8206 = vmatpush3.bf16.msra.mxu1 %v9866_v26  ;;  %v2416_v26 = vadd.f32 %v2415_v59, %v2414_v30  ;;  %v1235_v30 = vpop.permute.xlu0 %1234 }
 0x329   : > { %8207 = vmatprep.subr.bf16.mxu1 %v13239_v0  ;;  %1396 = vst.msk [vmem:[#allocation2 + $0x12f] sm:$0xfe] %vm1362_vm6, %v1235_v30 }
 0x32a   : > { %758 = vrot.lane.b32.xlu0 %v578_v12, %s9025_s30 }
 0x32c   : > { %8209 = vmatpush3.bf16.msra.mxu1 %v9876_v29  ;;  %v579_v29 = vld [vmem:[%s9146_s22 + $0x1a8] sm:$0xff]  ;;  %v1239_v37 = vpop.permute.xlu0 %1238 }
 0x32d   : > { %8210 = vmatprep.subr.bf16.mxu1 %v13239_v0  ;;  %760 = vrot.lane.b32.xlu1 %v579_v29, %s9025_s30  ;;  %1398 = vst.msk [vmem:[#allocation2 + $0x13f] sm:$0xfe] %vm1362_vm6, %v1239_v37 }
 0x32e   : > { %762 = vrot.lane.b32.xlu0 %v580_v20, %s9025_s30 }
 0x330   : > { %8212 = vmatpush3.bf16.msra.mxu1 %v9886_v32  ;;  %v2417_v32 = vrot.slane %v2416_v26, 2  ;;  %v727_v41 = vpop.permute.xlu0 %726 }
 0x331   : > { %8213 = vmatprep.subr.bf16.mxu1 %v13239_v0  ;;  %764 = vrot.lane.b32.xlu1 %v581_v22, %s9025_s30  ;;  %885 = vst.msk [vmem:[#allocation2 + $0x151] sm:$0xff] %vm847_vm2, %v727_v41 }
 0x332   : > { %1017 = vrot.lane.b32.xlu0 %v578_v12, %s13243_s13 }
 0x334   : > { %8215 = vmatpush3.bf16.msra.mxu1 %v9896_v35  ;;  %v2418_v35 = vadd.f32 %v2417_v32, %v2416_v26  ;;  %v731_v34 = vpop.permute.xlu0 %730 }
 0x335   : > { %8216 = vmatprep.subr.bf16.mxu1 %v13239_v0  ;;  %1019 = vrot.lane.b32.xlu1 %v579_v29, %s13243_s13  ;;  %887 = vst.msk [vmem:[#allocation2 + $0x161] sm:$0xff] %vm847_vm2, %v731_v34 }
 0x336   : > { %1021 = vrot.lane.b32.xlu0 %v580_v20, %s13243_s13 }
 0x338   : > { %8218 = vmatpush3.bf16.msra.mxu1 %v9906_v39  ;;  %v2419_v39 = vrot.slane %v2418_v35, 1  ;;  %v986_v59 = vpop.permute.xlu0 %985 }
 0x339   : > { %8219 = vmatprep.subr.bf16.mxu1 %v13239_v0  ;;  %1023 = vrot.lane.b32.xlu1 %v581_v22, %s13243_s13  ;;  %1142 = vst.msk [vmem:[#allocation2 + $0x150] sm:$0xff] %vm1105_vm4, %v986_v59 }
 0x33a   : > { %1274 = vrot.lane.b32.xlu0 %v578_v12, %s13300_s16 }
 0x33c   : > { %8221 = vmatpush3.bf16.msra.mxu1 %v9916_v42  ;;  %v2420_v42 = vadd.f32 %v2419_v39, %v2418_v35  ;;  %v990_v26 = vpop.permute.xlu0 %989  ;;  %v586_v35 = vld [vmem:[%s9146_s22 + $0x1e0] sm:$0xff] }
 0x33d   : > { %8222 = vmatprep.subr.bf16.mxu1 %v13239_v0  ;;  %1276 = vrot.lane.b32.xlu1 %v579_v29, %s13300_s16  ;;  %1144 = vst.msk [vmem:[#allocation2 + $0x160] sm:$0xff] %vm1105_vm4, %v990_v26 }
 0x33e   : > { %1278 = vrot.lane.b32.xlu0 %v580_v20, %s13300_s16 }
 0x340   : > { %8224 = vmatpush3.bf16.msra.mxu1 %v9929_v48  ;;  %v729_v48 = vpop.permute.xlu1 %728  ;;  %v1243_v16 = vpop.permute.xlu0 %1242 }
 0x341   : > { %7943 = vmatprep.subr.mxu1 %v13237_v47  ;;  %886 = vst.msk [vmem:[#allocation2 + $0x159] sm:$0x7f] %vm849_vm3, %v729_v48  ;;  %1280 = vrot.lane.b32.xlu1 %v581_v22, %s13300_s16 }
 0x342   : > { %766 = vrot.lane.b32.xlu0 %v582_v4, %s9025_s30  ;;  %1400 = vst.msk [vmem:[#allocation2 + $0x14f] sm:$0xfe] %vm1362_vm6, %v1243_v16 }
 0x343   : > { %7941 = vmatmul.mubr.f32.vlgmr.msra.gmra.mrb[2].mxu1 %v2420_v42 }
 0x344   : > { %7945 = vmatprep.mubr.msk.f32.mxu1 %vm9029_vm7, %v13237_v47  ;;  %v733_v61 = vpop.permute.xlu1 %732  ;;  %v1247_v12 = vpop.permute.xlu0 %1246 }
 0x345   : > { %888 = vst.msk [vmem:[#allocation2 + $0x169] sm:$0x7f] %vm849_vm3, %v733_v61  ;;  %768 = vrot.lane.b32.xlu1 %v583_v46, %s9025_s30 }
 0x346   : > { %770 = vrot.lane.b32.xlu0 %v584_v3, %s9025_s30  ;;  %1402 = vst.msk [vmem:[#allocation2 + $0x15f] sm:$0xfe] %vm1362_vm6, %v1247_v12 }
 0x348   : > { %v988_v7 = vpop.permute.xlu1 %987  ;;  %v735_v22 = vpop.permute.xlu0 %734 }
 0x349   : > { %1143 = vst.msk [vmem:[#allocation2 + $0x158] sm:$0xff] %vm1105_vm4, %v988_v7  ;;  %772 = vrot.lane.b32.xlu1 %v585_v36, %s9025_s30 }
 0x34a   : > { %1025 = vrot.lane.b32.xlu0 %v582_v4, %s13243_s13  ;;  %889 = vst.msk [vmem:[#allocation2 + $0x171] sm:$0xff] %vm847_vm2, %v735_v22 }
 0x34c   : > { %v992_v54 = vpop.permute.xlu1 %991  ;;  %v739_v20 = vpop.permute.xlu0 %738 }
 0x34d   : > { %1145 = vst.msk [vmem:[#allocation2 + $0x168] sm:$0xff] %vm1105_vm4, %v992_v54  ;;  %1027 = vrot.lane.b32.xlu1 %v583_v46, %s13243_s13 }
 0x34e   : > { %1029 = vrot.lane.b32.xlu0 %v584_v3, %s13243_s13  ;;  %891 = vst.msk [vmem:[#allocation2 + $0x181] sm:$0xff] %vm847_vm2, %v739_v20 }
 0x350   : > { %v1245_v29 = vpop.permute.xlu1 %1244  ;;  %v994_v39 = vpop.permute.xlu0 %993 }
 0x351   : > { %1401 = vst.msk [vmem:[#allocation2 + $0x157] sm:$0xff] %vm1364_vm5, %v1245_v29  ;;  %1031 = vrot.lane.b32.xlu1 %v585_v36, %s13243_s13 }
 0x352   : > { %1282 = vrot.lane.b32.xlu0 %v582_v4, %s13300_s16  ;;  %1146 = vst.msk [vmem:[#allocation2 + $0x170] sm:$0xff] %vm1105_vm4, %v994_v39 }
 0x354   : > { %v1249_v8 = vpop.permute.xlu1 %1248  ;;  %v998_v42 = vpop.permute.xlu0 %997 }
 0x355   : > { %1403 = vst.msk [vmem:[#allocation2 + $0x167] sm:$0xff] %vm1364_vm5, %v1249_v8  ;;  %1284 = vrot.lane.b32.xlu1 %v583_v46, %s13300_s16  ;;  %v10279_v46 = vld [vmem:[%s13231_s5] sm:$0xf] }
 0x356   : > { %1286 = vrot.lane.b32.xlu0 %v584_v3, %s13300_s16  ;;  %1148 = vst.msk [vmem:[#allocation2 + $0x180] sm:$0xff] %vm1105_vm4, %v998_v42  ;;  %7944 = vmatpush3.msk.msra.mxu1 %vm2588_vm8, %v10279_v46 }
 0x357   : > { %7948 = vmatprep.subr.mxu1 %v13237_v47 }
 0x358   : > { %v737_v32 = vpop.permute.xlu1 %736  ;;  %v1251_v37 = vpop.permute.xlu0 %1250 }
 0x359   : > { %890 = vst.msk [vmem:[#allocation2 + $0x179] sm:$0x7f] %vm849_vm3, %v737_v32  ;;  %1288 = vrot.lane.b32.xlu1 %v585_v36, %s13300_s16 }
 0x35a   : > { %774 = vrot.lane.b32.xlu0 %v586_v35, %s9025_s30  ;;  %1404 = vst.msk [vmem:[#allocation2 + $0x16f] sm:$0xfe] %vm1362_vm6, %v1251_v37 }
 0x35c   : > { %v741_v51 = vpop.permute.xlu1 %740  ;;  %v1255_v41 = vpop.permute.xlu0 %1254 }
 0x35d   : > { %892 = vst.msk [vmem:[#allocation2 + $0x189] sm:$0x7f] %vm849_vm3, %v741_v51  ;;  %776 = vrot.lane.b32.xlu1 %v587_v23, %s9025_s30 }
 0x35e   : > { %778 = vrot.lane.b32.xlu0 %v588_v19, %s9025_s30  ;;  %1406 = vst.msk [vmem:[#allocation2 + $0x17f] sm:$0xfe] %vm1362_vm6, %v1255_v41 }
 0x360   : > { %v996_v14 = vpop.permute.xlu1 %995 }
 0x361   : > { %1147 = vst.msk [vmem:[#allocation2 + $0x178] sm:$0xff] %vm1105_vm4, %v996_v14  ;;  %780 = vrot.lane.b32.xlu1 %v589_v43, %s9025_s30 }
 0x362   : > { %1033 = vrot.lane.b32.xlu0 %v586_v35, %s13243_s13 }
 0x364   : > { %v1000_v30 = vpop.permute.xlu1 %999 }
 0x365   : > { %1149 = vst.msk [vmem:[#allocation2 + $0x188] sm:$0xff] %vm1105_vm4, %v1000_v30  ;;  %1035 = vrot.lane.b32.xlu1 %v587_v23, %s13243_s13 }
 0x366   : > { %1037 = vrot.lane.b32.xlu0 %v588_v19, %s13243_s13  ;;  %v743_v34 = vpop.permute.xlu0 %742 }
 0x367   : > { %893 = vst.msk [vmem:[#allocation2 + $0x191] sm:$0xff] %vm847_vm2, %v743_v34 }
 0x368   : > { %v1253_v31 = vpop.permute.xlu1 %1252 }
 0x369   : > { %1405 = vst.msk [vmem:[#allocation2 + $0x177] sm:$0xff] %vm1364_vm5, %v1253_v31  ;;  %1039 = vrot.lane.b32.xlu1 %v589_v43, %s13243_s13  ;;  %s9032_s13 = smov 96  }
 0x36a   : > { %1290 = vrot.lane.b32.xlu0 %v586_v35, %s13300_s16  ;;  %v747_v36 = vpop.permute.xlu0 %746 }
 0x36b   : > { %895 = vst.msk [vmem:[#allocation2 + $0x1a1] sm:$0xff] %vm847_vm2, %v747_v36 }
 0x36c   : > { %v1257_v48 = vpop.permute.xlu1 %1256 }
 0x36d   : > { %1407 = vst.msk [vmem:[#allocation2 + $0x187] sm:$0xff] %vm1364_vm5, %v1257_v48  ;;  %1292 = vrot.lane.b32.xlu1 %v587_v23, %s13300_s16 }
 0x36e   : > { %1294 = vrot.lane.b32.xlu0 %v588_v19, %s13300_s16  ;;  %v1002_v59 = vpop.permute.xlu0 %1001 }
 0x36f   : > { %1150 = vst.msk [vmem:[#allocation2 + $0x190] sm:$0xff] %vm1105_vm4, %v1002_v59 }
 0x370   : > { %v745_v61 = vpop.permute.xlu1 %744 }
 0x371   : > { %894 = vst.msk [vmem:[#allocation2 + $0x199] sm:$0x7f] %vm849_vm3, %v745_v61  ;;  %1296 = vrot.lane.b32.xlu1 %v589_v43, %s13300_s16 }
 0x372   : > { %v1006_v54 = vpop.permute.xlu0 %1005 }
 0x373   : > { %1152 = vst.msk [vmem:[#allocation2 + $0x1a0] sm:$0xff] %vm1105_vm4, %v1006_v54 }
 0x374   : > { %v749_v4 = vpop.permute.xlu1 %748 }
 0x375   : > { %896 = vst.msk [vmem:[#allocation2 + $0x1a9] sm:$0x7f] %vm849_vm3, %v749_v4 }
 0x376   : > { %v1259_v29 = vpop.permute.xlu0 %1258 }
 0x377   : > { %1408 = vst.msk [vmem:[#allocation2 + $0x18f] sm:$0xfe] %vm1362_vm6, %v1259_v29 }
 0x378   : > { %v1004_v7 = vpop.permute.xlu1 %1003 }
 0x379   : > { %1151 = vst.msk [vmem:[#allocation2 + $0x198] sm:$0xff] %vm1105_vm4, %v1004_v7 }
 0x37a   : > { %v1263_v8 = vpop.permute.xlu0 %1262 }
 0x37b   : > { %1410 = vst.msk [vmem:[#allocation2 + $0x19f] sm:$0xfe] %vm1362_vm6, %v1263_v8 }
 0x37c   : > { %v1008_v3 = vpop.permute.xlu1 %1007 }
 0x37d   : > { %1153 = vst.msk [vmem:[#allocation2 + $0x1a8] sm:$0xff] %vm1105_vm4, %v1008_v3 }
 0x380   : > { %v1261_v26 = vpop.permute.xlu1 %1260 }
 0x381   : > { %1409 = vst.msk [vmem:[#allocation2 + $0x197] sm:$0xff] %vm1364_vm5, %v1261_v26 }
 0x382   : > { %v751_v32 = vpop.permute.xlu0 %750 }
 0x383   : > { %897 = vst.msk [vmem:[#allocation2 + $0x1b1] sm:$0xff] %vm847_vm2, %v751_v32 }
 0x384   : > { %v1265_v16 = vpop.permute.xlu1 %1264 }
 0x385   : > { %1411 = vst.msk [vmem:[#allocation2 + $0x1a7] sm:$0xff] %vm1364_vm5, %v1265_v16 }
 0x386   : > { %v755_v23 = vpop.permute.xlu0 %754 }
 0x387   : > { %899 = vst.msk [vmem:[#allocation2 + $0x1c1] sm:$0xff] %vm847_vm2, %v755_v23 }
 0x388   : > { %v753_v12 = vpop.permute.xlu1 %752 }
 0x389   : > { %898 = vst.msk [vmem:[#allocation2 + $0x1b9] sm:$0x7f] %vm849_vm3, %v753_v12 }
 0x38a   : > { %v1010_v20 = vpop.permute.xlu0 %1009 }
 0x38b   : > { %1154 = vst.msk [vmem:[#allocation2 + $0x1b0] sm:$0xff] %vm1105_vm4, %v1010_v20 }
 0x38c   : > { %v757_v22 = vpop.permute.xlu1 %756 }
 0x38d   : > { %900 = vst.msk [vmem:[#allocation2 + $0x1c9] sm:$0x7f] %vm849_vm3, %v757_v22 }
 0x38e   : > { %v1014_v43 = vpop.permute.xlu0 %1013 }
 0x38f   : > { %1156 = vst.msk [vmem:[#allocation2 + $0x1c0] sm:$0xff] %vm1105_vm4, %v1014_v43 }
 0x390   : > { %v1012_v51 = vpop.permute.xlu1 %1011 }
 0x391   : > { %1155 = vst.msk [vmem:[#allocation2 + $0x1b8] sm:$0xff] %vm1105_vm4, %v1012_v51 }
 0x392   : > { %v1267_v39 = vpop.permute.xlu0 %1266 }
 0x393   : > { %1412 = vst.msk [vmem:[#allocation2 + $0x1af] sm:$0xfe] %vm1362_vm6, %v1267_v39 }
 0x394   : > { %v1016_v35 = vpop.permute.xlu1 %1015 }
 0x395   : > { %1157 = vst.msk [vmem:[#allocation2 + $0x1c8] sm:$0xff] %vm1105_vm4, %v1016_v35 }
 0x398   : > { %v1269_v14 = vpop.permute.xlu1 %1268  ;;  %v1271_v30 = vpop.permute.xlu0 %1270 }
 0x399   : > { %1413 = vst.msk [vmem:[#allocation2 + $0x1b7] sm:$0xff] %vm1364_vm5, %v1269_v14 }
 0x39a   : > { %1414 = vst.msk [vmem:[#allocation2 + $0x1bf] sm:$0xfe] %vm1362_vm6, %v1271_v30 }
 0x39c   : > { %v1273_v19 = vpop.permute.xlu1 %1272  ;;  %v759_v31 = vpop.permute.xlu0 %758 }
 0x39d   : > { %1415 = vst.msk [vmem:[#allocation2 + $0x1c7] sm:$0xff] %vm1364_vm5, %v1273_v19 }
 0x39e   : > { %901 = vst.msk [vmem:[#allocation2 + $0x1d1] sm:$0xff] %vm847_vm2, %v759_v31 }
 0x3a0   : > { %v761_v42 = vpop.permute.xlu1 %760  ;;  %v763_v48 = vpop.permute.xlu0 %762 }
 0x3a1   : > { %902 = vst.msk [vmem:[#allocation2 + $0x1d9] sm:$0x7f] %vm849_vm3, %v761_v42 }
 0x3a2   : > { %903 = vst.msk [vmem:[#allocation2 + $0x1e1] sm:$0xff] %vm847_vm2, %v763_v48  ;;  %v3005_v48 = vld [vmem:[#allocation6 + $0x8] sm:$0xff] }
 0x3a3   : > { %3070 = vrot.lane.b32.xlu1 %v3005_v48, %s9025_s30  ;;  %v3026_v48 = vld [vmem:[#allocation6 + $0xb0] sm:$0xff] }
 0x3a4   : > { %v765_v37 = vpop.permute.xlu1 %764  ;;  %v1018_v61 = vpop.permute.xlu0 %1017 }
 0x3a5   : > { %904 = vst.msk [vmem:[#allocation2 + $0x1e9] sm:$0x7f] %vm849_vm3, %v765_v37 }
 0x3a6   : > { %1158 = vst.msk [vmem:[#allocation2 + $0x1d0] sm:$0xff] %vm1105_vm4, %v1018_v61 }
 0x3a8   : > { %v1020_v41 = vpop.permute.xlu1 %1019  ;;  %v1022_v4 = vpop.permute.xlu0 %1021 }
 0x3a9   : > { %1159 = vst.msk [vmem:[#allocation2 + $0x1d8] sm:$0xff] %vm1105_vm4, %v1020_v41  ;;  %1160 = vst.msk [vmem:[#allocation2 + $0x1e0] sm:$0xff] %vm1105_vm4, %v1022_v4  ;;  %v3004_v41 = vld [vmem:[#allocation6] sm:$0xff]  ;;  %v3007_v4 = vld [vmem:[#allocation6 + $0x18] sm:$0xff] }
 0x3aa   : > { %3068 = vrot.lane.b32.xlu0 %v3004_v41, %s9025_s30  ;;  %3074 = vrot.lane.b32.xlu1 %v3007_v4, %s9025_s30 }
 0x3ac   : > { %v1024_v34 = vpop.permute.xlu1 %1023  ;;  %v1275_v7 = vpop.permute.xlu0 %1274 }
 0x3ad   : > { %1161 = vst.msk [vmem:[#allocation2 + $0x1e8] sm:$0xff] %vm1105_vm4, %v1024_v34 }
 0x3ae   : > { %1416 = vst.msk [vmem:[#allocation2 + $0x1cf] sm:$0xfe] %vm1362_vm6, %v1275_v7 }
 0x3b0   : > { %v1277_v36 = vpop.permute.xlu1 %1276  ;;  %v1279_v3 = vpop.permute.xlu0 %1278 }
 0x3b1   : > { %1417 = vst.msk [vmem:[#allocation2 + $0x1d7] sm:$0xff] %vm1364_vm5, %v1277_v36  ;;  %v3006_v36 = vld [vmem:[#allocation6 + $0x10] sm:$0xff] }
 0x3b2   : > { %1418 = vst.msk [vmem:[#allocation2 + $0x1df] sm:$0xfe] %vm1362_vm6, %v1279_v3  ;;  %3072 = vrot.lane.b32.xlu0 %v3006_v36, %s9025_s30  ;;  %v3009_v3 = vld [vmem:[#allocation6 + $0x28] sm:$0xff] }
 0x3b3   : > { %3078 = vrot.lane.b32.xlu1 %v3009_v3, %s9025_s30  ;;  %v3029_v36 = vld [vmem:[#allocation6 + $0xc8] sm:$0xff]  ;;  %v3031_v3 = vld [vmem:[#allocation6 + $0xd8] sm:$0xff] }
 0x3b4   : > { %v1281_v59 = vpop.permute.xlu1 %1280  ;;  %v767_v26 = vpop.permute.xlu0 %766 }
 0x3b5   : > { %1419 = vst.msk [vmem:[#allocation2 + $0x1e7] sm:$0xff] %vm1364_vm5, %v1281_v59 }
 0x3b6   : > { %905 = vst.msk [vmem:[#allocation2 + $0x1f1] sm:$0xff] %vm847_vm2, %v767_v26  ;;  %v3011_v26 = vld [vmem:[#allocation6 + $0x38] sm:$0xff] }
 0x3b7   : > { %3082 = vrot.lane.b32.xlu1 %v3011_v26, %s9025_s30  ;;  %v3030_v26 = vld [vmem:[#allocation6 + $0xd0] sm:$0xff] }
 0x3b8   : > { %v769_v54 = vpop.permute.xlu1 %768  ;;  %v771_v16 = vpop.permute.xlu0 %770 }
 0x3b9   : > { %906 = vst.msk [vmem:[#allocation2 + $0x1f9] sm:$0x7f] %vm849_vm3, %v769_v54  ;;  %v3008_v54 = vld [vmem:[#allocation6 + $0x20] sm:$0xff] }
 0x3ba   : > { %907 = vst.msk [vmem:[#allocation2 + $0x201] sm:$0xff] %vm847_vm2, %v771_v16  ;;  %3076 = vrot.lane.b32.xlu0 %v3008_v54, %s9025_s30  ;;  %v10355_v16 = vld [vmem:[%s13227_s1 + $0x40] sm:$0xff]  }
 0x3bc   : > { %v773_v29 = vpop.permute.xlu1 %772  ;;  %v1026_v12 = vpop.permute.xlu0 %1025 }
 0x3bd   : > { %908 = vst.msk [vmem:[#allocation2 + $0x209] sm:$0x7f] %vm849_vm3, %v773_v29  ;;  %v3010_v29 = vld [vmem:[#allocation6 + $0x30] sm:$0xff] }
 0x3be   : > { %1162 = vst.msk [vmem:[#allocation2 + $0x1f0] sm:$0xff] %vm1105_vm4, %v1026_v12  ;;  %3080 = vrot.lane.b32.xlu0 %v3010_v29, %s9025_s30  ;;  %v3033_v29 = vld [vmem:[#allocation6 + $0xe8] sm:$0xff] }
 0x3c0   : > { %v1028_v8 = vpop.permute.xlu1 %1027  ;;  %v1030_v22 = vpop.permute.xlu0 %1029 }
 0x3c1   : > { %1163 = vst.msk [vmem:[#allocation2 + $0x1f8] sm:$0xff] %vm1105_vm4, %v1028_v8  ;;  %1164 = vst.msk [vmem:[#allocation2 + $0x200] sm:$0xff] %vm1105_vm4, %v1030_v22  ;;  %v3012_v22 = vld [vmem:[#allocation6 + $0x40] sm:$0xff] }
 0x3c2   : > { %3084 = vrot.lane.b32.xlu0 %v3012_v22, %s9025_s30  ;;  %v4387_v22 = vld [vmem:[#allocation2 + $0x130] sm:$0xff] }
 0x3c4   : > { %v1032_v32 = vpop.permute.xlu1 %1031  ;;  %v1283_v51 = vpop.permute.xlu0 %1282 }
 0x3c5   : > { %1165 = vst.msk [vmem:[#allocation2 + $0x208] sm:$0xff] %vm1105_vm4, %v1032_v32  ;;  %v3013_v32 = vld [vmem:[#allocation6 + $0x48] sm:$0xff] }
 0x3c6   : > { %1420 = vst.msk [vmem:[#allocation2 + $0x1ef] sm:$0xfe] %vm1362_vm6, %v1283_v51  ;;  %3086 = vrot.lane.b32.xlu1 %v3013_v32, %s9025_s30  ;;  %v3014_v51 = vld [vmem:[#allocation6 + $0x50] sm:$0xff] }
 0x3c7   : > { %3088 = vrot.lane.b32.xlu0 %v3014_v51, %s9025_s30  ;;  %v3034_v32 = vld [vmem:[#allocation6 + $0xf0] sm:$0xff]  ;;  %v8500_v51 = vld [vmem:[%s13227_s1 + $0x48] sm:$0xff]  }
 0x3c8   : > { %v1285_v23 = vpop.permute.xlu1 %1284  ;;  %v1287_v35 = vpop.permute.xlu0 %1286 }
 0x3c9   : > { %1421 = vst.msk [vmem:[#allocation2 + $0x1f7] sm:$0xff] %vm1364_vm5, %v1285_v23  ;;  %v3015_v23 = vld [vmem:[#allocation6 + $0x58] sm:$0xff] }
 0x3ca   : > { %1422 = vst.msk [vmem:[#allocation2 + $0x1ff] sm:$0xfe] %vm1362_vm6, %v1287_v35  ;;  %3090 = vrot.lane.b32.xlu1 %v3015_v23, %s9025_s30  ;;  %v3016_v35 = vld [vmem:[#allocation6 + $0x60] sm:$0xff]  ;;  %v4388_v23 = vld [vmem:[#allocation2 + $0x138] sm:$0xff] }
 0x3cb   : > { %3092 = vrot.lane.b32.xlu0 %v3016_v35, %s9025_s30  ;;  %v10392_v35 = vpack.c.bf16 %v4388_v23, %v4387_v22  ;;  %v4397_v22 = vld [vmem:[#allocation2 + $0x180] sm:$0xff]  ;;  %v4398_v23 = vld [vmem:[#allocation2 + $0x188] sm:$0xff] }
 0x3cc   : > { %v1289_v20 = vpop.permute.xlu1 %1288  ;;  %v775_v14 = vpop.permute.xlu0 %774 }
 0x3cd   : > { %1423 = vst.msk [vmem:[#allocation2 + $0x207] sm:$0xff] %vm1364_vm5, %v1289_v20  ;;  %v3017_v20 = vld [vmem:[#allocation6 + $0x68] sm:$0xff] }
 0x3ce   : > { %909 = vst.msk [vmem:[#allocation2 + $0x211] sm:$0xff] %vm847_vm2, %v775_v14  ;;  %3094 = vrot.lane.b32.xlu1 %v3017_v20, %s9025_s30  ;;  %v3021_v14 = vld [vmem:[#allocation6 + $0x88] sm:$0xff] }
 0x3d0   : > { %v777_v43 = vpop.permute.xlu1 %776  ;;  %v779_v19 = vpop.permute.xlu0 %778 }
 0x3d1   : > { %910 = vst.msk [vmem:[#allocation2 + $0x219] sm:$0x7f] %vm849_vm3, %v777_v43  ;;  %v3018_v43 = vld [vmem:[#allocation6 + $0x70] sm:$0xff] }
 0x3d2   : > { %911 = vst.msk [vmem:[#allocation2 + $0x221] sm:$0xff] %vm847_vm2, %v779_v19  ;;  %3096 = vrot.lane.b32.xlu0 %v3018_v43, %s9025_s30  ;;  %v3023_v19 = vld [vmem:[#allocation6 + $0x98] sm:$0xff] }
 0x3d3   : > { %v8502_v43 = vld [vmem:[%s13227_s1 + $0x58] sm:$0xff]  }
 0x3d4   : > { %v781_v39 = vpop.permute.xlu1 %780  ;;  %v1034_v42 = vpop.permute.xlu0 %1033 }
 0x3d5   : > { %912 = vst.msk [vmem:[#allocation2 + $0x229] sm:$0x7f] %vm849_vm3, %v781_v39  ;;  %v3020_v39 = vld [vmem:[#allocation6 + $0x80] sm:$0xff] }
 0x3d6   : > { %1166 = vst.msk [vmem:[#allocation2 + $0x210] sm:$0xff] %vm1105_vm4, %v1034_v42  ;;  %3100 = vrot.lane.b32.xlu0 %v3020_v39, %s9025_s30  ;;  %v3025_v42 = vld [vmem:[#allocation6 + $0xa8] sm:$0xff]  ;;  %v8505_v39 = vld [vmem:[%s13227_s1 + $0x70] sm:$0xff]  }
 0x3d8   : > { %v1036_v30 = vpop.permute.xlu1 %1035  ;;  %v1038_v37 = vpop.permute.xlu0 %1037 }
 0x3d9   : > { %1167 = vst.msk [vmem:[#allocation2 + $0x218] sm:$0xff] %vm1105_vm4, %v1036_v30  ;;  %1168 = vst.msk [vmem:[#allocation2 + $0x220] sm:$0xff] %vm1105_vm4, %v1038_v37  ;;  %v3022_v30 = vld [vmem:[#allocation6 + $0x90] sm:$0xff]  ;;  %v3027_v37 = vld [vmem:[#allocation6 + $0xb8] sm:$0xff] }
 0x3da   : > { %3104 = vrot.lane.b32.xlu0 %v3022_v30, %s9025_s30  ;;  %v8507_v30 = vld [vmem:[%s13227_s1] sm:$0xff]  }
 0x3dc   : > { %v1040_v31 = vpop.permute.xlu1 %1039  ;;  %v1291_v34 = vpop.permute.xlu0 %1290 }
 0x3dd   : > { %1169 = vst.msk [vmem:[#allocation2 + $0x228] sm:$0xff] %vm1105_vm4, %v1040_v31  ;;  %v3024_v31 = vld [vmem:[#allocation6 + $0xa0] sm:$0xff] }
 0x3de   : > { %1424 = vst.msk [vmem:[#allocation2 + $0x20f] sm:$0xfe] %vm1362_vm6, %v1291_v34  ;;  %3108 = vrot.lane.b32.xlu0 %v3024_v31, %s9025_s30  ;;  %v4390_v31 = vld [vmem:[#allocation2 + $0x148] sm:$0xff] }
 0x3e0   : > { %v1293_v61 = vpop.permute.xlu1 %1292  ;;  %v1295_v59 = vpop.permute.xlu0 %1294 }
 0x3e1   : > { %1425 = vst.msk [vmem:[#allocation2 + $0x217] sm:$0xff] %vm1364_vm5, %v1293_v61 }
 0x3e2   : > { %1426 = vst.msk [vmem:[#allocation2 + $0x21f] sm:$0xfe] %vm1362_vm6, %v1295_v59  ;;  %3112 = vrot.lane.b32.xlu0 %v3026_v48, %s9025_s30  ;;  %v4392_v48 = vld [vmem:[#allocation2 + $0x158] sm:$0xff] }
 0x3e4   : > { %v1297_v7 = vpop.permute.xlu1 %1296 }
 0x3e5   : > { %1427 = vst.msk [vmem:[#allocation2 + $0x227] sm:$0xff] %vm1364_vm5, %v1297_v7  ;;  %v3028_v7 = vld [vmem:[#allocation6 + $0xc0] sm:$0xff] }
 0x3e6   : > { %3116 = vrot.lane.b32.xlu0 %v3028_v7, %s9025_s30  ;;  %v4394_v7 = vld [vmem:[#allocation2 + $0x168] sm:$0xff] }
 0x3ea   : > { %3120 = vrot.lane.b32.xlu0 %v3030_v26, %s9025_s30  ;;  %v8510_v26 = vld [vmem:[%s13227_s1 + $0x18] sm:$0xff]  }
 0x3f6   : > { %v2504_v8 = vpop.f32.mrb[0].mxu1 }
 0x3f7   : > { %v7907_v12 = vpop.f32.mrb[1].mxu1  ;;  %7946 = vmatmul.mubr.msk.f32.vlgmr.msra.gmra.mrb[4].mxu1 %vm2584_vm9, %v2504_v8  ;;  %v2578_v41 = vmul.f32 %v2504_v8, %v2504_v8  ;;  %v3032_v8 = vld [vmem:[#allocation6 + $0xe0] sm:$0xff] }
 0x3f8   : > { %7949 = vmatpush3.msk.msra.mxu1 %vm2588_vm8, %v10279_v46  ;;  %7950 = vmatprep.mubr.msk.f32.mxu1 %vm9029_vm7, %v13237_v47  ;;  %v3019_v46 = vld [vmem:[#allocation6 + $0x78] sm:$0xff] }
 0x3f9   : > { %7953 = vmatprep.subr.bf16.mxu1 %v10355_v16  ;;  %3098 = vrot.lane.b32.xlu1 %v3019_v46, %s9025_s30  ;;  %v3035_v12 = vld [vmem:[#allocation6 + $0xf8] sm:$0xff]  ;;  %v8501_v46 = vld [vmem:[%s13227_s1 + $0x50] sm:$0xff]  }
 0x3fa   : > { %3124 = vrot.lane.b32.xlu0 %v3032_v8, %s9025_s30  ;;  %v5898_v8 = vld [vmem:[#allocation6 + $0x108] sm:$0xff] }
 0x3fd   : > { %3102 = vrot.lane.b32.xlu1 %v3021_v14, %s9025_s30  ;;  %v8503_v14 = vld [vmem:[%s13227_s1 + $0x60] sm:$0xff]  }
 0x3fe   : > { %3128 = vrot.lane.b32.xlu0 %v3034_v32, %s9025_s30  ;;  %v8511_v32 = vld [vmem:[%s13227_s1 + $0x20] sm:$0xff]  }
 0x401   : > { %3106 = vrot.lane.b32.xlu1 %v3023_v19, %s9025_s30  ;;  %v8506_v19 = vld [vmem:[%s13227_s1 + $0x78] sm:$0xff]  }
 0x405   : > { %3110 = vrot.lane.b32.xlu1 %v3025_v42, %s9025_s30  ;;  %v4389_v42 = vld [vmem:[#allocation2 + $0x140] sm:$0xff] }
 0x409   : > { %3114 = vrot.lane.b32.xlu1 %v3027_v37, %s9025_s30  ;;  %v4391_v37 = vld [vmem:[#allocation2 + $0x150] sm:$0xff] }
 0x40d   : > { %3118 = vrot.lane.b32.xlu1 %v3029_v36, %s9025_s30  ;;  %v4393_v36 = vld [vmem:[#allocation2 + $0x160] sm:$0xff] }
 0x411   : > { %3122 = vrot.lane.b32.xlu1 %v3031_v3, %s9025_s30  ;;  %v4396_v3 = vld [vmem:[#allocation2 + $0x178] sm:$0xff] }
 0x415   : > { %3126 = vrot.lane.b32.xlu1 %v3033_v29, %s9025_s30 }
 0x416   : > { %v2574_v61 = vpop.f32.mrb[2].mxu1 }
 0x417   : > { %v2579_v34 = vsub.f32 %v2574_v61, %v2578_v41  ;;  %v7942_v4 = vpop.f32.mrb[3].mxu1  ;;  %v10418_v41 = vpack.c.bf16 %v4390_v31, %v4389_v42  ;;  %v8508_v61 = vld [vmem:[%s13227_s1 + $0x8] sm:$0xff]   ;;  %v8513_v42 = vld [vmem:[%s13227_s1 + $0x30] sm:$0xff]   ;;  %v4401_v31 = vld [vmem:[#allocation2 + $0x1a0] sm:$0xff] }
 0x418   : > { %v8509_v4 = vld [vmem:[%s13227_s1 + $0x10] sm:$0xff]  }
 0x419   : > { %v2580_v59 = vmax.f32 %v2579_v34, 0.0  ;;  %3130 = vrot.lane.b32.xlu1 %v3035_v12, %s9025_s30  ;;  %v10423_v34 = vpack.c.bf16 %v4392_v48, %v4391_v37  ;;  %v5897_v12 = vld [vmem:[#allocation6 + $0x100] sm:$0xff]  ;;  %v4402_v37 = vld [vmem:[#allocation2 + $0x1a8] sm:$0xff]  ;;  %v5904_v48 = vld [vmem:[#allocation6 + $0x138] sm:$0xff] }
 0x41a   : > { %5961 = vrot.lane.b32.xlu0 %v5897_v12, %s9025_s30  ;;  %v10474_v12 = vld [vmem:[%s13227_s1 + $0x80] sm:$0xff]  }
 0x41b   : > { %v2581_v54 = vadd.f32 1e-05, %v2580_v59  ;;  %v4395_v59 = vld [vmem:[#allocation2 + $0x170] sm:$0xff] }
 0x41c   : > { %v10435_v29 = vpack.c.bf16 %v4396_v3, %v4395_v59  ;;  %v8514_v59 = vld [vmem:[%s13227_s1 + $0x38] sm:$0xff]  }
 0x41d   : > { %8523 = vrsqrt.f32 %v2581_v54  ;;  %v10430_v54 = vpack.c.bf16 %v4394_v7, %v4393_v36  ;;  %5963 = vrot.lane.b32.xlu1 %v5898_v8, %s9025_s30  ;;  %v5903_v36 = vld [vmem:[#allocation6 + $0x130] sm:$0xff]  ;;  %v10460_v7 = vpack.c.bf16 %v4402_v37, %v4401_v31  ;;  %v5905_v8 = vld [vmem:[#allocation6 + $0x140] sm:$0xff]  ;;  %v4410_v31 = vld [vmem:[#allocation2 + $0x1e8] sm:$0xff] }
 0x41e   : > { %v5912_v37 = vld [vmem:[#allocation6 + $0x178] sm:$0xff] }
 0x427   : > { %v8524_v20 = vpop.eup %8523 }
 0x428   : > { %7951 = vmatmul.mubr.msk.f32.vlgmr.msra.gmra.mrb[6].mxu1 %vm2584_vm9, %v8524_v20  ;;  %v4399_v20 = vld [vmem:[#allocation2 + $0x190] sm:$0xff] }
 0x429   : > { %7954 = vmatpush3.bf16.msra.mxu1 %v10355_v16  ;;  %7969 = vmatprep.mubr.bf16.mxu1 %v10392_v35  ;;  %v8504_v16 = vld [vmem:[%s13227_s1 + $0x68] sm:$0xff]  }
 0x42a   : > { %7955 = vmatprep.subr.bf16.mxu1 %v8500_v51 }
 0x42d   : > { %7956 = vmatpush3.bf16.msra.mxu1 %v8500_v51  ;;  %v5900_v51 = vld [vmem:[#allocation6 + $0x118] sm:$0xff] }
 0x42e   : > { %7957 = vmatprep.subr.bf16.mxu1 %v8501_v46  ;;  %5967 = vrot.lane.b32.xlu1 %v5900_v51, %s9025_s30  ;;  %v4407_v51 = vld [vmem:[#allocation2 + $0x1d0] sm:$0xff] }
 0x431   : > { %7958 = vmatpush3.bf16.msra.mxu1 %v8501_v46  ;;  %v4400_v46 = vld [vmem:[#allocation2 + $0x198] sm:$0xff] }
 0x432   : > { %7959 = vmatprep.subr.bf16.mxu1 %v8502_v43 }
 0x435   : > { %7960 = vmatpush3.bf16.msra.mxu1 %v8502_v43  ;;  %v5899_v43 = vld [vmem:[#allocation6 + $0x110] sm:$0xff] }
 0x436   : > { %7961 = vmatprep.subr.bf16.mxu1 %v8503_v14  ;;  %5965 = vrot.lane.b32.xlu0 %v5899_v43, %s9025_s30 }
 0x439   : > { %7962 = vmatpush3.bf16.msra.mxu1 %v8503_v14  ;;  %v10444_v14 = vpack.c.bf16 %v4398_v23, %v4397_v22  ;;  %v4406_v22 = vld [vmem:[#allocation2 + $0x1c8] sm:$0xff]  ;;  %v5908_v23 = vld [vmem:[#allocation6 + $0x158] sm:$0xff] }
 0x43a   : > { %7963 = vmatprep.subr.bf16.mxu1 %v8504_v16 }
 0x43d   : > { %7964 = vmatpush3.bf16.msra.mxu1 %v8504_v16  ;;  %v8512_v16 = vld [vmem:[%s13227_s1 + $0x28] sm:$0xff]  }
 0x43e   : > { %7965 = vmatprep.subr.bf16.mxu1 %v8505_v39 }
 0x441   : > { %7966 = vmatpush3.bf16.msra.mxu1 %v8505_v39  ;;  %v10450_v39 = vpack.c.bf16 %v4400_v46, %v4399_v20  ;;  %v4408_v20 = vld [vmem:[#allocation2 + $0x1d8] sm:$0xff]  ;;  %v5907_v46 = vld [vmem:[#allocation6 + $0x150] sm:$0xff] }
 0x442   : > { %7967 = vmatprep.subr.bf16.mxu1 %v8506_v19 }
 0x445   : > { %7968 = vmatpush3.bf16.msra.mxu1 %v8506_v19  ;;  %v5902_v19 = vld [vmem:[#allocation6 + $0x128] sm:$0xff] }
 0x446   : > { %8001 = vmatprep.subr.bf16.mxu1 %v8507_v30  ;;  %5971 = vrot.lane.b32.xlu1 %v5902_v19, %s9025_s30  ;;  %v5910_v19 = vld [vmem:[#allocation6 + $0x168] sm:$0xff] }
 0x448   : > { %7970 = vmatmul.mubr.bf16.vlgmr.msra.gmra.mrb[8].mxu1 %v10418_v41 }
 0x449   : > { %7973 = vmatprep.mubr.bf16.mxu1 %v10423_v34  ;;  %8002 = vmatpush3.bf16.msra.mxu1 %v8507_v30  ;;  %v5901_v30 = vld [vmem:[#allocation6 + $0x120] sm:$0xff] }
 0x44a   : > { %8003 = vmatprep.subr.bf16.mxu1 %v8508_v61  ;;  %5969 = vrot.lane.b32.xlu0 %v5901_v30, %s9025_s30  ;;  %v5909_v30 = vld [vmem:[#allocation6 + $0x160] sm:$0xff] }
 0x44b   : > { %5975 = vrot.lane.b32.xlu1 %v5904_v48, %s9025_s30  ;;  %v4411_v48 = vld [vmem:[#allocation2 + $0x1f0] sm:$0xff] }
 0x44d   : > { %8004 = vmatpush3.bf16.msra.mxu1 %v8508_v61  ;;  %v4403_v61 = vld [vmem:[#allocation2 + $0x1b0] sm:$0xff] }
 0x44e   : > { %8005 = vmatprep.subr.bf16.mxu1 %v8509_v4  ;;  %5973 = vrot.lane.b32.xlu0 %v5903_v36, %s9025_s30 }
 0x450   : > { %7974 = vmatmul.mubr.bf16.gmra.mrb[12].mxu1 %v10430_v54 }
 0x451   : > { %7977 = vmatprep.mubr.bf16.mxu1 %v10435_v29  ;;  %8006 = vmatpush3.bf16.msra.mxu1 %v8509_v4  ;;  %v4404_v4 = vld [vmem:[#allocation2 + $0x1b8] sm:$0xff] }
 0x452   : > { %8007 = vmatprep.subr.bf16.mxu1 %v8510_v26  ;;  %v10466_v3 = vpack.c.bf16 %v4404_v4, %v4403_v61  ;;  %5977 = vrot.lane.b32.xlu0 %v5905_v8, %s9025_s30  ;;  %v4412_v61 = vld [vmem:[#allocation2 + $0x1f8] sm:$0xff]  ;;  %v5911_v4 = vld [vmem:[#allocation6 + $0x170] sm:$0xff]  ;;  %v5913_v8 = vld [vmem:[#allocation6 + $0x180] sm:$0xff] }
 0x455   : > { %8008 = vmatpush3.bf16.msra.mxu1 %v8510_v26  ;;  %v5906_v26 = vld [vmem:[#allocation6 + $0x148] sm:$0xff] }
 0x456   : > { %8009 = vmatprep.subr.bf16.mxu1 %v8511_v32  ;;  %5979 = vrot.lane.b32.xlu1 %v5906_v26, %s9025_s30  ;;  %v5914_v26 = vld [vmem:[#allocation6 + $0x188] sm:$0xff] }
 0x457   : > { %5981 = vrot.lane.b32.xlu0 %v5907_v46, %s9025_s30  ;;  %v5915_v46 = vld [vmem:[#allocation6 + $0x190] sm:$0xff] }
 0x458   : > { %7978 = vmatmul.mubr.bf16.gmra.mrb[16].mxu1 %v10444_v14 }
 0x459   : > { %7981 = vmatprep.mubr.bf16.mxu1 %v10450_v39  ;;  %8010 = vmatpush3.bf16.msra.mxu1 %v8511_v32  ;;  %v4405_v32 = vld [vmem:[#allocation2 + $0x1c0] sm:$0xff] }
 0x45a   : > { %8011 = vmatprep.subr.bf16.mxu1 %v8512_v16  ;;  %v10478_v43 = vpack.c.bf16 %v4406_v22, %v4405_v32  ;;  %5983 = vrot.lane.b32.xlu1 %v5908_v23, %s9025_s30  ;;  %v4413_v32 = vld [vmem:[#allocation2 + $0x200] sm:$0xff]  ;;  %v4414_v22 = vld [vmem:[#allocation2 + $0x208] sm:$0xff]  ;;  %v5916_v23 = vld [vmem:[#allocation6 + $0x198] sm:$0xff] }
 0x45b   : > { %5985 = vrot.lane.b32.xlu0 %v5909_v30, %s9025_s30 }
 0x45d   : > { %8012 = vmatpush3.bf16.msra.mxu1 %v8512_v16  ;;  %v10482_v16 = vpack.c.bf16 %v4408_v20, %v4407_v51  ;;  %v4415_v51 = vld [vmem:[#allocation2 + $0x210] sm:$0xff]  ;;  %v4416_v20 = vld [vmem:[#allocation2 + $0x218] sm:$0xff] }
 0x45e   : > { %8013 = vmatprep.subr.bf16.mxu1 %v8513_v42  ;;  %5987 = vrot.lane.b32.xlu1 %v5910_v19, %s9025_s30  ;;  %v10499_v19 = vpack.c.bf16 %v4414_v22, %v4413_v32  ;;  %v10502_v30 = vpack.c.bf16 %v4416_v20, %v4415_v51  ;;  %v8516_v32 = vld [vmem:[%s13227_s1 + $0x88] sm:$0xff]   ;;  %v5920_v22 = vld [vmem:[#allocation6 + $0x1b8] sm:$0xff]  ;;  %v8521_v20 = vld [vmem:[%s13227_s1 + $0xb0] sm:$0xff]  }
 0x45f   : > { %5989 = vrot.lane.b32.xlu0 %v5911_v4, %s9025_s30  ;;  %v4418_v4 = vld [vmem:[#allocation2 + $0x228] sm:$0xff]  ;;  %v8518_v51 = vld [vmem:[%s13227_s1 + $0x98] sm:$0xff]  }
 0x460   : > { %7982 = vmatmul.mubr.bf16.gmra.mrb[20].mxu1 %v10460_v7 }
 0x461   : > { %7985 = vmatprep.mubr.bf16.mxu1 %v10466_v3  ;;  %8014 = vmatpush3.bf16.msra.mxu1 %v8513_v42  ;;  %v4409_v42 = vld [vmem:[#allocation2 + $0x1e0] sm:$0xff] }
 0x462   : > { %8015 = vmatprep.subr.bf16.mxu1 %v8514_v59  ;;  %v10489_v36 = vpack.c.bf16 %v4410_v31, %v4409_v42  ;;  %5991 = vrot.lane.b32.xlu1 %v5912_v37, %s9025_s30  ;;  %v5918_v42 = vld [vmem:[#allocation6 + $0x1a8] sm:$0xff]  ;;  %v5917_v31 = vld [vmem:[#allocation6 + $0x1a0] sm:$0xff] }
 0x463   : > { %5993 = vrot.lane.b32.xlu0 %v5913_v8, %s9025_s30  ;;  %v4322_v37 = vld [vmem:[#allocation2 + $0x120] sm:$0xff] }
 0x465   : > { %8016 = vmatpush3.bf16.msra.mxu1 %v8514_v59  ;;  %v10492_v59 = vpack.c.bf16 %v4412_v61, %v4411_v48  ;;  %v4323_v48 = vld [vmem:[#allocation2 + $0x128] sm:$0xff]  ;;  %v4417_v61 = vld [vmem:[#allocation2 + $0x220] sm:$0xff] }
 0x466   : > { %8049 = vmatprep.subr.bf16.mxu1 %v10474_v12  ;;  %5995 = vrot.lane.b32.xlu1 %v5914_v26, %s9025_s30  ;;  %v4354_v26 = vpack.c.bf16 %v4323_v48, %v4322_v37  ;;  %v10509_v8 = vpack.c.bf16 %v4418_v4, %v4417_v61  ;;  %v5922_v48 = vld [vmem:[#allocation6 + $0x1c8] sm:$0xff]  ;;  %v5921_v61 = vld [vmem:[#allocation6 + $0x1c0] sm:$0xff]  ;;  %v5924_v4 = vld [vmem:[#allocation6 + $0x1d8] sm:$0xff] }
 0x467   : > { %5997 = vrot.lane.b32.xlu0 %v5915_v46, %s9025_s30  ;;  %v8522_v46 = vld [vmem:[%s13227_s1 + $0xb8] sm:$0xff]  }
 0x468   : > { %7986 = vmatmul.mubr.bf16.gmra.mrb[24].mxu1 %v10478_v43 }
 0x469   : > { %7989 = vmatprep.mubr.bf16.mxu1 %v10482_v16 }
 0x46a   : > { %5999 = vrot.lane.b32.xlu1 %v5916_v23, %s9025_s30  ;;  %v8517_v23 = vld [vmem:[%s13227_s1 + $0x90] sm:$0xff]  }
 0x46b   : > { %6001 = vrot.lane.b32.xlu0 %v5917_v31, %s9025_s30 }
 0x46e   : > { %6003 = vrot.lane.b32.xlu1 %v5918_v42, %s9025_s30  ;;  %v5919_v42 = vld [vmem:[#allocation6 + $0x1b0] sm:$0xff] }
 0x46f   : > { %6005 = vrot.lane.b32.xlu0 %v5919_v42, %s9025_s30  ;;  %v4900_v42 = vld [vmem:[#allocation2 + $0x230] sm:$0xff] }
 0x470   : > { %7990 = vmatmul.mubr.bf16.gmra.mrb[28].mxu1 %v10489_v36 }
 0x471   : > { %7993 = vmatprep.mubr.bf16.mxu1 %v10492_v59 }
 0x472   : > { %6007 = vrot.lane.b32.xlu1 %v5920_v22, %s9025_s30 }
 0x473   : > { %6009 = vrot.lane.b32.xlu0 %v5921_v61, %s9025_s30 }
 0x476   : > { %6011 = vrot.lane.b32.xlu1 %v5922_v48, %s9025_s30 }
 0x478   : > { %7994 = vmatmul.mubr.bf16.gmra.mrb[32].mxu1 %v10499_v19 }
 0x479   : > { %7997 = vmatprep.mubr.bf16.mxu1 %v10502_v30 }
 0x47a   : > { %6015 = vrot.lane.b32.xlu1 %v5924_v4, %s9025_s30 }
 0x480   : > { %7998 = vmatmul.mubr.bf16.gmra.mrb[36].mxu1 %v10509_v8 }
 0x481   : > { %8017 = vmatprep.mubr.bf16.mxu1 %v4354_v26  ;;  %v5923_v26 = vld [vmem:[#allocation6 + $0x1d0] sm:$0xff] }
 0x482   : > { %6013 = vrot.lane.b32.xlu0 %v5923_v26, %s9025_s30 }
 0x488   : > { %8018 = vmatmul.mubr.bf16.vlgmr.msra.gmra.mrb[8].mxu1 %v10392_v35  ;;  %v8519_v35 = vld [vmem:[%s13227_s1 + $0xa0] sm:$0xff]  }
 0x489   : > { %8021 = vmatprep.mubr.bf16.mxu1 %v10418_v41  ;;  %8050 = vmatpush3.bf16.msra.mxu1 %v10474_v12  ;;  %v8520_v12 = vld [vmem:[%s13227_s1 + $0xa8] sm:$0xff]  }
 0x48a   : > { %8051 = vmatprep.subr.bf16.mxu1 %v8516_v32 }
 0x48d   : > { %8052 = vmatpush3.bf16.msra.mxu1 %v8516_v32  ;;  %v10563_v32 = vpop.permute.xlu1 %3070 }
 0x48e   : > { %8053 = vmatprep.subr.bf16.mxu1 %v8517_v23 }
 0x490   : > { %8022 = vmatmul.mubr.bf16.gmra.mrb[12].mxu1 %v10423_v34 }
 0x491   : > { %8025 = vmatprep.mubr.bf16.mxu1 %v10430_v54  ;;  %8054 = vmatpush3.bf16.msra.mxu1 %v8517_v23  ;;  %v10572_v23 = vpop.permute.xlu1 %3074 }
 0x492   : > { %8055 = vmatprep.subr.bf16.mxu1 %v8518_v51 }
 0x495   : > { %8056 = vmatpush3.bf16.msra.mxu1 %v8518_v51  ;;  %v10578_v51 = vpop.permute.xlu1 %3078 }
 0x496   : > { %8057 = vmatprep.subr.bf16.mxu1 %v8519_v35 }
 0x498   : > { %8026 = vmatmul.mubr.bf16.gmra.mrb[16].mxu1 %v10435_v29 }
 0x499   : > { %8029 = vmatprep.mubr.bf16.mxu1 %v10444_v14  ;;  %8058 = vmatpush3.bf16.msra.mxu1 %v8519_v35  ;;  %v10584_v35 = vpop.permute.xlu1 %3082 }
 0x49a   : > { %8059 = vmatprep.subr.bf16.mxu1 %v8520_v12 }
 0x49d   : > { %8060 = vmatpush3.bf16.msra.mxu1 %v8520_v12 }
 0x49e   : > { %8061 = vmatprep.subr.bf16.mxu1 %v8521_v20 }
 0x4a0   : > { %8030 = vmatmul.mubr.bf16.gmra.mrb[20].mxu1 %v10450_v39 }
 0x4a1   : > { %8033 = vmatprep.mubr.bf16.mxu1 %v10460_v7  ;;  %8062 = vmatpush3.bf16.msra.mxu1 %v8521_v20  ;;  %v10588_v20 = vpop.permute.xlu1 %3086 }
 0x4a2   : > { %8063 = vmatprep.subr.bf16.mxu1 %v8522_v46 }
 0x4a5   : > { %8064 = vmatpush3.bf16.msra.mxu1 %v8522_v46  ;;  %v10594_v46 = vpop.permute.xlu1 %3090 }
 0x4a6   : > { %13302 = vst [vmem:[#allocation11_spill] sm:$0xff] %v10594_v46 }
 0x4a8   : > { %8034 = vmatmul.mubr.bf16.gmra.mrb[24].mxu1 %v10466_v3 }
 0x4a9   : > { %8037 = vmatprep.mubr.bf16.mxu1 %v10478_v43  ;;  %v10605_v61 = vpop.permute.xlu1 %3094 }
 0x4aa   : > { %13305 = vst [vmem:[#allocation14_spill] sm:$0xff] %v10605_v61 }
 0x4b0   : > { %8038 = vmatmul.mubr.bf16.gmra.mrb[28].mxu1 %v10482_v16 }
 0x4b1   : > { %8041 = vmatprep.mubr.bf16.mxu1 %v10489_v36 }
 0x4b8   : > { %8042 = vmatmul.mubr.bf16.gmra.mrb[32].mxu1 %v10492_v59 }
 0x4b9   : > { %8045 = vmatprep.mubr.bf16.mxu1 %v10499_v19 }
 0x4c0   : > { %8046 = vmatmul.mubr.bf16.gmra.mrb[36].mxu1 %v10502_v30 }
 0x4c1   : > { %8065 = vmatprep.mubr.bf16.mxu1 %v10418_v41  ;;  %v10560_v41 = vpop.permute.xlu0 %3068 }
 0x4c5   : > { %v10569_v22 = vpop.permute.xlu0 %3072 }
 0x4c8   : > { %8066 = vmatmul.mubr.bf16.vlgmr.msra.gmra.mrb[8].mxu1 %v10423_v34  ;;  %v5926_v34 = vld [vmem:[#allocation6 + $0x1e8] sm:$0xff] }
 0x4c9   : > { %8069 = vmatprep.mubr.bf16.mxu1 %v10430_v54  ;;  %v5925_v54 = vld [vmem:[#allocation6 + $0x1e0] sm:$0xff]  ;;  %6019 = vrot.lane.b32.xlu1 %v5926_v34, %s9025_s30 }
 0x4ca   : > { %v2658_v31 = vpop.f32.mrb[4].mxu1  ;;  %6017 = vrot.lane.b32.xlu0 %v5925_v54, %s9025_s30 }
 0x4cb   : > { %v7947_v37 = vpop.f32.mrb[5].mxu1 }
 0x4cc   : > { %v4901_v37 = vld [vmem:[#allocation2 + $0x238] sm:$0xff] }
 0x4cd   : > { %v4917_v34 = vpack.c.bf16 %v4901_v37, %v4900_v42 }
 0x4d0   : > { %8070 = vmatmul.mubr.bf16.gmra.mrb[12].mxu1 %v10435_v29  ;;  %v5928_v29 = vld [vmem:[#allocation6 + $0x1f8] sm:$0xff] }
 0x4d1   : > { %8073 = vmatprep.mubr.bf16.mxu1 %v10444_v14  ;;  %v5927_v14 = vld [vmem:[#allocation6 + $0x1f0] sm:$0xff]  ;;  %6023 = vrot.lane.b32.xlu1 %v5928_v29, %s9025_s30 }
 0x4d2   : > { %6021 = vrot.lane.b32.xlu0 %v5927_v14, %s9025_s30 }
 0x4d8   : > { %8074 = vmatmul.mubr.bf16.gmra.mrb[16].mxu1 %v10450_v39  ;;  %v10576_v39 = vpop.permute.xlu0 %3076 }
 0x4d9   : > { %8077 = vmatprep.mubr.bf16.mxu1 %v10460_v7 }
 0x4dc   : > { %v10581_v7 = vpop.permute.xlu0 %3080 }
 0x4e0   : > { %8078 = vmatmul.mubr.bf16.gmra.mrb[20].mxu1 %v10466_v3  ;;  %v10586_v12 = vpop.permute.xlu0 %3084  ;;  %v2770_v3 = vlaneseq }
 0x4e1   : > { %8081 = vmatprep.mubr.bf16.mxu1 %v10478_v43 }
 0x4e4   : > { %v10592_v43 = vpop.permute.xlu0 %3088 }
 0x4e5   : > { %13301 = vst [vmem:[#allocation10_spill] sm:$0xff] %v10592_v43 }
 0x4e8   : > { %8082 = vmatmul.mubr.bf16.gmra.mrb[24].mxu1 %v10482_v16  ;;  %v2771_v16 = vshrl.u32 %v2770_v3, 7 }
 0x4e9   : > { %8085 = vmatprep.mubr.bf16.mxu1 %v10489_v36  ;;  %v524_v36 = vld [vmem:[%s13228_s2] sm:$0x1] }
 0x4ea   : > { %v10601_v48 = vsub.s32 0, %v2771_v16 }
 0x4ec   : > { %13303 = vst [vmem:[#allocation12_spill] sm:$0xff] %v10601_v48 }
 0x4f0   : > { %8086 = vmatmul.mubr.bf16.gmra.mrb[28].mxu1 %v10492_v59  ;;  %v10603_v59 = vpop.permute.xlu0 %3092 }
 0x4f1   : > { %8089 = vmatprep.mubr.bf16.mxu1 %v10499_v19  ;;  %13304 = vst [vmem:[#allocation13_spill] sm:$0xff] %v10603_v59 }
 0x4f4   : > { %v10614_v47 = vpop.permute.xlu0 %3096 }
 0x4f5   : > { %13306 = vst [vmem:[#allocation15_spill] sm:$0xff] %v10614_v47 }
 0x4f8   : > { %8090 = vmatmul.mubr.bf16.gmra.mrb[32].mxu1 %v10502_v30  ;;  %v525_v30 = vld [vmem:[%s13229_s3] sm:$0x1] }
 0x4f9   : > { %8093 = vmatprep.mubr.bf16.mxu1 %v10509_v8 }
 0x4fb   : > { %v2731_v19 = vpop.f32.mrb[6].mxu1 }
 0x4fc   : > { %v2735_v4 = vmul.f32 %v2731_v19, %v524_v36  ;;  %v7952_v26 = vpop.f32.mrb[7].mxu1  ;;  %v10620_v19 = vpop.permute.xlu1 %3098 }
 0x4fd   : > { %13307 = vst [vmem:[#allocation16_spill] sm:$0xff] %v10620_v19 }
 0x4fe   : > { %v2736_v8 = vmul.f32 %v2735_v4, %v2658_v31  ;;  %v2773_v54 = vrot.slane %v2735_v4, %v10601_v48 }
 0x500   : > { %v2737_v29 = vsub.f32 %v525_v30, %v2736_v8  ;;  %v2774_v14 = vmul.f32 %v2773_v54, %v9956_v57  ;;  %v2775_v3 = vmul.f32 %v2773_v54, %v9962_v63  ;;  %v2776_v16 = vmul.f32 %v9952_v56, %v2773_v54  ;;  %8094 = vmatmul.mubr.bf16.gmra.mrb[36].mxu1 %v4917_v34  ;;  %v10642_v8 = vpop.permute.xlu0 %3100 }
 0x501   : > { %v2777_v36 = vmul.f32 %v9960_v62, %v2773_v54  ;;  %v2778_v42 = vmul.f32 %v2773_v54, %v9982_v11  ;;  %v2779_v37 = vmul.f32 %v2773_v54, %v9989_v18  ;;  %v2780_v31 = vmul.f32 %v9977_v9, %v2773_v54  ;;  %13308 = vst [vmem:[#allocation17_spill] sm:$0xff] %v10642_v8 }
 0x502   : > { %v2810_v4 = vrot.slane %v2737_v29, %v10601_v48  ;;  %v2781_v57 = vmul.f32 %v9987_v17, %v2773_v54  ;;  %v2782_v63 = vmul.f32 %v2773_v54, %v10006_v38  ;;  %v2783_v56 = vmul.f32 %v2773_v54, %v10013_v28 }
 0x503   : > { %v2784_v26 = vmul.f32 %v10001_v13, %v2773_v54  ;;  %v2785_v62 = vmul.f32 %v10011_v27, %v2773_v54  ;;  %v2786_v11 = vmul.f32 %v2773_v54, %v10032_v52  ;;  %v2787_v18 = vmul.f32 %v2773_v54, %v10041_v2 }
 0x504   : > { %v2788_v9 = vmul.f32 %v10027_v49, %v2773_v54  ;;  %v2789_v34 = vmul.f32 %v10039_v1, %v2773_v54  ;;  %v2790_v30 = vmul.f32 %v2773_v54, %v10058_v21  ;;  %v2791_v17 = vmul.f32 %v2773_v54, %v10065_v24 }
 0x505   : > { %v2792_v38 = vmul.f32 %v10053_v15, %v2773_v54  ;;  %v2793_v28 = vmul.f32 %v10063_v44, %v2773_v54  ;;  %v2794_v13 = vmul.f32 %v2773_v54, %v10082_v40  ;;  %v2795_v27 = vmul.f32 %v2773_v54, %v10089_v55  ;;  %v10648_v40 = vpop.permute.xlu1 %3102 }
 0x506   : > { %v2796_v52 = vmul.f32 %v10077_v33, %v2773_v54  ;;  %v2797_v2 = vmul.f32 %v10087_v50, %v2773_v54  ;;  %v2798_v49 = vmul.f32 %v2773_v54, %v10108_v53  ;;  %v2799_v1 = vmul.f32 %v2773_v54, %v10117_v58  ;;  %13309 = vst [vmem:[#allocation18_spill] sm:$0xff] %v10648_v40 }
 0x507   : > { %v2800_v21 = vmul.f32 %v10103_v10, %v2773_v54  ;;  %v2801_v15 = vmul.f32 %v10115_v25, %v2773_v54  ;;  %v2802_v44 = vmul.f32 %v2773_v54, %v10134_v60  ;;  %v2803_v24 = vmul.f32 %v2773_v54, %v10141_v6 }
 0x508   : > { %v2804_v33 = vmul.f32 %v10129_v45, %v2773_v54  ;;  %v2805_v50 = vmul.f32 %v10139_v5, %v2773_v54  ;;  %v10652_v55 = vadd.f32 %v2810_v4, %v2774_v14  ;;  %v10654_v53 = vadd.f32 %v2810_v4, %v2775_v3 }
 0x509   : > { %v10656_v58 = vadd.f32 %v2810_v4, %v2776_v16  ;;  %v10658_v29 = vadd.f32 %v2810_v4, %v2777_v36  ;;  %v10660_v10 = vadd.f32 %v2810_v4, %v2778_v42  ;;  %v10662_v25 = vadd.f32 %v2810_v4, %v2779_v37 }
 0x50a   : > { %v10664_v60 = vadd.f32 %v2810_v4, %v2780_v31  ;;  %v10666_v6 = vadd.f32 %v2810_v4, %v2781_v57  ;;  %v10668_v0 = vadd.f32 %v2810_v4, %v2782_v63  ;;  %v10670_v45 = vadd.f32 %v2810_v4, %v2783_v56 }
 0x50b   : > { %v10672_v5 = vadd.f32 %v2810_v4, %v2784_v26  ;;  %v10674_v54 = vadd.f32 %v2810_v4, %v2785_v62  ;;  %v10676_v14 = vadd.f32 %v2810_v4, %v2786_v11  ;;  %v10678_v3 = vadd.f32 %v2810_v4, %v2787_v18  ;;  %v10696_v26 = vpop.permute.xlu0 %3104 }
 0x50c   : > { %v10680_v16 = vadd.f32 %v2810_v4, %v2788_v9  ;;  %v10682_v36 = vadd.f32 %v2810_v4, %v2789_v34  ;;  %v10684_v42 = vadd.f32 %v2810_v4, %v2790_v30  ;;  %v10686_v37 = vadd.f32 %v2810_v4, %v2791_v17  ;;  %13310 = vst [vmem:[#allocation19_spill] sm:$0xff] %v10696_v26  ;;  %v10706_v34 = vpop.permute.xlu1 %3106 }
 0x50d   : > { %v10688_v31 = vadd.f32 %v2810_v4, %v2792_v38  ;;  %v10690_v57 = vadd.f32 %v2810_v4, %v2793_v28  ;;  %v10692_v63 = vadd.f32 %v2810_v4, %v2794_v13  ;;  %v10694_v56 = vadd.f32 %v2810_v4, %v2795_v27  ;;  %13311 = vst [vmem:[#allocation20_spill] sm:$0xff] %v10706_v34 }
 0x50e   : > { %v10698_v62 = vadd.f32 %v2810_v4, %v2796_v52  ;;  %v10700_v11 = vadd.f32 %v2810_v4, %v2797_v2  ;;  %v10702_v18 = vadd.f32 %v2810_v4, %v2798_v49  ;;  %v10704_v9 = vadd.f32 %v2810_v4, %v2799_v1 }
 0x50f   : > { %v10708_v30 = vadd.f32 %v2810_v4, %v2800_v21  ;;  %v10710_v17 = vadd.f32 %v2810_v4, %v2801_v15  ;;  %v10712_v38 = vadd.f32 %v2810_v4, %v2802_v44  ;;  %v10714_v28 = vadd.f32 %v2810_v4, %v2803_v24  ;;  %v10720_v52 = vpop.permute.xlu0 %3108 }
 0x510   : > { %v10716_v13 = vadd.f32 %v2810_v4, %v2804_v33  ;;  %v10718_v27 = vadd.f32 %v2810_v4, %v2805_v50  ;;  %13312 = vst [vmem:[#allocation21_spill] sm:$0xff] %v10720_v52  ;;  %v10722_v2 = vpop.permute.xlu1 %3110  ;;  %8525 = vtanh.f32 %v10652_v55  ;;  %v2846_v47 = vmul.f32 0.5, %v10656_v58 }
 0x511   : > { %13313 = vst [vmem:[#allocation22_spill] sm:$0xff] %v10722_v2  ;;  %8527 = vtanh.f32 %v10654_v53 }
 0x512   : > { %8529 = vtanh.f32 %v10656_v58  ;;  %v2851_v58 = vmul.f32 0.5, %v10666_v6 }
 0x513   : > { %v10726_v49 = vpop.permute.xlu0 %3112  ;;  %8531 = vtanh.f32 %v10658_v29 }
 0x514   : > { %13314 = vst [vmem:[#allocation23_spill] sm:$0xff] %v10726_v49  ;;  %v10728_v1 = vpop.permute.xlu1 %3114  ;;  %8533 = vtanh.f32 %v10660_v10 }
 0x515   : > { %13315 = vst [vmem:[#allocation24_spill] sm:$0xff] %v10728_v1  ;;  %8535 = vtanh.f32 %v10662_v25  ;;  %v5319_v1 = vld [vmem:[%s13230_s4 + $0x18] sm:$0xff] }
 0x516   : > { %8537 = vtanh.f32 %v10664_v60 }
 0x517   : > { %v10732_v21 = vpop.permute.xlu0 %3116  ;;  %8539 = vtanh.f32 %v10666_v6  ;;  %v2855_v6 = vmul.f32 0.5, %v10674_v54 }
 0x518   : > { %13316 = vst [vmem:[#allocation25_spill] sm:$0xff] %v10732_v21  ;;  %v10735_v4 = vpop.permute.xlu1 %3118  ;;  %8541 = vtanh.f32 %v10668_v0 }
 0x519   : > { %13317 = vst [vmem:[#allocation26_spill] sm:$0xff] %v10735_v4  ;;  %8543 = vtanh.f32 %v10670_v45 }
 0x51a   : > { %v8526_v15 = vpop.eup %8525  ;;  %8545 = vtanh.f32 %v10672_v5 }
 0x51b   : > { %v8528_v44 = vpop.eup %8527  ;;  %3228 = vrot.lane.b32.xlu0 %v8526_v15, %s9031_s21  ;;  %v10742_v24 = vpop.permute.xlu0 %3120  ;;  %8547 = vtanh.f32 %v10674_v54 }
 0x51c   : > { %3230 = vrot.lane.b32.xlu1 %v8528_v44, %s9031_s21  ;;  %13318 = vst [vmem:[#allocation27_spill] sm:$0xff] %v10742_v24  ;;  %v8530_v33 = vpop.eup %8529  ;;  %v10744_v50 = vpop.permute.xlu1 %3122  ;;  %8549 = vtanh.f32 %v10676_v14 }
 0x51d   : > { %13319 = vst [vmem:[#allocation28_spill] sm:$0xff] %v10744_v50  ;;  %v8532_v48 = vpop.eup %8531  ;;  %8551 = vtanh.f32 %v10678_v3 }
 0x51e   : > { %v8534_v15 = vpop.eup %8533  ;;  %8553 = vtanh.f32 %v10680_v16 }
 0x51f   : > { %3232 = vrot.lane.b32.xlu0 %v8530_v33, %s9031_s21  ;;  %v8536_v4 = vpop.eup %8535  ;;  %v10750_v21 = vpop.permute.xlu0 %3124  ;;  %8555 = vtanh.f32 %v10682_v36 }
 0x520   : > { %3234 = vrot.lane.b32.xlu1 %v8532_v48, %s9031_s21  ;;  %13320 = vst [vmem:[#allocation29_spill] sm:$0xff] %v10750_v21  ;;  %v10754_v44 = vpop.permute.xlu1 %3126  ;;  %v8538_v33 = vpop.eup %8537  ;;  %8557 = vtanh.f32 %v10684_v42 }
 0x521   : > { %13321 = vst [vmem:[#allocation30_spill] sm:$0xff] %v10754_v44  ;;  %v8540_v50 = vpop.eup %8539  ;;  %8559 = vtanh.f32 %v10686_v37 }
 0x522   : > { %8561 = vtanh.f32 %v10688_v31 }
 0x523   : > { %3236 = vrot.lane.b32.xlu0 %v8534_v15, %s9031_s21  ;;  %v10762_v48 = vpop.permute.xlu0 %3128  ;;  %v8542_v15 = vpop.eup %8541  ;;  %8563 = vtanh.f32 %v10690_v57 }
 0x524   : > { %3238 = vrot.lane.b32.xlu1 %v8536_v4, %s9031_s21  ;;  %13322 = vst [vmem:[#allocation31_spill] sm:$0xff] %v10762_v48  ;;  %v10764_v21 = vpop.permute.xlu1 %3130  ;;  %v8544_v44 = vpop.eup %8543  ;;  %v13328_v48 = vmov 0.0|0.0   ;;  %8565 = vtanh.f32 %v10692_v63 }
 0x525   : > { %13323 = vst [vmem:[#allocation32_spill] sm:$0xff] %v10764_v21  ;;  %8567 = vtanh.f32 %v10694_v56 }
 0x526   : > { %8569 = vtanh.f32 %v10698_v62 }
 0x527   : > { %3240 = vrot.lane.b32.xlu0 %v8538_v33, %s9031_s21  ;;  %v10770_v4 = vpop.permute.xlu0 %5961  ;;  %v8546_v33 = vpop.eup %8545  ;;  %8571 = vtanh.f32 %v10700_v11 }
 0x528   : > { %3242 = vrot.lane.b32.xlu1 %v8540_v50, %s9031_s21  ;;  %13324 = vst [vmem:[#allocation33_spill] sm:$0xff] %v10770_v4  ;;  %v10772_v50 = vpop.permute.xlu1 %5963  ;;  %v8548_v24 = vpop.eup %8547  ;;  %v5316_v4 = vld [vmem:[%s13230_s4] sm:$0xff]  ;;  %8573 = vtanh.f32 %v10702_v18 }
 0x529   : > { %13325 = vst [vmem:[#allocation34_spill] sm:$0xff] %v10772_v50  ;;  %8575 = vtanh.f32 %v10704_v9 }
 0x52a   : > { %8577 = vtanh.f32 %v10708_v30 }
 0x52b   : > { %3244 = vrot.lane.b32.xlu0 %v8542_v15, %s9031_s21  ;;  %v8550_v15 = vpop.eup %8549  ;;  %8579 = vtanh.f32 %v10710_v17 }
 0x52c   : > { %3246 = vrot.lane.b32.xlu1 %v8544_v44, %s9031_s21  ;;  %v8552_v21 = vpop.eup %8551  ;;  %v10779_v44 = vpop.permute.xlu0 %5965  ;;  %8581 = vtanh.f32 %v10712_v38 }
 0x52d   : > { %13326 = vst [vmem:[#allocation35_spill] sm:$0xff] %v10779_v44  ;;  %8583 = vtanh.f32 %v10714_v28 }
 0x52f   : > { %3248 = vrot.lane.b32.xlu0 %v8546_v33, %s9031_s21  ;;  %v5317_v33 = vld [vmem:[%s13230_s4 + $0x8] sm:$0xff] }
 0x530   : > { %3250 = vrot.lane.b32.xlu1 %v8548_v24, %s9031_s21  ;;  %v10789_v24 = vpop.permute.xlu1 %5967  ;;  %v10791_v50 = vpack.c.bf16 %v5317_v33, %v5316_v4 }
 0x531   : > { %13327 = vst [vmem:[#allocation36_spill] sm:$0xff] %v10789_v24 }
 0x532   : > { %8227 = vmatpush3.bf16.msra.mxu0 %v10791_v50 }
 0x533   : > { %3252 = vrot.lane.b32.xlu0 %v8550_v15, %s9031_s21  ;;  %v8554_v15 = vpop.eup %8553  ;;  %8228 = vmatprep.subr.bf16.mxu0 %v13328_v48  ;;  %8585 = vtanh.f32 %v10716_v13 }
 0x534   : > { %3254 = vrot.lane.b32.xlu1 %v8552_v21, %s9031_s21  ;;  %v8556_v44 = vpop.eup %8555  ;;  %v10800_v21 = vpop.permute.xlu0 %5969  ;;  %8587 = vtanh.f32 %v10718_v27 }
 0x535   : > { %13329 = vst [vmem:[#allocation37_spill] sm:$0xff] %v10800_v21  ;;  %v8558_v4 = vpop.eup %8557  ;;  %v10802_v33 = vpop.permute.xlu1 %5971 }
 0x536   : > { %13330 = vst [vmem:[#allocation38_spill] sm:$0xff] %v10802_v33  ;;  %v8560_v24 = vpop.eup %8559 }
 0x537   : > { %3256 = vrot.lane.b32.xlu0 %v8554_v15, %s9031_s21  ;;  %v5318_v15 = vld [vmem:[%s13230_s4 + $0x10] sm:$0xff]  ;;  %v8562_v33 = vpop.eup %8561 }
 0x538   : > { %3258 = vrot.lane.b32.xlu1 %v8556_v44, %s9031_s21  ;;  %v10813_v44 = vpack.c.bf16 %v5319_v1, %v5318_v15  ;;  %v10818_v21 = vpop.permute.xlu0 %5973 }
 0x539   : > { %13331 = vst [vmem:[#allocation39_spill] sm:$0xff] %v10818_v21  ;;  %v10823_v49 = vpop.permute.xlu1 %5975 }
 0x53a   : > { %8230 = vmatpush3.bf16.msra.mxu0 %v10813_v44  ;;  %13332 = vst [vmem:[#allocation40_spill] sm:$0xff] %v10823_v49 }
 0x53b   : > { %3260 = vrot.lane.b32.xlu0 %v8558_v4, %s9031_s21  ;;  %v8564_v4 = vpop.eup %8563  ;;  %8231 = vmatprep.subr.bf16.mxu0 %v13328_v48 }
 0x53c   : > { %3262 = vrot.lane.b32.xlu1 %v8560_v24, %s9031_s21  ;;  %v8566_v1 = vpop.eup %8565 }
 0x53d   : > { %v8568_v24 = vpop.eup %8567  ;;  %v10832_v21 = vpop.permute.xlu1 %5979 }
 0x53e   : > { %v8570_v15 = vpop.eup %8569  ;;  %13334 = vst [vmem:[#allocation42_spill] sm:$0xff] %v10832_v21 }
 0x53f   : > { %3264 = vrot.lane.b32.xlu0 %v8562_v33, %s9031_s21  ;;  %v10830_v33 = vpop.permute.xlu0 %5977 }
 0x540   : > { %3266 = vrot.lane.b32.xlu1 %v8564_v4, %s9031_s21  ;;  %13333 = vst [vmem:[#allocation41_spill] sm:$0xff] %v10830_v33  ;;  %v8572_v4 = vpop.eup %8571 }
 0x541   : > { %v10843_v21 = vpop.permute.xlu1 %5983 }
 0x542   : > { %13336 = vst [vmem:[#allocation44_spill] sm:$0xff] %v10843_v21  ;;  %v5323_v21 = vld [vmem:[%s13230_s4 + $0x38] sm:$0xff] }
 0x543   : > { %3268 = vrot.lane.b32.xlu0 %v8566_v1, %s9031_s21  ;;  %v8574_v1 = vpop.eup %8573 }
 0x544   : > { %3270 = vrot.lane.b32.xlu1 %v8568_v24, %s9031_s21  ;;  %v8576_v49 = vpop.eup %8575  ;;  %v10839_v24 = vpop.permute.xlu0 %5981 }
 0x545   : > { %13335 = vst [vmem:[#allocation43_spill] sm:$0xff] %v10839_v24  ;;  %v8578_v33 = vpop.eup %8577  ;;  %v10864_v34 = vpop.permute.xlu1 %5987 }
 0x546   : > { %13338 = vst [vmem:[#allocation46_spill] sm:$0xff] %v10864_v34  ;;  %v5326_v34 = vld [vmem:[%s13230_s4 + $0x50] sm:$0xff] }
 0x547   : > { %3272 = vrot.lane.b32.xlu0 %v8570_v15, %s9031_s21  ;;  %v5320_v15 = vld [vmem:[%s13230_s4 + $0x20] sm:$0xff] }
 0x548   : > { %3274 = vrot.lane.b32.xlu1 %v8572_v4, %s9031_s21  ;;  %v5321_v4 = vld [vmem:[%s13230_s4 + $0x28] sm:$0xff]  ;;  %v10862_v2 = vpop.permute.xlu0 %5985 }
 0x549   : > { %v10860_v24 = vpack.c.bf16 %v5321_v4, %v5320_v15  ;;  %13337 = vst [vmem:[#allocation45_spill] sm:$0xff] %v10862_v2  ;;  %v5325_v15 = vld [vmem:[%s13230_s4 + $0x48] sm:$0xff]  ;;  %v10892_v2 = vpop.permute.xlu1 %5991 }
 0x54a   : > { %13340 = vst [vmem:[#allocation48_spill] sm:$0xff] %v10892_v2  ;;  %v5329_v2 = vld [vmem:[%s13230_s4 + $0x68] sm:$0xff] }
 0x54b   : > { %3276 = vrot.lane.b32.xlu0 %v8574_v1, %s9031_s21  ;;  %v8580_v1 = vpop.eup %8579  ;;  %8233 = vmatpush3.bf16.msra.mxu0 %v10860_v24 }
 0x54c   : > { %3278 = vrot.lane.b32.xlu1 %v8576_v49, %s9031_s21  ;;  %v5322_v49 = vld [vmem:[%s13230_s4 + $0x30] sm:$0xff]  ;;  %v8582_v52 = vpop.eup %8581  ;;  %8234 = vmatprep.subr.bf16.mxu0 %v13328_v48 }
 0x54d   : > { %v8584_v26 = vpop.eup %8583 }
 0x54e   : > { %v8586_v4 = vpop.eup %8585 }
 0x54f   : > { %3280 = vrot.lane.b32.xlu0 %v8578_v33, %s9031_s21  ;;  %v10867_v33 = vpack.c.bf16 %v5323_v21, %v5322_v49  ;;  %v8588_v49 = vpop.eup %8587 }
 0x550   : > { %3282 = vrot.lane.b32.xlu1 %v8580_v1, %s9031_s21  ;;  %v5324_v1 = vld [vmem:[%s13230_s4 + $0x40] sm:$0xff] }
 0x551   : > { %8236 = vmatpush3.bf16.msra.mxu0 %v10867_v33  ;;  %v10879_v21 = vpack.c.bf16 %v5325_v15, %v5324_v1 }
 0x552   : > { %8237 = vmatprep.subr.bf16.mxu0 %v13328_v48 }
 0x553   : > { %3284 = vrot.lane.b32.xlu0 %v8582_v52, %s9031_s21  ;;  %v10882_v52 = vpop.permute.xlu0 %5989 }
 0x554   : > { %3286 = vrot.lane.b32.xlu1 %v8584_v26, %s9031_s21  ;;  %13339 = vst [vmem:[#allocation47_spill] sm:$0xff] %v10882_v52  ;;  %v5327_v26 = vld [vmem:[%s13230_s4 + $0x58] sm:$0xff] }
 0x555   : > { %8239 = vmatpush3.bf16.msra.mxu0 %v10879_v21  ;;  %v10895_v1 = vpack.c.bf16 %v5327_v26, %v5326_v34  ;;  %v5330_v34 = vld [vmem:[%s13230_s4 + $0x70] sm:$0xff] }
 0x556   : > { %8240 = vmatprep.subr.bf16.mxu0 %v13328_v48 }
 0x557   : > { %3288 = vrot.lane.b32.xlu0 %v8586_v4, %s9031_s21  ;;  %v10898_v15 = vpop.permute.xlu0 %5993  ;;  %v10900_v4 = vpop.permute.xlu1 %5995 }
 0x558   : > { %3290 = vrot.lane.b32.xlu1 %v8588_v49, %s9031_s21  ;;  %13341 = vst [vmem:[#allocation49_spill] sm:$0xff] %v10898_v15  ;;  %13342 = vst [vmem:[#allocation50_spill] sm:$0xff] %v10900_v4  ;;  %v5328_v49 = vld [vmem:[%s13230_s4 + $0x60] sm:$0xff]  ;;  %v5331_v4 = vld [vmem:[%s13230_s4 + $0x78] sm:$0xff] }
 0x559   : > { %8242 = vmatpush3.bf16.msra.mxu0 %v10895_v1  ;;  %v10913_v26 = vpack.c.bf16 %v5329_v2, %v5328_v49  ;;  %v10919_v15 = vpack.c.bf16 %v5331_v4, %v5330_v34 }
 0x55a   : > { %8243 = vmatprep.subr.bf16.mxu0 %v13328_v48 }
 0x55b   : > { %v10921_v52 = vpop.permute.xlu0 %5997  ;;  %v10924_v40 = vpop.permute.xlu1 %5999 }
 0x55c   : > { %13343 = vst [vmem:[#allocation51_spill] sm:$0xff] %v10921_v52  ;;  %13344 = vst [vmem:[#allocation52_spill] sm:$0xff] %v10924_v40  ;;  %v2844_v52 = vmul.f32 0.5, %v10652_v55  ;;  %v2845_v40 = vmul.f32 0.5, %v10654_v53  ;;  %v2850_v53 = vmul.f32 0.5, %v10664_v60 }
 0x55d   : > { %8245 = vmatpush3.bf16.msra.mxu0 %v10913_v26 }
 0x55e   : > { %8246 = vmatprep.subr.bf16.mxu0 %v13328_v48  ;;  %8589 = vtanh.f32 %v2844_v52  ;;  %v2852_v52 = vmul.f32 0.5, %v10668_v0 }
 0x55f   : > { %v10928_v2 = vpop.permute.xlu0 %6001  ;;  %v10930_v49 = vpop.permute.xlu1 %6003  ;;  %8591 = vtanh.f32 %v2845_v40 }
 0x560   : > { %13345 = vst [vmem:[#allocation53_spill] sm:$0xff] %v10928_v2  ;;  %13346 = vst [vmem:[#allocation54_spill] sm:$0xff] %v10930_v49  ;;  %v2847_v2 = vmul.f32 0.5, %v10658_v29  ;;  %8593 = vtanh.f32 %v2846_v47 }
 0x561   : > { %8248 = vmatpush3.bf16.msra.mxu0 %v10919_v15 }
 0x562   : > { %8249 = vmatprep.subr.bf16.mxu0 %v13328_v48  ;;  %8595 = vtanh.f32 %v2847_v2 }
 0x563   : > { %v10932_v8 = vpop.permute.xlu0 %6005  ;;  %v10934_v19 = vpop.permute.xlu1 %6007 }
 0x564   : > { %13347 = vst [vmem:[#allocation55_spill] sm:$0xff] %v10932_v8  ;;  %13348 = vst [vmem:[#allocation56_spill] sm:$0xff] %v10934_v19  ;;  %v2848_v19 = vmul.f32 0.5, %v10660_v10  ;;  %v2853_v10 = vmul.f32 0.5, %v10670_v45 }
 0x566   : > { %8597 = vtanh.f32 %v2848_v19  ;;  %v2854_v19 = vmul.f32 0.5, %v10672_v5  ;;  %v2857_v5 = vmul.f32 0.5, %v10678_v3  ;;  %v2859_v3 = vmul.f32 0.5, %v10682_v36 }
 0x567   : > { %v10936_v4 = vpop.permute.xlu0 %6009  ;;  %v10938_v34 = vpop.permute.xlu1 %6011 }
 0x568   : > { %13349 = vst [vmem:[#allocation57_spill] sm:$0xff] %v10936_v4  ;;  %13350 = vst [vmem:[#allocation58_spill] sm:$0xff] %v10938_v34  ;;  %v2849_v4 = vmul.f32 0.5, %v10662_v25  ;;  %v8590_v29 = vpop.eup %8589 }
 0x569   : > { %v8592_v40 = vpop.eup %8591  ;;  %v2908_v25 = vadd.f32 1.0, %v8590_v29 }
 0x56a   : > { %8599 = vtanh.f32 %v2849_v4 }
 0x56b   : > { %v10943_v61 = vpop.permute.xlu0 %6013  ;;  %v10946_v49 = vpop.permute.xlu1 %6015  ;;  %8601 = vtanh.f32 %v2850_v53  ;;  %v10964_v0 = vmul.f32 0.5, %v2908_v25 }
 0x56c   : > { %13351 = vst [vmem:[#allocation59_spill] sm:$0xff] %v10943_v61  ;;  %13352 = vst [vmem:[#allocation60_spill] sm:$0xff] %v10946_v49  ;;  %8603 = vtanh.f32 %v2851_v58 }
 0x56d   : > { %8605 = vtanh.f32 %v2852_v52 }
 0x56e   : > { %8607 = vtanh.f32 %v2853_v10  ;;  %v2858_v10 = vmul.f32 0.5, %v10680_v16  ;;  %v2860_v16 = vmul.f32 0.5, %v10684_v42  ;;  %v2862_v42 = vmul.f32 0.5, %v10688_v31 }
 0x56f   : > { %v10950_v34 = vpop.permute.xlu0 %6017  ;;  %v10952_v55 = vpop.permute.xlu1 %6019  ;;  %8609 = vtanh.f32 %v2854_v19 }
 0x570   : > { %13353 = vst [vmem:[#allocation61_spill] sm:$0xff] %v10950_v34  ;;  %13354 = vst [vmem:[#allocation62_spill] sm:$0xff] %v10952_v55  ;;  %v8594_v55 = vpop.eup %8593  ;;  %v2909_v34 = vadd.f32 1.0, %v8592_v40  ;;  %8611 = vtanh.f32 %v2855_v6 }
 0x571   : > { %v8596_v60 = vpop.eup %8595  ;;  %v2910_v4 = vadd.f32 1.0, %v8594_v55 }
 0x572   : > { %v8598_v45 = vpop.eup %8597  ;;  %v2911_v53 = vadd.f32 1.0, %v8596_v60  ;;  %v10966_v49 = vmul.f32 0.5, %v2909_v34 }
 0x573   : > { %v10958_v47 = vpop.permute.xlu0 %6021  ;;  %v10960_v2 = vpop.permute.xlu1 %6023  ;;  %v2912_v55 = vadd.f32 1.0, %v8598_v45  ;;  %v10972_v52 = vmul.f32 0.5, %v2910_v4 }
 0x574   : > { %13355 = vst [vmem:[#allocation63_spill] sm:$0xff] %v10958_v47  ;;  %13356 = vst [vmem:[#allocation64_spill] sm:$0xff] %v10960_v2  ;;  %v8600_v29 = vpop.eup %8599  ;;  %v2856_v2 = vmul.f32 0.5, %v10676_v14  ;;  %v10976_v60 = vmul.f32 0.5, %v2911_v53 }
 0x575   : > { %v8602_v34 = vpop.eup %8601  ;;  %v2913_v25 = vadd.f32 1.0, %v8600_v29  ;;  %v10985_v29 = vmul.f32 0.5, %v2912_v55 }
 0x576   : > { %v8604_v19 = vpop.eup %8603  ;;  %8613 = vtanh.f32 %v2856_v2  ;;  %v2914_v53 = vadd.f32 1.0, %v8602_v34 }
 0x577   : > { %8615 = vtanh.f32 %v2857_v5  ;;  %v2915_v2 = vadd.f32 1.0, %v8604_v19 }
 0x578   : > { %8617 = vtanh.f32 %v2858_v10  ;;  %v11007_v61 = vmul.f32 0.5, %v2914_v53 }
 0x579   : > { %8619 = vtanh.f32 %v2859_v3  ;;  %v11010_v8 = vmul.f32 0.5, %v2915_v2 }
 0x57a   : > { %8621 = vtanh.f32 %v2860_v16  ;;  %v2863_v16 = vmul.f32 0.5, %v10690_v57 }
 0x58d   : > { %v3229_v58 = vpop.permute.xlu0 %3228 }
 0x58e   : > { %v3231_v40 = vpop.permute.xlu1 %3230  ;;  %v3324_v47 = vmul.f32 %v3229_v58, %v10964_v0  ;;  %v8606_v58 = vpop.eup %8605 }
 0x58f   : > { %v3325_v54 = vmul.f32 %v3231_v40, %v10966_v49  ;;  %v8608_v36 = vpop.eup %8607  ;;  %v2916_v31 = vadd.f32 1.0, %v8606_v58  ;;  %v2864_v58 = vmul.f32 0.5, %v10692_v63 }
 0x590   : > { %3388 = vrot.lane.b32.xlu0 %v3324_v47, %s9025_s30  ;;  %v2917_v3 = vadd.f32 1.0, %v8608_v36 }
 0x591   : > { %3390 = vrot.lane.b32.xlu1 %v3325_v54, %s9025_s30  ;;  %v3233_v14 = vpop.permute.xlu0 %3232  ;;  %v10990_v54 = vmul.f32 0.5, %v2913_v25 }
 0x592   : > { %v3235_v6 = vpop.permute.xlu1 %3234  ;;  %v3326_v45 = vmul.f32 %v3233_v14, %v10972_v52 }
 0x593   : > { %v3327_v4 = vmul.f32 %v3235_v6, %v10976_v60  ;;  %v2861_v6 = vmul.f32 0.5, %v10686_v37  ;;  %v8610_v37 = vpop.eup %8609 }
 0x594   : > { %3392 = vrot.lane.b32.xlu0 %v3326_v45, %s9025_s30 }
 0x595   : > { %3394 = vrot.lane.b32.xlu1 %v3327_v4, %s9025_s30  ;;  %v3237_v5 = vpop.permute.xlu0 %3236  ;;  %8623 = vtanh.f32 %v2861_v6 }
 0x596   : > { %v3239_v55 = vpop.permute.xlu1 %3238  ;;  %v3328_v34 = vmul.f32 %v3237_v5, %v10985_v29  ;;  %v8612_v5 = vpop.eup %8611  ;;  %8625 = vtanh.f32 %v2862_v42 }
 0x597   : > { %v3329_v10 = vmul.f32 %v3239_v55, %v10990_v54  ;;  %v2919_v57 = vadd.f32 1.0, %v8612_v5  ;;  %v2866_v5 = vmul.f32 0.5, %v10698_v62  ;;  %8627 = vtanh.f32 %v2863_v16 }
 0x598   : > { %3396 = vrot.lane.b32.xlu0 %v3328_v34, %s9025_s30  ;;  %8629 = vtanh.f32 %v2864_v58  ;;  %v2867_v58 = vmul.f32 0.5, %v10700_v11 }
 0x599   : > { %3398 = vrot.lane.b32.xlu1 %v3329_v10, %s9025_s30  ;;  %v3241_v55 = vpop.permute.xlu0 %3240  ;;  %v11050_v16 = vmul.f32 0.5, %v2919_v57 }
 0x59a   : > { %v3243_v53 = vpop.permute.xlu1 %3242  ;;  %v3330_v36 = vmul.f32 %v3241_v55, %v11007_v61  ;;  %v11030_v55 = vmul.f32 0.5, %v2917_v3 }
 0x59b   : > { %v10982_v47 = vpop.f32.mrb[8].mxu1  ;;  %v3331_v2 = vmul.f32 %v3243_v53, %v11010_v8  ;;  %13365 = vst [vmem:[#allocation73_spill] sm:$0xff] %v11050_v16 }
 0x59c   : > { %13357 = vst [vmem:[#allocation65_spill] sm:$0xff] %v10982_v47  ;;  %v10988_v40 = vpop.f32.mrb[9].mxu1  ;;  %3400 = vrot.lane.b32.xlu0 %v3330_v36, %s9025_s30 }
 0x59d   : > { %13358 = vst [vmem:[#allocation66_spill] sm:$0xff] %v10988_v40  ;;  %v10993_v14 = vpop.f32.mrb[10].mxu1  ;;  %v5246_v25 = vmul.f32 %v10988_v40, %v10988_v40  ;;  %3402 = vrot.lane.b32.xlu1 %v3331_v2, %s9025_s30 }
 0x59e   : > { %13359 = vst [vmem:[#allocation67_spill] sm:$0xff] %v10993_v14  ;;  %v10998_v45 = vpop.f32.mrb[11].mxu1  ;;  %v5249_v34 = vmul.f32 %v10993_v14, %v10993_v14  ;;  %v3247_v53 = vpop.permute.xlu1 %3246 }
 0x59f   : > { %13360 = vst [vmem:[#allocation68_spill] sm:$0xff] %v10998_v45  ;;  %v5208_v19 = vadd.f32 %v10998_v45, %v10988_v40  ;;  %v5247_v4 = vmul.f32 %v10998_v45, %v10998_v45  ;;  %v5248_v40 = vmul.f32 %v10982_v47, %v10982_v47 }
 0x5a1   : > { %v5209_v59 = vadd.f32 %v10982_v47, %v5208_v19  ;;  %v5278_v45 = vadd.f32 %v5247_v4, %v5246_v25  ;;  %v8614_v19 = vpop.eup %8613  ;;  %v2918_v25 = vadd.f32 1.0, %v8610_v37  ;;  %v11025_v4 = vmul.f32 0.5, %v2916_v31 }
 0x5a2   : > { %v8616_v6 = vpop.eup %8615  ;;  %v2865_v31 = vmul.f32 0.5, %v10694_v56  ;;  %v2920_v56 = vadd.f32 1.0, %v8614_v19  ;;  %v2868_v19 = vmul.f32 0.5, %v10702_v18 }
 0x5a3   : > { %v5279_v10 = vadd.f32 %v5278_v45, %v5248_v40  ;;  %v11022_v46 = vpop.f32.mrb[12].mxu1  ;;  %v5210_v43 = vadd.f32 %v10993_v14, %v5209_v59  ;;  %v3245_v40 = vpop.permute.xlu0 %3244  ;;  %v3333_v14 = vmul.f32 %v3247_v53, %v11030_v55  ;;  %v11047_v62 = vmul.f32 0.5, %v2918_v25 }
 0x5a4   : > { %13361 = vst [vmem:[#allocation69_spill] sm:$0xff] %v11022_v46  ;;  %v11028_v63 = vpop.f32.mrb[13].mxu1  ;;  %v3332_v3 = vmul.f32 %v3245_v40, %v11025_v4  ;;  %v8618_v2 = vpop.eup %8617  ;;  %8631 = vtanh.f32 %v2865_v31 }
 0x5a5   : > { %13362 = vst [vmem:[#allocation70_spill] sm:$0xff] %v11028_v63  ;;  %v5211_v45 = vadd.f32 %v5210_v43, %v11028_v63  ;;  %v5250_v59 = vmul.f32 %v11028_v63, %v11028_v63  ;;  %v5280_v42 = vadd.f32 %v5279_v10, %v5249_v34  ;;  %v11036_v37 = vpop.f32.mrb[14].mxu1  ;;  %v8620_v10 = vpop.eup %8619  ;;  %v2921_v63 = vadd.f32 1.0, %v8616_v6  ;;  %3406 = vrot.lane.b32.xlu1 %v3333_v14, %s9025_s30 }
 0x5a6   : > { %13363 = vst [vmem:[#allocation71_spill] sm:$0xff] %v11036_v37  ;;  %v11041_v36 = vpop.f32.mrb[15].mxu1  ;;  %3404 = vrot.lane.b32.xlu0 %v3332_v3, %s9025_s30  ;;  %v8622_v53 = vpop.eup %8621  ;;  %v5253_v14 = vmul.f32 %v11036_v37, %v11036_v37  ;;  %8633 = vtanh.f32 %v2866_v5  ;;  %v2923_v11 = vadd.f32 1.0, %v8620_v10  ;;  %v2869_v10 = vmul.f32 0.5, %v10704_v9 }
 0x5a7   : > { %13364 = vst [vmem:[#allocation72_spill] sm:$0xff] %v11041_v36  ;;  %v5281_v43 = vadd.f32 %v5280_v42, %v5250_v59  ;;  %v5212_v47 = vadd.f32 %v5211_v45, %v11041_v36  ;;  %v5251_v34 = vmul.f32 %v11041_v36, %v11041_v36  ;;  %v3249_v40 = vpop.permute.xlu0 %3248  ;;  %v5252_v59 = vmul.f32 %v11022_v46, %v11022_v46  ;;  %v3251_v25 = vpop.permute.xlu1 %3250 }
 0x5a8   : > { %v3334_v6 = vmul.f32 %v3249_v40, %v11047_v62  ;;  %v3335_v57 = vmul.f32 %v3251_v25, %v11050_v16  ;;  %v11070_v31 = vmul.f32 0.5, %v2921_v63  ;;  %8635 = vtanh.f32 %v2867_v58 }
 0x5a9   : > { %v5213_v45 = vadd.f32 %v11022_v46, %v5212_v47  ;;  %v5282_v42 = vadd.f32 %v5281_v43, %v5251_v34  ;;  %v8624_v43 = vpop.eup %8623  ;;  %v2922_v34 = vadd.f32 1.0, %v8618_v2  ;;  %v11065_v46 = vmul.f32 0.5, %v2920_v56 }
 0x5aa   : > { %3408 = vrot.lane.b32.xlu0 %v3334_v6, %s9025_s30  ;;  %3410 = vrot.lane.b32.xlu1 %v3335_v57, %s9025_s30  ;;  %v8626_v2 = vpop.eup %8625  ;;  %v2870_v56 = vmul.f32 0.5, %v10708_v30  ;;  %8637 = vtanh.f32 %v2868_v19  ;;  %v2925_v9 = vadd.f32 1.0, %v8624_v43  ;;  %v11090_v30 = vmul.f32 0.5, %v2923_v11 }
 0x5ab   : > { %v5283_v3 = vadd.f32 %v5282_v42, %v5252_v59  ;;  %v11062_v36 = vpop.f32.mrb[16].mxu1  ;;  %v5214_v47 = vadd.f32 %v11036_v37, %v5213_v45  ;;  %v3253_v40 = vpop.permute.xlu0 %3252  ;;  %v11087_v16 = vmul.f32 0.5, %v2922_v34  ;;  %v2871_v19 = vmul.f32 0.5, %v10710_v17 }
 0x5ac   : > { %13366 = vst [vmem:[#allocation74_spill] sm:$0xff] %v11062_v36  ;;  %v11068_v18 = vpop.f32.mrb[17].mxu1  ;;  %v3255_v25 = vpop.permute.xlu1 %3254  ;;  %v3336_v63 = vmul.f32 %v3253_v40, %v11065_v46  ;;  %v5256_v40 = vmul.f32 %v11062_v36, %v11062_v36  ;;  %8639 = vtanh.f32 %v2869_v10  ;;  %v2926_v17 = vadd.f32 1.0, %v8626_v2 }
 0x5ad   : > { %13367 = vst [vmem:[#allocation75_spill] sm:$0xff] %v11068_v18  ;;  %v5215_v59 = vadd.f32 %v5214_v47, %v11068_v18  ;;  %v5254_v45 = vmul.f32 %v11068_v18, %v11068_v18  ;;  %v5284_v42 = vadd.f32 %v5283_v3, %v5253_v14  ;;  %v11076_v5 = vpop.f32.mrb[18].mxu1  ;;  %v3337_v57 = vmul.f32 %v3255_v25, %v11070_v31  ;;  %v8628_v3 = vpop.eup %8627 }
 0x5ae   : > { %13368 = vst [vmem:[#allocation76_spill] sm:$0xff] %v11076_v5  ;;  %v11081_v6 = vpop.f32.mrb[19].mxu1  ;;  %v2924_v18 = vadd.f32 1.0, %v8622_v53  ;;  %3412 = vrot.lane.b32.xlu0 %v3336_v63, %s9025_s30  ;;  %v2872_v53 = vmul.f32 0.5, %v10712_v38  ;;  %v5257_v25 = vmul.f32 %v11076_v5, %v11076_v5  ;;  %8641 = vtanh.f32 %v2870_v56 }
 0x5af   : > { %13369 = vst [vmem:[#allocation77_spill] sm:$0xff] %v11081_v6  ;;  %v5285_v47 = vadd.f32 %v5284_v42, %v5254_v45  ;;  %v5216_v37 = vadd.f32 %v5215_v59, %v11081_v6  ;;  %v5255_v14 = vmul.f32 %v11081_v6, %v11081_v6  ;;  %3414 = vrot.lane.b32.xlu1 %v3337_v57, %s9025_s30  ;;  %v3257_v58 = vpop.permute.xlu0 %3256  ;;  %v8630_v42 = vpop.eup %8629  ;;  %v11110_v10 = vmul.f32 0.5, %v2925_v9 }
 0x5b0   : > { %v3259_v43 = vpop.permute.xlu1 %3258  ;;  %v3338_v34 = vmul.f32 %v3257_v58, %v11087_v16  ;;  %8643 = vtanh.f32 %v2871_v19 }
 0x5b1   : > { %v5217_v59 = vadd.f32 %v11062_v36, %v5216_v37  ;;  %v5286_v45 = vadd.f32 %v5285_v47, %v5255_v14  ;;  %v3339_v11 = vmul.f32 %v3259_v43, %v11090_v30  ;;  %v8632_v47 = vpop.eup %8631  ;;  %v2927_v14 = vadd.f32 1.0, %v8628_v3 }
 0x5b2   : > { %v11105_v36 = vmul.f32 0.5, %v2924_v18  ;;  %3416 = vrot.lane.b32.xlu0 %v3338_v34, %s9025_s30  ;;  %v8634_v2 = vpop.eup %8633  ;;  %v2873_v18 = vmul.f32 0.5, %v10714_v28  ;;  %8645 = vtanh.f32 %v2872_v53  ;;  %v2928_v28 = vadd.f32 1.0, %v8630_v42 }
 0x5b3   : > { %v5287_v63 = vadd.f32 %v5286_v45, %v5256_v40  ;;  %v11102_v57 = vpop.f32.mrb[20].mxu1  ;;  %v5218_v37 = vadd.f32 %v11076_v5, %v5217_v59  ;;  %3418 = vrot.lane.b32.xlu1 %v3339_v11, %s9025_s30  ;;  %v3261_v58 = vpop.permute.xlu0 %3260  ;;  %v2929_v5 = vadd.f32 1.0, %v8632_v47  ;;  %v11129_v19 = vmul.f32 0.5, %v2927_v14 }
 0x5b4   : > { %13370 = vst [vmem:[#allocation78_spill] sm:$0xff] %v11102_v57  ;;  %v11108_v38 = vpop.f32.mrb[21].mxu1  ;;  %v3263_v3 = vpop.permute.xlu1 %3262  ;;  %v3340_v43 = vmul.f32 %v3261_v58, %v11105_v36  ;;  %v2874_v53 = vmul.f32 0.5, %v10716_v13  ;;  %8647 = vtanh.f32 %v2873_v18  ;;  %v11146_v13 = vmul.f32 0.5, %v2928_v28 }
 0x5b5   : > { %13371 = vst [vmem:[#allocation79_spill] sm:$0xff] %v11108_v38  ;;  %v5219_v40 = vadd.f32 %v5218_v37, %v11108_v38  ;;  %v5258_v59 = vmul.f32 %v11108_v38, %v11108_v38  ;;  %v5288_v45 = vadd.f32 %v5287_v63, %v5257_v25  ;;  %v11116_v56 = vpop.f32.mrb[22].mxu1  ;;  %v3341_v34 = vmul.f32 %v3263_v3, %v11110_v10  ;;  %v8636_v25 = vpop.eup %8635 }
 0x5b6   : > { %13372 = vst [vmem:[#allocation80_spill] sm:$0xff] %v11116_v56  ;;  %v11120_v9 = vpop.f32.mrb[23].mxu1  ;;  %v11126_v63 = vmul.f32 0.5, %v2926_v17  ;;  %3420 = vrot.lane.b32.xlu0 %v3340_v43, %s9025_s30  ;;  %v8638_v3 = vpop.eup %8637  ;;  %v5261_v14 = vmul.f32 %v11116_v56, %v11116_v56  ;;  %13376 = vst [vmem:[#allocation84_spill] sm:$0xff] %v11146_v13  ;;  %v2930_v18 = vadd.f32 1.0, %v8634_v2  ;;  %8649 = vtanh.f32 %v2874_v53 }
 0x5b7   : > { %13373 = vst [vmem:[#allocation81_spill] sm:$0xff] %v11120_v9  ;;  %v5289_v11 = vadd.f32 %v5288_v45, %v5258_v59  ;;  %v5220_v37 = vadd.f32 %v5219_v40, %v11120_v9  ;;  %v5259_v38 = vmul.f32 %v11120_v9, %v11120_v9  ;;  %3422 = vrot.lane.b32.xlu1 %v3341_v34, %s9025_s30  ;;  %v3265_v58 = vpop.permute.xlu0 %3264  ;;  %v8640_v6 = vpop.eup %8639 }
 0x5b8   : > { %v5260_v59 = vmul.f32 %v11102_v57, %v11102_v57  ;;  %v3267_v17 = vpop.permute.xlu1 %3266  ;;  %v3342_v42 = vmul.f32 %v3265_v58, %v11126_v63  ;;  %v2931_v58 = vadd.f32 1.0, %v8636_v25 }
 0x5b9   : > { %v5221_v40 = vadd.f32 %v11102_v57, %v5220_v37  ;;  %v5290_v45 = vadd.f32 %v5289_v11, %v5259_v38  ;;  %v3343_v47 = vmul.f32 %v3267_v17, %v11129_v19  ;;  %v2875_v38 = vmul.f32 0.5, %v10718_v27 }
 0x5ba   : > { %v11144_v11 = vmul.f32 0.5, %v2929_v5  ;;  %3424 = vrot.lane.b32.xlu0 %v3342_v42, %s9025_s30  ;;  %v8642_v5 = vpop.eup %8641  ;;  %v11167_v53 = vmul.f32 0.5, %v2931_v58 }
 0x5bb   : > { %v5291_v43 = vadd.f32 %v5290_v45, %v5260_v59  ;;  %v11140_v34 = vpop.f32.mrb[24].mxu1  ;;  %v5222_v9 = vadd.f32 %v11116_v56, %v5221_v40  ;;  %3426 = vrot.lane.b32.xlu1 %v3343_v47, %s9025_s30  ;;  %v3269_v59 = vpop.permute.xlu0 %3268  ;;  %8651 = vtanh.f32 %v2875_v38 }
 0x5bc   : > { %13374 = vst [vmem:[#allocation82_spill] sm:$0xff] %v11140_v34  ;;  %13375 = vst [vmem:[#allocation83_spill] sm:$0xff] %v11144_v11  ;;  %v11149_v37 = vpop.f32.mrb[25].mxu1  ;;  %v3271_v28 = vpop.permute.xlu1 %3270  ;;  %v3344_v2 = vmul.f32 %v3269_v59, %v11146_v13 }
 0x5bd   : > { %13377 = vst [vmem:[#allocation85_spill] sm:$0xff] %v11149_v37  ;;  %v5223_v45 = vadd.f32 %v5222_v9, %v11149_v37  ;;  %v5262_v40 = vmul.f32 %v11149_v37, %v11149_v37  ;;  %v5292_v17 = vadd.f32 %v5291_v43, %v5261_v14  ;;  %v11155_v27 = vpop.f32.mrb[26].mxu1  ;;  %v3345_v25 = vmul.f32 %v3271_v28, %v11144_v11  ;;  %v8644_v57 = vpop.eup %8643 }
 0x5be   : > { %13378 = vst [vmem:[#allocation86_spill] sm:$0xff] %v11155_v27  ;;  %v11158_v42 = vpop.f32.mrb[27].mxu1  ;;  %v11164_v14 = vmul.f32 0.5, %v2930_v18  ;;  %v2933_v43 = vadd.f32 1.0, %v8640_v6  ;;  %v2932_v37 = vadd.f32 1.0, %v8638_v3  ;;  %3428 = vrot.lane.b32.xlu0 %v3344_v2, %s9025_s30  ;;  %13381 = vst [vmem:[#allocation89_spill] sm:$0xff] %v11167_v53  ;;  %v8646_v28 = vpop.eup %8645  ;;  %v5265_v3 = vmul.f32 %v11155_v27, %v11155_v27 }
 0x5bf   : > { %13379 = vst [vmem:[#allocation87_spill] sm:$0xff] %v11158_v42  ;;  %v5293_v56 = vadd.f32 %v5292_v17, %v5262_v40  ;;  %v5224_v47 = vadd.f32 %v5223_v45, %v11158_v42  ;;  %v5263_v9 = vmul.f32 %v11158_v42, %v11158_v42  ;;  %3430 = vrot.lane.b32.xlu1 %v3345_v25, %s9025_s30  ;;  %v3273_v59 = vpop.permute.xlu0 %3272  ;;  %v8648_v25 = vpop.eup %8647 }
 0x5c0   : > { %13380 = vst [vmem:[#allocation88_spill] sm:$0xff] %v11164_v14  ;;  %v5264_v40 = vmul.f32 %v11140_v34, %v11140_v34  ;;  %v3275_v42 = vpop.permute.xlu1 %3274  ;;  %v3346_v38 = vmul.f32 %v3273_v59, %v11164_v14  ;;  %v11180_v11 = vmul.f32 0.5, %v2933_v43  ;;  %v11182_v13 = vmul.f32 0.5, %v2932_v37 }
 0x5c1   : > { %v5225_v45 = vadd.f32 %v11140_v34, %v5224_v47  ;;  %v5294_v17 = vadd.f32 %v5293_v56, %v5263_v9  ;;  %v3347_v6 = vmul.f32 %v3275_v42, %v11167_v53  ;;  %v2934_v56 = vadd.f32 1.0, %v8642_v5 }
 0x5c2   : > { %13383 = vst [vmem:[#allocation91_spill] sm:$0xff] %v11180_v11  ;;  %13384 = vst [vmem:[#allocation92_spill] sm:$0xff] %v11182_v13  ;;  %3432 = vrot.lane.b32.xlu0 %v3346_v38, %s9025_s30  ;;  %v2935_v9 = vadd.f32 1.0, %v8644_v57 }
 0x5c3   : > { %v5295_v18 = vadd.f32 %v5294_v17, %v5264_v40  ;;  %v11177_v58 = vpop.f32.mrb[28].mxu1  ;;  %v5226_v2 = vadd.f32 %v11155_v27, %v5225_v45  ;;  %3434 = vrot.lane.b32.xlu1 %v3347_v6, %s9025_s30  ;;  %v3277_v42 = vpop.permute.xlu0 %3276  ;;  %v11200_v34 = vmul.f32 0.5, %v2934_v56 }
 0x5c4   : > { %13382 = vst [vmem:[#allocation90_spill] sm:$0xff] %v11177_v58  ;;  %v11185_v47 = vpop.f32.mrb[29].mxu1  ;;  %v3279_v43 = vpop.permute.xlu1 %3278  ;;  %v3348_v37 = vmul.f32 %v3277_v42, %v11182_v13 }
 0x5c5   : > { %13385 = vst [vmem:[#allocation93_spill] sm:$0xff] %v11185_v47  ;;  %v5227_v59 = vadd.f32 %v5226_v2, %v11185_v47  ;;  %v5266_v40 = vmul.f32 %v11185_v47, %v11185_v47  ;;  %v5296_v45 = vadd.f32 %v5295_v18, %v5265_v3  ;;  %v11191_v17 = vpop.f32.mrb[30].mxu1  ;;  %v3349_v38 = vmul.f32 %v3279_v43, %v11180_v11  ;;  %v8650_v2 = vpop.eup %8649 }
 0x5c6   : > { %13386 = vst [vmem:[#allocation94_spill] sm:$0xff] %v11191_v17  ;;  %v11194_v5 = vpop.f32.mrb[31].mxu1  ;;  %v2937_v47 = vadd.f32 1.0, %v8648_v25  ;;  %v2936_v3 = vadd.f32 1.0, %v8646_v28  ;;  %3436 = vrot.lane.b32.xlu0 %v3348_v37, %s9025_s30  ;;  %v11203_v18 = vmul.f32 0.5, %v2935_v9  ;;  %v8652_v43 = vpop.eup %8651  ;;  %v5269_v28 = vmul.f32 %v11191_v17, %v11191_v17 }
 0x5c7   : > { %13387 = vst [vmem:[#allocation95_spill] sm:$0xff] %v11194_v5  ;;  %v5297_v27 = vadd.f32 %v5296_v45, %v5266_v40  ;;  %v5228_v57 = vadd.f32 %v5227_v59, %v11194_v5  ;;  %v5267_v6 = vmul.f32 %v11194_v5, %v11194_v5  ;;  %3438 = vrot.lane.b32.xlu1 %v3349_v38, %s9025_s30  ;;  %v3281_v42 = vpop.permute.xlu0 %3280 }
 0x5c8   : > { %v5268_v40 = vmul.f32 %v11177_v58, %v11177_v58  ;;  %v3283_v5 = vpop.permute.xlu1 %3282  ;;  %v3350_v56 = vmul.f32 %v3281_v42, %v11200_v34  ;;  %v11216_v11 = vmul.f32 0.5, %v2937_v47  ;;  %v11218_v13 = vmul.f32 0.5, %v2936_v3 }
 0x5c9   : > { %v5229_v59 = vadd.f32 %v11177_v58, %v5228_v57  ;;  %v5298_v45 = vadd.f32 %v5297_v27, %v5267_v6  ;;  %v3351_v25 = vmul.f32 %v3283_v5, %v11203_v18  ;;  %v2938_v57 = vadd.f32 1.0, %v8650_v2 }
 0x5ca   : > { %13389 = vst [vmem:[#allocation97_spill] sm:$0xff] %v11216_v11  ;;  %3440 = vrot.lane.b32.xlu0 %v3350_v56, %s9025_s30  ;;  %v2939_v6 = vadd.f32 1.0, %v8652_v43 }
 0x5cb   : > { %v5299_v9 = vadd.f32 %v5298_v45, %v5268_v40  ;;  %v11213_v37 = vpop.f32.mrb[32].mxu1  ;;  %v5230_v38 = vadd.f32 %v11191_v17, %v5229_v59  ;;  %3442 = vrot.lane.b32.xlu1 %v3351_v25, %s9025_s30  ;;  %v3285_v5 = vpop.permute.xlu0 %3284 }
 0x5cc   : > { %13388 = vst [vmem:[#allocation96_spill] sm:$0xff] %v11213_v37  ;;  %v11221_v27 = vpop.f32.mrb[33].mxu1  ;;  %v3287_v47 = vpop.permute.xlu1 %3286  ;;  %v3352_v3 = vmul.f32 %v3285_v5, %v11218_v13  ;;  %v5272_v5 = vmul.f32 %v11213_v37, %v11213_v37 }
 0x5cd   : > { %13390 = vst [vmem:[#allocation98_spill] sm:$0xff] %v11221_v27  ;;  %v5231_v42 = vadd.f32 %v5230_v38, %v11221_v27  ;;  %v5270_v40 = vmul.f32 %v11221_v27, %v11221_v27  ;;  %v5300_v45 = vadd.f32 %v5299_v9, %v5269_v28  ;;  %v11227_v59 = vpop.f32.mrb[34].mxu1  ;;  %v3353_v56 = vmul.f32 %v3287_v47, %v11216_v11 }
 0x5ce   : > { %13391 = vst [vmem:[#allocation99_spill] sm:$0xff] %v11227_v59  ;;  %v11230_v2 = vpop.f32.mrb[35].mxu1  ;;  %v11236_v38 = vmul.f32 0.5, %v2938_v57  ;;  %3444 = vrot.lane.b32.xlu0 %v3352_v3, %s9025_s30  ;;  %v11239_v28 = vmul.f32 0.5, %v2939_v6  ;;  %v5273_v57 = vmul.f32 %v11227_v59, %v11227_v59 }
 0x5cf   : > { %13392 = vst [vmem:[#allocation100_spill] sm:$0xff] %v11230_v2  ;;  %v5301_v17 = vadd.f32 %v5300_v45, %v5270_v40  ;;  %v5232_v43 = vadd.f32 %v5231_v42, %v11230_v2  ;;  %v5271_v25 = vmul.f32 %v11230_v2, %v11230_v2  ;;  %3446 = vrot.lane.b32.xlu1 %v3353_v56, %s9025_s30  ;;  %v3289_v9 = vpop.permute.xlu0 %3288 }
 0x5d0   : > { %13393 = vst [vmem:[#allocation101_spill] sm:$0xff] %v11239_v28  ;;  %v3291_v45 = vpop.permute.xlu1 %3290  ;;  %v3354_v42 = vmul.f32 %v3289_v9, %v11236_v38 }
 0x5d1   : > { %v5233_v47 = vadd.f32 %v11213_v37, %v5232_v43  ;;  %v5302_v40 = vadd.f32 %v5301_v17, %v5271_v25  ;;  %v3355_v2 = vmul.f32 %v3291_v45, %v11239_v28 }
 0x5d2   : > { %3448 = vrot.lane.b32.xlu0 %v3354_v42, %s9025_s30 }
 0x5d3   : > { %v5303_v3 = vadd.f32 %v5302_v40, %v5272_v5  ;;  %v11249_v6 = vpop.f32.mrb[36].mxu1  ;;  %v5234_v56 = vadd.f32 %v11227_v59, %v5233_v47  ;;  %3450 = vrot.lane.b32.xlu1 %v3355_v2, %s9025_s30 }
 0x5d4   : > { %13394 = vst [vmem:[#allocation102_spill] sm:$0xff] %v11249_v6  ;;  %v11253_v27 = vpop.f32.mrb[37].mxu1  ;;  %v5276_v42 = vmul.f32 %v11249_v6, %v11249_v6 }
 0x5d5   : > { %13395 = vst [vmem:[#allocation103_spill] sm:$0xff] %v11253_v27  ;;  %v5235_v17 = vadd.f32 %v5234_v56, %v11253_v27  ;;  %v5274_v43 = vmul.f32 %v11253_v27, %v11253_v27  ;;  %v5304_v25 = vadd.f32 %v5303_v3, %v5273_v57  ;;  %v11259_v9 = vpop.f32.mrb[38].mxu1 }
 0x5d6   : > { %13396 = vst [vmem:[#allocation104_spill] sm:$0xff] %v11259_v9  ;;  %v11261_v45 = vpop.f32.mrb[39].mxu1  ;;  %v5277_v27 = vmul.f32 %v11259_v9, %v11259_v9 }
 0x5d7   : > { %13397 = vst [vmem:[#allocation105_spill] sm:$0xff] %v11261_v45  ;;  %v5305_v5 = vadd.f32 %v5304_v25, %v5274_v43  ;;  %v5236_v40 = vadd.f32 %v5235_v17, %v11261_v45  ;;  %v5275_v47 = vmul.f32 %v11261_v45, %v11261_v45  ;;  %v13398_v45 = vmov 0.0  }
 0x5d9   : > { %v5237_v2 = vadd.f32 %v11249_v6, %v5236_v40  ;;  %v5306_v56 = vadd.f32 %v5305_v5, %v5275_v47  ;;  %v3168_v47 = vmul.f32 %v10576_v39, %v10985_v29  ;;  %v3171_v39 = vmul.f32 %v10584_v35, %v11010_v8  ;;  %v13419_v6 = vld [vmem:[#allocation26_spill] sm:$0xff] }
 0x5db   : > { %v5238_v57 = vadd.f32 %v11259_v9, %v5237_v2  ;;  %v5307_v3 = vadd.f32 %v5306_v56, %v5276_v42 }
 0x5dd   : > { %v5239_v59 = vrot.slane %v5238_v57, 4  ;;  %v5308_v37 = vadd.f32 %v5307_v3, %v5277_v27 }
 0x5df   : > { %v5240_v43 = vadd.f32 %v5239_v59, %v5238_v57  ;;  %v5309_v27 = vrot.slane %v5308_v37, 4  ;;  %v3170_v57 = vmul.f32 %v10581_v7, %v11007_v61  ;;  %v3173_v7 = vmul.f32 %v10588_v20, %v11030_v55 }
 0x5e1   : > { %v5241_v25 = vrot.slane %v5240_v43, 2 }
 0x5e3   : > { %v5242_v17 = vadd.f32 %v5241_v25, %v5240_v43 }
 0x5e5   : > { %v5243_v58 = vrot.slane %v5242_v17, 1 }
 0x5e7   : > { %v5244_v28 = vadd.f32 %v5243_v58, %v5242_v17  ;;  %v5310_v58 = vadd.f32 %v5309_v27, %v5308_v37  ;;  %v3172_v17 = vmul.f32 %v10586_v12, %v11025_v4  ;;  %v13400_v12 = vld [vmem:[#allocation73_spill] sm:$0xff] }
 0x5e9   : > { %8130 = vmatmul.mubr.f32.vlgmr.msra.gmra.mrb[32].mxu0 %v5244_v28 }
 0x5ea   : > { %8251 = vmatpush3.bf16.msra.mxu0 %v10791_v50  ;;  %8164 = vmatprep.mubr.msk.f32.mxu0 %vm9029_vm7, %v13398_v45  ;;  %v5311_v50 = vrot.slane %v5310_v58, 2 }
 0x5eb   : > { %8252 = vmatprep.subr.bf16.mxu0 %v13328_v48 }
 0x5ee   : > { %8254 = vmatpush3.bf16.msra.mxu0 %v10813_v44  ;;  %v5312_v44 = vadd.f32 %v5311_v50, %v5310_v58 }
 0x5ef   : > { %8255 = vmatprep.subr.bf16.mxu0 %v13328_v48 }
 0x5f2   : > { %8257 = vmatpush3.bf16.msra.mxu0 %v10860_v24  ;;  %v5313_v24 = vrot.slane %v5312_v44, 1 }
 0x5f3   : > { %8258 = vmatprep.subr.bf16.mxu0 %v13328_v48 }
 0x5f6   : > { %8260 = vmatpush3.bf16.msra.mxu0 %v10867_v33  ;;  %v5314_v33 = vadd.f32 %v5313_v24, %v5312_v44  ;;  %v13399_v44 = vld [vmem:[#allocation10_spill] sm:$0xff] }
 0x5f7   : > { %8261 = vmatprep.subr.bf16.mxu0 %v13328_v48  ;;  %v3174_v24 = vmul.f32 %v13399_v44, %v11047_v62  ;;  %v13406_v44 = vld [vmem:[#allocation17_spill] sm:$0xff] }
 0x5fa   : > { %8263 = vmatpush3.bf16.msra.mxu0 %v10879_v21  ;;  %v3164_v21 = vmul.f32 %v10560_v41, %v10964_v0  ;;  %v3167_v41 = vmul.f32 %v10572_v23, %v10976_v60 }
 0x5fb   : > { %8264 = vmatprep.subr.bf16.mxu0 %v13328_v48 }
 0x5fe   : > { %8266 = vmatpush3.bf16.msra.mxu0 %v10895_v1  ;;  %v3165_v1 = vmul.f32 %v10563_v32, %v10966_v49 }
 0x5ff   : > { %8267 = vmatprep.subr.bf16.mxu0 %v13328_v48 }
 0x602   : > { %8269 = vmatpush3.bf16.msra.mxu0 %v10913_v26  ;;  %v3389_v37 = vpop.permute.xlu0 %3388 }
 0x603   : > { %8270 = vmatprep.subr.bf16.mxu0 %v13328_v48  ;;  %v3391_v26 = vpop.permute.xlu1 %3390  ;;  %v11296_v59 = vadd.f32 %v3389_v37, %v3164_v21 }
 0x604   : > { %v11298_v48 = vadd.f32 %v3391_v26, %v3165_v1 }
 0x605   : > { %3740 = vrot.lane.b32.xlu0 %v11296_v59, %s9032_s13  ;;  %8653 = vtanh.f32 %v11296_v59 }
 0x606   : > { %8272 = vmatpush3.bf16.msra.mxu0 %v10919_v15  ;;  %v3166_v15 = vmul.f32 %v10569_v22, %v10972_v52  ;;  %3742 = vrot.lane.b32.xlu1 %v11298_v48, %s9032_s13  ;;  %v3393_v32 = vpop.permute.xlu0 %3392  ;;  %v3169_v22 = vmul.f32 %v10578_v51, %v10990_v54  ;;  %8655 = vtanh.f32 %v11298_v48 }
 0x607   : > { %8167 = vmatprep.subr.mxu0 %v13398_v45  ;;  %v3395_v28 = vpop.permute.xlu1 %3394 }
 0x608   : > { %v11308_v5 = vadd.f32 %v3393_v32, %v3166_v15  ;;  %v11310_v40 = vadd.f32 %v3395_v28, %v3167_v41  ;;  %v13402_v15 = vld [vmem:[#allocation13_spill] sm:$0xff]  ;;  %v13403_v32 = vld [vmem:[#allocation14_spill] sm:$0xff] }
 0x609   : > { %8165 = vmatmul.mubr.f32.vlgmr.msra.gmra.mrb[34].mxu0 %v5314_v33  ;;  %v13401_v33 = vld [vmem:[#allocation11_spill] sm:$0xff]  ;;  %v3176_v41 = vmul.f32 %v13402_v15, %v11065_v46  ;;  %v3177_v28 = vmul.f32 %v13403_v32, %v11070_v31 }
 0x60a   : > { %8169 = vmatprep.mubr.msk.f32.mxu0 %vm9029_vm7, %v13398_v45  ;;  %3744 = vrot.lane.b32.xlu0 %v11308_v5, %s9032_s13  ;;  %v3397_v23 = vpop.permute.xlu0 %3396  ;;  %v3175_v21 = vmul.f32 %v13401_v33, %v13400_v12  ;;  %v13407_v33 = vld [vmem:[#allocation18_spill] sm:$0xff]  ;;  %v13408_v32 = vld [vmem:[#allocation19_spill] sm:$0xff]  ;;  %8657 = vtanh.f32 %v11308_v5 }
 0x60b   : > { %3746 = vrot.lane.b32.xlu1 %v11310_v40, %s9032_s13  ;;  %v3399_v42 = vpop.permute.xlu1 %3398  ;;  %v11320_v2 = vadd.f32 %v3397_v23, %v3168_v47  ;;  %8659 = vtanh.f32 %v11310_v40  ;;  %v11494_v40 = vld [vmem:[%s13231_s5] sm:$0xf] }
 0x60c   : > { %v11322_v56 = vadd.f32 %v3399_v42, %v3169_v22  ;;  %8168 = vmatpush3.msk.msra.mxu0 %vm2588_vm8, %v11494_v40 }
 0x60d   : > { %8661 = vtanh.f32 %v11320_v2  ;;  %8172 = vmatprep.subr.mxu0 %v13398_v45 }
 0x60e   : > { %3748 = vrot.lane.b32.xlu0 %v11320_v2, %s9032_s13  ;;  %v3401_v51 = vpop.permute.xlu0 %3400  ;;  %8663 = vtanh.f32 %v11322_v56 }
 0x60f   : > { %3750 = vrot.lane.b32.xlu1 %v11322_v56, %s9032_s13  ;;  %v3403_v3 = vpop.permute.xlu1 %3402  ;;  %v11332_v43 = vadd.f32 %v3401_v51, %v3170_v57  ;;  %v13404_v57 = vld [vmem:[#allocation15_spill] sm:$0xff]  ;;  %v13405_v51 = vld [vmem:[#allocation16_spill] sm:$0xff] }
 0x610   : > { %v11334_v25 = vadd.f32 %v3403_v3, %v3171_v39  ;;  %v3178_v39 = vmul.f32 %v13404_v57, %v11087_v16  ;;  %v3179_v3 = vmul.f32 %v13405_v51, %v11090_v30 }
 0x611   : > { %8665 = vtanh.f32 %v11332_v43 }
 0x612   : > { %3752 = vrot.lane.b32.xlu0 %v11332_v43, %s9032_s13  ;;  %8667 = vtanh.f32 %v11334_v25 }
 0x613   : > { %3754 = vrot.lane.b32.xlu1 %v11334_v25, %s9032_s13 }
 0x617   : > { %v3407_v27 = vpop.permute.xlu1 %3406 }
 0x618   : > { %v3405_v35 = vpop.permute.xlu0 %3404  ;;  %v11346_v50 = vadd.f32 %v3407_v27, %v3173_v7 }
 0x619   : > { %v11344_v58 = vadd.f32 %v3405_v35, %v3172_v17 }
 0x61a   : > { %3758 = vrot.lane.b32.xlu1 %v11346_v50, %s9032_s13 }
 0x61b   : > { %3756 = vrot.lane.b32.xlu0 %v11344_v58, %s9032_s13  ;;  %8669 = vtanh.f32 %v11344_v58 }
 0x61c   : > { %v3409_v20 = vpop.permute.xlu0 %3408  ;;  %v3411_v1 = vpop.permute.xlu1 %3410  ;;  %8671 = vtanh.f32 %v11346_v50 }
 0x61d   : > { %v11356_v37 = vadd.f32 %v3409_v20, %v3174_v24  ;;  %v11358_v26 = vadd.f32 %v3411_v1, %v3175_v21  ;;  %v3180_v24 = vmul.f32 %v13406_v44, %v11105_v36  ;;  %v3181_v21 = vmul.f32 %v13407_v33, %v11110_v10  ;;  %v13413_v33 = vld [vmem:[#allocation22_spill] sm:$0xff] }
 0x61f   : > { %3760 = vrot.lane.b32.xlu0 %v11356_v37, %s9032_s13  ;;  %3762 = vrot.lane.b32.xlu1 %v11358_v26, %s9032_s13  ;;  %8673 = vtanh.f32 %v11356_v37 }
 0x620   : > { %v3413_v47 = vpop.permute.xlu0 %3412  ;;  %8675 = vtanh.f32 %v11358_v26 }
 0x621   : > { %v3415_v22 = vpop.permute.xlu1 %3414  ;;  %v11368_v23 = vadd.f32 %v3413_v47, %v3176_v41  ;;  %v13409_v47 = vld [vmem:[#allocation20_spill] sm:$0xff] }
 0x622   : > { %v11370_v42 = vadd.f32 %v3415_v22, %v3177_v28  ;;  %v3182_v28 = vmul.f32 %v13408_v32, %v11126_v63  ;;  %v3183_v22 = vmul.f32 %v13409_v47, %v11129_v19  ;;  %v13414_v47 = vld [vmem:[#allocation23_spill] sm:$0xff] }
 0x623   : > { %3764 = vrot.lane.b32.xlu0 %v11368_v23, %s9032_s13  ;;  %8677 = vtanh.f32 %v11368_v23 }
 0x624   : > { %3766 = vrot.lane.b32.xlu1 %v11370_v42, %s9032_s13  ;;  %v3417_v17 = vpop.permute.xlu0 %3416  ;;  %8679 = vtanh.f32 %v11370_v42 }
 0x625   : > { %v3419_v7 = vpop.permute.xlu1 %3418  ;;  %v11380_v35 = vadd.f32 %v3417_v17, %v3178_v39  ;;  %v13410_v17 = vld [vmem:[#allocation84_spill] sm:$0xff] }
 0x626   : > { %v11382_v27 = vadd.f32 %v3419_v7, %v3179_v3  ;;  %v13411_v7 = vld [vmem:[#allocation21_spill] sm:$0xff] }
 0x627   : > { %3768 = vrot.lane.b32.xlu0 %v11380_v35, %s9032_s13  ;;  %v3184_v44 = vmul.f32 %v13411_v7, %v13410_v17  ;;  %8681 = vtanh.f32 %v11380_v35 }
 0x628   : > { %3770 = vrot.lane.b32.xlu1 %v11382_v27, %s9032_s13  ;;  %v3421_v20 = vpop.permute.xlu0 %3420  ;;  %8683 = vtanh.f32 %v11382_v27 }
 0x629   : > { %v3423_v1 = vpop.permute.xlu1 %3422  ;;  %v11392_v15 = vadd.f32 %v3421_v20, %v3180_v24  ;;  %v13412_v24 = vld [vmem:[#allocation83_spill] sm:$0xff] }
 0x62a   : > { %v11394_v41 = vadd.f32 %v3423_v1, %v3181_v21  ;;  %v3185_v21 = vmul.f32 %v13413_v33, %v13412_v24 }
 0x62b   : > { %3772 = vrot.lane.b32.xlu0 %v11392_v15, %s9032_s13 }
 0x62c   : > { %3774 = vrot.lane.b32.xlu1 %v11394_v41, %s9032_s13  ;;  %v3425_v57 = vpop.permute.xlu0 %3424 }
 0x62d   : > { %v3427_v39 = vpop.permute.xlu1 %3426  ;;  %v11404_v51 = vadd.f32 %v3425_v57, %v3182_v28  ;;  %v13415_v57 = vld [vmem:[#allocation24_spill] sm:$0xff] }
 0x62e   : > { %v11406_v3 = vadd.f32 %v3427_v39, %v3183_v22  ;;  %v3186_v22 = vmul.f32 %v13414_v47, %v11164_v14  ;;  %v3187_v39 = vmul.f32 %v13415_v57, %v11167_v53  ;;  %v13418_v47 = vld [vmem:[#allocation91_spill] sm:$0xff] }
 0x62f   : > { %3776 = vrot.lane.b32.xlu0 %v11404_v51, %s9032_s13  ;;  %v3189_v14 = vmul.f32 %v13419_v6, %v13418_v47 }
 0x630   : > { %3778 = vrot.lane.b32.xlu1 %v11406_v3, %s9032_s13  ;;  %v3429_v20 = vpop.permute.xlu0 %3428 }
 0x631   : > { %v3431_v1 = vpop.permute.xlu1 %3430  ;;  %v11416_v32 = vadd.f32 %v3429_v20, %v3184_v44  ;;  %v13417_v20 = vld [vmem:[#allocation25_spill] sm:$0xff] }
 0x632   : > { %v11418_v28 = vadd.f32 %v3431_v1, %v3185_v21  ;;  %v13416_v21 = vld [vmem:[#allocation92_spill] sm:$0xff] }
 0x633   : > { %3780 = vrot.lane.b32.xlu0 %v11416_v32, %s9032_s13  ;;  %v3188_v1 = vmul.f32 %v13417_v20, %v13416_v21 }
 0x634   : > { %3782 = vrot.lane.b32.xlu1 %v11418_v28, %s9032_s13  ;;  %v3433_v7 = vpop.permute.xlu0 %3432 }
 0x635   : > { %v3435_v33 = vpop.permute.xlu1 %3434  ;;  %v11428_v9 = vadd.f32 %v3433_v7, %v3186_v22 }
 0x636   : > { %v11430_v44 = vadd.f32 %v3435_v33, %v3187_v39  ;;  %v13420_v39 = vld [vmem:[#allocation27_spill] sm:$0xff]  ;;  %v13421_v33 = vld [vmem:[#allocation28_spill] sm:$0xff] }
 0x637   : > { %3784 = vrot.lane.b32.xlu0 %v11428_v9, %s9032_s13  ;;  %v3190_v7 = vmul.f32 %v13420_v39, %v11200_v34  ;;  %v3191_v20 = vmul.f32 %v13421_v33, %v11203_v18 }
 0x638   : > { %3786 = vrot.lane.b32.xlu1 %v11430_v44, %s9032_s13  ;;  %v3437_v57 = vpop.permute.xlu0 %3436 }
 0x639   : > { %v3439_v53 = vpop.permute.xlu1 %3438  ;;  %v11440_v24 = vadd.f32 %v3437_v57, %v3188_v1  ;;  %v13423_v57 = vld [vmem:[#allocation30_spill] sm:$0xff] }
 0x63a   : > { %v11442_v22 = vadd.f32 %v3439_v53, %v3189_v14  ;;  %v13422_v14 = vld [vmem:[#allocation29_spill] sm:$0xff]  ;;  %v3193_v39 = vmul.f32 %v13423_v57, %v11216_v11  ;;  %v13426_v11 = vld [vmem:[#allocation32_spill] sm:$0xff] }
 0x63b   : > { %3788 = vrot.lane.b32.xlu0 %v11440_v24, %s9032_s13  ;;  %v3192_v53 = vmul.f32 %v13422_v14, %v11218_v13  ;;  %v13425_v57 = vld [vmem:[#allocation101_spill] sm:$0xff] }
 0x63c   : > { %3790 = vrot.lane.b32.xlu1 %v11442_v22, %s9032_s13  ;;  %v3441_v6 = vpop.permute.xlu0 %3440  ;;  %v3195_v59 = vmul.f32 %v13426_v11, %v13425_v57  ;;  %v8654_v11 = vpop.eup %8653  ;;  %8685 = vtanh.f32 %v11392_v15 }
 0x63d   : > { %v3443_v47 = vpop.permute.xlu1 %3442  ;;  %v11452_v21 = vadd.f32 %v3441_v6, %v3190_v7  ;;  %v13424_v6 = vld [vmem:[#allocation31_spill] sm:$0xff]  ;;  %v8656_v5 = vpop.eup %8655  ;;  %8687 = vtanh.f32 %v11394_v41 }
 0x63e   : > { %v11454_v1 = vadd.f32 %v3443_v47, %v3191_v20  ;;  %v3194_v14 = vmul.f32 %v13424_v6, %v11236_v38  ;;  %v8658_v2 = vpop.eup %8657  ;;  %8689 = vtanh.f32 %v11404_v51 }
 0x63f   : > { %3792 = vrot.lane.b32.xlu0 %v11452_v21, %s9032_s13  ;;  %v8660_v56 = vpop.eup %8659  ;;  %8691 = vtanh.f32 %v11406_v3 }
 0x640   : > { %3794 = vrot.lane.b32.xlu1 %v11454_v1, %s9032_s13  ;;  %v3445_v33 = vpop.permute.xlu0 %3444  ;;  %v8662_v43 = vpop.eup %8661  ;;  %8693 = vtanh.f32 %v11416_v32 }
 0x641   : > { %v3447_v7 = vpop.permute.xlu1 %3446  ;;  %v11466_v47 = vadd.f32 %v3445_v33, %v3192_v53 }
 0x642   : > { %v11468_v20 = vadd.f32 %v3447_v7, %v3193_v39  ;;  %v8664_v7 = vpop.eup %8663  ;;  %8695 = vtanh.f32 %v11418_v28 }
 0x643   : > { %3796 = vrot.lane.b32.xlu0 %v11466_v47, %s9032_s13  ;;  %v8666_v25 = vpop.eup %8665  ;;  %8697 = vtanh.f32 %v11428_v9 }
 0x644   : > { %3798 = vrot.lane.b32.xlu1 %v11468_v20, %s9032_s13  ;;  %v3449_v48 = vpop.permute.xlu0 %3448  ;;  %v8668_v6 = vpop.eup %8667  ;;  %8699 = vtanh.f32 %v11430_v44 }
 0x645   : > { %v3451_v53 = vpop.permute.xlu1 %3450  ;;  %v11480_v39 = vadd.f32 %v3449_v48, %v3194_v14  ;;  %v8670_v58 = vpop.eup %8669  ;;  %8701 = vtanh.f32 %v11440_v24 }
 0x646   : > { %v11482_v33 = vadd.f32 %v3451_v53, %v3195_v59  ;;  %v8672_v50 = vpop.eup %8671  ;;  %8703 = vtanh.f32 %v11442_v22 }
 0x647   : > { %3800 = vrot.lane.b32.xlu0 %v11480_v39, %s9032_s13  ;;  %v8674_v37 = vpop.eup %8673  ;;  %8705 = vtanh.f32 %v11452_v21 }
 0x648   : > { %3802 = vrot.lane.b32.xlu1 %v11482_v33, %s9032_s13  ;;  %v8676_v26 = vpop.eup %8675  ;;  %8707 = vtanh.f32 %v11454_v1 }
 0x649   : > { %v8678_v23 = vpop.eup %8677  ;;  %8709 = vtanh.f32 %v11466_v47 }
 0x64a   : > { %v8680_v42 = vpop.eup %8679  ;;  %8711 = vtanh.f32 %v11468_v20 }
 0x64b   : > { %3580 = vrot.lane.b32.xlu0 %v8654_v11, %s9031_s21  ;;  %v8682_v35 = vpop.eup %8681  ;;  %8713 = vtanh.f32 %v11480_v39 }
 0x64c   : > { %3582 = vrot.lane.b32.xlu1 %v8656_v5, %s9031_s21  ;;  %v8684_v27 = vpop.eup %8683  ;;  %8715 = vtanh.f32 %v11482_v33 }
 0x64d   : > { %v8686_v15 = vpop.eup %8685 }
 0x64e   : > { %v8688_v41 = vpop.eup %8687 }
 0x64f   : > { %3584 = vrot.lane.b32.xlu0 %v8658_v2, %s9031_s21  ;;  %v8690_v51 = vpop.eup %8689 }
 0x650   : > { %3586 = vrot.lane.b32.xlu1 %v8660_v56, %s9031_s21  ;;  %v8692_v3 = vpop.eup %8691 }
 0x651   : > { %v8694_v32 = vpop.eup %8693 }
 0x652   : > { %v8696_v28 = vpop.eup %8695 }
 0x653   : > { %3588 = vrot.lane.b32.xlu0 %v8662_v43, %s9031_s21  ;;  %v8698_v9 = vpop.eup %8697 }
 0x654   : > { %3590 = vrot.lane.b32.xlu1 %v8664_v7, %s9031_s21  ;;  %v8700_v44 = vpop.eup %8699 }
 0x655   : > { %v8702_v24 = vpop.eup %8701 }
 0x656   : > { %v8704_v22 = vpop.eup %8703 }
 0x657   : > { %3592 = vrot.lane.b32.xlu0 %v8666_v25, %s9031_s21  ;;  %v8706_v1 = vpop.eup %8705 }
 0x658   : > { %3594 = vrot.lane.b32.xlu1 %v8668_v6, %s9031_s21  ;;  %v8708_v47 = vpop.eup %8707 }
 0x659   : > { %v8710_v59 = vpop.eup %8709 }
 0x65a   : > { %v8712_v53 = vpop.eup %8711 }
 0x65b   : > { %3596 = vrot.lane.b32.xlu0 %v8670_v58, %s9031_s21  ;;  %v8714_v33 = vpop.eup %8713 }
 0x65c   : > { %3598 = vrot.lane.b32.xlu1 %v8672_v50, %s9031_s21  ;;  %v8716_v5 = vpop.eup %8715 }
 0x65f   : > { %3600 = vrot.lane.b32.xlu0 %v8674_v37, %s9031_s21 }
 0x660   : > { %3602 = vrot.lane.b32.xlu1 %v8676_v26, %s9031_s21 }
 0x663   : > { %3604 = vrot.lane.b32.xlu0 %v8678_v23, %s9031_s21 }
 0x664   : > { %3606 = vrot.lane.b32.xlu1 %v8680_v42, %s9031_s21 }
 0x667   : > { %3608 = vrot.lane.b32.xlu0 %v8682_v35, %s9031_s21 }
 0x668   : > { %3610 = vrot.lane.b32.xlu1 %v8684_v27, %s9031_s21 }
 0x66b   : > { %3612 = vrot.lane.b32.xlu0 %v8686_v15, %s9031_s21 }
 0x66c   : > { %3614 = vrot.lane.b32.xlu1 %v8688_v41, %s9031_s21 }
 0x66f   : > { %3616 = vrot.lane.b32.xlu0 %v8690_v51, %s9031_s21 }
 0x670   : > { %3618 = vrot.lane.b32.xlu1 %v8692_v3, %s9031_s21 }
 0x673   : > { %3620 = vrot.lane.b32.xlu0 %v8694_v32, %s9031_s21 }
 0x674   : > { %3622 = vrot.lane.b32.xlu1 %v8696_v28, %s9031_s21 }
 0x677   : > { %3624 = vrot.lane.b32.xlu0 %v8698_v9, %s9031_s21  ;;  %v3741_v21 = vpop.permute.xlu0 %3740 }
 0x678   : > { %3626 = vrot.lane.b32.xlu1 %v8700_v44, %s9031_s21  ;;  %v3743_v14 = vpop.permute.xlu1 %3742  ;;  %3837 = vst.msk [vmem:[#allocation6] sm:$0xff] %vm3836_vm10, %v3741_v21 }
 0x679   : > { %3838 = vst.msk [vmem:[#allocation6 + $0x8] sm:$0xff] %vm3836_vm10, %v3743_v14 }
 0x67b   : > { %3628 = vrot.lane.b32.xlu0 %v8702_v24, %s9031_s21 }
 0x67c   : > { %3630 = vrot.lane.b32.xlu1 %v8704_v22, %s9031_s21  ;;  %v3745_v20 = vpop.permute.xlu0 %3744 }
 0x67d   : > { %v3747_v48 = vpop.permute.xlu1 %3746  ;;  %3839 = vst.msk [vmem:[#allocation6 + $0x10] sm:$0xff] %vm3836_vm10, %v3745_v20 }
 0x67e   : > { %3840 = vst.msk [vmem:[#allocation6 + $0x18] sm:$0xff] %vm3836_vm10, %v3747_v48 }
 0x67f   : > { %3632 = vrot.lane.b32.xlu0 %v8706_v1, %s9031_s21 }
 0x680   : > { %3634 = vrot.lane.b32.xlu1 %v8708_v47, %s9031_s21  ;;  %v3749_v39 = vpop.permute.xlu0 %3748 }
 0x681   : > { %v3751_v11 = vpop.permute.xlu1 %3750  ;;  %3841 = vst.msk [vmem:[#allocation6 + $0x20] sm:$0xff] %vm3836_vm10, %v3749_v39 }
 0x682   : > { %3842 = vst.msk [vmem:[#allocation6 + $0x28] sm:$0xff] %vm3836_vm10, %v3751_v11 }
 0x683   : > { %3636 = vrot.lane.b32.xlu0 %v8710_v59, %s9031_s21 }
 0x684   : > { %3638 = vrot.lane.b32.xlu1 %v8712_v53, %s9031_s21  ;;  %v3753_v2 = vpop.permute.xlu0 %3752 }
 0x685   : > { %v3755_v56 = vpop.permute.xlu1 %3754  ;;  %3843 = vst.msk [vmem:[#allocation6 + $0x30] sm:$0xff] %vm3836_vm10, %v3753_v2 }
 0x686   : > { %3844 = vst.msk [vmem:[#allocation6 + $0x38] sm:$0xff] %vm3836_vm10, %v3755_v56 }
 0x687   : > { %3640 = vrot.lane.b32.xlu0 %v8714_v33, %s9031_s21 }
 0x688   : > { %3642 = vrot.lane.b32.xlu1 %v8716_v5, %s9031_s21 }
 0x68c   : > { %v3759_v7 = vpop.permute.xlu1 %3758 }
 0x68d   : > { %v3757_v43 = vpop.permute.xlu0 %3756  ;;  %3846 = vst.msk [vmem:[#allocation6 + $0x48] sm:$0xff] %vm3836_vm10, %v3759_v7 }
 0x68e   : > { %3845 = vst.msk [vmem:[#allocation6 + $0x40] sm:$0xff] %vm3836_vm10, %v3757_v43 }
 0x691   : > { %v3761_v25 = vpop.permute.xlu0 %3760  ;;  %v3763_v6 = vpop.permute.xlu1 %3762 }
 0x692   : > { %3847 = vst.msk [vmem:[#allocation6 + $0x50] sm:$0xff] %vm3836_vm10, %v3761_v25  ;;  %3848 = vst.msk [vmem:[#allocation6 + $0x58] sm:$0xff] %vm3836_vm10, %v3763_v6 }
 0x695   : > { %v3765_v58 = vpop.permute.xlu0 %3764 }
 0x696   : > { %v3767_v50 = vpop.permute.xlu1 %3766  ;;  %3849 = vst.msk [vmem:[#allocation6 + $0x60] sm:$0xff] %vm3836_vm10, %v3765_v58 }
 0x697   : > { %3850 = vst.msk [vmem:[#allocation6 + $0x68] sm:$0xff] %vm3836_vm10, %v3767_v50 }
 0x699   : > { %v3769_v37 = vpop.permute.xlu0 %3768 }
 0x69a   : > { %v3771_v26 = vpop.permute.xlu1 %3770  ;;  %3851 = vst.msk [vmem:[#allocation6 + $0x70] sm:$0xff] %vm3836_vm10, %v3769_v37 }
 0x69b   : > { %3852 = vst.msk [vmem:[#allocation6 + $0x78] sm:$0xff] %vm3836_vm10, %v3771_v26 }
 0x69d   : > { %v3773_v23 = vpop.permute.xlu0 %3772 }
 0x69e   : > { %v3775_v42 = vpop.permute.xlu1 %3774  ;;  %3853 = vst.msk [vmem:[#allocation6 + $0x80] sm:$0xff] %vm3836_vm10, %v3773_v23 }
 0x69f   : > { %3854 = vst.msk [vmem:[#allocation6 + $0x88] sm:$0xff] %vm3836_vm10, %v3775_v42 }
 0x6a1   : > { %v3777_v35 = vpop.permute.xlu0 %3776 }
 0x6a2   : > { %v3779_v27 = vpop.permute.xlu1 %3778  ;;  %3855 = vst.msk [vmem:[#allocation6 + $0x90] sm:$0xff] %vm3836_vm10, %v3777_v35 }
 0x6a3   : > { %3856 = vst.msk [vmem:[#allocation6 + $0x98] sm:$0xff] %vm3836_vm10, %v3779_v27 }
 0x6a5   : > { %v3781_v15 = vpop.permute.xlu0 %3780 }
 0x6a6   : > { %v3783_v41 = vpop.permute.xlu1 %3782  ;;  %3857 = vst.msk [vmem:[#allocation6 + $0xa0] sm:$0xff] %vm3836_vm10, %v3781_v15 }
 0x6a7   : > { %3858 = vst.msk [vmem:[#allocation6 + $0xa8] sm:$0xff] %vm3836_vm10, %v3783_v41 }
 0x6a9   : > { %v3785_v51 = vpop.permute.xlu0 %3784 }
 0x6aa   : > { %v3787_v3 = vpop.permute.xlu1 %3786  ;;  %3859 = vst.msk [vmem:[#allocation6 + $0xb0] sm:$0xff] %vm3836_vm10, %v3785_v51 }
 0x6ab   : > { %3860 = vst.msk [vmem:[#allocation6 + $0xb8] sm:$0xff] %vm3836_vm10, %v3787_v3 }
 0x6ad   : > { %v3789_v32 = vpop.permute.xlu0 %3788 }
 0x6ae   : > { %v3791_v28 = vpop.permute.xlu1 %3790  ;;  %3861 = vst.msk [vmem:[#allocation6 + $0xc0] sm:$0xff] %vm3836_vm10, %v3789_v32 }
 0x6af   : > { %3862 = vst.msk [vmem:[#allocation6 + $0xc8] sm:$0xff] %vm3836_vm10, %v3791_v28 }
 0x6b1   : > { %v3793_v9 = vpop.permute.xlu0 %3792 }
 0x6b2   : > { %v3795_v44 = vpop.permute.xlu1 %3794  ;;  %3863 = vst.msk [vmem:[#allocation6 + $0xd0] sm:$0xff] %vm3836_vm10, %v3793_v9 }
 0x6b3   : > { %3864 = vst.msk [vmem:[#allocation6 + $0xd8] sm:$0xff] %vm3836_vm10, %v3795_v44  ;;  %v13427_v44 = vld [vmem:[#allocation83_spill] sm:$0xff] }
 0x6b5   : > { %v3797_v24 = vpop.permute.xlu0 %3796 }
 0x6b6   : > { %v3799_v22 = vpop.permute.xlu1 %3798  ;;  %3865 = vst.msk [vmem:[#allocation6 + $0xe0] sm:$0xff] %vm3836_vm10, %v3797_v24 }
 0x6b7   : > { %3866 = vst.msk [vmem:[#allocation6 + $0xe8] sm:$0xff] %vm3836_vm10, %v3799_v22  ;;  %v13428_v22 = vld [vmem:[#allocation88_spill] sm:$0xff] }
 0x6b9   : > { %v3801_v21 = vpop.permute.xlu0 %3800 }
 0x6ba   : > { %v3803_v1 = vpop.permute.xlu1 %3802  ;;  %3867 = vst.msk [vmem:[#allocation6 + $0xf0] sm:$0xff] %vm3836_vm10, %v3801_v21 }
 0x6bb   : > { %3868 = vst.msk [vmem:[#allocation6 + $0xf8] sm:$0xff] %vm3836_vm10, %v3803_v1 }
 0x6bc   : > { %v5398_v14 = vpop.f32.mrb[32].mxu0 }
 0x6bd   : > { %v8131_v47 = vpop.f32.mrb[33].mxu0  ;;  %8170 = vmatmul.mubr.msk.f32.vlgmr.msra.gmra.mrb[36].mxu0 %vm2584_vm9, %v5398_v14  ;;  %v3581_v20 = vpop.permute.xlu0 %3580 }
 0x6be   : > { %8173 = vmatpush3.msk.msra.mxu0 %vm2588_vm8, %v11494_v40  ;;  %8174 = vmatprep.mubr.msk.f32.mxu0 %vm9029_vm7, %v13398_v45  ;;  %v3583_v59 = vpop.permute.xlu1 %3582  ;;  %v11594_v48 = vmul.f32 %v3581_v20, %v10964_v0 }
 0x6bf   : > { %v11597_v53 = vmul.f32 %v3583_v59, %v10966_v49  ;;  %v13430_v59 = vld [vmem:[#allocation92_spill] sm:$0xff] }
 0x6c0   : > { %3901 = vrot.lane.b32.xlu0 %v11594_v48, %s9025_s30 }
 0x6c1   : > { %3903 = vrot.lane.b32.xlu1 %v11597_v53, %s9025_s30  ;;  %v3585_v39 = vpop.permute.xlu0 %3584 }
 0x6c2   : > { %v3587_v33 = vpop.permute.xlu1 %3586  ;;  %v11604_v40 = vmul.f32 %v3585_v39, %v10972_v52 }
 0x6c3   : > { %v11607_v45 = vmul.f32 %v3587_v33, %v10976_v60  ;;  %v13431_v33 = vld [vmem:[#allocation91_spill] sm:$0xff] }
 0x6c4   : > { %3905 = vrot.lane.b32.xlu0 %v11604_v40, %s9025_s30 }
 0x6c5   : > { %3907 = vrot.lane.b32.xlu1 %v11607_v45, %s9025_s30  ;;  %v3589_v49 = vpop.permute.xlu0 %3588 }
 0x6c6   : > { %v3591_v0 = vpop.permute.xlu1 %3590  ;;  %v11614_v11 = vmul.f32 %v3589_v49, %v10985_v29 }
 0x6c7   : > { %v11617_v5 = vmul.f32 %v3591_v0, %v10990_v54 }
 0x6c8   : > { %3909 = vrot.lane.b32.xlu0 %v11614_v11, %s9025_s30 }
 0x6c9   : > { %3911 = vrot.lane.b32.xlu1 %v11617_v5, %s9025_s30  ;;  %v3593_v52 = vpop.permute.xlu0 %3592 }
 0x6ca   : > { %v3595_v60 = vpop.permute.xlu1 %3594  ;;  %v11624_v2 = vmul.f32 %v3593_v52, %v11007_v61 }
 0x6cb   : > { %v11627_v56 = vmul.f32 %v3595_v60, %v11010_v8 }
 0x6cc   : > { %3913 = vrot.lane.b32.xlu0 %v11624_v2, %s9025_s30 }
 0x6cd   : > { %3915 = vrot.lane.b32.xlu1 %v11627_v56, %s9025_s30  ;;  %v3597_v29 = vpop.permute.xlu0 %3596 }
 0x6ce   : > { %v3599_v54 = vpop.permute.xlu1 %3598  ;;  %v11634_v43 = vmul.f32 %v3597_v29, %v11025_v4 }
 0x6cf   : > { %v11637_v7 = vmul.f32 %v3599_v54, %v11030_v55 }
 0x6d0   : > { %3917 = vrot.lane.b32.xlu0 %v11634_v43, %s9025_s30 }
 0x6d1   : > { %3919 = vrot.lane.b32.xlu1 %v11637_v7, %s9025_s30  ;;  %v3601_v61 = vpop.permute.xlu0 %3600 }
 0x6d2   : > { %v3603_v8 = vpop.permute.xlu1 %3602  ;;  %v11644_v25 = vmul.f32 %v3601_v61, %v11047_v62  ;;  %v5472_v62 = vmul.f32 %v5398_v14, %v5398_v14  ;;  %v13429_v14 = vld [vmem:[#allocation89_spill] sm:$0xff] }
 0x6d3   : > { %v11647_v6 = vmul.f32 %v3603_v8, %v13400_v12 }
 0x6d4   : > { %3921 = vrot.lane.b32.xlu0 %v11644_v25, %s9025_s30 }
 0x6d5   : > { %3923 = vrot.lane.b32.xlu1 %v11647_v6, %s9025_s30  ;;  %v3605_v4 = vpop.permute.xlu0 %3604 }
 0x6d6   : > { %v3607_v55 = vpop.permute.xlu1 %3606  ;;  %v11654_v58 = vmul.f32 %v3605_v4, %v11065_v46  ;;  %v13432_v4 = vld [vmem:[#allocation97_spill] sm:$0xff] }
 0x6d7   : > { %v11657_v50 = vmul.f32 %v3607_v55, %v11070_v31 }
 0x6d8   : > { %3925 = vrot.lane.b32.xlu0 %v11654_v58, %s9025_s30 }
 0x6d9   : > { %3927 = vrot.lane.b32.xlu1 %v11657_v50, %s9025_s30  ;;  %v3609_v12 = vpop.permute.xlu0 %3608 }
 0x6da   : > { %v3611_v37 = vpop.permute.xlu1 %3610  ;;  %v11664_v26 = vmul.f32 %v3609_v12, %v11087_v16 }
 0x6db   : > { %v11667_v42 = vmul.f32 %v3611_v37, %v11090_v30 }
 0x6dc   : > { %v5468_v23 = vpop.f32.mrb[34].mxu0  ;;  %3929 = vrot.lane.b32.xlu0 %v11664_v26, %s9025_s30 }
 0x6dd   : > { %v5473_v46 = vsub.f32 %v5468_v23, %v5472_v62  ;;  %v8166_v35 = vpop.f32.mrb[35].mxu0  ;;  %3931 = vrot.lane.b32.xlu1 %v11667_v42, %s9025_s30  ;;  %v3613_v31 = vpop.permute.xlu0 %3612 }
 0x6de   : > { %v3615_v15 = vpop.permute.xlu1 %3614  ;;  %v11674_v41 = vmul.f32 %v3613_v31, %v11105_v36 }
 0x6df   : > { %v5474_v27 = vmax.f32 %v5473_v46, 0.0  ;;  %v11677_v16 = vmul.f32 %v3615_v15, %v11110_v10 }
 0x6e0   : > { %3933 = vrot.lane.b32.xlu0 %v11674_v41, %s9025_s30 }
 0x6e1   : > { %v5475_v51 = vadd.f32 1e-05, %v5474_v27  ;;  %3935 = vrot.lane.b32.xlu1 %v11677_v16, %s9025_s30  ;;  %v3617_v30 = vpop.permute.xlu0 %3616 }
 0x6e2   : > { %v3619_v3 = vpop.permute.xlu1 %3618  ;;  %v11684_v32 = vmul.f32 %v3617_v30, %v11126_v63 }
 0x6e3   : > { %8717 = vrsqrt.f32 %v5475_v51  ;;  %v11687_v28 = vmul.f32 %v3619_v3, %v11129_v19 }
 0x6e4   : > { %3937 = vrot.lane.b32.xlu0 %v11684_v32, %s9025_s30 }
 0x6e5   : > { %3939 = vrot.lane.b32.xlu1 %v11687_v28, %s9025_s30  ;;  %v3621_v36 = vpop.permute.xlu0 %3620 }
 0x6e6   : > { %v3623_v10 = vpop.permute.xlu1 %3622  ;;  %v11694_v9 = vmul.f32 %v3621_v36, %v13410_v17 }
 0x6e7   : > { %v11697_v24 = vmul.f32 %v3623_v10, %v13427_v44 }
 0x6e8   : > { %3941 = vrot.lane.b32.xlu0 %v11694_v9, %s9025_s30 }
 0x6e9   : > { %3943 = vrot.lane.b32.xlu1 %v11697_v24, %s9025_s30  ;;  %v3625_v63 = vpop.permute.xlu0 %3624 }
 0x6ea   : > { %v3627_v19 = vpop.permute.xlu1 %3626  ;;  %v11704_v21 = vmul.f32 %v3625_v63, %v13428_v22 }
 0x6eb   : > { %v11707_v47 = vmul.f32 %v3627_v19, %v13429_v14 }
 0x6ec   : > { %3945 = vrot.lane.b32.xlu0 %v11704_v21, %s9025_s30 }
 0x6ed   : > { %v8718_v1 = vpop.eup %8717  ;;  %3947 = vrot.lane.b32.xlu1 %v11707_v47, %s9025_s30  ;;  %v3629_v17 = vpop.permute.xlu0 %3628 }
 0x6ee   : > { %8175 = vmatmul.mubr.msk.f32.vlgmr.msra.gmra.mrb[38].mxu0 %vm2584_vm9, %v8718_v1  ;;  %v3631_v20 = vpop.permute.xlu1 %3630  ;;  %v11715_v39 = vmul.f32 %v3629_v17, %v13430_v59 }
 0x6ef   : > { %v11718_v49 = vmul.f32 %v3631_v20, %v13431_v33 }
 0x6f0   : > { %3949 = vrot.lane.b32.xlu0 %v11715_v39, %s9025_s30 }
 0x6f1   : > { %3951 = vrot.lane.b32.xlu1 %v11718_v49, %s9025_s30  ;;  %v3633_v0 = vpop.permute.xlu0 %3632 }
 0x6f2   : > { %v3635_v52 = vpop.permute.xlu1 %3634  ;;  %v11725_v60 = vmul.f32 %v3633_v0, %v11200_v34 }
 0x6f3   : > { %v11728_v29 = vmul.f32 %v3635_v52, %v11203_v18 }
 0x6f4   : > { %3953 = vrot.lane.b32.xlu0 %v11725_v60, %s9025_s30 }
 0x6f5   : > { %3955 = vrot.lane.b32.xlu1 %v11728_v29, %s9025_s30  ;;  %v3637_v54 = vpop.permute.xlu0 %3636 }
 0x6f6   : > { %v3639_v61 = vpop.permute.xlu1 %3638  ;;  %v11735_v8 = vmul.f32 %v3637_v54, %v11218_v13 }
 0x6f7   : > { %v11738_v55 = vmul.f32 %v3639_v61, %v13432_v4 }
 0x6f8   : > { %3957 = vrot.lane.b32.xlu0 %v11735_v8, %s9025_s30 }
 0x6f9   : > { %3959 = vrot.lane.b32.xlu1 %v11738_v55, %s9025_s30  ;;  %v3641_v34 = vpop.permute.xlu0 %3640 }
 0x6fa   : > { %v3643_v18 = vpop.permute.xlu1 %3642  ;;  %v11745_v62 = vmul.f32 %v3641_v34, %v11236_v38 }
 0x6fb   : > { %v11748_v12 = vmul.f32 %v3643_v18, %v13425_v57 }
 0x6fc   : > { %3961 = vrot.lane.b32.xlu0 %v11745_v62, %s9025_s30 }
 0x6fd   : > { %3963 = vrot.lane.b32.xlu1 %v11748_v12, %s9025_s30 }
 0x700   : > { %4062 = vrot.lane.b32.xlu0 %v11594_v48, %s13433_s17 }
 0x701   : > { %4064 = vrot.lane.b32.xlu1 %v11597_v53, %s13433_s17 }
 0x704   : > { %4066 = vrot.lane.b32.xlu0 %v11604_v40, %s13433_s17 }
 0x705   : > { %4068 = vrot.lane.b32.xlu1 %v11607_v45, %s13433_s17 }
 0x708   : > { %4070 = vrot.lane.b32.xlu0 %v11614_v11, %s13433_s17 }
 0x709   : > { %4072 = vrot.lane.b32.xlu1 %v11617_v5, %s13433_s17 }
 0x70c   : > { %4074 = vrot.lane.b32.xlu0 %v11624_v2, %s13433_s17 }
 0x70d   : > { %4076 = vrot.lane.b32.xlu1 %v11627_v56, %s13433_s17 }
 0x710   : > { %4078 = vrot.lane.b32.xlu0 %v11634_v43, %s13433_s17 }
 0x711   : > { %4080 = vrot.lane.b32.xlu1 %v11637_v7, %s13433_s17 }
 0x714   : > { %4082 = vrot.lane.b32.xlu0 %v11644_v25, %s13433_s17 }
 0x715   : > { %4084 = vrot.lane.b32.xlu1 %v11647_v6, %s13433_s17 }
 0x718   : > { %4086 = vrot.lane.b32.xlu0 %v11654_v58, %s13433_s17 }
 0x719   : > { %4088 = vrot.lane.b32.xlu1 %v11657_v50, %s13433_s17 }
 0x71c   : > { %4090 = vrot.lane.b32.xlu0 %v11664_v26, %s13433_s17 }
 0x71d   : > { %4092 = vrot.lane.b32.xlu1 %v11667_v42, %s13433_s17 }
 0x720   : > { %4094 = vrot.lane.b32.xlu0 %v11674_v41, %s13433_s17 }
 0x721   : > { %4096 = vrot.lane.b32.xlu1 %v11677_v16, %s13433_s17 }
 0x724   : > { %4098 = vrot.lane.b32.xlu0 %v11684_v32, %s13433_s17 }
 0x725   : > { %4100 = vrot.lane.b32.xlu1 %v11687_v28, %s13433_s17 }
 0x728   : > { %4102 = vrot.lane.b32.xlu0 %v11694_v9, %s13433_s17 }
 0x729   : > { %4104 = vrot.lane.b32.xlu1 %v11697_v24, %s13433_s17 }
 0x72c   : > { %4106 = vrot.lane.b32.xlu0 %v11704_v21, %s13433_s17 }
 0x72d   : > { %4108 = vrot.lane.b32.xlu1 %v11707_v47, %s13433_s17 }
 0x730   : > { %4110 = vrot.lane.b32.xlu0 %v11715_v39, %s13433_s17 }
 0x731   : > { %4112 = vrot.lane.b32.xlu1 %v11718_v49, %s13433_s17 }
 0x732   : > { %v3902_v13 = vpop.permute.xlu0 %3901 }
 0x733   : > { %v3904_v38 = vpop.permute.xlu1 %3903  ;;  %3997 = vst.msk [vmem:[%s9148_s23] sm:$0xff] %vm3836_vm10, %v3902_v13  ;;  %4029 = vst.msk [vmem:[#allocation2 + $0x11] sm:$0xff] %vm3836_vm10, %v3902_v13 }
 0x734   : > { %3998 = vst.msk [vmem:[%s9148_s23 + $0x8] sm:$0xff] %vm3836_vm10, %v3904_v38  ;;  %4114 = vrot.lane.b32.xlu0 %v11725_v60, %s13433_s17 }
 0x735   : > { %4031 = vst.msk [vmem:[#allocation2 + $0x19] sm:$0x7f] %vm4030_vm11, %v3904_v38  ;;  %4116 = vrot.lane.b32.xlu1 %v11728_v29, %s13433_s17 }
 0x736   : > { %v3906_v57 = vpop.permute.xlu0 %3905 }
 0x737   : > { %v3908_v37 = vpop.permute.xlu1 %3907  ;;  %3999 = vst.msk [vmem:[%s9148_s23 + $0x10] sm:$0xff] %vm3836_vm10, %v3906_v57  ;;  %4032 = vst.msk [vmem:[#allocation2 + $0x21] sm:$0xff] %vm3836_vm10, %v3906_v57 }
 0x738   : > { %4000 = vst.msk [vmem:[%s9148_s23 + $0x18] sm:$0xff] %vm3836_vm10, %v3908_v37  ;;  %4118 = vrot.lane.b32.xlu0 %v11735_v8, %s13433_s17 }
 0x739   : > { %4033 = vst.msk [vmem:[#allocation2 + $0x29] sm:$0x7f] %vm4030_vm11, %v3908_v37  ;;  %4120 = vrot.lane.b32.xlu1 %v11738_v55, %s13433_s17 }
 0x73a   : > { %v3910_v23 = vpop.permute.xlu0 %3909 }
 0x73b   : > { %v3912_v46 = vpop.permute.xlu1 %3911  ;;  %4001 = vst.msk [vmem:[%s9148_s23 + $0x20] sm:$0xff] %vm3836_vm10, %v3910_v23  ;;  %4034 = vst.msk [vmem:[#allocation2 + $0x31] sm:$0xff] %vm3836_vm10, %v3910_v23 }
 0x73c   : > { %4002 = vst.msk [vmem:[%s9148_s23 + $0x28] sm:$0xff] %vm3836_vm10, %v3912_v46  ;;  %4122 = vrot.lane.b32.xlu0 %v11745_v62, %s13433_s17 }
 0x73d   : > { %4035 = vst.msk [vmem:[#allocation2 + $0x39] sm:$0x7f] %vm4030_vm11, %v3912_v46  ;;  %4124 = vrot.lane.b32.xlu1 %v11748_v12, %s13433_s17 }
 0x73e   : > { %v3914_v35 = vpop.permute.xlu0 %3913 }
 0x73f   : > { %v3916_v31 = vpop.permute.xlu1 %3915  ;;  %4003 = vst.msk [vmem:[%s9148_s23 + $0x30] sm:$0xff] %vm3836_vm10, %v3914_v35  ;;  %4036 = vst.msk [vmem:[#allocation2 + $0x41] sm:$0xff] %vm3836_vm10, %v3914_v35 }
 0x740   : > { %4004 = vst.msk [vmem:[%s9148_s23 + $0x38] sm:$0xff] %vm3836_vm10, %v3916_v31  ;;  %4191 = vrot.lane.b32.xlu0 %v11594_v48, %s13300_s16 }
 0x741   : > { %4037 = vst.msk [vmem:[#allocation2 + $0x49] sm:$0x7f] %vm4030_vm11, %v3916_v31  ;;  %4193 = vrot.lane.b32.xlu1 %v11597_v53, %s13300_s16 }
 0x742   : > { %v3918_v27 = vpop.permute.xlu0 %3917 }
 0x743   : > { %v3920_v15 = vpop.permute.xlu1 %3919  ;;  %4005 = vst.msk [vmem:[%s9148_s23 + $0x40] sm:$0xff] %vm3836_vm10, %v3918_v27  ;;  %4038 = vst.msk [vmem:[#allocation2 + $0x51] sm:$0xff] %vm3836_vm10, %v3918_v27 }
 0x744   : > { %4006 = vst.msk [vmem:[%s9148_s23 + $0x48] sm:$0xff] %vm3836_vm10, %v3920_v15  ;;  %4195 = vrot.lane.b32.xlu0 %v11604_v40, %s13300_s16 }
 0x745   : > { %4039 = vst.msk [vmem:[#allocation2 + $0x59] sm:$0x7f] %vm4030_vm11, %v3920_v15  ;;  %4197 = vrot.lane.b32.xlu1 %v11607_v45, %s13300_s16 }
 0x746   : > { %v3922_v48 = vpop.permute.xlu0 %3921 }
 0x747   : > { %v3924_v53 = vpop.permute.xlu1 %3923  ;;  %4007 = vst.msk [vmem:[%s9148_s23 + $0x50] sm:$0xff] %vm3836_vm10, %v3922_v48  ;;  %4040 = vst.msk [vmem:[#allocation2 + $0x61] sm:$0xff] %vm3836_vm10, %v3922_v48 }
 0x748   : > { %4008 = vst.msk [vmem:[%s9148_s23 + $0x58] sm:$0xff] %vm3836_vm10, %v3924_v53  ;;  %4199 = vrot.lane.b32.xlu0 %v11614_v11, %s13300_s16 }
 0x749   : > { %4041 = vst.msk [vmem:[#allocation2 + $0x69] sm:$0x7f] %vm4030_vm11, %v3924_v53  ;;  %4201 = vrot.lane.b32.xlu1 %v11617_v5, %s13300_s16  ;;  %v8911_v53 = vld [vmem:[%s13228_s2] sm:$0x1] }
 0x74a   : > { %v3926_v40 = vpop.permute.xlu0 %3925 }
 0x74b   : > { %v3928_v45 = vpop.permute.xlu1 %3927  ;;  %4009 = vst.msk [vmem:[%s9148_s23 + $0x60] sm:$0xff] %vm3836_vm10, %v3926_v40  ;;  %4042 = vst.msk [vmem:[#allocation2 + $0x71] sm:$0xff] %vm3836_vm10, %v3926_v40 }
 0x74c   : > { %4010 = vst.msk [vmem:[%s9148_s23 + $0x68] sm:$0xff] %vm3836_vm10, %v3928_v45  ;;  %4203 = vrot.lane.b32.xlu0 %v11624_v2, %s13300_s16 }
 0x74d   : > { %4043 = vst.msk [vmem:[#allocation2 + $0x79] sm:$0x7f] %vm4030_vm11, %v3928_v45  ;;  %4205 = vrot.lane.b32.xlu1 %v11627_v56, %s13300_s16 }
 0x74e   : > { %v3930_v11 = vpop.permute.xlu0 %3929 }
 0x74f   : > { %v3932_v5 = vpop.permute.xlu1 %3931  ;;  %4011 = vst.msk [vmem:[%s9148_s23 + $0x70] sm:$0xff] %vm3836_vm10, %v3930_v11  ;;  %4044 = vst.msk [vmem:[#allocation2 + $0x81] sm:$0xff] %vm3836_vm10, %v3930_v11 }
 0x750   : > { %4012 = vst.msk [vmem:[%s9148_s23 + $0x78] sm:$0xff] %vm3836_vm10, %v3932_v5  ;;  %4207 = vrot.lane.b32.xlu0 %v11634_v43, %s13300_s16 }
 0x751   : > { %4045 = vst.msk [vmem:[#allocation2 + $0x89] sm:$0x7f] %vm4030_vm11, %v3932_v5  ;;  %4209 = vrot.lane.b32.xlu1 %v11637_v7, %s13300_s16 }
 0x752   : > { %v3934_v2 = vpop.permute.xlu0 %3933 }
 0x753   : > { %v3936_v56 = vpop.permute.xlu1 %3935  ;;  %4013 = vst.msk [vmem:[%s9148_s23 + $0x80] sm:$0xff] %vm3836_vm10, %v3934_v2  ;;  %4046 = vst.msk [vmem:[#allocation2 + $0x91] sm:$0xff] %vm3836_vm10, %v3934_v2  ;;  %v13434_v2 = vld [vmem:[#allocation12_spill] sm:$0xff] }
 0x754   : > { %4014 = vst.msk [vmem:[%s9148_s23 + $0x88] sm:$0xff] %vm3836_vm10, %v3936_v56  ;;  %4211 = vrot.lane.b32.xlu0 %v11644_v25, %s13300_s16 }
 0x755   : > { %4047 = vst.msk [vmem:[#allocation2 + $0x99] sm:$0x7f] %vm4030_vm11, %v3936_v56  ;;  %4213 = vrot.lane.b32.xlu1 %v11647_v6, %s13300_s16 }
 0x756   : > { %v3938_v43 = vpop.permute.xlu0 %3937 }
 0x757   : > { %v3940_v7 = vpop.permute.xlu1 %3939  ;;  %4015 = vst.msk [vmem:[%s9148_s23 + $0x90] sm:$0xff] %vm3836_vm10, %v3938_v43  ;;  %4048 = vst.msk [vmem:[#allocation2 + $0xa1] sm:$0xff] %vm3836_vm10, %v3938_v43 }
 0x758   : > { %4016 = vst.msk [vmem:[%s9148_s23 + $0x98] sm:$0xff] %vm3836_vm10, %v3940_v7  ;;  %4215 = vrot.lane.b32.xlu0 %v11654_v58, %s13300_s16 }
 0x759   : > { %4049 = vst.msk [vmem:[#allocation2 + $0xa9] sm:$0x7f] %vm4030_vm11, %v3940_v7  ;;  %4217 = vrot.lane.b32.xlu1 %v11657_v50, %s13300_s16  ;;  %v8912_v7 = vld [vmem:[%s13229_s3] sm:$0x1] }
 0x75a   : > { %v3942_v25 = vpop.permute.xlu0 %3941 }
 0x75b   : > { %v3944_v6 = vpop.permute.xlu1 %3943  ;;  %4017 = vst.msk [vmem:[%s9148_s23 + $0xa0] sm:$0xff] %vm3836_vm10, %v3942_v25  ;;  %4050 = vst.msk [vmem:[#allocation2 + $0xb1] sm:$0xff] %vm3836_vm10, %v3942_v25 }
 0x75c   : > { %4018 = vst.msk [vmem:[%s9148_s23 + $0xa8] sm:$0xff] %vm3836_vm10, %v3944_v6  ;;  %4219 = vrot.lane.b32.xlu0 %v11664_v26, %s13300_s16 }
 0x75d   : > { %4051 = vst.msk [vmem:[#allocation2 + $0xb9] sm:$0x7f] %vm4030_vm11, %v3944_v6  ;;  %4221 = vrot.lane.b32.xlu1 %v11667_v42, %s13300_s16  ;;  %v13435_v6 = vld [vmem:[#allocation66_spill] sm:$0xff] }
 0x75e   : > { %v3946_v58 = vpop.permute.xlu0 %3945 }
 0x75f   : > { %v3948_v50 = vpop.permute.xlu1 %3947  ;;  %4019 = vst.msk [vmem:[%s9148_s23 + $0xb0] sm:$0xff] %vm3836_vm10, %v3946_v58  ;;  %4052 = vst.msk [vmem:[#allocation2 + $0xc1] sm:$0xff] %vm3836_vm10, %v3946_v58 }
 0x760   : > { %4020 = vst.msk [vmem:[%s9148_s23 + $0xb8] sm:$0xff] %vm3836_vm10, %v3948_v50  ;;  %4223 = vrot.lane.b32.xlu0 %v11674_v41, %s13300_s16 }
 0x761   : > { %4053 = vst.msk [vmem:[#allocation2 + $0xc9] sm:$0x7f] %vm4030_vm11, %v3948_v50  ;;  %4225 = vrot.lane.b32.xlu1 %v11677_v16, %s13300_s16  ;;  %v13436_v50 = vld [vmem:[#allocation68_spill] sm:$0xff] }
 0x762   : > { %v3950_v26 = vpop.permute.xlu0 %3949 }
 0x763   : > { %v3952_v42 = vpop.permute.xlu1 %3951  ;;  %4021 = vst.msk [vmem:[%s9148_s23 + $0xc0] sm:$0xff] %vm3836_vm10, %v3950_v26  ;;  %4054 = vst.msk [vmem:[#allocation2 + $0xd1] sm:$0xff] %vm3836_vm10, %v3950_v26 }
 0x764   : > { %4022 = vst.msk [vmem:[%s9148_s23 + $0xc8] sm:$0xff] %vm3836_vm10, %v3952_v42  ;;  %4227 = vrot.lane.b32.xlu0 %v11684_v32, %s13300_s16 }
 0x765   : > { %4055 = vst.msk [vmem:[#allocation2 + $0xd9] sm:$0x7f] %vm4030_vm11, %v3952_v42  ;;  %4229 = vrot.lane.b32.xlu1 %v11687_v28, %s13300_s16  ;;  %v13437_v42 = vld [vmem:[#allocation65_spill] sm:$0xff] }
 0x766   : > { %v3954_v41 = vpop.permute.xlu0 %3953 }
 0x767   : > { %v3956_v16 = vpop.permute.xlu1 %3955  ;;  %4023 = vst.msk [vmem:[%s9148_s23 + $0xd0] sm:$0xff] %vm3836_vm10, %v3954_v41  ;;  %4056 = vst.msk [vmem:[#allocation2 + $0xe1] sm:$0xff] %vm3836_vm10, %v3954_v41 }
 0x768   : > { %4024 = vst.msk [vmem:[%s9148_s23 + $0xd8] sm:$0xff] %vm3836_vm10, %v3956_v16  ;;  %4231 = vrot.lane.b32.xlu0 %v11694_v9, %s13300_s16 }
 0x769   : > { %4057 = vst.msk [vmem:[#allocation2 + $0xe9] sm:$0x7f] %vm4030_vm11, %v3956_v16  ;;  %4233 = vrot.lane.b32.xlu1 %v11697_v24, %s13300_s16  ;;  %v13438_v16 = vld [vmem:[#allocation67_spill] sm:$0xff] }
 0x76a   : > { %v3958_v51 = vpop.permute.xlu0 %3957 }
 0x76b   : > { %v3960_v30 = vpop.permute.xlu1 %3959  ;;  %4025 = vst.msk [vmem:[%s9148_s23 + $0xe0] sm:$0xff] %vm3836_vm10, %v3958_v51  ;;  %4058 = vst.msk [vmem:[#allocation2 + $0xf1] sm:$0xff] %vm3836_vm10, %v3958_v51 }
 0x76c   : > { %4026 = vst.msk [vmem:[%s9148_s23 + $0xe8] sm:$0xff] %vm3836_vm10, %v3960_v30  ;;  %4235 = vrot.lane.b32.xlu0 %v11704_v21, %s13300_s16 }
 0x76d   : > { %4059 = vst.msk [vmem:[#allocation2 + $0xf9] sm:$0x7f] %vm4030_vm11, %v3960_v30  ;;  %4237 = vrot.lane.b32.xlu1 %v11707_v47, %s13300_s16  ;;  %v13439_v30 = vld [vmem:[#allocation70_spill] sm:$0xff] }
 0x76e   : > { %v3962_v3 = vpop.permute.xlu0 %3961 }
 0x76f   : > { %v3964_v32 = vpop.permute.xlu1 %3963  ;;  %4027 = vst.msk [vmem:[%s9148_s23 + $0xf0] sm:$0xff] %vm3836_vm10, %v3962_v3  ;;  %4060 = vst.msk [vmem:[#allocation2 + $0x101] sm:$0xff] %vm3836_vm10, %v3962_v3 }
 0x770   : > { %4028 = vst.msk [vmem:[%s9148_s23 + $0xf8] sm:$0xff] %vm3836_vm10, %v3964_v32  ;;  %4239 = vrot.lane.b32.xlu0 %v11715_v39, %s13300_s16 }
 0x771   : > { %4061 = vst.msk [vmem:[#allocation2 + $0x109] sm:$0x7f] %vm4030_vm11, %v3964_v32  ;;  %4241 = vrot.lane.b32.xlu1 %v11718_v49, %s13300_s16  ;;  %v13440_v32 = vld [vmem:[#allocation72_spill] sm:$0xff] }
 0x772   : > { %v4063_v28 = vpop.permute.xlu0 %4062 }
 0x773   : > { %v4065_v36 = vpop.permute.xlu1 %4064  ;;  %4159 = vst.msk [vmem:[#allocation2 + $0x10] sm:$0xff] %vm4158_vm12, %v4063_v28 }
 0x774   : > { %4243 = vrot.lane.b32.xlu0 %v11725_v60, %s13300_s16  ;;  %4160 = vst.msk [vmem:[#allocation2 + $0x18] sm:$0xff] %vm4158_vm12, %v4065_v36  ;;  %v13441_v36 = vld [vmem:[#allocation69_spill] sm:$0xff] }
 0x775   : > { %4245 = vrot.lane.b32.xlu1 %v11728_v29, %s13300_s16 }
 0x776   : > { %v4067_v10 = vpop.permute.xlu0 %4066 }
 0x777   : > { %v4069_v9 = vpop.permute.xlu1 %4068  ;;  %4161 = vst.msk [vmem:[#allocation2 + $0x20] sm:$0xff] %vm4158_vm12, %v4067_v10 }
 0x778   : > { %4247 = vrot.lane.b32.xlu0 %v11735_v8, %s13300_s16  ;;  %4162 = vst.msk [vmem:[#allocation2 + $0x28] sm:$0xff] %vm4158_vm12, %v4069_v9 }
 0x779   : > { %4249 = vrot.lane.b32.xlu1 %v11738_v55, %s13300_s16 }
 0x77a   : > { %v4071_v44 = vpop.permute.xlu0 %4070 }
 0x77b   : > { %v4073_v24 = vpop.permute.xlu1 %4072  ;;  %4163 = vst.msk [vmem:[#allocation2 + $0x30] sm:$0xff] %vm4158_vm12, %v4071_v44 }
 0x77c   : > { %4251 = vrot.lane.b32.xlu0 %v11745_v62, %s13300_s16  ;;  %4164 = vst.msk [vmem:[#allocation2 + $0x38] sm:$0xff] %vm4158_vm12, %v4073_v24  ;;  %v13442_v24 = vld [vmem:[#allocation71_spill] sm:$0xff] }
 0x77d   : > { %4253 = vrot.lane.b32.xlu1 %v11748_v12, %s13300_s16 }
 0x77e   : > { %v4075_v63 = vpop.permute.xlu0 %4074 }
 0x77f   : > { %v4077_v19 = vpop.permute.xlu1 %4076  ;;  %4165 = vst.msk [vmem:[#allocation2 + $0x40] sm:$0xff] %vm4158_vm12, %v4075_v63 }
 0x780   : > { %4166 = vst.msk [vmem:[#allocation2 + $0x48] sm:$0xff] %vm4158_vm12, %v4077_v19  ;;  %v13443_v19 = vld [vmem:[#allocation75_spill] sm:$0xff] }
 0x782   : > { %v4079_v22 = vpop.permute.xlu0 %4078 }
 0x783   : > { %v4081_v21 = vpop.permute.xlu1 %4080  ;;  %4167 = vst.msk [vmem:[#allocation2 + $0x50] sm:$0xff] %vm4158_vm12, %v4079_v22 }
 0x784   : > { %4168 = vst.msk [vmem:[#allocation2 + $0x58] sm:$0xff] %vm4158_vm12, %v4081_v21  ;;  %v13444_v21 = vld [vmem:[#allocation77_spill] sm:$0xff] }
 0x786   : > { %v4083_v1 = vpop.permute.xlu0 %4082 }
 0x787   : > { %v4085_v14 = vpop.permute.xlu1 %4084  ;;  %4169 = vst.msk [vmem:[#allocation2 + $0x60] sm:$0xff] %vm4158_vm12, %v4083_v1 }
 0x788   : > { %4170 = vst.msk [vmem:[#allocation2 + $0x68] sm:$0xff] %vm4158_vm12, %v4085_v14 }
 0x78a   : > { %v4087_v47 = vpop.permute.xlu0 %4086 }
 0x78b   : > { %v4089_v17 = vpop.permute.xlu1 %4088  ;;  %4171 = vst.msk [vmem:[#allocation2 + $0x70] sm:$0xff] %vm4158_vm12, %v4087_v47  ;;  %v13445_v47 = vld [vmem:[#allocation74_spill] sm:$0xff] }
 0x78c   : > { %4172 = vst.msk [vmem:[#allocation2 + $0x78] sm:$0xff] %vm4158_vm12, %v4089_v17 }
 0x78e   : > { %v4091_v20 = vpop.permute.xlu0 %4090 }
 0x78f   : > { %v4093_v39 = vpop.permute.xlu1 %4092  ;;  %4173 = vst.msk [vmem:[#allocation2 + $0x80] sm:$0xff] %vm4158_vm12, %v4091_v20  ;;  %v13446_v20 = vld [vmem:[#allocation76_spill] sm:$0xff] }
 0x790   : > { %v5550_v59 = vpop.f32.mrb[36].mxu0  ;;  %4174 = vst.msk [vmem:[#allocation2 + $0x88] sm:$0xff] %vm4158_vm12, %v4093_v39  ;;  %v13447_v39 = vld [vmem:[#allocation79_spill] sm:$0xff] }
 0x791   : > { %v8171_v33 = vpop.f32.mrb[37].mxu0 }
 0x792   : > { %v4095_v49 = vpop.permute.xlu0 %4094 }
 0x793   : > { %v4097_v0 = vpop.permute.xlu1 %4096  ;;  %4175 = vst.msk [vmem:[#allocation2 + $0x90] sm:$0xff] %vm4158_vm12, %v4095_v49  ;;  %v13448_v49 = vld [vmem:[#allocation81_spill] sm:$0xff] }
 0x794   : > { %4176 = vst.msk [vmem:[#allocation2 + $0x98] sm:$0xff] %vm4158_vm12, %v4097_v0 }
 0x796   : > { %v4099_v52 = vpop.permute.xlu0 %4098 }
 0x797   : > { %v4101_v60 = vpop.permute.xlu1 %4100  ;;  %4177 = vst.msk [vmem:[#allocation2 + $0xa0] sm:$0xff] %vm4158_vm12, %v4099_v52  ;;  %v13449_v52 = vld [vmem:[#allocation78_spill] sm:$0xff] }
 0x798   : > { %4178 = vst.msk [vmem:[#allocation2 + $0xa8] sm:$0xff] %vm4158_vm12, %v4101_v60 }
 0x79a   : > { %v4103_v29 = vpop.permute.xlu0 %4102 }
 0x79b   : > { %v4105_v54 = vpop.permute.xlu1 %4104  ;;  %4179 = vst.msk [vmem:[#allocation2 + $0xb0] sm:$0xff] %vm4158_vm12, %v4103_v29  ;;  %v13450_v29 = vld [vmem:[#allocation80_spill] sm:$0xff] }
 0x79c   : > { %4180 = vst.msk [vmem:[#allocation2 + $0xb8] sm:$0xff] %vm4158_vm12, %v4105_v54 }
 0x79e   : > { %v4107_v61 = vpop.permute.xlu0 %4106 }
 0x79f   : > { %v4109_v8 = vpop.permute.xlu1 %4108  ;;  %4181 = vst.msk [vmem:[#allocation2 + $0xc0] sm:$0xff] %vm4158_vm12, %v4107_v61  ;;  %v13451_v61 = vld [vmem:[#allocation85_spill] sm:$0xff] }
 0x7a0   : > { %4182 = vst.msk [vmem:[#allocation2 + $0xc8] sm:$0xff] %vm4158_vm12, %v4109_v8 }
 0x7a2   : > { %v4111_v4 = vpop.permute.xlu0 %4110 }
 0x7a3   : > { %v4113_v55 = vpop.permute.xlu1 %4112  ;;  %4183 = vst.msk [vmem:[#allocation2 + $0xd0] sm:$0xff] %vm4158_vm12, %v4111_v4  ;;  %v13452_v4 = vld [vmem:[#allocation87_spill] sm:$0xff] }
 0x7a4   : > { %4184 = vst.msk [vmem:[#allocation2 + $0xd8] sm:$0xff] %vm4158_vm12, %v4113_v55 }
 0x7a6   : > { %v4115_v34 = vpop.permute.xlu0 %4114 }
 0x7a7   : > { %v4117_v18 = vpop.permute.xlu1 %4116  ;;  %4185 = vst.msk [vmem:[#allocation2 + $0xe0] sm:$0xff] %vm4158_vm12, %v4115_v34  ;;  %v13453_v34 = vld [vmem:[#allocation82_spill] sm:$0xff] }
 0x7a8   : > { %4186 = vst.msk [vmem:[#allocation2 + $0xe8] sm:$0xff] %vm4158_vm12, %v4117_v18 }
 0x7aa   : > { %v4119_v62 = vpop.permute.xlu0 %4118 }
 0x7ab   : > { %v4121_v12 = vpop.permute.xlu1 %4120  ;;  %4187 = vst.msk [vmem:[#allocation2 + $0xf0] sm:$0xff] %vm4158_vm12, %v4119_v62  ;;  %v13454_v62 = vld [vmem:[#allocation86_spill] sm:$0xff] }
 0x7ac   : > { %4188 = vst.msk [vmem:[#allocation2 + $0xf8] sm:$0xff] %vm4158_vm12, %v4121_v12 }
 0x7ae   : > { %v4123_v13 = vpop.permute.xlu0 %4122 }
 0x7af   : > { %v4125_v38 = vpop.permute.xlu1 %4124  ;;  %4189 = vst.msk [vmem:[#allocation2 + $0x100] sm:$0xff] %vm4158_vm12, %v4123_v13  ;;  %v13455_v13 = vld [vmem:[#allocation93_spill] sm:$0xff] }
 0x7b0   : > { %4190 = vst.msk [vmem:[#allocation2 + $0x108] sm:$0xff] %vm4158_vm12, %v4125_v38 }
 0x7b2   : > { %v4192_v57 = vpop.permute.xlu0 %4191 }
 0x7b3   : > { %v4194_v37 = vpop.permute.xlu1 %4193  ;;  %4288 = vst.msk [vmem:[#allocation2 + $0xf] sm:$0xfe] %vm4287_vm13, %v4192_v57  ;;  %v13456_v57 = vld [vmem:[#allocation95_spill] sm:$0xff] }
 0x7b4   : > { %4290 = vst.msk [vmem:[#allocation2 + $0x17] sm:$0xff] %vm4289_vm14, %v4194_v37 }
 0x7b6   : > { %v4196_v23 = vpop.permute.xlu0 %4195 }
 0x7b7   : > { %v4198_v46 = vpop.permute.xlu1 %4197  ;;  %4291 = vst.msk [vmem:[#allocation2 + $0x1f] sm:$0xfe] %vm4287_vm13, %v4196_v23 }
 0x7b8   : > { %4292 = vst.msk [vmem:[#allocation2 + $0x27] sm:$0xff] %vm4289_vm14, %v4198_v46  ;;  %v13457_v46 = vld [vmem:[#allocation90_spill] sm:$0xff] }
 0x7ba   : > { %v4200_v35 = vpop.permute.xlu0 %4199 }
 0x7bb   : > { %v4202_v31 = vpop.permute.xlu1 %4201  ;;  %4293 = vst.msk [vmem:[#allocation2 + $0x2f] sm:$0xfe] %vm4287_vm13, %v4200_v35 }
 0x7bc   : > { %4294 = vst.msk [vmem:[#allocation2 + $0x37] sm:$0xff] %vm4289_vm14, %v4202_v31  ;;  %v13458_v31 = vld [vmem:[#allocation94_spill] sm:$0xff] }
 0x7be   : > { %v4204_v27 = vpop.permute.xlu0 %4203 }
 0x7bf   : > { %v4206_v15 = vpop.permute.xlu1 %4205  ;;  %4295 = vst.msk [vmem:[#allocation2 + $0x3f] sm:$0xfe] %vm4287_vm13, %v4204_v27 }
 0x7c0   : > { %4296 = vst.msk [vmem:[#allocation2 + $0x47] sm:$0xff] %vm4289_vm14, %v4206_v15  ;;  %v13459_v15 = vld [vmem:[#allocation98_spill] sm:$0xff] }
 0x7c1   : > { %v5623_v48 = vpop.f32.mrb[38].mxu0 }
 0x7c2   : > { %v5627_v40 = vmul.f32 %v8911_v53, %v5623_v48  ;;  %v8176_v45 = vpop.f32.mrb[39].mxu0  ;;  %v4208_v11 = vpop.permute.xlu0 %4207  ;;  %v13460_v53 = vld [vmem:[#allocation100_spill] sm:$0xff] }
 0x7c3   : > { %v4210_v43 = vpop.permute.xlu1 %4209  ;;  %4297 = vst.msk [vmem:[#allocation2 + $0x4f] sm:$0xfe] %vm4287_vm13, %v4208_v11  ;;  %v13461_v11 = vld [vmem:[#allocation96_spill] sm:$0xff] }
 0x7c4   : > { %v5628_v5 = vmul.f32 %v5627_v40, %v5550_v59  ;;  %v5665_v56 = vrot.slane %v5627_v40, %v13434_v2  ;;  %4298 = vst.msk [vmem:[#allocation2 + $0x57] sm:$0xff] %vm4289_vm14, %v4210_v43 }
 0x7c6   : > { %v5629_v25 = vsub.f32 %v8912_v7, %v5628_v5  ;;  %v5666_v58 = vmul.f32 %v5665_v56, %v13435_v6  ;;  %v5667_v26 = vmul.f32 %v5665_v56, %v13436_v50  ;;  %v5668_v41 = vmul.f32 %v13437_v42, %v5665_v56  ;;  %v4212_v9 = vpop.permute.xlu0 %4211  ;;  %v13463_v7 = vld [vmem:[#allocation103_spill] sm:$0xff]  ;;  %v13464_v6 = vld [vmem:[#allocation105_spill] sm:$0xff]  ;;  %v13465_v42 = vld [vmem:[#allocation102_spill] sm:$0xff] }
 0x7c7   : > { %v5669_v51 = vmul.f32 %v13438_v16, %v5665_v56  ;;  %v5670_v3 = vmul.f32 %v5665_v56, %v13439_v30  ;;  %v5671_v28 = vmul.f32 %v5665_v56, %v13440_v32  ;;  %v5672_v10 = vmul.f32 %v13441_v36, %v5665_v56  ;;  %v4214_v14 = vpop.permute.xlu1 %4213  ;;  %4299 = vst.msk [vmem:[#allocation2 + $0x5f] sm:$0xfe] %vm4287_vm13, %v4212_v9  ;;  %v13466_v30 = vld [vmem:[#allocation104_spill] sm:$0xff] }
 0x7c8   : > { %v12035_v44 = vrot.slane %v5629_v25, %v13434_v2  ;;  %v5673_v63 = vmul.f32 %v13442_v24, %v5665_v56  ;;  %v5674_v22 = vmul.f32 %v5665_v56, %v13443_v19  ;;  %v5675_v1 = vmul.f32 %v5665_v56, %v13444_v21  ;;  %4300 = vst.msk [vmem:[#allocation2 + $0x67] sm:$0xff] %vm4289_vm14, %v4214_v14  ;;  %v13462_v2 = vld [vmem:[#allocation99_spill] sm:$0xff] }
 0x7c9   : > { %v5676_v17 = vmul.f32 %v13445_v47, %v5665_v56  ;;  %v5677_v59 = vmul.f32 %v13446_v20, %v5665_v56  ;;  %v5678_v33 = vmul.f32 %v5665_v56, %v13447_v39  ;;  %v5679_v0 = vmul.f32 %v5665_v56, %v13448_v49 }
 0x7ca   : > { %v5680_v60 = vmul.f32 %v13449_v52, %v5665_v56  ;;  %v5681_v54 = vmul.f32 %v13450_v29, %v5665_v56  ;;  %v5682_v8 = vmul.f32 %v5665_v56, %v13451_v61  ;;  %v5683_v55 = vmul.f32 %v5665_v56, %v13452_v4  ;;  %v4216_v23 = vpop.permute.xlu0 %4215 }
 0x7cb   : > { %v5684_v18 = vmul.f32 %v13453_v34, %v5665_v56  ;;  %v5685_v12 = vmul.f32 %v13454_v62, %v5665_v56  ;;  %v5686_v38 = vmul.f32 %v5665_v56, %v13455_v13  ;;  %v5687_v37 = vmul.f32 %v5665_v56, %v13456_v57  ;;  %v4218_v45 = vpop.permute.xlu1 %4217  ;;  %4301 = vst.msk [vmem:[#allocation2 + $0x6f] sm:$0xfe] %vm4287_vm13, %v4216_v23 }
 0x7cc   : > { %v5688_v35 = vmul.f32 %v13457_v46, %v5665_v56  ;;  %v5689_v27 = vmul.f32 %v13458_v31, %v5665_v56  ;;  %v5690_v48 = vmul.f32 %v5665_v56, %v13459_v15  ;;  %v5691_v40 = vmul.f32 %v5665_v56, %v13460_v53  ;;  %4302 = vst.msk [vmem:[#allocation2 + $0x77] sm:$0xff] %vm4289_vm14, %v4218_v45 }
 0x7cd   : > { %v5692_v5 = vmul.f32 %v13461_v11, %v5665_v56  ;;  %v5693_v43 = vmul.f32 %v13462_v2, %v5665_v56  ;;  %v5694_v25 = vmul.f32 %v5665_v56, %v13463_v7  ;;  %v5695_v50 = vmul.f32 %v5665_v56, %v13464_v6 }
 0x7ce   : > { %v5696_v16 = vmul.f32 %v13465_v42, %v5665_v56  ;;  %v5697_v32 = vmul.f32 %v13466_v30, %v5665_v56  ;;  %v12067_v36 = vadd.f32 %v12035_v44, %v5666_v58  ;;  %v12070_v9 = vadd.f32 %v12035_v44, %v5667_v26  ;;  %v4220_v47 = vpop.permute.xlu0 %4219 }
 0x7cf   : > { %v12073_v24 = vadd.f32 %v12035_v44, %v5668_v41  ;;  %v12076_v19 = vadd.f32 %v12035_v44, %v5669_v51  ;;  %v12079_v21 = vadd.f32 %v12035_v44, %v5670_v3  ;;  %v12082_v14 = vadd.f32 %v12035_v44, %v5671_v28  ;;  %v4222_v51 = vpop.permute.xlu1 %4221  ;;  %4303 = vst.msk [vmem:[#allocation2 + $0x7f] sm:$0xfe] %vm4287_vm13, %v4220_v47 }
 0x7d0   : > { %v12085_v56 = vadd.f32 %v12035_v44, %v5672_v10  ;;  %v12088_v58 = vadd.f32 %v12035_v44, %v5673_v63  ;;  %v12091_v26 = vadd.f32 %v12035_v44, %v5674_v22  ;;  %v12094_v41 = vadd.f32 %v12035_v44, %v5675_v1  ;;  %4304 = vst.msk [vmem:[#allocation2 + $0x87] sm:$0xff] %vm4289_vm14, %v4222_v51 }
 0x7d1   : > { %v12098_v3 = vadd.f32 %v12035_v44, %v5676_v17  ;;  %v12101_v28 = vadd.f32 %v12035_v44, %v5677_v59  ;;  %v12104_v10 = vadd.f32 %v12035_v44, %v5678_v33  ;;  %v12107_v63 = vadd.f32 %v12035_v44, %v5679_v0 }
 0x7d2   : > { %v12111_v22 = vadd.f32 %v12035_v44, %v5680_v60  ;;  %v12114_v1 = vadd.f32 %v12035_v44, %v5681_v54  ;;  %v12117_v17 = vadd.f32 %v12035_v44, %v5682_v8  ;;  %v12120_v20 = vadd.f32 %v12035_v44, %v5683_v55  ;;  %v4224_v54 = vpop.permute.xlu0 %4223 }
 0x7d3   : > { %v12123_v59 = vadd.f32 %v12035_v44, %v5684_v18  ;;  %v12126_v39 = vadd.f32 %v12035_v44, %v5685_v12  ;;  %v12129_v33 = vadd.f32 %v12035_v44, %v5686_v38  ;;  %v12132_v49 = vadd.f32 %v12035_v44, %v5687_v37  ;;  %v4226_v34 = vpop.permute.xlu1 %4225  ;;  %4305 = vst.msk [vmem:[#allocation2 + $0x8f] sm:$0xfe] %vm4287_vm13, %v4224_v54 }
 0x7d4   : > { %v12135_v0 = vadd.f32 %v12035_v44, %v5688_v35  ;;  %v12138_v52 = vadd.f32 %v12035_v44, %v5689_v27  ;;  %v12141_v60 = vadd.f32 %v12035_v44, %v5690_v48  ;;  %v12144_v29 = vadd.f32 %v12035_v44, %v5691_v40  ;;  %4306 = vst.msk [vmem:[#allocation2 + $0x97] sm:$0xff] %vm4289_vm14, %v4226_v34 }
 0x7d5   : > { %v12147_v61 = vadd.f32 %v12035_v44, %v5692_v5  ;;  %v12150_v8 = vadd.f32 %v12035_v44, %v5693_v43  ;;  %v12153_v4 = vadd.f32 %v12035_v44, %v5694_v25  ;;  %v12156_v55 = vadd.f32 %v12035_v44, %v5695_v50 }
 0x7d6   : > { %v12160_v18 = vadd.f32 %v12035_v44, %v5696_v16  ;;  %v12163_v62 = vadd.f32 %v12035_v44, %v5697_v32  ;;  %v4228_v12 = vpop.permute.xlu0 %4227  ;;  %8719 = vtanh.f32 %v12067_v36 }
 0x7d7   : > { %v4230_v13 = vpop.permute.xlu1 %4229  ;;  %4307 = vst.msk [vmem:[#allocation2 + $0x9f] sm:$0xfe] %vm4287_vm13, %v4228_v12  ;;  %8721 = vtanh.f32 %v12070_v9 }
 0x7d8   : > { %4308 = vst.msk [vmem:[#allocation2 + $0xa7] sm:$0xff] %vm4289_vm14, %v4230_v13  ;;  %8723 = vtanh.f32 %v12073_v24 }
 0x7d9   : > { %8725 = vtanh.f32 %v12076_v19 }
 0x7da   : > { %v4232_v38 = vpop.permute.xlu0 %4231  ;;  %8727 = vtanh.f32 %v12079_v21 }
 0x7db   : > { %v4234_v57 = vpop.permute.xlu1 %4233  ;;  %4309 = vst.msk [vmem:[#allocation2 + $0xaf] sm:$0xfe] %vm4287_vm13, %v4232_v38  ;;  %8729 = vtanh.f32 %v12082_v14 }
 0x7dc   : > { %4310 = vst.msk [vmem:[#allocation2 + $0xb7] sm:$0xff] %vm4289_vm14, %v4234_v57  ;;  %8731 = vtanh.f32 %v12085_v56 }
 0x7dd   : > { %8733 = vtanh.f32 %v12088_v58 }
 0x7de   : > { %v4236_v44 = vpop.permute.xlu0 %4235  ;;  %8735 = vtanh.f32 %v12091_v26 }
 0x7df   : > { %v4238_v37 = vpop.permute.xlu1 %4237  ;;  %4311 = vst.msk [vmem:[#allocation2 + $0xbf] sm:$0xfe] %vm4287_vm13, %v4236_v44  ;;  %8737 = vtanh.f32 %v12094_v41 }
 0x7e0   : > { %4312 = vst.msk [vmem:[#allocation2 + $0xc7] sm:$0xff] %vm4289_vm14, %v4238_v37  ;;  %v8720_v35 = vpop.eup %8719  ;;  %8739 = vtanh.f32 %v12098_v3 }
 0x7e1   : > { %v8722_v27 = vpop.eup %8721  ;;  %6121 = vrot.lane.b32.xlu0 %v8720_v35, %s9031_s21  ;;  %8741 = vtanh.f32 %v12101_v28 }
 0x7e2   : > { %v4240_v23 = vpop.permute.xlu0 %4239  ;;  %6123 = vrot.lane.b32.xlu1 %v8722_v27, %s9031_s21  ;;  %v8724_v48 = vpop.eup %8723  ;;  %8743 = vtanh.f32 %v12104_v10 }
 0x7e3   : > { %v4242_v46 = vpop.permute.xlu1 %4241  ;;  %4313 = vst.msk [vmem:[#allocation2 + $0xcf] sm:$0xfe] %vm4287_vm13, %v4240_v23  ;;  %v8726_v40 = vpop.eup %8725  ;;  %8745 = vtanh.f32 %v12107_v63 }
 0x7e4   : > { %4314 = vst.msk [vmem:[#allocation2 + $0xd7] sm:$0xff] %vm4289_vm14, %v4242_v46  ;;  %v8728_v11 = vpop.eup %8727  ;;  %8747 = vtanh.f32 %v12111_v22 }
 0x7e5   : > { %6125 = vrot.lane.b32.xlu0 %v8724_v48, %s9031_s21  ;;  %v8730_v2 = vpop.eup %8729  ;;  %8749 = vtanh.f32 %v12114_v1 }
 0x7e6   : > { %v4244_v31 = vpop.permute.xlu0 %4243  ;;  %6127 = vrot.lane.b32.xlu1 %v8726_v40, %s9031_s21  ;;  %v8732_v7 = vpop.eup %8731  ;;  %8751 = vtanh.f32 %v12117_v17  ;;  %v5736_v40 = vmul.f32 0.5, %v12067_v36 }
 0x7e7   : > { %v4246_v15 = vpop.permute.xlu1 %4245  ;;  %4315 = vst.msk [vmem:[#allocation2 + $0xdf] sm:$0xfe] %vm4287_vm13, %v4244_v31  ;;  %v8734_v25 = vpop.eup %8733  ;;  %8753 = vtanh.f32 %v12120_v20 }
 0x7e8   : > { %4316 = vst.msk [vmem:[#allocation2 + $0xe7] sm:$0xff] %vm4289_vm14, %v4246_v15  ;;  %v8736_v6 = vpop.eup %8735  ;;  %8755 = vtanh.f32 %v12123_v59 }
 0x7e9   : > { %6129 = vrot.lane.b32.xlu0 %v8728_v11, %s9031_s21  ;;  %v8738_v50 = vpop.eup %8737  ;;  %8757 = vtanh.f32 %v12126_v39  ;;  %v5738_v11 = vmul.f32 0.5, %v12073_v24  ;;  %v5744_v24 = vmul.f32 0.5, %v12091_v26 }
 0x7ea   : > { %v4248_v53 = vpop.permute.xlu0 %4247  ;;  %6131 = vrot.lane.b32.xlu1 %v8730_v2, %s9031_s21  ;;  %v8740_v42 = vpop.eup %8739  ;;  %8759 = vtanh.f32 %v12129_v33  ;;  %v5740_v2 = vmul.f32 0.5, %v12079_v21 }
 0x7eb   : > { %v4250_v45 = vpop.permute.xlu1 %4249  ;;  %4317 = vst.msk [vmem:[#allocation2 + $0xef] sm:$0xfe] %vm4287_vm13, %v4248_v53  ;;  %v8742_v16 = vpop.eup %8741  ;;  %8761 = vtanh.f32 %v12132_v49 }
 0x7ec   : > { %4318 = vst.msk [vmem:[#allocation2 + $0xf7] sm:$0xff] %vm4289_vm14, %v4250_v45  ;;  %v8744_v30 = vpop.eup %8743  ;;  %8763 = vtanh.f32 %v12135_v0  ;;  %v5737_v45 = vmul.f32 0.5, %v12070_v9 }
 0x7ed   : > { %6133 = vrot.lane.b32.xlu0 %v8732_v7, %s9031_s21  ;;  %v8746_v32 = vpop.eup %8745  ;;  %8765 = vtanh.f32 %v12138_v52  ;;  %v5742_v7 = vmul.f32 0.5, %v12085_v56  ;;  %v5747_v56 = vmul.f32 0.5, %v12101_v28  ;;  %v5749_v28 = vmul.f32 0.5, %v12107_v63 }
 0x7ee   : > { %v4252_v5 = vpop.permute.xlu0 %4251  ;;  %6135 = vrot.lane.b32.xlu1 %v8734_v25, %s9031_s21  ;;  %v8748_v47 = vpop.eup %8747  ;;  %8767 = vtanh.f32 %v12141_v60  ;;  %v5743_v25 = vmul.f32 0.5, %v12088_v58 }
 0x7ef   : > { %v4254_v43 = vpop.permute.xlu1 %4253  ;;  %4319 = vst.msk [vmem:[#allocation2 + $0xff] sm:$0xfe] %vm4287_vm13, %v4252_v5  ;;  %v8750_v51 = vpop.eup %8749  ;;  %8769 = vtanh.f32 %v12144_v29  ;;  %v5739_v5 = vmul.f32 0.5, %v12076_v19  ;;  %v5745_v19 = vmul.f32 0.5, %v12094_v41 }
 0x7f0   : > { %4320 = vst.msk [vmem:[#allocation2 + $0x107] sm:$0xff] %vm4289_vm14, %v4254_v43  ;;  %v8752_v54 = vpop.eup %8751  ;;  %8771 = vtanh.f32 %v12147_v61  ;;  %v5741_v43 = vmul.f32 0.5, %v12082_v14  ;;  %v5746_v14 = vmul.f32 0.5, %v12098_v3 }
 0x7f1   : > { %6137 = vrot.lane.b32.xlu0 %v8736_v6, %s9031_s21  ;;  %v8754_v34 = vpop.eup %8753  ;;  %8773 = vtanh.f32 %v12150_v8 }
 0x7f2   : > { %6139 = vrot.lane.b32.xlu1 %v8738_v50, %s9031_s21  ;;  %v8756_v12 = vpop.eup %8755  ;;  %8775 = vtanh.f32 %v12153_v4 }
 0x7f3   : > { %v8758_v13 = vpop.eup %8757  ;;  %8777 = vtanh.f32 %v12156_v55 }
 0x7f4   : > { %v8760_v38 = vpop.eup %8759  ;;  %8779 = vtanh.f32 %v12160_v18 }
 0x7f5   : > { %6141 = vrot.lane.b32.xlu0 %v8740_v42, %s9031_s21  ;;  %v8762_v57 = vpop.eup %8761  ;;  %8781 = vtanh.f32 %v12163_v62 }
 0x7f6   : > { %6143 = vrot.lane.b32.xlu1 %v8742_v16, %s9031_s21  ;;  %v8764_v44 = vpop.eup %8763  ;;  %8783 = vtanh.f32 %v5736_v40 }
 0x7f7   : > { %v8766_v37 = vpop.eup %8765  ;;  %8785 = vtanh.f32 %v5737_v45 }
 0x7f8   : > { %v8768_v23 = vpop.eup %8767  ;;  %8787 = vtanh.f32 %v5738_v11 }
 0x7f9   : > { %6145 = vrot.lane.b32.xlu0 %v8744_v30, %s9031_s21  ;;  %v8770_v46 = vpop.eup %8769  ;;  %8789 = vtanh.f32 %v5739_v5 }
 0x7fa   : > { %6147 = vrot.lane.b32.xlu1 %v8746_v32, %s9031_s21  ;;  %v8772_v35 = vpop.eup %8771  ;;  %8791 = vtanh.f32 %v5740_v2  ;;  %v5752_v2 = vmul.f32 0.5, %v12117_v17 }
 0x7fb   : > { %v8774_v31 = vpop.eup %8773  ;;  %8793 = vtanh.f32 %v5741_v43  ;;  %v5753_v43 = vmul.f32 0.5, %v12120_v20 }
 0x7fc   : > { %v8776_v27 = vpop.eup %8775  ;;  %8795 = vtanh.f32 %v5742_v7 }
 0x7fd   : > { %6149 = vrot.lane.b32.xlu0 %v8748_v47, %s9031_s21  ;;  %v8778_v15 = vpop.eup %8777  ;;  %8797 = vtanh.f32 %v5743_v25 }
 0x7fe   : > { %6151 = vrot.lane.b32.xlu1 %v8750_v51, %s9031_s21  ;;  %v8780_v48 = vpop.eup %8779  ;;  %8799 = vtanh.f32 %v5744_v24 }
 0x7ff   : > { %v8782_v53 = vpop.eup %8781  ;;  %8801 = vtanh.f32 %v5745_v19 }
 0x800   : > { %v8784_v36 = vpop.eup %8783  ;;  %8803 = vtanh.f32 %v5746_v14 }
 0x801   : > { %6153 = vrot.lane.b32.xlu0 %v8752_v54, %s9031_s21  ;;  %v8786_v9 = vpop.eup %8785  ;;  %v5800_v6 = vadd.f32 1.0, %v8784_v36  ;;  %8805 = vtanh.f32 %v5747_v56 }
 0x802   : > { %6155 = vrot.lane.b32.xlu1 %v8754_v34, %s9031_s21  ;;  %v8788_v21 = vpop.eup %8787  ;;  %v5801_v50 = vadd.f32 1.0, %v8786_v9  ;;  %v5748_v34 = vmul.f32 0.5, %v12104_v10 }
 0x803   : > { %v8790_v42 = vpop.eup %8789  ;;  %v12256_v58 = vmul.f32 0.5, %v5800_v6  ;;  %v5802_v16 = vadd.f32 1.0, %v8788_v21 }
 0x804   : > { %v8792_v30 = vpop.eup %8791  ;;  %v12258_v32 = vmul.f32 0.5, %v5801_v50  ;;  %v5803_v47 = vadd.f32 1.0, %v8790_v42  ;;  %8807 = vtanh.f32 %v5748_v34  ;;  %v5754_v50 = vmul.f32 0.5, %v12123_v59 }
 0x805   : > { %6157 = vrot.lane.b32.xlu0 %v8756_v12, %s9031_s21  ;;  %v8794_v41 = vpop.eup %8793  ;;  %v12265_v12 = vmul.f32 0.5, %v5802_v16  ;;  %8809 = vtanh.f32 %v5749_v28  ;;  %v5755_v42 = vmul.f32 0.5, %v12126_v39  ;;  %v5757_v34 = vmul.f32 0.5, %v12132_v49 }
 0x806   : > { %6159 = vrot.lane.b32.xlu1 %v8758_v13, %s9031_s21  ;;  %v5804_v13 = vadd.f32 1.0, %v8792_v30 }
 0x809   : > { %6161 = vrot.lane.b32.xlu0 %v8760_v38, %s9031_s21  ;;  %v8796_v38 = vpop.eup %8795 }
 0x80a   : > { %6163 = vrot.lane.b32.xlu1 %v8762_v57, %s9031_s21  ;;  %v12268_v57 = vmul.f32 0.5, %v5803_v47 }
 0x80d   : > { %6165 = vrot.lane.b32.xlu0 %v8764_v44, %s9031_s21 }
 0x80e   : > { %6167 = vrot.lane.b32.xlu1 %v8766_v37, %s9031_s21  ;;  %v5805_v37 = vadd.f32 1.0, %v8794_v41 }
 0x811   : > { %6169 = vrot.lane.b32.xlu0 %v8768_v23, %s9031_s21  ;;  %v8798_v23 = vpop.eup %8797 }
 0x812   : > { %6171 = vrot.lane.b32.xlu1 %v8770_v46, %s9031_s21  ;;  %v5807_v45 = vadd.f32 1.0, %v8798_v23 }
 0x814   : > { %v12288_v9 = vmul.f32 0.5, %v5807_v45 }
 0x815   : > { %6173 = vrot.lane.b32.xlu0 %v8772_v35, %s9031_s21  ;;  %v5750_v35 = vmul.f32 0.5, %v12111_v22 }
 0x816   : > { %6175 = vrot.lane.b32.xlu1 %v8774_v31, %s9031_s21  ;;  %v5751_v31 = vmul.f32 0.5, %v12114_v1 }
 0x817   : > { %8811 = vtanh.f32 %v5750_v35  ;;  %v5759_v35 = vmul.f32 0.5, %v12138_v52 }
 0x818   : > { %8813 = vtanh.f32 %v5751_v31 }
 0x819   : > { %6177 = vrot.lane.b32.xlu0 %v8776_v27, %s9031_s21  ;;  %v12275_v27 = vmul.f32 0.5, %v5804_v13  ;;  %8815 = vtanh.f32 %v5752_v2  ;;  %v5761_v2 = vmul.f32 0.5, %v12144_v29 }
 0x81a   : > { %6179 = vrot.lane.b32.xlu1 %v8778_v15, %s9031_s21  ;;  %v5806_v15 = vadd.f32 1.0, %v8796_v38  ;;  %8817 = vtanh.f32 %v5753_v43 }
 0x81b   : > { %8819 = vtanh.f32 %v5754_v50  ;;  %v5763_v50 = vmul.f32 0.5, %v12150_v8 }
 0x81c   : > { %v12285_v7 = vmul.f32 0.5, %v5806_v15  ;;  %8821 = vtanh.f32 %v5755_v42 }
 0x81d   : > { %6181 = vrot.lane.b32.xlu0 %v8780_v48, %s9031_s21  ;;  %v8800_v48 = vpop.eup %8799 }
 0x81e   : > { %6183 = vrot.lane.b32.xlu1 %v8782_v53, %s9031_s21  ;;  %v12278_v53 = vmul.f32 0.5, %v5805_v37  ;;  %v8802_v11 = vpop.eup %8801  ;;  %v5808_v25 = vadd.f32 1.0, %v8800_v48 }
 0x81f   : > { %v8804_v36 = vpop.eup %8803  ;;  %v5809_v19 = vadd.f32 1.0, %v8802_v11 }
 0x820   : > { %v8806_v6 = vpop.eup %8805  ;;  %v12295_v14 = vmul.f32 0.5, %v5808_v25  ;;  %v5810_v56 = vadd.f32 1.0, %v8804_v36 }
 0x821   : > { %v8808_v16 = vpop.eup %8807  ;;  %v12298_v30 = vmul.f32 0.5, %v5809_v19  ;;  %v5811_v47 = vadd.f32 1.0, %v8806_v6 }
 0x822   : > { %v8810_v41 = vpop.eup %8809  ;;  %v5812_v28 = vadd.f32 1.0, %v8808_v16 }
 0x823   : > { %v8812_v13 = vpop.eup %8811  ;;  %v12308_v38 = vmul.f32 0.5, %v5811_v47  ;;  %v5813_v37 = vadd.f32 1.0, %v8810_v41 }
 0x824   : > { %v8814_v23 = vpop.eup %8813  ;;  %v5814_v31 = vadd.f32 1.0, %v8812_v13 }
 0x825   : > { %v8816_v15 = vpop.eup %8815  ;;  %v12318_v48 = vmul.f32 0.5, %v5813_v37  ;;  %v5815_v45 = vadd.f32 1.0, %v8814_v23 }
 0x826   : > { %v8818_v11 = vpop.eup %8817  ;;  %v5816_v43 = vadd.f32 1.0, %v8816_v15 }
 0x827   : > { %v8820_v25 = vpop.eup %8819  ;;  %v12328_v36 = vmul.f32 0.5, %v5815_v45  ;;  %v5817_v19 = vadd.f32 1.0, %v8818_v11 }
 0x828   : > { %v8822_v6 = vpop.eup %8821  ;;  %v5818_v42 = vadd.f32 1.0, %v8820_v25 }
 0x829   : > { %v12338_v16 = vmul.f32 0.5, %v5817_v19  ;;  %v5819_v47 = vadd.f32 1.0, %v8822_v6 }
 0x82b   : > { %v12348_v13 = vmul.f32 0.5, %v5819_v47 }
 0x853   : > { %v6122_v26 = vpop.permute.xlu0 %6121 }
 0x854   : > { %v6124_v51 = vpop.permute.xlu1 %6123  ;;  %v6217_v54 = vmul.f32 %v6122_v26, %v12256_v58 }
 0x855   : > { %v6218_v3 = vmul.f32 %v6124_v51, %v12258_v32 }
 0x856   : > { %6281 = vrot.lane.b32.xlu0 %v6217_v54, %s9025_s30  ;;  %v5756_v54 = vmul.f32 0.5, %v12129_v33 }
 0x857   : > { %6283 = vrot.lane.b32.xlu1 %v6218_v3, %s9025_s30  ;;  %v6126_v44 = vpop.permute.xlu0 %6125  ;;  %v12305_v3 = vmul.f32 0.5, %v5810_v56 }
 0x858   : > { %v6128_v10 = vpop.permute.xlu1 %6127  ;;  %v6219_v46 = vmul.f32 %v6126_v44, %v12265_v12  ;;  %8823 = vtanh.f32 %v5756_v54  ;;  %v5765_v54 = vmul.f32 0.5, %v12156_v55 }
 0x859   : > { %v6220_v63 = vmul.f32 %v6128_v10, %v12268_v57  ;;  %8825 = vtanh.f32 %v5757_v34 }
 0x85a   : > { %6285 = vrot.lane.b32.xlu0 %v6219_v46, %s9025_s30  ;;  %v5758_v46 = vmul.f32 0.5, %v12135_v0 }
 0x85b   : > { %6287 = vrot.lane.b32.xlu1 %v6220_v63, %s9025_s30  ;;  %v6130_v40 = vpop.permute.xlu0 %6129  ;;  %v12315_v63 = vmul.f32 0.5, %v5812_v28 }
 0x85c   : > { %v6132_v22 = vpop.permute.xlu1 %6131  ;;  %v6221_v5 = vmul.f32 %v6130_v40, %v12275_v27  ;;  %8827 = vtanh.f32 %v5758_v46  ;;  %v5767_v46 = vmul.f32 0.5, %v12163_v62 }
 0x85d   : > { %v6222_v1 = vmul.f32 %v6132_v22, %v12278_v53  ;;  %8829 = vtanh.f32 %v5759_v35 }
 0x85e   : > { %6289 = vrot.lane.b32.xlu0 %v6221_v5, %s9025_s30  ;;  %v5760_v5 = vmul.f32 0.5, %v12141_v60 }
 0x85f   : > { %6291 = vrot.lane.b32.xlu1 %v6222_v1, %s9025_s30  ;;  %v6134_v24 = vpop.permute.xlu0 %6133  ;;  %v12325_v1 = vmul.f32 0.5, %v5814_v31 }
 0x860   : > { %v6136_v17 = vpop.permute.xlu1 %6135  ;;  %v6223_v21 = vmul.f32 %v6134_v24, %v12285_v7  ;;  %8831 = vtanh.f32 %v5760_v5 }
 0x861   : > { %v6224_v20 = vmul.f32 %v6136_v17, %v12288_v9  ;;  %8833 = vtanh.f32 %v5761_v2 }
 0x862   : > { %6293 = vrot.lane.b32.xlu0 %v6223_v21, %s9025_s30  ;;  %v5762_v21 = vmul.f32 0.5, %v12147_v61  ;;  %v8824_v56 = vpop.eup %8823 }
 0x863   : > { %6295 = vrot.lane.b32.xlu1 %v6224_v20, %s9025_s30  ;;  %v6138_v26 = vpop.permute.xlu0 %6137  ;;  %v12335_v20 = vmul.f32 0.5, %v5816_v43  ;;  %v8826_v41 = vpop.eup %8825  ;;  %v5820_v34 = vadd.f32 1.0, %v8824_v56 }
 0x864   : > { %v6140_v59 = vpop.permute.xlu1 %6139  ;;  %v6225_v51 = vmul.f32 %v6138_v26, %v12295_v14  ;;  %8835 = vtanh.f32 %v5762_v21  ;;  %v5821_v37 = vadd.f32 1.0, %v8826_v41 }
 0x865   : > { %v6226_v39 = vmul.f32 %v6140_v59, %v12298_v30  ;;  %8837 = vtanh.f32 %v5763_v50 }
 0x866   : > { %6297 = vrot.lane.b32.xlu0 %v6225_v51, %s9025_s30  ;;  %v5764_v51 = vmul.f32 0.5, %v12153_v4  ;;  %v8828_v28 = vpop.eup %8827  ;;  %v12358_v15 = vmul.f32 0.5, %v5821_v37 }
 0x867   : > { %6299 = vrot.lane.b32.xlu1 %v6226_v39, %s9025_s30  ;;  %v6142_v44 = vpop.permute.xlu0 %6141  ;;  %v12345_v39 = vmul.f32 0.5, %v5818_v42  ;;  %v8830_v23 = vpop.eup %8829  ;;  %v5822_v35 = vadd.f32 1.0, %v8828_v28 }
 0x868   : > { %v6144_v33 = vpop.permute.xlu1 %6143  ;;  %v6227_v10 = vmul.f32 %v6142_v44, %v12305_v3  ;;  %8839 = vtanh.f32 %v5764_v51  ;;  %13467 = vst [vmem:[#allocation10_spill] sm:$0xff] %v12358_v15  ;;  %v5823_v45 = vadd.f32 1.0, %v8830_v23 }
 0x869   : > { %v6228_v49 = vmul.f32 %v6144_v33, %v12308_v38  ;;  %8841 = vtanh.f32 %v5765_v54 }
 0x86a   : > { %6301 = vrot.lane.b32.xlu0 %v6227_v10, %s9025_s30  ;;  %v5766_v10 = vmul.f32 0.5, %v12160_v18  ;;  %v8832_v31 = vpop.eup %8831  ;;  %v12366_v2 = vmul.f32 0.5, %v5823_v45 }
 0x86b   : > { %6303 = vrot.lane.b32.xlu1 %v6228_v49, %s9025_s30  ;;  %v6146_v40 = vpop.permute.xlu0 %6145  ;;  %v12355_v49 = vmul.f32 0.5, %v5820_v34  ;;  %v8834_v11 = vpop.eup %8833  ;;  %v5824_v5 = vadd.f32 1.0, %v8832_v31 }
 0x86c   : > { %v6148_v0 = vpop.permute.xlu1 %6147  ;;  %v6229_v22 = vmul.f32 %v6146_v40, %v12315_v63  ;;  %8843 = vtanh.f32 %v5766_v10  ;;  %13469 = vst [vmem:[#allocation11_spill] sm:$0xff] %v12366_v2  ;;  %v5825_v25 = vadd.f32 1.0, %v8834_v11 }
 0x86d   : > { %v6230_v52 = vmul.f32 %v6148_v0, %v12318_v48  ;;  %8845 = vtanh.f32 %v5767_v46 }
 0x86e   : > { %6305 = vrot.lane.b32.xlu0 %v6229_v22, %s9025_s30  ;;  %v12363_v22 = vmul.f32 0.5, %v5822_v35  ;;  %v12374_v50 = vmul.f32 0.5, %v5825_v25 }
 0x86f   : > { %6307 = vrot.lane.b32.xlu1 %v6230_v52, %s9025_s30  ;;  %v6150_v24 = vpop.permute.xlu0 %6149  ;;  %v8836_v52 = vpop.eup %8835 }
 0x870   : > { %v6152_v60 = vpop.permute.xlu1 %6151  ;;  %v6231_v17 = vmul.f32 %v6150_v24, %v12325_v1  ;;  %13468 = vst [vmem:[#allocation73_spill] sm:$0xff] %v12363_v22  ;;  %v8838_v24 = vpop.eup %8837  ;;  %v5826_v21 = vadd.f32 1.0, %v8836_v52  ;;  %13471 = vst [vmem:[#allocation14_spill] sm:$0xff] %v12374_v50 }
 0x871   : > { %v6232_v29 = vmul.f32 %v6152_v60, %v12328_v36  ;;  %v5827_v56 = vadd.f32 1.0, %v8838_v24  ;;  %v13473_v24 = vld [vmem:[#allocation34_spill] sm:$0xff] }
 0x872   : > { %6309 = vrot.lane.b32.xlu0 %v6231_v17, %s9025_s30  ;;  %v12371_v17 = vmul.f32 0.5, %v5824_v5 }
 0x873   : > { %6311 = vrot.lane.b32.xlu1 %v6232_v29, %s9025_s30  ;;  %v6154_v26 = vpop.permute.xlu0 %6153  ;;  %v8840_v29 = vpop.eup %8839  ;;  %v12382_v54 = vmul.f32 0.5, %v5827_v56 }
 0x874   : > { %v6156_v61 = vpop.permute.xlu1 %6155  ;;  %v6233_v59 = vmul.f32 %v6154_v26, %v12335_v20  ;;  %13470 = vst [vmem:[#allocation13_spill] sm:$0xff] %v12371_v17  ;;  %v8842_v26 = vpop.eup %8841  ;;  %v5828_v51 = vadd.f32 1.0, %v8840_v29 }
 0x875   : > { %v6234_v8 = vmul.f32 %v6156_v61, %v12338_v16  ;;  %v5829_v28 = vadd.f32 1.0, %v8842_v26  ;;  %v13475_v26 = vld [vmem:[#allocation36_spill] sm:$0xff] }
 0x876   : > { %6313 = vrot.lane.b32.xlu0 %v6233_v59, %s9025_s30  ;;  %v12379_v59 = vmul.f32 0.5, %v5826_v21 }
 0x877   : > { %6315 = vrot.lane.b32.xlu1 %v6234_v8, %s9025_s30  ;;  %v6158_v44 = vpop.permute.xlu0 %6157  ;;  %v8844_v8 = vpop.eup %8843 }
 0x878   : > { %v6160_v4 = vpop.permute.xlu1 %6159  ;;  %v6235_v33 = vmul.f32 %v6158_v44, %v12345_v39  ;;  %v8846_v44 = vpop.eup %8845  ;;  %v5830_v10 = vadd.f32 1.0, %v8844_v8 }
 0x879   : > { %v6236_v55 = vmul.f32 %v6160_v4, %v12348_v13  ;;  %v5831_v35 = vadd.f32 1.0, %v8846_v44  ;;  %v13477_v44 = vld [vmem:[#allocation38_spill] sm:$0xff] }
 0x87a   : > { %6317 = vrot.lane.b32.xlu0 %v6235_v33, %s9025_s30  ;;  %v12387_v33 = vmul.f32 0.5, %v5828_v51  ;;  %v12395_v11 = vmul.f32 0.5, %v5830_v10 }
 0x87b   : > { %6319 = vrot.lane.b32.xlu1 %v6236_v55, %s9025_s30  ;;  %v6162_v40 = vpop.permute.xlu0 %6161  ;;  %v12390_v55 = vmul.f32 0.5, %v5829_v28 }
 0x87c   : > { %v6164_v18 = vpop.permute.xlu1 %6163  ;;  %v6237_v0 = vmul.f32 %v6162_v40, %v12355_v49 }
 0x87d   : > { %v6238_v62 = vmul.f32 %v6164_v18, %v12358_v15  ;;  %v12398_v18 = vmul.f32 0.5, %v5831_v35  ;;  %v13478_v35 = vld [vmem:[#allocation39_spill] sm:$0xff] }
 0x87e   : > { %6321 = vrot.lane.b32.xlu0 %v6237_v0, %s9025_s30 }
 0x87f   : > { %6323 = vrot.lane.b32.xlu1 %v6238_v62, %s9025_s30  ;;  %v6166_v43 = vpop.permute.xlu0 %6165 }
 0x880   : > { %v6168_v19 = vpop.permute.xlu1 %6167  ;;  %v6239_v6 = vmul.f32 %v6166_v43, %v12363_v22  ;;  %v13472_v43 = vld [vmem:[#allocation33_spill] sm:$0xff] }
 0x881   : > { %v6240_v60 = vmul.f32 %v6168_v19, %v12366_v2  ;;  %v6057_v25 = vmul.f32 %v13472_v43, %v12256_v58  ;;  %v6058_v19 = vmul.f32 %v13473_v24, %v12258_v32  ;;  %v13480_v43 = vld [vmem:[#allocation41_spill] sm:$0xff]  ;;  %v13481_v24 = vld [vmem:[#allocation42_spill] sm:$0xff] }
 0x882   : > { %6325 = vrot.lane.b32.xlu0 %v6239_v6, %s9025_s30 }
 0x883   : > { %6327 = vrot.lane.b32.xlu1 %v6240_v60, %s9025_s30  ;;  %v6170_v42 = vpop.permute.xlu0 %6169 }
 0x884   : > { %v6172_v47 = vpop.permute.xlu1 %6171  ;;  %v6241_v41 = vmul.f32 %v6170_v42, %v12371_v17  ;;  %v13474_v42 = vld [vmem:[#allocation35_spill] sm:$0xff] }
 0x885   : > { %v6242_v61 = vmul.f32 %v6172_v47, %v12374_v50  ;;  %v6059_v56 = vmul.f32 %v13474_v42, %v12265_v12  ;;  %v6060_v47 = vmul.f32 %v13475_v26, %v12268_v57  ;;  %v13482_v26 = vld [vmem:[#allocation43_spill] sm:$0xff] }
 0x886   : > { %6329 = vrot.lane.b32.xlu0 %v6241_v41, %s9025_s30 }
 0x887   : > { %6331 = vrot.lane.b32.xlu1 %v6242_v61, %s9025_s30  ;;  %v6174_v34 = vpop.permute.xlu0 %6173 }
 0x888   : > { %v6176_v37 = vpop.permute.xlu1 %6175  ;;  %v6243_v23 = vmul.f32 %v6174_v34, %v12379_v59  ;;  %v13476_v34 = vld [vmem:[#allocation37_spill] sm:$0xff] }
 0x889   : > { %v6244_v4 = vmul.f32 %v6176_v37, %v12382_v54  ;;  %v6061_v28 = vmul.f32 %v13476_v34, %v12275_v27  ;;  %v6062_v37 = vmul.f32 %v13477_v44, %v12278_v53 }
 0x88a   : > { %6333 = vrot.lane.b32.xlu0 %v6243_v23, %s9025_s30 }
 0x88b   : > { %6335 = vrot.lane.b32.xlu1 %v6244_v4, %s9025_s30  ;;  %v6178_v46 = vpop.permute.xlu0 %6177 }
 0x88c   : > { %v6180_v31 = vpop.permute.xlu1 %6179  ;;  %v6245_v40 = vmul.f32 %v6178_v46, %v12387_v33 }
 0x88d   : > { %v6246_v45 = vmul.f32 %v6180_v31, %v12390_v55  ;;  %v6063_v31 = vmul.f32 %v13478_v35, %v12285_v7  ;;  %v13485_v35 = vld [vmem:[#allocation46_spill] sm:$0xff] }
 0x88e   : > { %6337 = vrot.lane.b32.xlu0 %v6245_v40, %s9025_s30  ;;  %v13479_v40 = vld [vmem:[#allocation40_spill] sm:$0xff] }
 0x88f   : > { %6339 = vrot.lane.b32.xlu1 %v6246_v45, %s9025_s30  ;;  %v6182_v0 = vpop.permute.xlu0 %6181  ;;  %v6064_v45 = vmul.f32 %v13479_v40, %v12288_v9 }
 0x890   : > { %v6184_v62 = vpop.permute.xlu1 %6183  ;;  %v6247_v5 = vmul.f32 %v6182_v0, %v12395_v11 }
 0x891   : > { %v6248_v52 = vmul.f32 %v6184_v62, %v12398_v18 }
 0x892   : > { %6341 = vrot.lane.b32.xlu0 %v6247_v5, %s9025_s30 }
 0x893   : > { %6343 = vrot.lane.b32.xlu1 %v6248_v52, %s9025_s30 }
 0x8c8   : > { %v6282_v6 = vpop.permute.xlu0 %6281 }
 0x8c9   : > { %v6284_v60 = vpop.permute.xlu1 %6283  ;;  %v12408_v21 = vadd.f32 %v6282_v6, %v6057_v25  ;;  %v6065_v25 = vmul.f32 %v13480_v43, %v12295_v14  ;;  %v13486_v43 = vld [vmem:[#allocation47_spill] sm:$0xff] }
 0x8ca   : > { %v12410_v29 = vadd.f32 %v6284_v60, %v6058_v19  ;;  %v6066_v19 = vmul.f32 %v13481_v24, %v12298_v30  ;;  %v13487_v24 = vld [vmem:[#allocation48_spill] sm:$0xff] }
 0x8cb   : > { %6633 = vrot.lane.b32.xlu0 %v12408_v21, %s9032_s13  ;;  %8847 = vtanh.f32 %v12408_v21 }
 0x8cc   : > { %6635 = vrot.lane.b32.xlu1 %v12410_v29, %s9032_s13  ;;  %v6286_v41 = vpop.permute.xlu0 %6285  ;;  %8849 = vtanh.f32 %v12410_v29 }
 0x8cd   : > { %v6288_v61 = vpop.permute.xlu1 %6287  ;;  %v12420_v51 = vadd.f32 %v6286_v41, %v6059_v56  ;;  %v13483_v41 = vld [vmem:[#allocation44_spill] sm:$0xff] }
 0x8ce   : > { %v12422_v8 = vadd.f32 %v6288_v61, %v6060_v47  ;;  %v6067_v47 = vmul.f32 %v13482_v26, %v12305_v3  ;;  %v6068_v61 = vmul.f32 %v13483_v41, %v12308_v38  ;;  %v13488_v41 = vld [vmem:[#allocation49_spill] sm:$0xff] }
 0x8cf   : > { %6637 = vrot.lane.b32.xlu0 %v12420_v51, %s9032_s13  ;;  %8851 = vtanh.f32 %v12420_v51 }
 0x8d0   : > { %6639 = vrot.lane.b32.xlu1 %v12422_v8, %s9032_s13  ;;  %v6290_v23 = vpop.permute.xlu0 %6289  ;;  %8853 = vtanh.f32 %v12422_v8 }
 0x8d1   : > { %v6292_v4 = vpop.permute.xlu1 %6291  ;;  %v12432_v10 = vadd.f32 %v6290_v23, %v6061_v28  ;;  %v13484_v23 = vld [vmem:[#allocation45_spill] sm:$0xff] }
 0x8d2   : > { %v12434_v46 = vadd.f32 %v6292_v4, %v6062_v37  ;;  %v6069_v4 = vmul.f32 %v13484_v23, %v12315_v63 }
 0x8d3   : > { %6641 = vrot.lane.b32.xlu0 %v12432_v10, %s9032_s13  ;;  %8855 = vtanh.f32 %v12432_v10 }
 0x8d4   : > { %6643 = vrot.lane.b32.xlu1 %v12434_v46, %s9032_s13  ;;  %v6294_v0 = vpop.permute.xlu0 %6293  ;;  %8857 = vtanh.f32 %v12434_v46 }
 0x8d5   : > { %v6296_v62 = vpop.permute.xlu1 %6295  ;;  %v12444_v5 = vadd.f32 %v6294_v0, %v6063_v31  ;;  %v6070_v31 = vmul.f32 %v13485_v35, %v12318_v48  ;;  %v8848_v51 = vpop.eup %8847 }
 0x8d6   : > { %v12446_v52 = vadd.f32 %v6296_v62, %v6064_v45 }
 0x8d7   : > { %6645 = vrot.lane.b32.xlu0 %v12444_v5, %s9032_s13  ;;  %8859 = vtanh.f32 %v12444_v5 }
 0x8d8   : > { %6647 = vrot.lane.b32.xlu1 %v12446_v52, %s9032_s13  ;;  %v6298_v6 = vpop.permute.xlu0 %6297  ;;  %8861 = vtanh.f32 %v12446_v52 }
 0x8d9   : > { %v6300_v60 = vpop.permute.xlu1 %6299  ;;  %v12456_v42 = vadd.f32 %v6298_v6, %v6065_v25  ;;  %v6071_v25 = vmul.f32 %v13486_v43, %v12325_v1  ;;  %v13491_v43 = vld [vmem:[#allocation52_spill] sm:$0xff] }
 0x8da   : > { %v12458_v56 = vadd.f32 %v6300_v60, %v6066_v19  ;;  %v6072_v19 = vmul.f32 %v13487_v24, %v12328_v36 }
 0x8db   : > { %6649 = vrot.lane.b32.xlu0 %v12456_v42, %s9032_s13  ;;  %8863 = vtanh.f32 %v12456_v42 }
 0x8dc   : > { %6651 = vrot.lane.b32.xlu1 %v12458_v56, %s9032_s13  ;;  %v6302_v34 = vpop.permute.xlu0 %6301  ;;  %8865 = vtanh.f32 %v12458_v56 }
 0x8dd   : > { %v6304_v28 = vpop.permute.xlu1 %6303  ;;  %v12468_v44 = vadd.f32 %v6302_v34, %v6067_v47  ;;  %v13489_v34 = vld [vmem:[#allocation50_spill] sm:$0xff] }
 0x8de   : > { %v12470_v37 = vadd.f32 %v6304_v28, %v6068_v61  ;;  %v6073_v61 = vmul.f32 %v13488_v41, %v12335_v20  ;;  %v6074_v28 = vmul.f32 %v13489_v34, %v12338_v16  ;;  %v13492_v41 = vld [vmem:[#allocation53_spill] sm:$0xff]  ;;  %v13493_v34 = vld [vmem:[#allocation54_spill] sm:$0xff] }
 0x8df   : > { %6653 = vrot.lane.b32.xlu0 %v12468_v44, %s9032_s13  ;;  %8867 = vtanh.f32 %v12468_v44 }
 0x8e0   : > { %6655 = vrot.lane.b32.xlu1 %v12470_v37, %s9032_s13  ;;  %v6306_v40 = vpop.permute.xlu0 %6305  ;;  %8869 = vtanh.f32 %v12470_v37 }
 0x8e1   : > { %v6308_v45 = vpop.permute.xlu1 %6307  ;;  %v12480_v0 = vadd.f32 %v6306_v40, %v6069_v4  ;;  %v13490_v40 = vld [vmem:[#allocation51_spill] sm:$0xff] }
 0x8e2   : > { %v12482_v62 = vadd.f32 %v6308_v45, %v6070_v31  ;;  %v6075_v45 = vmul.f32 %v13490_v40, %v12345_v39 }
 0x8e3   : > { %6657 = vrot.lane.b32.xlu0 %v12480_v0, %s9032_s13  ;;  %8871 = vtanh.f32 %v12480_v0 }
 0x8e4   : > { %6659 = vrot.lane.b32.xlu1 %v12482_v62, %s9032_s13  ;;  %v6310_v6 = vpop.permute.xlu0 %6309  ;;  %8873 = vtanh.f32 %v12482_v62 }
 0x8e5   : > { %v6312_v60 = vpop.permute.xlu1 %6311  ;;  %v12492_v26 = vadd.f32 %v6310_v6, %v6071_v25  ;;  %v6076_v25 = vmul.f32 %v13491_v43, %v12348_v13  ;;  %v13494_v43 = vld [vmem:[#allocation55_spill] sm:$0xff] }
 0x8e6   : > { %v12494_v47 = vadd.f32 %v6312_v60, %v6072_v19 }
 0x8e7   : > { %6661 = vrot.lane.b32.xlu0 %v12492_v26, %s9032_s13  ;;  %8875 = vtanh.f32 %v12492_v26 }
 0x8e8   : > { %6663 = vrot.lane.b32.xlu1 %v12494_v47, %s9032_s13  ;;  %v6314_v23 = vpop.permute.xlu0 %6313  ;;  %8877 = vtanh.f32 %v12494_v47 }
 0x8e9   : > { %v6316_v4 = vpop.permute.xlu1 %6315  ;;  %v12504_v35 = vadd.f32 %v6314_v23, %v6073_v61  ;;  %v6077_v61 = vmul.f32 %v13492_v41, %v12355_v49 }
 0x8ea   : > { %v12506_v31 = vadd.f32 %v6316_v4, %v6074_v28  ;;  %v6078_v28 = vmul.f32 %v13493_v34, %v12358_v15 }
 0x8eb   : > { %6665 = vrot.lane.b32.xlu0 %v12504_v35, %s9032_s13  ;;  %8879 = vtanh.f32 %v12504_v35 }
 0x8ec   : > { %6667 = vrot.lane.b32.xlu1 %v12506_v31, %s9032_s13  ;;  %v6318_v24 = vpop.permute.xlu0 %6317 }
 0x8ed   : > { %v6320_v19 = vpop.permute.xlu1 %6319  ;;  %v12516_v6 = vadd.f32 %v6318_v24, %v6075_v45  ;;  %v13495_v24 = vld [vmem:[#allocation56_spill] sm:$0xff] }
 0x8ee   : > { %v12518_v60 = vadd.f32 %v6320_v19, %v6076_v25  ;;  %v6079_v25 = vmul.f32 %v13494_v43, %v12363_v22  ;;  %v6080_v19 = vmul.f32 %v13495_v24, %v12366_v2 }
 0x8ef   : > { %6669 = vrot.lane.b32.xlu0 %v12516_v6, %s9032_s13 }
 0x8f0   : > { %6671 = vrot.lane.b32.xlu1 %v12518_v60, %s9032_s13  ;;  %v6322_v23 = vpop.permute.xlu0 %6321 }
 0x8f1   : > { %v6324_v4 = vpop.permute.xlu1 %6323  ;;  %v12528_v40 = vadd.f32 %v6322_v23, %v6077_v61 }
 0x8f2   : > { %v12530_v45 = vadd.f32 %v6324_v4, %v6078_v28  ;;  %v13496_v28 = vld [vmem:[#allocation57_spill] sm:$0xff]  ;;  %v13497_v4 = vld [vmem:[#allocation58_spill] sm:$0xff] }
 0x8f3   : > { %6673 = vrot.lane.b32.xlu0 %v12528_v40, %s9032_s13  ;;  %v6081_v23 = vmul.f32 %v13496_v28, %v12371_v17  ;;  %v6082_v43 = vmul.f32 %v13497_v4, %v12374_v50 }
 0x8f4   : > { %6675 = vrot.lane.b32.xlu1 %v12530_v45, %s9032_s13  ;;  %v6326_v41 = vpop.permute.xlu0 %6325 }
 0x8f5   : > { %v6328_v34 = vpop.permute.xlu1 %6327  ;;  %v12540_v15 = vadd.f32 %v6326_v41, %v6079_v25 }
 0x8f6   : > { %v12542_v61 = vadd.f32 %v6328_v34, %v6080_v19  ;;  %v13498_v19 = vld [vmem:[#allocation59_spill] sm:$0xff]  ;;  %v13499_v34 = vld [vmem:[#allocation60_spill] sm:$0xff] }
 0x8f7   : > { %6677 = vrot.lane.b32.xlu0 %v12540_v15, %s9032_s13  ;;  %v6083_v41 = vmul.f32 %v13498_v19, %v12379_v59  ;;  %v6084_v28 = vmul.f32 %v13499_v34, %v12382_v54 }
 0x8f8   : > { %6679 = vrot.lane.b32.xlu1 %v12542_v61, %s9032_s13  ;;  %v6330_v22 = vpop.permute.xlu0 %6329 }
 0x8f9   : > { %v6332_v24 = vpop.permute.xlu1 %6331  ;;  %v12552_v2 = vadd.f32 %v6330_v22, %v6081_v23  ;;  %v13500_v23 = vld [vmem:[#allocation61_spill] sm:$0xff] }
 0x8fa   : > { %v12554_v25 = vadd.f32 %v6332_v24, %v6082_v43  ;;  %v6085_v43 = vmul.f32 %v13500_v23, %v12387_v33  ;;  %v13501_v24 = vld [vmem:[#allocation62_spill] sm:$0xff]  ;;  %v13503_v23 = vld [vmem:[#allocation64_spill] sm:$0xff] }
 0x8fb   : > { %6681 = vrot.lane.b32.xlu0 %v12552_v2, %s9032_s13  ;;  %v6086_v19 = vmul.f32 %v13501_v24, %v12390_v55  ;;  %v6088_v24 = vmul.f32 %v13503_v23, %v12398_v18 }
 0x8fc   : > { %6683 = vrot.lane.b32.xlu1 %v12554_v25, %s9032_s13  ;;  %v6334_v17 = vpop.permute.xlu0 %6333 }
 0x8fd   : > { %v6336_v4 = vpop.permute.xlu1 %6335  ;;  %v12564_v50 = vadd.f32 %v6334_v17, %v6083_v41 }
 0x8fe   : > { %v12566_v22 = vadd.f32 %v6336_v4, %v6084_v28  ;;  %v13502_v4 = vld [vmem:[#allocation63_spill] sm:$0xff] }
 0x8ff   : > { %6685 = vrot.lane.b32.xlu0 %v12564_v50, %s9032_s13  ;;  %v6087_v21 = vmul.f32 %v13502_v4, %v12395_v11 }
 0x900   : > { %6687 = vrot.lane.b32.xlu1 %v12566_v22, %s9032_s13  ;;  %v6338_v34 = vpop.permute.xlu0 %6337 }
 0x901   : > { %v6340_v17 = vpop.permute.xlu1 %6339  ;;  %v12578_v41 = vadd.f32 %v6338_v34, %v6085_v43 }
 0x902   : > { %v12580_v28 = vadd.f32 %v6340_v17, %v6086_v19  ;;  %v8850_v17 = vpop.eup %8849  ;;  %8881 = vtanh.f32 %v12506_v31 }
 0x903   : > { %6689 = vrot.lane.b32.xlu0 %v12578_v41, %s9032_s13  ;;  %v8852_v8 = vpop.eup %8851  ;;  %8883 = vtanh.f32 %v12516_v6 }
 0x904   : > { %6691 = vrot.lane.b32.xlu1 %v12580_v28, %s9032_s13  ;;  %v6342_v29 = vpop.permute.xlu0 %6341  ;;  %v8854_v4 = vpop.eup %8853  ;;  %8885 = vtanh.f32 %v12518_v60 }
 0x905   : > { %v6344_v43 = vpop.permute.xlu1 %6343  ;;  %v12592_v19 = vadd.f32 %v6342_v29, %v6087_v21  ;;  %v8856_v10 = vpop.eup %8855  ;;  %8887 = vtanh.f32 %v12528_v40 }
 0x906   : > { %v12594_v34 = vadd.f32 %v6344_v43, %v6088_v24  ;;  %v8858_v46 = vpop.eup %8857  ;;  %8889 = vtanh.f32 %v12530_v45 }
 0x907   : > { %6693 = vrot.lane.b32.xlu0 %v12592_v19, %s9032_s13  ;;  %v8860_v5 = vpop.eup %8859  ;;  %8891 = vtanh.f32 %v12540_v15 }
 0x908   : > { %6695 = vrot.lane.b32.xlu1 %v12594_v34, %s9032_s13  ;;  %v8862_v52 = vpop.eup %8861  ;;  %8893 = vtanh.f32 %v12542_v61 }
 0x909   : > { %v8864_v42 = vpop.eup %8863  ;;  %8895 = vtanh.f32 %v12552_v2 }
 0x90a   : > { %v8866_v56 = vpop.eup %8865  ;;  %8897 = vtanh.f32 %v12554_v25 }
 0x90b   : > { %6473 = vrot.lane.b32.xlu0 %v8848_v51, %s9031_s21  ;;  %v8868_v44 = vpop.eup %8867  ;;  %8899 = vtanh.f32 %v12564_v50 }
 0x90c   : > { %6475 = vrot.lane.b32.xlu1 %v8850_v17, %s9031_s21  ;;  %v8870_v37 = vpop.eup %8869  ;;  %8901 = vtanh.f32 %v12566_v22 }
 0x90d   : > { %v8872_v0 = vpop.eup %8871  ;;  %8903 = vtanh.f32 %v12578_v41 }
 0x90e   : > { %v8874_v62 = vpop.eup %8873  ;;  %8905 = vtanh.f32 %v12580_v28 }
 0x90f   : > { %6477 = vrot.lane.b32.xlu0 %v8852_v8, %s9031_s21  ;;  %v8876_v26 = vpop.eup %8875  ;;  %8907 = vtanh.f32 %v12592_v19 }
 0x910   : > { %6479 = vrot.lane.b32.xlu1 %v8854_v4, %s9031_s21  ;;  %v8878_v47 = vpop.eup %8877  ;;  %8909 = vtanh.f32 %v12594_v34 }
 0x911   : > { %v8880_v35 = vpop.eup %8879 }
 0x912   : > { %v8882_v31 = vpop.eup %8881 }
 0x913   : > { %6481 = vrot.lane.b32.xlu0 %v8856_v10, %s9031_s21  ;;  %v8884_v6 = vpop.eup %8883 }
 0x914   : > { %6483 = vrot.lane.b32.xlu1 %v8858_v46, %s9031_s21  ;;  %v8886_v60 = vpop.eup %8885 }
 0x915   : > { %v8888_v40 = vpop.eup %8887 }
 0x916   : > { %v8890_v45 = vpop.eup %8889 }
 0x917   : > { %6485 = vrot.lane.b32.xlu0 %v8860_v5, %s9031_s21  ;;  %v8892_v15 = vpop.eup %8891 }
 0x918   : > { %6487 = vrot.lane.b32.xlu1 %v8862_v52, %s9031_s21  ;;  %v8894_v61 = vpop.eup %8893 }
 0x919   : > { %v8896_v2 = vpop.eup %8895 }
 0x91a   : > { %v8898_v25 = vpop.eup %8897 }
 0x91b   : > { %6489 = vrot.lane.b32.xlu0 %v8864_v42, %s9031_s21  ;;  %v8900_v22 = vpop.eup %8899 }
 0x91c   : > { %6491 = vrot.lane.b32.xlu1 %v8866_v56, %s9031_s21  ;;  %v8902_v41 = vpop.eup %8901 }
 0x91d   : > { %v8904_v23 = vpop.eup %8903 }
 0x91e   : > { %v8906_v29 = vpop.eup %8905 }
 0x91f   : > { %6493 = vrot.lane.b32.xlu0 %v8868_v44, %s9031_s21  ;;  %v8908_v19 = vpop.eup %8907 }
 0x920   : > { %6495 = vrot.lane.b32.xlu1 %v8870_v37, %s9031_s21  ;;  %v8910_v51 = vpop.eup %8909 }
 0x923   : > { %6497 = vrot.lane.b32.xlu0 %v8872_v0, %s9031_s21 }
 0x924   : > { %6499 = vrot.lane.b32.xlu1 %v8874_v62, %s9031_s21 }
 0x927   : > { %6501 = vrot.lane.b32.xlu0 %v8876_v26, %s9031_s21 }
 0x928   : > { %6503 = vrot.lane.b32.xlu1 %v8878_v47, %s9031_s21 }
 0x92b   : > { %6505 = vrot.lane.b32.xlu0 %v8880_v35, %s9031_s21 }
 0x92c   : > { %6507 = vrot.lane.b32.xlu1 %v8882_v31, %s9031_s21 }
 0x92f   : > { %6509 = vrot.lane.b32.xlu0 %v8884_v6, %s9031_s21 }
 0x930   : > { %6511 = vrot.lane.b32.xlu1 %v8886_v60, %s9031_s21 }
 0x933   : > { %6513 = vrot.lane.b32.xlu0 %v8888_v40, %s9031_s21 }
 0x934   : > { %6515 = vrot.lane.b32.xlu1 %v8890_v45, %s9031_s21 }
 0x937   : > { %6517 = vrot.lane.b32.xlu0 %v8892_v15, %s9031_s21 }
 0x938   : > { %6519 = vrot.lane.b32.xlu1 %v8894_v61, %s9031_s21 }
 0x93b   : > { %6521 = vrot.lane.b32.xlu0 %v8896_v2, %s9031_s21 }
 0x93c   : > { %6523 = vrot.lane.b32.xlu1 %v8898_v25, %s9031_s21 }
 0x93d   : > { %v6634_v50 = vpop.permute.xlu0 %6633 }
 0x93e   : > { %v6636_v21 = vpop.permute.xlu1 %6635  ;;  %6729 = vst.msk [vmem:[#allocation6 + $0x100] sm:$0xff] %vm3836_vm10, %v6634_v50 }
 0x93f   : > { %6730 = vst.msk [vmem:[#allocation6 + $0x108] sm:$0xff] %vm3836_vm10, %v6636_v21  ;;  %6525 = vrot.lane.b32.xlu0 %v8900_v22, %s9031_s21 }
 0x940   : > { %6527 = vrot.lane.b32.xlu1 %v8902_v41, %s9031_s21 }
 0x941   : > { %v6638_v28 = vpop.permute.xlu0 %6637 }
 0x942   : > { %v6640_v24 = vpop.permute.xlu1 %6639  ;;  %6731 = vst.msk [vmem:[#allocation6 + $0x110] sm:$0xff] %vm3836_vm10, %v6638_v28 }
 0x943   : > { %6732 = vst.msk [vmem:[#allocation6 + $0x118] sm:$0xff] %vm3836_vm10, %v6640_v24  ;;  %6529 = vrot.lane.b32.xlu0 %v8904_v23, %s9031_s21 }
 0x944   : > { %6531 = vrot.lane.b32.xlu1 %v8906_v29, %s9031_s21 }
 0x945   : > { %v6642_v43 = vpop.permute.xlu0 %6641 }
 0x946   : > { %v6644_v34 = vpop.permute.xlu1 %6643  ;;  %6733 = vst.msk [vmem:[#allocation6 + $0x120] sm:$0xff] %vm3836_vm10, %v6642_v43 }
 0x947   : > { %6734 = vst.msk [vmem:[#allocation6 + $0x128] sm:$0xff] %vm3836_vm10, %v6644_v34  ;;  %6533 = vrot.lane.b32.xlu0 %v8908_v19, %s9031_s21 }
 0x948   : > { %6535 = vrot.lane.b32.xlu1 %v8910_v51, %s9031_s21 }
 0x949   : > { %v6646_v17 = vpop.permute.xlu0 %6645 }
 0x94a   : > { %v6648_v8 = vpop.permute.xlu1 %6647  ;;  %6735 = vst.msk [vmem:[#allocation6 + $0x130] sm:$0xff] %vm3836_vm10, %v6646_v17 }
 0x94b   : > { %6736 = vst.msk [vmem:[#allocation6 + $0x138] sm:$0xff] %vm3836_vm10, %v6648_v8 }
 0x94d   : > { %v6650_v4 = vpop.permute.xlu0 %6649 }
 0x94e   : > { %v6652_v10 = vpop.permute.xlu1 %6651  ;;  %6737 = vst.msk [vmem:[#allocation6 + $0x140] sm:$0xff] %vm3836_vm10, %v6650_v4 }
 0x94f   : > { %6738 = vst.msk [vmem:[#allocation6 + $0x148] sm:$0xff] %vm3836_vm10, %v6652_v10 }
 0x951   : > { %v6654_v46 = vpop.permute.xlu0 %6653 }
 0x952   : > { %v6656_v5 = vpop.permute.xlu1 %6655  ;;  %6739 = vst.msk [vmem:[#allocation6 + $0x150] sm:$0xff] %vm3836_vm10, %v6654_v46 }
 0x953   : > { %6740 = vst.msk [vmem:[#allocation6 + $0x158] sm:$0xff] %vm3836_vm10, %v6656_v5 }
 0x955   : > { %v6658_v52 = vpop.permute.xlu0 %6657 }
 0x956   : > { %v6660_v42 = vpop.permute.xlu1 %6659  ;;  %6741 = vst.msk [vmem:[#allocation6 + $0x160] sm:$0xff] %vm3836_vm10, %v6658_v52 }
 0x957   : > { %6742 = vst.msk [vmem:[#allocation6 + $0x168] sm:$0xff] %vm3836_vm10, %v6660_v42 }
 0x959   : > { %v6662_v56 = vpop.permute.xlu0 %6661 }
 0x95a   : > { %v6664_v44 = vpop.permute.xlu1 %6663  ;;  %6743 = vst.msk [vmem:[#allocation6 + $0x170] sm:$0xff] %vm3836_vm10, %v6662_v56 }
 0x95b   : > { %6744 = vst.msk [vmem:[#allocation6 + $0x178] sm:$0xff] %vm3836_vm10, %v6664_v44 }
 0x95d   : > { %v6666_v37 = vpop.permute.xlu0 %6665 }
 0x95e   : > { %v6668_v0 = vpop.permute.xlu1 %6667  ;;  %6745 = vst.msk [vmem:[#allocation6 + $0x180] sm:$0xff] %vm3836_vm10, %v6666_v37 }
 0x95f   : > { %6746 = vst.msk [vmem:[#allocation6 + $0x188] sm:$0xff] %vm3836_vm10, %v6668_v0 }
 0x961   : > { %v6670_v62 = vpop.permute.xlu0 %6669 }
 0x962   : > { %v6672_v26 = vpop.permute.xlu1 %6671  ;;  %6747 = vst.msk [vmem:[#allocation6 + $0x190] sm:$0xff] %vm3836_vm10, %v6670_v62 }
 0x963   : > { %6748 = vst.msk [vmem:[#allocation6 + $0x198] sm:$0xff] %vm3836_vm10, %v6672_v26 }
 0x965   : > { %v6674_v47 = vpop.permute.xlu0 %6673 }
 0x966   : > { %v6676_v35 = vpop.permute.xlu1 %6675  ;;  %6749 = vst.msk [vmem:[#allocation6 + $0x1a0] sm:$0xff] %vm3836_vm10, %v6674_v47  ;;  %v13504_v47 = vld [vmem:[#allocation10_spill] sm:$0xff] }
 0x967   : > { %6750 = vst.msk [vmem:[#allocation6 + $0x1a8] sm:$0xff] %vm3836_vm10, %v6676_v35 }
 0x969   : > { %v6678_v31 = vpop.permute.xlu0 %6677 }
 0x96a   : > { %v6680_v6 = vpop.permute.xlu1 %6679  ;;  %6751 = vst.msk [vmem:[#allocation6 + $0x1b0] sm:$0xff] %vm3836_vm10, %v6678_v31  ;;  %v13505_v31 = vld [vmem:[#allocation73_spill] sm:$0xff] }
 0x96b   : > { %6752 = vst.msk [vmem:[#allocation6 + $0x1b8] sm:$0xff] %vm3836_vm10, %v6680_v6 }
 0x96d   : > { %v6682_v60 = vpop.permute.xlu0 %6681 }
 0x96e   : > { %v6684_v40 = vpop.permute.xlu1 %6683  ;;  %6753 = vst.msk [vmem:[#allocation6 + $0x1c0] sm:$0xff] %vm3836_vm10, %v6682_v60  ;;  %v13506_v60 = vld [vmem:[#allocation11_spill] sm:$0xff] }
 0x96f   : > { %6754 = vst.msk [vmem:[#allocation6 + $0x1c8] sm:$0xff] %vm3836_vm10, %v6684_v40 }
 0x971   : > { %v6686_v45 = vpop.permute.xlu0 %6685 }
 0x972   : > { %v6688_v15 = vpop.permute.xlu1 %6687  ;;  %6755 = vst.msk [vmem:[#allocation6 + $0x1d0] sm:$0xff] %vm3836_vm10, %v6686_v45 }
 0x973   : > { %6756 = vst.msk [vmem:[#allocation6 + $0x1d8] sm:$0xff] %vm3836_vm10, %v6688_v15  ;;  %v13507_v15 = vld [vmem:[#allocation13_spill] sm:$0xff] }
 0x975   : > { %v6690_v61 = vpop.permute.xlu0 %6689 }
 0x976   : > { %v6692_v2 = vpop.permute.xlu1 %6691  ;;  %6757 = vst.msk [vmem:[#allocation6 + $0x1e0] sm:$0xff] %vm3836_vm10, %v6690_v61 }
 0x977   : > { %6758 = vst.msk [vmem:[#allocation6 + $0x1e8] sm:$0xff] %vm3836_vm10, %v6692_v2  ;;  %v13508_v2 = vld [vmem:[#allocation14_spill] sm:$0xff] }
 0x979   : > { %v6694_v25 = vpop.permute.xlu0 %6693 }
 0x97a   : > { %v6696_v50 = vpop.permute.xlu1 %6695  ;;  %6759 = vst.msk [vmem:[#allocation6 + $0x1f0] sm:$0xff] %vm3836_vm10, %v6694_v25 }
 0x97b   : > { %6760 = vst.msk [vmem:[#allocation6 + $0x1f8] sm:$0xff] %vm3836_vm10, %v6696_v50 }
 0x97d   : > { %v6474_v22 = vpop.permute.xlu0 %6473 }
 0x97e   : > { %v6476_v21 = vpop.permute.xlu1 %6475  ;;  %v12693_v41 = vmul.f32 %v6474_v22, %v12256_v58 }
 0x97f   : > { %v12696_v28 = vmul.f32 %v6476_v21, %v12258_v32 }
 0x980   : > { %6793 = vrot.lane.b32.xlu0 %v12693_v41, %s9025_s30 }
 0x981   : > { %6795 = vrot.lane.b32.xlu1 %v12696_v28, %s9025_s30  ;;  %v6478_v23 = vpop.permute.xlu0 %6477 }
 0x982   : > { %v6480_v24 = vpop.permute.xlu1 %6479  ;;  %v12703_v29 = vmul.f32 %v6478_v23, %v12265_v12 }
 0x983   : > { %v12706_v43 = vmul.f32 %v6480_v24, %v12268_v57 }
 0x984   : > { %6797 = vrot.lane.b32.xlu0 %v12703_v29, %s9025_s30 }
 0x985   : > { %6799 = vrot.lane.b32.xlu1 %v12706_v43, %s9025_s30  ;;  %v6482_v58 = vpop.permute.xlu0 %6481 }
 0x986   : > { %v6484_v32 = vpop.permute.xlu1 %6483  ;;  %v12713_v19 = vmul.f32 %v6482_v58, %v12275_v27 }
 0x987   : > { %v12716_v34 = vmul.f32 %v6484_v32, %v12278_v53 }
 0x988   : > { %6801 = vrot.lane.b32.xlu0 %v12713_v19, %s9025_s30 }
 0x989   : > { %6803 = vrot.lane.b32.xlu1 %v12716_v34, %s9025_s30  ;;  %v6486_v12 = vpop.permute.xlu0 %6485 }
 0x98a   : > { %v6488_v57 = vpop.permute.xlu1 %6487  ;;  %v12723_v51 = vmul.f32 %v6486_v12, %v12285_v7 }
 0x98b   : > { %v12726_v17 = vmul.f32 %v6488_v57, %v12288_v9 }
 0x98c   : > { %6805 = vrot.lane.b32.xlu0 %v12723_v51, %s9025_s30 }
 0x98d   : > { %6807 = vrot.lane.b32.xlu1 %v12726_v17, %s9025_s30  ;;  %v6490_v27 = vpop.permute.xlu0 %6489 }
 0x98e   : > { %v6492_v53 = vpop.permute.xlu1 %6491  ;;  %v12733_v8 = vmul.f32 %v6490_v27, %v12295_v14 }
 0x98f   : > { %v12736_v4 = vmul.f32 %v6492_v53, %v12298_v30 }
 0x990   : > { %6809 = vrot.lane.b32.xlu0 %v12733_v8, %s9025_s30 }
 0x991   : > { %6811 = vrot.lane.b32.xlu1 %v12736_v4, %s9025_s30  ;;  %v6494_v7 = vpop.permute.xlu0 %6493 }
 0x992   : > { %v6496_v9 = vpop.permute.xlu1 %6495  ;;  %v12743_v10 = vmul.f32 %v6494_v7, %v12305_v3 }
 0x993   : > { %v12746_v46 = vmul.f32 %v6496_v9, %v12308_v38 }
 0x994   : > { %6813 = vrot.lane.b32.xlu0 %v12743_v10, %s9025_s30 }
 0x995   : > { %6815 = vrot.lane.b32.xlu1 %v12746_v46, %s9025_s30  ;;  %v6498_v14 = vpop.permute.xlu0 %6497 }
 0x996   : > { %v6500_v30 = vpop.permute.xlu1 %6499  ;;  %v12753_v5 = vmul.f32 %v6498_v14, %v12315_v63 }
 0x997   : > { %v12756_v52 = vmul.f32 %v6500_v30, %v12318_v48 }
 0x998   : > { %6817 = vrot.lane.b32.xlu0 %v12753_v5, %s9025_s30 }
 0x999   : > { %6819 = vrot.lane.b32.xlu1 %v12756_v52, %s9025_s30  ;;  %v6502_v3 = vpop.permute.xlu0 %6501 }
 0x99a   : > { %v6504_v38 = vpop.permute.xlu1 %6503  ;;  %v12763_v42 = vmul.f32 %v6502_v3, %v12325_v1 }
 0x99b   : > { %v12766_v56 = vmul.f32 %v6504_v38, %v12328_v36 }
 0x99c   : > { %6821 = vrot.lane.b32.xlu0 %v12763_v42, %s9025_s30 }
 0x99d   : > { %6823 = vrot.lane.b32.xlu1 %v12766_v56, %s9025_s30  ;;  %v6506_v63 = vpop.permute.xlu0 %6505 }
 0x99e   : > { %v6508_v48 = vpop.permute.xlu1 %6507  ;;  %v12773_v44 = vmul.f32 %v6506_v63, %v12335_v20 }
 0x99f   : > { %v12776_v37 = vmul.f32 %v6508_v48, %v12338_v16 }
 0x9a0   : > { %6825 = vrot.lane.b32.xlu0 %v12773_v44, %s9025_s30 }
 0x9a1   : > { %6827 = vrot.lane.b32.xlu1 %v12776_v37, %s9025_s30  ;;  %v6510_v1 = vpop.permute.xlu0 %6509 }
 0x9a2   : > { %v6512_v36 = vpop.permute.xlu1 %6511  ;;  %v12783_v0 = vmul.f32 %v6510_v1, %v12345_v39 }
 0x9a3   : > { %v12786_v62 = vmul.f32 %v6512_v36, %v12348_v13 }
 0x9a4   : > { %6829 = vrot.lane.b32.xlu0 %v12783_v0, %s9025_s30 }
 0x9a5   : > { %6831 = vrot.lane.b32.xlu1 %v12786_v62, %s9025_s30  ;;  %v6514_v20 = vpop.permute.xlu0 %6513 }
 0x9a6   : > { %v6516_v16 = vpop.permute.xlu1 %6515  ;;  %v12793_v26 = vmul.f32 %v6514_v20, %v12355_v49 }
 0x9a7   : > { %v12796_v35 = vmul.f32 %v6516_v16, %v13504_v47 }
 0x9a8   : > { %6833 = vrot.lane.b32.xlu0 %v12793_v26, %s9025_s30 }
 0x9a9   : > { %6835 = vrot.lane.b32.xlu1 %v12796_v35, %s9025_s30  ;;  %v6518_v39 = vpop.permute.xlu0 %6517 }
 0x9aa   : > { %v6520_v13 = vpop.permute.xlu1 %6519  ;;  %v12803_v6 = vmul.f32 %v6518_v39, %v13505_v31 }
 0x9ab   : > { %v12806_v40 = vmul.f32 %v6520_v13, %v13506_v60 }
 0x9ac   : > { %6837 = vrot.lane.b32.xlu0 %v12803_v6, %s9025_s30 }
 0x9ad   : > { %6839 = vrot.lane.b32.xlu1 %v12806_v40, %s9025_s30  ;;  %v6522_v49 = vpop.permute.xlu0 %6521 }
 0x9ae   : > { %v6524_v45 = vpop.permute.xlu1 %6523  ;;  %v12813_v61 = vmul.f32 %v6522_v49, %v13507_v15 }
 0x9af   : > { %v12816_v25 = vmul.f32 %v6524_v45, %v13508_v2 }
 0x9b0   : > { %6841 = vrot.lane.b32.xlu0 %v12813_v61, %s9025_s30 }
 0x9b1   : > { %6843 = vrot.lane.b32.xlu1 %v12816_v25, %s9025_s30  ;;  %v6526_v50 = vpop.permute.xlu0 %6525 }
 0x9b2   : > { %v6528_v22 = vpop.permute.xlu1 %6527  ;;  %v12823_v21 = vmul.f32 %v6526_v50, %v12379_v59 }
 0x9b3   : > { %v12826_v23 = vmul.f32 %v6528_v22, %v12382_v54 }
 0x9b4   : > { %6845 = vrot.lane.b32.xlu0 %v12823_v21, %s9025_s30 }
 0x9b5   : > { %6847 = vrot.lane.b32.xlu1 %v12826_v23, %s9025_s30  ;;  %v6530_v24 = vpop.permute.xlu0 %6529 }
 0x9b6   : > { %v6532_v58 = vpop.permute.xlu1 %6531  ;;  %v12833_v32 = vmul.f32 %v6530_v24, %v12387_v33 }
 0x9b7   : > { %v12836_v12 = vmul.f32 %v6532_v58, %v12390_v55 }
 0x9b8   : > { %6849 = vrot.lane.b32.xlu0 %v12833_v32, %s9025_s30 }
 0x9b9   : > { %6851 = vrot.lane.b32.xlu1 %v12836_v12, %s9025_s30  ;;  %v6534_v59 = vpop.permute.xlu0 %6533 }
 0x9ba   : > { %v6536_v54 = vpop.permute.xlu1 %6535  ;;  %v12843_v57 = vmul.f32 %v6534_v59, %v12395_v11 }
 0x9bb   : > { %v12846_v27 = vmul.f32 %v6536_v54, %v12398_v18 }
 0x9bc   : > { %6853 = vrot.lane.b32.xlu0 %v12843_v57, %s9025_s30 }
 0x9bd   : > { %6855 = vrot.lane.b32.xlu1 %v12846_v27, %s9025_s30  ;;  %s7508_s30 = sshll.u32 %s9013_s27, 13  ;;  %s9033_s27 = smov [#allocation6]  }
 0x9be   : > { %s13068_s22 = scalar_lea.hbm %s13232_s6, %s7508_s30  ;;  %s8919_s30 = scalar_lea.vmem %s8918_s8, 16384 }
 0x9bf   : > { %p8921_p5 = scmp.lt.s32.totalorder %s8919_s30, %s8913_s19 }
 0x9c0   : > { %6954 = vrot.lane.b32.xlu0 %v12693_v41, %s13433_s17 }
 0x9c1   : > { %6956 = vrot.lane.b32.xlu1 %v12696_v28, %s13433_s17  ;;  %p8922_p6 = por %p8921_p5, %p8920_p3 }
 0x9c3   : > { %p8923_p7 = pnand %p8922_p6, %p8916_p1 }
 0x9c4   : > { %6958 = vrot.lane.b32.xlu0 %v12703_v29, %s13433_s17 }
 0x9c5   : > { %6960 = vrot.lane.b32.xlu1 %v12706_v43, %s13433_s17 }
 0x9c8   : > { %6962 = vrot.lane.b32.xlu0 %v12713_v19, %s13433_s17 }
 0x9c9   : > { %6964 = vrot.lane.b32.xlu1 %v12716_v34, %s13433_s17 }
 0x9cc   : > { %6966 = vrot.lane.b32.xlu0 %v12723_v51, %s13433_s17 }
 0x9cd   : > { %6968 = vrot.lane.b32.xlu1 %v12726_v17, %s13433_s17 }
 0x9d0   : > { %6970 = vrot.lane.b32.xlu0 %v12733_v8, %s13433_s17 }
 0x9d1   : > { %6972 = vrot.lane.b32.xlu1 %v12736_v4, %s13433_s17 }
 0x9d4   : > { %6974 = vrot.lane.b32.xlu0 %v12743_v10, %s13433_s17 }
 0x9d5   : > { %6976 = vrot.lane.b32.xlu1 %v12746_v46, %s13433_s17 }
 0x9d8   : > { %6978 = vrot.lane.b32.xlu0 %v12753_v5, %s13433_s17 }
 0x9d9   : > { %6980 = vrot.lane.b32.xlu1 %v12756_v52, %s13433_s17 }
 0x9dc   : > { %6982 = vrot.lane.b32.xlu0 %v12763_v42, %s13433_s17 }
 0x9dd   : > { %6984 = vrot.lane.b32.xlu1 %v12766_v56, %s13433_s17 }
 0x9e0   : > { %6986 = vrot.lane.b32.xlu0 %v12773_v44, %s13433_s17 }
 0x9e1   : > { %6988 = vrot.lane.b32.xlu1 %v12776_v37, %s13433_s17 }
 0x9e4   : > { %6990 = vrot.lane.b32.xlu0 %v12783_v0, %s13433_s17 }
 0x9e5   : > { %6992 = vrot.lane.b32.xlu1 %v12786_v62, %s13433_s17 }
 0x9e8   : > { %6994 = vrot.lane.b32.xlu0 %v12793_v26, %s13433_s17 }
 0x9e9   : > { %6996 = vrot.lane.b32.xlu1 %v12796_v35, %s13433_s17 }
 0x9ec   : > { %6998 = vrot.lane.b32.xlu0 %v12803_v6, %s13433_s17 }
 0x9ed   : > { %7000 = vrot.lane.b32.xlu1 %v12806_v40, %s13433_s17 }
 0x9f0   : > { %7002 = vrot.lane.b32.xlu0 %v12813_v61, %s13433_s17 }
 0x9f1   : > { %7004 = vrot.lane.b32.xlu1 %v12816_v25, %s13433_s17 }
 0x9f2   : > { %v6794_v33 = vpop.permute.xlu0 %6793 }
 0x9f3   : > { %v6796_v55 = vpop.permute.xlu1 %6795  ;;  %7468 = vst.msk [vmem:[%s9148_s23 + $0x100] sm:$0xff] %vm3836_vm10, %v6794_v33  ;;  %6922 = vst.msk [vmem:[#allocation2 + $0x131] sm:$0xff] %vm3836_vm10, %v6794_v33 }
 0x9f4   : > { %7469 = vst.msk [vmem:[%s9148_s23 + $0x108] sm:$0xff] %vm3836_vm10, %v6796_v55  ;;  %7006 = vrot.lane.b32.xlu0 %v12823_v21, %s13433_s17 }
 0x9f5   : > { %6923 = vst.msk [vmem:[#allocation2 + $0x139] sm:$0x7f] %vm4030_vm11, %v6796_v55  ;;  %7008 = vrot.lane.b32.xlu1 %v12826_v23, %s13433_s17 }
 0x9f6   : > { %v6798_v11 = vpop.permute.xlu0 %6797 }
 0x9f7   : > { %v6800_v18 = vpop.permute.xlu1 %6799  ;;  %7470 = vst.msk [vmem:[%s9148_s23 + $0x110] sm:$0xff] %vm3836_vm10, %v6798_v11  ;;  %6924 = vst.msk [vmem:[#allocation2 + $0x141] sm:$0xff] %vm3836_vm10, %v6798_v11 }
 0x9f8   : > { %7471 = vst.msk [vmem:[%s9148_s23 + $0x118] sm:$0xff] %vm3836_vm10, %v6800_v18  ;;  %7010 = vrot.lane.b32.xlu0 %v12833_v32, %s13433_s17 }
 0x9f9   : > { %6925 = vst.msk [vmem:[#allocation2 + $0x149] sm:$0x7f] %vm4030_vm11, %v6800_v18  ;;  %7012 = vrot.lane.b32.xlu1 %v12836_v12, %s13433_s17 }
 0x9fa   : > { %v6802_v53 = vpop.permute.xlu0 %6801 }
 0x9fb   : > { %v6804_v7 = vpop.permute.xlu1 %6803  ;;  %7472 = vst.msk [vmem:[%s9148_s23 + $0x120] sm:$0xff] %vm3836_vm10, %v6802_v53  ;;  %6926 = vst.msk [vmem:[#allocation2 + $0x151] sm:$0xff] %vm3836_vm10, %v6802_v53 }
 0x9fc   : > { %7473 = vst.msk [vmem:[%s9148_s23 + $0x128] sm:$0xff] %vm3836_vm10, %v6804_v7  ;;  %7014 = vrot.lane.b32.xlu0 %v12843_v57, %s13433_s17 }
 0x9fd   : > { %6927 = vst.msk [vmem:[#allocation2 + $0x159] sm:$0x7f] %vm4030_vm11, %v6804_v7  ;;  %7016 = vrot.lane.b32.xlu1 %v12846_v27, %s13433_s17  ;;  %s7244_s17 = sshll.u32 %s9033_s27, 4  ;;  %s13079_s17 = int_to_ptr.vmem [resolvable:$true] %s7244_s17 }
 0x9fe   : > { %v6806_v9 = vpop.permute.xlu0 %6805 }
 0x9ff   : > { %v6808_v14 = vpop.permute.xlu1 %6807  ;;  %7474 = vst.msk [vmem:[%s9148_s23 + $0x130] sm:$0xff] %vm3836_vm10, %v6806_v9  ;;  %6928 = vst.msk [vmem:[#allocation2 + $0x161] sm:$0xff] %vm3836_vm10, %v6806_v9 }
 0xa00   : > { %7475 = vst.msk [vmem:[%s9148_s23 + $0x138] sm:$0xff] %vm3836_vm10, %v6808_v14  ;;  %7082 = vrot.lane.b32.xlu0 %v12693_v41, %s13300_s16 }
 0xa01   : > { %6929 = vst.msk [vmem:[#allocation2 + $0x169] sm:$0x7f] %vm4030_vm11, %v6808_v14  ;;  %7084 = vrot.lane.b32.xlu1 %v12696_v28, %s13300_s16 }
 0xa02   : > { %v6810_v30 = vpop.permute.xlu0 %6809 }
 0xa03   : > { %v6812_v3 = vpop.permute.xlu1 %6811  ;;  %7476 = vst.msk [vmem:[%s9148_s23 + $0x140] sm:$0xff] %vm3836_vm10, %v6810_v30  ;;  %6930 = vst.msk [vmem:[#allocation2 + $0x171] sm:$0xff] %vm3836_vm10, %v6810_v30 }
 0xa04   : > { %7477 = vst.msk [vmem:[%s9148_s23 + $0x148] sm:$0xff] %vm3836_vm10, %v6812_v3  ;;  %7086 = vrot.lane.b32.xlu0 %v12703_v29, %s13300_s16 }
 0xa05   : > { %6931 = vst.msk [vmem:[#allocation2 + $0x179] sm:$0x7f] %vm4030_vm11, %v6812_v3  ;;  %7088 = vrot.lane.b32.xlu1 %v12706_v43, %s13300_s16 }
 0xa06   : > { %v6814_v41 = vpop.permute.xlu0 %6813 }
 0xa07   : > { %v6816_v28 = vpop.permute.xlu1 %6815  ;;  %7478 = vst.msk [vmem:[%s9148_s23 + $0x150] sm:$0xff] %vm3836_vm10, %v6814_v41  ;;  %6932 = vst.msk [vmem:[#allocation2 + $0x181] sm:$0xff] %vm3836_vm10, %v6814_v41 }
 0xa08   : > { %7479 = vst.msk [vmem:[%s9148_s23 + $0x158] sm:$0xff] %vm3836_vm10, %v6816_v28  ;;  %7090 = vrot.lane.b32.xlu0 %v12713_v19, %s13300_s16 }
 0xa09   : > { %6933 = vst.msk [vmem:[#allocation2 + $0x189] sm:$0x7f] %vm4030_vm11, %v6816_v28  ;;  %7092 = vrot.lane.b32.xlu1 %v12716_v34, %s13300_s16 }
 0xa0a   : > { %v6818_v29 = vpop.permute.xlu0 %6817 }
 0xa0b   : > { %v6820_v43 = vpop.permute.xlu1 %6819  ;;  %7480 = vst.msk [vmem:[%s9148_s23 + $0x160] sm:$0xff] %vm3836_vm10, %v6818_v29  ;;  %6934 = vst.msk [vmem:[#allocation2 + $0x191] sm:$0xff] %vm3836_vm10, %v6818_v29 }
 0xa0c   : > { %7481 = vst.msk [vmem:[%s9148_s23 + $0x168] sm:$0xff] %vm3836_vm10, %v6820_v43  ;;  %7094 = vrot.lane.b32.xlu0 %v12723_v51, %s13300_s16 }
 0xa0d   : > { %6935 = vst.msk [vmem:[#allocation2 + $0x199] sm:$0x7f] %vm4030_vm11, %v6820_v43  ;;  %7096 = vrot.lane.b32.xlu1 %v12726_v17, %s13300_s16 }
 0xa0e   : > { %v6822_v19 = vpop.permute.xlu0 %6821 }
 0xa0f   : > { %v6824_v34 = vpop.permute.xlu1 %6823  ;;  %7482 = vst.msk [vmem:[%s9148_s23 + $0x170] sm:$0xff] %vm3836_vm10, %v6822_v19  ;;  %6936 = vst.msk [vmem:[#allocation2 + $0x1a1] sm:$0xff] %vm3836_vm10, %v6822_v19 }
 0xa10   : > { %7483 = vst.msk [vmem:[%s9148_s23 + $0x178] sm:$0xff] %vm3836_vm10, %v6824_v34  ;;  %7098 = vrot.lane.b32.xlu0 %v12733_v8, %s13300_s16 }
 0xa11   : > { %6937 = vst.msk [vmem:[#allocation2 + $0x1a9] sm:$0x7f] %vm4030_vm11, %v6824_v34  ;;  %7100 = vrot.lane.b32.xlu1 %v12736_v4, %s13300_s16 }
 0xa12   : > { %v6826_v51 = vpop.permute.xlu0 %6825 }
 0xa13   : > { %v6828_v17 = vpop.permute.xlu1 %6827  ;;  %7484 = vst.msk [vmem:[%s9148_s23 + $0x180] sm:$0xff] %vm3836_vm10, %v6826_v51  ;;  %6938 = vst.msk [vmem:[#allocation2 + $0x1b1] sm:$0xff] %vm3836_vm10, %v6826_v51 }
 0xa14   : > { %7485 = vst.msk [vmem:[%s9148_s23 + $0x188] sm:$0xff] %vm3836_vm10, %v6828_v17  ;;  %7102 = vrot.lane.b32.xlu0 %v12743_v10, %s13300_s16 }
 0xa15   : > { %6939 = vst.msk [vmem:[#allocation2 + $0x1b9] sm:$0x7f] %vm4030_vm11, %v6828_v17  ;;  %7104 = vrot.lane.b32.xlu1 %v12746_v46, %s13300_s16 }
 0xa16   : > { %v6830_v8 = vpop.permute.xlu0 %6829 }
 0xa17   : > { %v6832_v4 = vpop.permute.xlu1 %6831  ;;  %7486 = vst.msk [vmem:[%s9148_s23 + $0x190] sm:$0xff] %vm3836_vm10, %v6830_v8  ;;  %6940 = vst.msk [vmem:[#allocation2 + $0x1c1] sm:$0xff] %vm3836_vm10, %v6830_v8 }
 0xa18   : > { %7487 = vst.msk [vmem:[%s9148_s23 + $0x198] sm:$0xff] %vm3836_vm10, %v6832_v4  ;;  %7106 = vrot.lane.b32.xlu0 %v12753_v5, %s13300_s16 }
 0xa19   : > { %6941 = vst.msk [vmem:[#allocation2 + $0x1c9] sm:$0x7f] %vm4030_vm11, %v6832_v4  ;;  %7108 = vrot.lane.b32.xlu1 %v12756_v52, %s13300_s16 }
 0xa1a   : > { %v6834_v10 = vpop.permute.xlu0 %6833 }
 0xa1b   : > { %v6836_v46 = vpop.permute.xlu1 %6835  ;;  %7488 = vst.msk [vmem:[%s9148_s23 + $0x1a0] sm:$0xff] %vm3836_vm10, %v6834_v10  ;;  %6942 = vst.msk [vmem:[#allocation2 + $0x1d1] sm:$0xff] %vm3836_vm10, %v6834_v10 }
 0xa1c   : > { %7489 = vst.msk [vmem:[%s9148_s23 + $0x1a8] sm:$0xff] %vm3836_vm10, %v6836_v46  ;;  %7110 = vrot.lane.b32.xlu0 %v12763_v42, %s13300_s16 }
 0xa1d   : > { %6943 = vst.msk [vmem:[#allocation2 + $0x1d9] sm:$0x7f] %vm4030_vm11, %v6836_v46  ;;  %7112 = vrot.lane.b32.xlu1 %v12766_v56, %s13300_s16 }
 0xa1e   : > { %v6838_v5 = vpop.permute.xlu0 %6837 }
 0xa1f   : > { %v6840_v52 = vpop.permute.xlu1 %6839  ;;  %7490 = vst.msk [vmem:[%s9148_s23 + $0x1b0] sm:$0xff] %vm3836_vm10, %v6838_v5  ;;  %6944 = vst.msk [vmem:[#allocation2 + $0x1e1] sm:$0xff] %vm3836_vm10, %v6838_v5 }
 0xa20   : > { %7491 = vst.msk [vmem:[%s9148_s23 + $0x1b8] sm:$0xff] %vm3836_vm10, %v6840_v52  ;;  %7114 = vrot.lane.b32.xlu0 %v12773_v44, %s13300_s16 }
 0xa21   : > { %6945 = vst.msk [vmem:[#allocation2 + $0x1e9] sm:$0x7f] %vm4030_vm11, %v6840_v52  ;;  %7116 = vrot.lane.b32.xlu1 %v12776_v37, %s13300_s16 }
 0xa22   : > { %v6842_v38 = vpop.permute.xlu0 %6841 }
 0xa23   : > { %v6844_v42 = vpop.permute.xlu1 %6843  ;;  %7492 = vst.msk [vmem:[%s9148_s23 + $0x1c0] sm:$0xff] %vm3836_vm10, %v6842_v38  ;;  %6946 = vst.msk [vmem:[#allocation2 + $0x1f1] sm:$0xff] %vm3836_vm10, %v6842_v38 }
 0xa24   : > { %7493 = vst.msk [vmem:[%s9148_s23 + $0x1c8] sm:$0xff] %vm3836_vm10, %v6844_v42  ;;  %7118 = vrot.lane.b32.xlu0 %v12783_v0, %s13300_s16 }
 0xa25   : > { %6947 = vst.msk [vmem:[#allocation2 + $0x1f9] sm:$0x7f] %vm4030_vm11, %v6844_v42  ;;  %7120 = vrot.lane.b32.xlu1 %v12786_v62, %s13300_s16 }
 0xa26   : > { %v6846_v56 = vpop.permute.xlu0 %6845 }
 0xa27   : > { %v6848_v63 = vpop.permute.xlu1 %6847  ;;  %7494 = vst.msk [vmem:[%s9148_s23 + $0x1d0] sm:$0xff] %vm3836_vm10, %v6846_v56  ;;  %6948 = vst.msk [vmem:[#allocation2 + $0x201] sm:$0xff] %vm3836_vm10, %v6846_v56 }
 0xa28   : > { %7495 = vst.msk [vmem:[%s9148_s23 + $0x1d8] sm:$0xff] %vm3836_vm10, %v6848_v63  ;;  %7122 = vrot.lane.b32.xlu0 %v12793_v26, %s13300_s16 }
 0xa29   : > { %6949 = vst.msk [vmem:[#allocation2 + $0x209] sm:$0x7f] %vm4030_vm11, %v6848_v63  ;;  %7124 = vrot.lane.b32.xlu1 %v12796_v35, %s13300_s16 }
 0xa2a   : > { %v6850_v48 = vpop.permute.xlu0 %6849 }
 0xa2b   : > { %v6852_v44 = vpop.permute.xlu1 %6851  ;;  %7496 = vst.msk [vmem:[%s9148_s23 + $0x1e0] sm:$0xff] %vm3836_vm10, %v6850_v48  ;;  %6950 = vst.msk [vmem:[#allocation2 + $0x211] sm:$0xff] %vm3836_vm10, %v6850_v48 }
 0xa2c   : > { %7497 = vst.msk [vmem:[%s9148_s23 + $0x1e8] sm:$0xff] %vm3836_vm10, %v6852_v44  ;;  %7126 = vrot.lane.b32.xlu0 %v12803_v6, %s13300_s16 }
 0xa2d   : > { %6951 = vst.msk [vmem:[#allocation2 + $0x219] sm:$0x7f] %vm4030_vm11, %v6852_v44  ;;  %7128 = vrot.lane.b32.xlu1 %v12806_v40, %s13300_s16 }
 0xa2e   : > { %v6854_v37 = vpop.permute.xlu0 %6853 }
 0xa2f   : > { %v6856_v1 = vpop.permute.xlu1 %6855  ;;  %7498 = vst.msk [vmem:[%s9148_s23 + $0x1f0] sm:$0xff] %vm3836_vm10, %v6854_v37  ;;  %6952 = vst.msk [vmem:[#allocation2 + $0x221] sm:$0xff] %vm3836_vm10, %v6854_v37 }
 0xa30   : > { %7499 = vst.msk [vmem:[%s9148_s23 + $0x1f8] sm:$0xff] %vm3836_vm10, %v6856_v1  ;;  %7130 = vrot.lane.b32.xlu0 %v12813_v61, %s13300_s16  ;;  %s13509_s23 = sand.u32 1, %s9005_s25  }
 0xa31   : > { %6953 = vst.msk [vmem:[#allocation2 + $0x229] sm:$0x7f] %vm4030_vm11, %v6856_v1  ;;  %7132 = vrot.lane.b32.xlu1 %v12816_v25, %s13300_s16  ;;  %s13083_s18 = scalar_lea.sflag [#allocation5], %s13509_s23 }
 0xa32   : > { %v6955_v36 = vpop.permute.xlu0 %6954 }
 0xa33   : > { %v6957_v0 = vpop.permute.xlu1 %6956  ;;  %7050 = vst.msk [vmem:[#allocation2 + $0x130] sm:$0xff] %vm4158_vm12, %v6955_v36 }
 0xa34   : > { %7051 = vst.msk [vmem:[#allocation2 + $0x138] sm:$0xff] %vm4158_vm12, %v6957_v0  ;;  %7134 = vrot.lane.b32.xlu0 %v12823_v21, %s13300_s16 }
 0xa35   : > { %7136 = vrot.lane.b32.xlu1 %v12826_v23, %s13300_s16 }
 0xa36   : > { %v6959_v62 = vpop.permute.xlu0 %6958 }
 0xa37   : > { %8926 = shalt.err (!%p8923_p7)
}
 0xa38   : > { %s8927_s21 = scalar_lea.hbm %s13068_s22, 8192  ;;  %s8931_s23 = scalar_lea.hbm %s13232_s6, 65536 }
 0xa39   : > { %p8928_p9 = scmp.ne.s32.totalorder %s13068_s22, %s8927_s21  ;;  %p8932_p12 = scmp.lt.u32.totalorder %s13068_s22, %s13232_s6 }
 0xa3a   : > { %p8933_p13 = scmp.lt.u32.totalorder %s8931_s23, %s8927_s21  ;;  %p8935_p1 = scmp.lt.u32.totalorder %s8927_s21, %s13068_s22 }
 0xa3b   : > { %p8929_p10 = pnand %p8928_p9, %p9123_p4 }
 0xa3c   : > { %p8934_p0 = por %p8933_p13, %p8932_p12 }
 0xa3d   : > { %p8930_p11 = pneg %p8929_p10 }
 0xa3e   : > { %p8936_p3 = por %p8935_p1, %p8934_p0 }
 0xa40   : > { %p8937_p5 = pnand %p8936_p3, %p8930_p11 }
 0xa42   : > { %8940 = shalt.err (!%p8937_p5)
}
 0xa43   : > { %s9035_s19 = smov 128   ;;  %s9036_s30 = smov 8   ;;  %v6961_v20 = vpop.permute.xlu1 %6960  ;;  %7052 = vst.msk [vmem:[#allocation2 + $0x140] sm:$0xff] %vm4158_vm12, %v6959_v62 }
 0xa44   : > { %8401 = dma.vmem_to_hbm [thread:$0]  (%p9123_p4), %s13071_s10, 8192, %s13068_s22, %s13083_s18, %s9035_s19, %s9035_s19, %s9036_s30  }
 0xa45   : > { %s8941_s13 = scalar_lea.vmem %s13079_s17, 8192  ;;  %p8948_p10 = scmp.lt.s32.totalorder %s13079_s17, %s13079_s17 }
 0xa46   : > { %p8942_p6 = scmp.ne.s32.totalorder %s13079_s17, %s8941_s13  ;;  %p8949_p11 = scmp.lt.s32.totalorder %s8941_s13, %s8941_s13 }
 0xa48   : > { %p8943_p7 = pnand %p8942_p6, %p9113_p2  ;;  %p8950_p12 = por %p8949_p11, %p8948_p10 }
 0xa4a   : > { %p8944_p9 = pneg %p8943_p7 }
 0xa4c   : > { %p8951_p13 = pnand %p8950_p12, %p8944_p9 }
 0xa4e   : > { %8954 = shalt.err (!%p8951_p13)
}
 0xa4f   : > { %s8955_s12 = scalar_lea.hbm %s13233_s7, 8192 }
 0xa50   : > { %p8956_p4 = scmp.ne.s32.totalorder %s13233_s7, %s8955_s12  ;;  %p8961_p3 = scmp.lt.u32.totalorder %s8955_s12, %s13233_s7 }
 0xa52   : > { %p8957_p0 = pnand %p8956_p4, %p9113_p2 }
 0xa54   : > { %p8958_p1 = pneg %p8957_p0 }
 0xa56   : > { %p8963_p5 = pnand %p8961_p3, %p8958_p1 }
 0xa58   : > { %8966 = shalt.err (!%p8963_p5)
}
 0xa59   : > { %8403 = dma.vmem_to_hbm [thread:$0]  (%p9113_p2), %s13079_s17, 8192, %s13233_s7, [#allocation7], %s9035_s19, %s9035_s19, %s9036_s30   ;;  %7053 = vst.msk [vmem:[#allocation2 + $0x148] sm:$0xff] %vm4158_vm12, %v6961_v20  ;;  %v6963_v16 = vpop.permute.xlu0 %6962  ;;  %v6965_v26 = vpop.permute.xlu1 %6964 }
 0xa5a   : > { %7138 = vrot.lane.b32.xlu0 %v12833_v32, %s13300_s16  ;;  %7140 = vrot.lane.b32.xlu1 %v12836_v12, %s13300_s16  ;;  %7054 = vst.msk [vmem:[#allocation2 + $0x150] sm:$0xff] %vm4158_vm12, %v6963_v16  ;;  %7055 = vst.msk [vmem:[#allocation2 + $0x158] sm:$0xff] %vm4158_vm12, %v6965_v26 }
 0xa5d   : > { %v6967_v47 = vpop.permute.xlu0 %6966  ;;  %v6969_v35 = vpop.permute.xlu1 %6968 }
 0xa5e   : > { %7142 = vrot.lane.b32.xlu0 %v12843_v57, %s13300_s16  ;;  %7144 = vrot.lane.b32.xlu1 %v12846_v27, %s13300_s16  ;;  %7056 = vst.msk [vmem:[#allocation2 + $0x160] sm:$0xff] %vm4158_vm12, %v6967_v47  ;;  %7057 = vst.msk [vmem:[#allocation2 + $0x168] sm:$0xff] %vm4158_vm12, %v6969_v35 }
 0xa61   : > { %v6971_v39 = vpop.permute.xlu0 %6970  ;;  %v6973_v13 = vpop.permute.xlu1 %6972 }
 0xa62   : > { %7058 = vst.msk [vmem:[#allocation2 + $0x170] sm:$0xff] %vm4158_vm12, %v6971_v39  ;;  %7059 = vst.msk [vmem:[#allocation2 + $0x178] sm:$0xff] %vm4158_vm12, %v6973_v13 }
 0xa65   : > { %v6975_v31 = vpop.permute.xlu0 %6974  ;;  %v6977_v6 = vpop.permute.xlu1 %6976 }
 0xa66   : > { %7060 = vst.msk [vmem:[#allocation2 + $0x180] sm:$0xff] %vm4158_vm12, %v6975_v31  ;;  %7061 = vst.msk [vmem:[#allocation2 + $0x188] sm:$0xff] %vm4158_vm12, %v6977_v6 }
 0xa69   : > { %v6979_v60 = vpop.permute.xlu0 %6978  ;;  %v6981_v40 = vpop.permute.xlu1 %6980 }
 0xa6a   : > { %7062 = vst.msk [vmem:[#allocation2 + $0x190] sm:$0xff] %vm4158_vm12, %v6979_v60  ;;  %7063 = vst.msk [vmem:[#allocation2 + $0x198] sm:$0xff] %vm4158_vm12, %v6981_v40 }
 0xa6d   : > { %v6983_v49 = vpop.permute.xlu0 %6982  ;;  %v6985_v45 = vpop.permute.xlu1 %6984 }
 0xa6e   : > { %7064 = vst.msk [vmem:[#allocation2 + $0x1a0] sm:$0xff] %vm4158_vm12, %v6983_v49  ;;  %7065 = vst.msk [vmem:[#allocation2 + $0x1a8] sm:$0xff] %vm4158_vm12, %v6985_v45 }
 0xa71   : > { %v6987_v15 = vpop.permute.xlu0 %6986  ;;  %v6989_v61 = vpop.permute.xlu1 %6988 }
 0xa72   : > { %7066 = vst.msk [vmem:[#allocation2 + $0x1b0] sm:$0xff] %vm4158_vm12, %v6987_v15  ;;  %7067 = vst.msk [vmem:[#allocation2 + $0x1b8] sm:$0xff] %vm4158_vm12, %v6989_v61 }
 0xa75   : > { %v6991_v2 = vpop.permute.xlu0 %6990  ;;  %v6993_v25 = vpop.permute.xlu1 %6992 }
 0xa76   : > { %7068 = vst.msk [vmem:[#allocation2 + $0x1c0] sm:$0xff] %vm4158_vm12, %v6991_v2  ;;  %7069 = vst.msk [vmem:[#allocation2 + $0x1c8] sm:$0xff] %vm4158_vm12, %v6993_v25 }
 0xa79   : > { %v6995_v50 = vpop.permute.xlu0 %6994  ;;  %v6997_v22 = vpop.permute.xlu1 %6996 }
 0xa7a   : > { %7070 = vst.msk [vmem:[#allocation2 + $0x1d0] sm:$0xff] %vm4158_vm12, %v6995_v50  ;;  %7071 = vst.msk [vmem:[#allocation2 + $0x1d8] sm:$0xff] %vm4158_vm12, %v6997_v22 }
 0xa7d   : > { %v6999_v21 = vpop.permute.xlu0 %6998  ;;  %v7001_v23 = vpop.permute.xlu1 %7000 }
 0xa7e   : > { %7072 = vst.msk [vmem:[#allocation2 + $0x1e0] sm:$0xff] %vm4158_vm12, %v6999_v21  ;;  %7073 = vst.msk [vmem:[#allocation2 + $0x1e8] sm:$0xff] %vm4158_vm12, %v7001_v23 }
 0xa81   : > { %v7003_v24 = vpop.permute.xlu0 %7002  ;;  %v7005_v58 = vpop.permute.xlu1 %7004 }
 0xa82   : > { %7074 = vst.msk [vmem:[#allocation2 + $0x1f0] sm:$0xff] %vm4158_vm12, %v7003_v24  ;;  %7075 = vst.msk [vmem:[#allocation2 + $0x1f8] sm:$0xff] %vm4158_vm12, %v7005_v58 }
 0xa85   : > { %v7007_v32 = vpop.permute.xlu0 %7006  ;;  %v7009_v12 = vpop.permute.xlu1 %7008 }
 0xa86   : > { %7076 = vst.msk [vmem:[#allocation2 + $0x200] sm:$0xff] %vm4158_vm12, %v7007_v32  ;;  %7077 = vst.msk [vmem:[#allocation2 + $0x208] sm:$0xff] %vm4158_vm12, %v7009_v12 }
 0xa89   : > { %v7011_v59 = vpop.permute.xlu0 %7010  ;;  %v7013_v54 = vpop.permute.xlu1 %7012 }
 0xa8a   : > { %7078 = vst.msk [vmem:[#allocation2 + $0x210] sm:$0xff] %vm4158_vm12, %v7011_v59  ;;  %7079 = vst.msk [vmem:[#allocation2 + $0x218] sm:$0xff] %vm4158_vm12, %v7013_v54 }
 0xa8d   : > { %v7015_v57 = vpop.permute.xlu0 %7014  ;;  %v7017_v27 = vpop.permute.xlu1 %7016 }
 0xa8e   : > { %7080 = vst.msk [vmem:[#allocation2 + $0x220] sm:$0xff] %vm4158_vm12, %v7015_v57  ;;  %7081 = vst.msk [vmem:[#allocation2 + $0x228] sm:$0xff] %vm4158_vm12, %v7017_v27 }
 0xa91   : > { %v7083_v33 = vpop.permute.xlu0 %7082  ;;  %v7085_v55 = vpop.permute.xlu1 %7084 }
 0xa92   : > { %7178 = vst.msk [vmem:[#allocation2 + $0x12f] sm:$0xfe] %vm4287_vm13, %v7083_v33 }
 0xa93   : > { %7179 = vst.msk [vmem:[#allocation2 + $0x137] sm:$0xff] %vm4289_vm14, %v7085_v55 }
 0xa95   : > { %v7087_v11 = vpop.permute.xlu0 %7086  ;;  %v7089_v18 = vpop.permute.xlu1 %7088 }
 0xa96   : > { %7180 = vst.msk [vmem:[#allocation2 + $0x13f] sm:$0xfe] %vm4287_vm13, %v7087_v11 }
 0xa97   : > { %7181 = vst.msk [vmem:[#allocation2 + $0x147] sm:$0xff] %vm4289_vm14, %v7089_v18 }
 0xa99   : > { %v7091_v53 = vpop.permute.xlu0 %7090  ;;  %v7093_v7 = vpop.permute.xlu1 %7092 }
 0xa9a   : > { %7182 = vst.msk [vmem:[#allocation2 + $0x14f] sm:$0xfe] %vm4287_vm13, %v7091_v53 }
 0xa9b   : > { %7183 = vst.msk [vmem:[#allocation2 + $0x157] sm:$0xff] %vm4289_vm14, %v7093_v7 }
 0xa9d   : > { %v7095_v9 = vpop.permute.xlu0 %7094  ;;  %v7097_v14 = vpop.permute.xlu1 %7096 }
 0xa9e   : > { %7184 = vst.msk [vmem:[#allocation2 + $0x15f] sm:$0xfe] %vm4287_vm13, %v7095_v9 }
 0xa9f   : > { %7185 = vst.msk [vmem:[#allocation2 + $0x167] sm:$0xff] %vm4289_vm14, %v7097_v14 }
 0xaa1   : > { %v7099_v30 = vpop.permute.xlu0 %7098  ;;  %v7101_v3 = vpop.permute.xlu1 %7100 }
 0xaa2   : > { %7186 = vst.msk [vmem:[#allocation2 + $0x16f] sm:$0xfe] %vm4287_vm13, %v7099_v30 }
 0xaa3   : > { %7187 = vst.msk [vmem:[#allocation2 + $0x177] sm:$0xff] %vm4289_vm14, %v7101_v3 }
 0xaa5   : > { %v7103_v41 = vpop.permute.xlu0 %7102  ;;  %v7105_v28 = vpop.permute.xlu1 %7104 }
 0xaa6   : > { %7188 = vst.msk [vmem:[#allocation2 + $0x17f] sm:$0xfe] %vm4287_vm13, %v7103_v41 }
 0xaa7   : > { %7189 = vst.msk [vmem:[#allocation2 + $0x187] sm:$0xff] %vm4289_vm14, %v7105_v28 }
 0xaa9   : > { %v7107_v29 = vpop.permute.xlu0 %7106  ;;  %v7109_v43 = vpop.permute.xlu1 %7108 }
 0xaaa   : > { %7190 = vst.msk [vmem:[#allocation2 + $0x18f] sm:$0xfe] %vm4287_vm13, %v7107_v29 }
 0xaab   : > { %7191 = vst.msk [vmem:[#allocation2 + $0x197] sm:$0xff] %vm4289_vm14, %v7109_v43 }
 0xaad   : > { %v7111_v19 = vpop.permute.xlu0 %7110  ;;  %v7113_v34 = vpop.permute.xlu1 %7112 }
 0xaae   : > { %7192 = vst.msk [vmem:[#allocation2 + $0x19f] sm:$0xfe] %vm4287_vm13, %v7111_v19 }
 0xaaf   : > { %7193 = vst.msk [vmem:[#allocation2 + $0x1a7] sm:$0xff] %vm4289_vm14, %v7113_v34 }
 0xab1   : > { %v7115_v51 = vpop.permute.xlu0 %7114  ;;  %v7117_v17 = vpop.permute.xlu1 %7116 }
 0xab2   : > { %7194 = vst.msk [vmem:[#allocation2 + $0x1af] sm:$0xfe] %vm4287_vm13, %v7115_v51 }
 0xab3   : > { %7195 = vst.msk [vmem:[#allocation2 + $0x1b7] sm:$0xff] %vm4289_vm14, %v7117_v17 }
 0xab5   : > { %v7119_v8 = vpop.permute.xlu0 %7118  ;;  %v7121_v4 = vpop.permute.xlu1 %7120 }
 0xab6   : > { %7196 = vst.msk [vmem:[#allocation2 + $0x1bf] sm:$0xfe] %vm4287_vm13, %v7119_v8 }
 0xab7   : > { %7197 = vst.msk [vmem:[#allocation2 + $0x1c7] sm:$0xff] %vm4289_vm14, %v7121_v4 }
 0xab9   : > { %v7123_v10 = vpop.permute.xlu0 %7122  ;;  %v7125_v46 = vpop.permute.xlu1 %7124 }
 0xaba   : > { %7198 = vst.msk [vmem:[#allocation2 + $0x1cf] sm:$0xfe] %vm4287_vm13, %v7123_v10 }
 0xabb   : > { %7199 = vst.msk [vmem:[#allocation2 + $0x1d7] sm:$0xff] %vm4289_vm14, %v7125_v46 }
 0xabd   : > { %v7127_v5 = vpop.permute.xlu0 %7126  ;;  %v7129_v52 = vpop.permute.xlu1 %7128 }
 0xabe   : > { %7200 = vst.msk [vmem:[#allocation2 + $0x1df] sm:$0xfe] %vm4287_vm13, %v7127_v5 }
 0xabf   : > { %7201 = vst.msk [vmem:[#allocation2 + $0x1e7] sm:$0xff] %vm4289_vm14, %v7129_v52 }
 0xac1   : > { %v7131_v38 = vpop.permute.xlu0 %7130  ;;  %v7133_v42 = vpop.permute.xlu1 %7132 }
 0xac2   : > { %7202 = vst.msk [vmem:[#allocation2 + $0x1ef] sm:$0xfe] %vm4287_vm13, %v7131_v38 }
 0xac3   : > { %7203 = vst.msk [vmem:[#allocation2 + $0x1f7] sm:$0xff] %vm4289_vm14, %v7133_v42 }
 0xac5   : > { %v7135_v56 = vpop.permute.xlu0 %7134  ;;  %v7137_v63 = vpop.permute.xlu1 %7136 }
 0xac6   : > { %7204 = vst.msk [vmem:[#allocation2 + $0x1ff] sm:$0xfe] %vm4287_vm13, %v7135_v56 }
 0xac7   : > { %7205 = vst.msk [vmem:[#allocation2 + $0x207] sm:$0xff] %vm4289_vm14, %v7137_v63 }
 0xacc   : > { %v7139_v48 = vpop.permute.xlu0 %7138  ;;  %v7141_v44 = vpop.permute.xlu1 %7140 }
 0xacd   : > { %7206 = vst.msk [vmem:[#allocation2 + $0x20f] sm:$0xfe] %vm4287_vm13, %v7139_v48 }
 0xace   : > { %7207 = vst.msk [vmem:[#allocation2 + $0x217] sm:$0xff] %vm4289_vm14, %v7141_v44 }
 0xad0   : > { %v7143_v37 = vpop.permute.xlu0 %7142  ;;  %v7145_v1 = vpop.permute.xlu1 %7144 }
 0xad1   : > { %7208 = vst.msk [vmem:[#allocation2 + $0x21f] sm:$0xfe] %vm4287_vm13, %v7143_v37 }
 0xad2   : > { %7209 = vst.msk [vmem:[#allocation2 + $0x227] sm:$0xff] %vm4289_vm14, %v7145_v1 }
 0xad3   : > { %8992 = dma.done.wait (%p9113_p2), [#allocation7], 8192  }
 0xad4   : > { %8994 = vsyncadd (%p9113_p2), [#allocation7], 4294959104 }
 0xad5 PF: > { %p8413_p6 = scmp.ge.s32.totalorder %s9021_s29, 2  ;;  %s7263_s16 = sand.u32 1, %s9001_s24  }
 0xad6   : > { %s7264_s17 = scalar_lea.sflag [#allocation5], %s7263_s16 }
 0xad7   : > { %p8408_p7 = pnand %p8413_p6, %p9130_p8 }
 0xad9   : > { %8996 = dma.done.wait (!%p8408_p7), %s7264_s17, 8192  }
 0xada   : > { %8998 = vsyncadd (!%p8408_p7), %s7264_s17, 4294959104  ;;  %s22_s29 = sadd.s32 1, %s9021_s29   ;;  %s13510_s24 = smov %s9005_s25 }
 0xadb   : > { %p19_p9 = scmp.ge.s32.totalorder %s22_s29, 10   ;;  %s13511_s25 = smov %s9009_s26 }
 0xadc   : > { %s13512_s26 = smov %s9136_s15  ;;  %s13513_s27 = smov %s9017_s28 }
 0xadd   : > { %s13514_s28 = smov %s13516_s9  ;;  %21 = sbr.rel (!%p19_p9) target bundleno = 5 (0x5), region = 103 }
 0xae4   :  { %7269 = vsyncpa [#allocation5], 1 }
 0xae5   :  { %7271 = vsyncpa [#allocation5 + $0x1], 1 }
 0xae6   :  { %7272 = vsyncpa [#allocation7], 1 }

</bundles_post_ra>
